<compile_context>
chip_gen: v7x
topology: tpu7x:2x2x1
jax: 0.10.0
libtpu: 0.0.40
codegen_flags: <defaults>
</compile_context>

<pallas_src>
import jax
import jax.numpy as jnp
from jax import lax
from jax.experimental import pallas as pl
from jax.experimental.pallas import tpu as pltpu

SLOPE = 0.2                             # LeakyReLU negative slope (WGAN-GP critic)
_LANE = 128                             # score / grad-norm outputs are lane-broadcast
_SUB = 8                                # batch rows padded to a multiple of this
_MAX_ROWS = 256                         # batch-tile rows (weights stay resident across tiles)
_VMEM_CAP = 48 * 1024 * 1024            # keep fused working set below v7x's 64 MiB / TC
_MAX_DENSE_LAYER_BYTES = 8 * 1024 * 1024


# -----------------------------------------------------------------------------
# Pallas kernels
# -----------------------------------------------------------------------------
def _critic_fwd_kernel(x_ref, w1_ref, b1_ref, w2_ref, b2_ref, w3_ref, b3_ref,
                       score_ref, m1_ref, m2_ref):
    """Fused mini-critic forward (custom_vjp primal / residual producer).

    x:(TB,D1) bf16.  Emits per-row score broadcast across 128 lanes (unmasked
    lane-dense store) plus int8 LeakyReLU sign masks as residuals (the exact
    0.2 slope is reconstructed in the backward kernel, never stored narrow).
    """
    pre1 = jnp.dot(x_ref[...], w1_ref[...],
                   preferred_element_type=jnp.float32) + b1_ref[...]
    m1 = jnp.where(pre1 > 0.0, 1.0, SLOPE)
    m1_ref[...] = jnp.where(pre1 > 0.0, 1, 0).astype(jnp.int8)
    h1 = pre1 * m1                                                   # LeakyReLU (f32)
    pre2 = jnp.dot(h1.astype(jnp.bfloat16), w2_ref[...],
                   preferred_element_type=jnp.float32) + b2_ref[...]
    m2 = jnp.where(pre2 > 0.0, 1.0, SLOPE)
    m2_ref[...] = jnp.where(pre2 > 0.0, 1, 0).astype(jnp.int8)
    h2 = pre2 * m2
    # N=1 head as VPU multiply + cross-lane reduce (no (M,1) MXU matmul).
    s = jnp.sum(h2 * w3_ref[...], axis=-1, keepdims=True)            # (TB, 1)
    score_ref[...] = jnp.broadcast_to(s, score_ref.shape) + b3_ref[...]


def _critic_bwd_kernel(g_ref, m1_ref, m2_ref, w1_ref, w2_ref, w3_ref, gx_ref):
    """Input gradient of the critic (custom_vjp backward).

    Reuses the same w1/w2 the forward fetched via transposed-RHS contractions
    (lax.dot_general contracting dim 1 of both operands) — no pre-transposed
    weight copies in HBM or VMEM.  Slope reconstructed from int8 sign masks.
    """
    m1 = jnp.where(m1_ref[...] > 0, 1.0, SLOPE)
    m2 = jnp.where(m2_ref[...] > 0, 1.0, SLOPE)
    gh2 = g_ref[...] * w3_ref[...] * m2                               # (TB, H2) f32
    gh1 = lax.dot_general(gh2.astype(jnp.bfloat16), w2_ref[...],
                          dimension_numbers=(((1,), (1,)), ((), ())),
                          preferred_element_type=jnp.float32) * m1    # (TB, H1)
    gx_ref[...] = lax.dot_general(gh1.astype(jnp.bfloat16), w1_ref[...],
                                  dimension_numbers=(((1,), (1,)), ((), ())),
                                  preferred_element_type=jnp.float32)  # (TB, D1)


def _critic_loss_kernel(x_ref, w1_ref, b1_ref, w2_ref, b2_ref, w3_ref, b3_ref,
                        score_ref, gsq_ref):
    """Fully fused forward + input-gradient for the discriminator loss.

    The gradient-penalty cotangent is the constant 1 per row, so the score,
    the LeakyReLU masks, the input gradient and the per-row squared gradient
    norm are all computed in ONE kernel: masks/h1/h2/gx never leave VMEM, only
    the lane-broadcast score and ||grad||^2 slabs are stored, and w1/w2 are
    fetched once and reused (transposed contraction) for the backward.
    """
    pre1 = jnp.dot(x_ref[...], w1_ref[...],
                   preferred_element_type=jnp.float32) + b1_ref[...]
    m1 = jnp.where(pre1 > 0.0, 1.0, SLOPE)
    h1 = pre1 * m1
    pre2 = jnp.dot(h1.astype(jnp.bfloat16), w2_ref[...],
                   preferred_element_type=jnp.float32) + b2_ref[...]
    m2 = jnp.where(pre2 > 0.0, 1.0, SLOPE)
    h2 = pre2 * m2
    s = jnp.sum(h2 * w3_ref[...], axis=-1, keepdims=True)             # (TB, 1)
    score_ref[...] = jnp.broadcast_to(s, score_ref.shape) + b3_ref[...]
    # Backward with unit cotangent, reusing the resident w1/w2 (no w.T copies).
    gh2 = w3_ref[...] * m2                                            # (TB, H2)
    gh1 = lax.dot_general(gh2.astype(jnp.bfloat16), w2_ref[...],
                          dimension_numbers=(((1,), (1,)), ((), ())),
                          preferred_element_type=jnp.float32) * m1    # (TB, H1)
    gx = lax.dot_general(gh1.astype(jnp.bfloat16), w1_ref[...],
                         dimension_numbers=(((1,), (1,)), ((), ())),
                         preferred_element_type=jnp.float32)          # (TB, D1)
    gsq = jnp.sum(gx * gx, axis=-1, keepdims=True)                    # (TB, 1)
    gsq_ref[...] = jnp.broadcast_to(gsq, gsq_ref.shape)


# -----------------------------------------------------------------------------
# Wrappers
# -----------------------------------------------------------------------------
def _pad_rows(x, rows):
    pad = rows - x.shape[0]
    if pad:
        x = jnp.pad(x, ((0, pad),) + ((0, 0),) * (x.ndim - 1))
    return x


def _row_tiling(n):
    """Pad n rows to the 8-row sublane tile; tile in _MAX_ROWS blocks if big."""
    npad = ((n + _SUB - 1) // _SUB) * _SUB
    if npad > _MAX_ROWS:
        npad = ((npad + _MAX_ROWS - 1) // _MAX_ROWS) * _MAX_ROWS
        return npad, _MAX_ROWS
    return npad, npad


def _nbytes(a):
    return int(a.size) * a.dtype.itemsize


def _vmem_limit(block_bytes):
    # 2x headroom for double-buffered batch tiles + compiler scratch, capped
    # below v7x's 64 MiB per-TensorCore VMEM.
    return int(min(max(2 * block_bytes + (4 << 20), 16 << 20), _VMEM_CAP))


def _const_spec(shape):
    # Weight block pinned to (0,0): stays resident in VMEM across batch tiles.
    return pl.BlockSpec(shape, lambda i: (0, 0))


def _weight_args(p):
    return (p["w1"], p["b1"], p["w2"], p["b2"], p["w3"], p["b3"])


def _weight_specs(p):
    return [_const_spec(a.shape) for a in _weight_args(p)]


def _run_critic_fwd(xflat, p):
    """xflat (N, D1) f32 -> (scores (N,), int8 masks m1 (Np,H1), m2 (Np,H2))."""
    n = xflat.shape[0]
    npad, tb = _row_tiling(n)
    xp = _pad_rows(xflat, npad).astype(jnp.bfloat16)
    d1 = xp.shape[1]
    h1 = p["w1"].shape[1]
    h2 = p["w2"].shape[1]
    wbytes = sum(_nbytes(a) for a in _weight_args(p))
    blk = tb * (2 * d1 + 4 * _LANE + h1 + h2)
    score, m1, m2 = pl.pallas_call(
        _critic_fwd_kernel,
        out_shape=(jax.ShapeDtypeStruct((npad, _LANE), jnp.float32),
                   jax.ShapeDtypeStruct((npad, h1), jnp.int8),
                   jax.ShapeDtypeStruct((npad, h2), jnp.int8)),
        grid=(npad // tb,),
        in_specs=[pl.BlockSpec((tb, d1), lambda i: (i, 0))] + _weight_specs(p),
        out_specs=(pl.BlockSpec((tb, _LANE), lambda i: (i, 0)),
                   pl.BlockSpec((tb, h1), lambda i: (i, 0)),
                   pl.BlockSpec((tb, h2), lambda i: (i, 0))),
        compiler_params=pltpu.CompilerParams(
            dimension_semantics=("parallel",),
            vmem_limit_bytes=_vmem_limit(wbytes + blk)),
    )(xp, *_weight_args(p))
    return score[:n, 0], m1, m2


def _run_critic_bwd(g, m1, m2, p):
    """g (N,) cotangent on scores -> d score / d xflat (N, D1)."""
    n = g.shape[0]
    npad = m1.shape[0]
    tb = min(npad, _MAX_ROWS)
    gp = _pad_rows(g.reshape(n, 1).astype(jnp.float32), npad)
    d1 = p["w1"].shape[0]
    h1 = m1.shape[1]
    h2 = m2.shape[1]
    wbytes = _nbytes(p["w1"]) + _nbytes(p["w2"]) + _nbytes(p["w3"])
    blk = tb * (4 + h1 + h2 + 4 * d1)
    gx = pl.pallas_call(
        _critic_bwd_kernel,
        out_shape=jax.ShapeDtypeStruct((npad, d1), jnp.float32),
        grid=(npad // tb,),
        in_specs=[pl.BlockSpec((tb, 1), lambda i: (i, 0)),
                  pl.BlockSpec((tb, h1), lambda i: (i, 0)),
                  pl.BlockSpec((tb, h2), lambda i: (i, 0)),
                  _const_spec(p["w1"].shape),
                  _const_spec(p["w2"].shape),
                  _const_spec(p["w3"].shape)],
        out_specs=pl.BlockSpec((tb, d1), lambda i: (i, 0)),
        compiler_params=pltpu.CompilerParams(
            dimension_semantics=("parallel",),
            vmem_limit_bytes=_vmem_limit(wbytes + blk)),
    )(gp, m1, m2, p["w1"], p["w2"], p["w3"])
    return gx[:n]


def _run_critic_loss(xflat, p):
    """xflat (N, D1) f32 -> (scores (N,), ||d score/d x||^2 (N,)) in ONE kernel."""
    n = xflat.shape[0]
    npad, tb = _row_tiling(n)
    xp = _pad_rows(xflat, npad).astype(jnp.bfloat16)
    d1 = xp.shape[1]
    wbytes = sum(_nbytes(a) for a in _weight_args(p))
    blk = tb * (2 * d1 + 8 * _LANE)
    score, gsq = pl.pallas_call(
        _critic_loss_kernel,
        out_shape=(jax.ShapeDtypeStruct((npad, _LANE), jnp.float32),
                   jax.ShapeDtypeStruct((npad, _LANE), jnp.float32)),
        grid=(npad // tb,),
        in_specs=[pl.BlockSpec((tb, d1), lambda i: (i, 0))] + _weight_specs(p),
        out_specs=(pl.BlockSpec((tb, _LANE), lambda i: (i, 0)),
                   pl.BlockSpec((tb, _LANE), lambda i: (i, 0))),
        compiler_params=pltpu.CompilerParams(
            dimension_semantics=("parallel",),
            vmem_limit_bytes=_vmem_limit(wbytes + blk)),
    )(xp, *_weight_args(p))
    return score[:n, 0], gsq[:n, 0]


def _conv_as_matrix(wconv, cin, hw):
    """Dense (cin*H*W, cout*Ho*Wo) matrix equal to a 4x4 / stride-2 / pad-1 conv.

    NCHW-flat ordering on both sides.  Built once at init (exact Jacobian of
    the linear conv map); only sensible for the small feature maps used here.
    """
    h, w = hw

    def apply(xflat):
        x = xflat.reshape(1, cin, h, w)
        y = lax.conv_general_dilated(
            x, wconv, window_strides=(2, 2), padding=((1, 1), (1, 1)),
            dimension_numbers=("NCHW", "HWIO", "NCHW"))
        return y.reshape(-1)

    jac = jax.jacfwd(apply)(jnp.zeros((cin * h * w,), jnp.float32))  # (out, in)
    return jac.T                                                      # (in, out)


# -----------------------------------------------------------------------------
# Module
# -----------------------------------------------------------------------------
class ImageAdversarySimpleWganGp:
    """WGAN-GP image adversary with a fused Pallas TPU critic.

    critic loss : mean(D_fake) - mean(D_real) + drift * mean(D_real^2) + grad-pen
    generator   : -mean(D_fake)
    """

    def __init__(self, lambda_weight, drift_mag_weight, critic_type="mini",
                 inchannels=4, image_hw=(16, 16), key=None):
        assert critic_type in ["mini", "full"]
        # TODO(synk): networks.wgan_helpers.WGANGPDiscriminator64 ('full') is not
        # available; both critic types use the mini structure (2 convs + head).
        self.lambda_weight = float(lambda_weight)
        self.drift_mag_weight = float(drift_mag_weight)
        self.noise_sigma = None
        if key is None:
            key = jax.random.PRNGKey(0)
        h, w = image_hw
        assert h % 4 == 0 and w % 4 == 0
        c1, c2 = 32, 64                      # channel widths of the mini critic
        ks = jax.random.split(key, 3)
        s = 0.05
        # Conv-layout weights (weight sharing preserved in the parameterisation)
        k1 = s * jax.random.normal(ks[0], (4, 4, inchannels, c1), jnp.float32)
        k2 = s * jax.random.normal(ks[1], (4, 4, c1, c2), jnp.float32)
        w3 = s * jax.random.normal(ks[2], (c2 * (h // 4) * (w // 4),), jnp.float32)
        b1 = jnp.zeros((c1,), jnp.float32)
        b2 = jnp.zeros((c2,), jnp.float32)
        b3 = 0.0
        # Convs lowered once to dense per-layer matrices so the whole critic is
        # three MXU matmuls inside one Pallas kernel (bf16 storage, f32 accum).
        w1_big = _conv_as_matrix(k1, inchannels, (h, w))            # (D1, H1)
        w2_big = _conv_as_matrix(k2, c1, (h // 2, w // 2))          # (H1, H2)
        # TODO(synk): for larger image_hw / the 'full' critic, fall back to a
        # K-tiled grid or a direct-conv (in-kernel im2col) layer instead of the
        # dense Jacobian — the guard below makes that a hard error, not a cliff.
        for name, mat in (("conv1", w1_big), ("conv2", w2_big)):
            nbytes = 2 * int(mat.size)       # bf16 storage
            assert nbytes <= _MAX_DENSE_LAYER_BYTES, (
                f"{name}: dense conv-as-matrix lowering needs {nbytes} bytes; "
                "only supported for small feature maps (must fit v7x VMEM).")
        # TODO(synk): quantized weight storage (fp8 on v7x, int8/int4 on v5e/v6e)
        # with per-column scales would halve the dominant weight DMA; kept bf16.
        self._params = dict(
            w1=w1_big.astype(jnp.bfloat16),
            b1=jnp.repeat(b1, (h // 2) * (w // 2)).reshape(1, -1),
            w2=w2_big.astype(jnp.bfloat16),
            b2=jnp.repeat(b2, (h // 4) * (w // 4)).reshape(1, -1),
            w3=w3.reshape(1, -1),
            b3=jnp.full((1, _LANE), b3, jnp.float32),
        )
        params = self._params
        lam = self.lambda_weight
        drift = self.drift_mag_weight

        # Critic score, differentiable w.r.t. the image input (used when
        # training the generator).  Forward and backward are one fused Pallas
        # kernel each.
        # TODO(synk): parameter gradients (and the second-order grads needed to
        # train the critic through the gradient penalty) are not wired up.
        @jax.custom_vjp
        def score_fn(xflat):
            scores, _, _ = _run_critic_fwd(xflat, params)
            return scores

        def score_fwd(xflat):
            scores, m1, m2 = _run_critic_fwd(xflat, params)
            return scores, (m1, m2)

        def score_bwd(res, g):
            m1, m2 = res
            return (_run_critic_bwd(g, m1, m2, params),)

        score_fn.defvjp(score_fwd, score_bwd)
        self._score_fn = score_fn

        def gen_loss(I_fake):
            xflat = I_fake.reshape(I_fake.shape[0], -1).astype(jnp.float32)
            return -jnp.mean(score_fn(xflat))            # wasserstein_loss_gen

        def dis_loss(I_real, I_fake, gp_key):
            b = I_real.shape[0]
            eps = jax.random.uniform(gp_key, (b, 1, 1, 1), jnp.float32)
            x_hat = eps * I_real + (1.0 - eps) * I_fake
            # ONE fused fwd+bwd kernel over [real ; fake ; x_hat]: the GP
            # cotangent is the constant 1, so scores and ||d score/d x||^2 both
            # come out of a single pallas_call (weights fetched once, no mask /
            # gx round-trip through HBM).
            xs = jnp.concatenate([I_real, I_fake, x_hat], axis=0)
            xs = xs.reshape(3 * b, -1).astype(jnp.float32)
            scores, gsq = _run_critic_loss(xs, params)
            d_real, d_fake = scores[:b], scores[b:2 * b]
            # wasserstein_loss_dis with drift regularisation on the real scores
            l1 = (jnp.mean(d_fake) - jnp.mean(d_real)
                  + drift * jnp.mean(d_real ** 2))
            # TODO(synk): at training batch sizes, restrict the in-kernel
            # backward to the x_hat rows only (3x fewer backward rows).
            norms = jnp.sqrt(gsq[2 * b:] + 1e-12)
            l2 = lam * jnp.mean((norms - 1.0) ** 2)      # gradient penalty
            return l1 + l2

        # Whole losses under a single jit so pad / cast / reshape / concatenate
        # fuse with the kernel launch instead of separate HBM round-trips.
        self._gen_loss = jax.jit(gen_loss)
        self._dis_loss = jax.jit(dis_loss)

    # ----- critic forward (the `self.f` network) ------------------------------
    def f(self, x_nchw):
        b = x_nchw.shape[0]
        return self._score_fn(x_nchw.reshape(b, -1).astype(jnp.float32))  # (B,)

    # ----- losses --------------------------------------------------------------
    def compute_loss_for_generator(self, I):
        return self._gen_loss(I)

    def __call__(self, for_gen, I_fake, I_real=None, compute_hyp_loss=False,
                 I1=None, I2=None, p=None, gp_key=None):
        if for_gen:
            return self.compute_loss_for_generator(I_fake)
        elif compute_hyp_loss:
            # TODO(synk): hyp_weighted_perceptual_loss depends on internals of the
            # unavailable networks.wgan_helpers discriminator; not implemented.
            raise NotImplementedError("hyp_weighted_perceptual_loss not available")
        else:
            if gp_key is None:
                gp_key = jax.random.PRNGKey(1)
            return self._dis_loss(I_real, I_fake, gp_key)


# -----------------------------------------------------------------------------
if __name__ == "__main__":
    key = jax.random.PRNGKey(0)
    k_real, k_fake, k_params, k_gp = jax.random.split(key, 4)

    B, C, H, W = 2, 4, 16, 16
    I_real = jax.random.normal(k_real, (B, C, H, W), jnp.float32)
    I_fake = jax.random.normal(k_fake, (B, C, H, W), jnp.float32)

    adv = ImageAdversarySimpleWganGp(
        lambda_weight=10.0, drift_mag_weight=1e-3, critic_type="mini",
        inchannels=C, image_hw=(H, W), key=k_params)

    gen_loss = adv(for_gen=True, I_fake=I_fake)
    critic_loss = adv(for_gen=False, I_fake=I_fake, I_real=I_real, gp_key=k_gp)
    # Input-gradient path (generator training direction) through the custom_vjp.
    g_fake = jax.grad(lambda x: -jnp.mean(adv.f(x)))(I_fake)

    jax.block_until_ready((gen_loss, critic_loss, g_fake))
    assert jnp.isfinite(gen_loss) and jnp.isfinite(critic_loss)
    assert bool(jnp.all(jnp.isfinite(g_fake)))
    print("KERNEL_OK")
</pallas_src>

<mosaic_0001>
module attributes {stable_mosaic.version = 11 : i64} {
  func.func @_critic_fwd_kernel(%arg0: i32, %arg1: memref<8x1024xbf16, #tpu.memory_space<vmem>>, %arg2: memref<1024x2048xbf16, #tpu.memory_space<vmem>>, %arg3: memref<1x2048xf32, #tpu.memory_space<vmem>>, %arg4: memref<2048x1024xbf16, #tpu.memory_space<vmem>>, %arg5: memref<1x1024xf32, #tpu.memory_space<vmem>>, %arg6: memref<1x1024xf32, #tpu.memory_space<vmem>>, %arg7: memref<1x128xf32, #tpu.memory_space<vmem>>, %arg8: memref<8x128xf32, #tpu.memory_space<vmem>>, %arg9: memref<8x2048xi8, #tpu.memory_space<vmem>>, %arg10: memref<8x1024xi8, #tpu.memory_space<vmem>>) attributes {dimension_semantics = [#tpu.dimension_semantics<parallel>], iteration_bounds = array<i64: 1>, scalar_prefetch = 0 : i64, scratch_operands = 0 : i64, tpu.core_type = #tpu.core_type<tc>, window_params = [{transform_indices = @transform_0, window_bounds = array<i64: 8, 1024>}, {pipeline_mode = #tpu.pipeline_mode<synchronous>, transform_indices = @transform_1, window_bounds = array<i64: 1024, 2048>}, {pipeline_mode = #tpu.pipeline_mode<synchronous>, transform_indices = @transform_2, window_bounds = array<i64: 1, 2048>}, {pipeline_mode = #tpu.pipeline_mode<synchronous>, transform_indices = @transform_3, window_bounds = array<i64: 2048, 1024>}, {pipeline_mode = #tpu.pipeline_mode<synchronous>, transform_indices = @transform_4, window_bounds = array<i64: 1, 1024>}, {pipeline_mode = #tpu.pipeline_mode<synchronous>, transform_indices = @transform_5, window_bounds = array<i64: 1, 1024>}, {pipeline_mode = #tpu.pipeline_mode<synchronous>, transform_indices = @transform_6, window_bounds = array<i64: 1, 128>}, {transform_indices = @transform_7, window_bounds = array<i64: 8, 128>}, {transform_indices = @transform_8, window_bounds = array<i64: 8, 2048>}, {transform_indices = @transform_9, window_bounds = array<i64: 8, 1024>}]} {
    %c0 = arith.constant 0 : index
    %c0_0 = arith.constant 0 : index
    %0 = vector.load %arg1[%c0, %c0_0] : memref<8x1024xbf16, #tpu.memory_space<vmem>>, vector<8x1024xbf16>
    %c0_1 = arith.constant 0 : index
    %c0_2 = arith.constant 0 : index
    %1 = vector.load %arg2[%c0_1, %c0_2] : memref<1024x2048xbf16, #tpu.memory_space<vmem>>, vector<1024x2048xbf16>
    %cst = arith.constant dense<0.000000e+00> : vector<8x2048xf32>
    %2 = tpu.matmul %0, %1, %cst {dimension_numbers = #tpu.dot_dimension_numbers<[1], [0], [0], [1], [0, 0, 1, 1], [], []>} : vector<8x1024xbf16>, vector<1024x2048xbf16>, vector<8x2048xf32> -> vector<8x2048xf32>
    %c0_3 = arith.constant 0 : index
    %c0_4 = arith.constant 0 : index
    %3 = vector.load %arg3[%c0_3, %c0_4] : memref<1x2048xf32, #tpu.memory_space<vmem>>, vector<1x2048xf32>
    %4 = vector.broadcast %3 : vector<1x2048xf32> to vector<8x2048xf32>
    %5 = arith.addf %2, %4 : vector<8x2048xf32>
    %cst_5 = arith.constant 0.000000e+00 : f32
    %6 = vector.broadcast %cst_5 : f32 to vector<8x2048xf32>
    %7 = arith.cmpf ogt, %5, %6 : vector<8x2048xf32>
    %cst_6 = arith.constant 1.000000e+00 : f32
    %cst_7 = arith.constant 2.000000e-01 : f32
    %8 = vector.broadcast %cst_6 : f32 to vector<8x2048xf32>
    %9 = vector.broadcast %cst_7 : f32 to vector<8x2048xf32>
    %10 = arith.select %7, %8, %9 : vector<8x2048xi1>, vector<8x2048xf32>
    %cst_8 = arith.constant 0.000000e+00 : f32
    %11 = vector.broadcast %cst_8 : f32 to vector<8x2048xf32>
    %12 = arith.cmpf ogt, %5, %11 : vector<8x2048xf32>
    %c1_i32 = arith.constant 1 : i32
    %c0_i32 = arith.constant 0 : i32
    %13 = vector.broadcast %c1_i32 : i32 to vector<8x2048xi32>
    %14 = vector.broadcast %c0_i32 : i32 to vector<8x2048xi32>
    %15 = arith.select %12, %13, %14 : vector<8x2048xi1>, vector<8x2048xi32>
    %16 = arith.trunci %15 : vector<8x2048xi32> to vector<8x2048xi8>
    %c0_9 = arith.constant 0 : index
    %c0_10 = arith.constant 0 : index
    %17 = vector.load %arg9[%c0_9, %c0_10] : memref<8x2048xi8, #tpu.memory_space<vmem>>, vector<8x2048xi8>
    tpu.vector_store %arg9[%c0_9, %c0_10], %16 {strides = array<i32>} : memref<8x2048xi8, #tpu.memory_space<vmem>>, vector<8x2048xi8>,
    %18 = arith.mulf %5, %10 : vector<8x2048xf32>
    %19 = arith.truncf %18 : vector<8x2048xf32> to vector<8x2048xbf16>
    %c0_11 = arith.constant 0 : index
    %c0_12 = arith.constant 0 : index
    %20 = vector.load %arg4[%c0_11, %c0_12] : memref<2048x1024xbf16, #tpu.memory_space<vmem>>, vector<2048x1024xbf16>
    %cst_13 = arith.constant dense<0.000000e+00> : vector<8x1024xf32>
    %21 = tpu.matmul %19, %20, %cst_13 {dimension_numbers = #tpu.dot_dimension_numbers<[1], [0], [0], [1], [0, 0, 1, 1], [], []>} : vector<8x2048xbf16>, vector<2048x1024xbf16>, vector<8x1024xf32> -> vector<8x1024xf32>
    %c0_14 = arith.constant 0 : index
    %c0_15 = arith.constant 0 : index
    %22 = vector.load %arg5[%c0_14, %c0_15] : memref<1x1024xf32, #tpu.memory_space<vmem>>, vector<1x1024xf32>
    %23 = vector.broadcast %22 : vector<1x1024xf32> to vector<8x1024xf32>
    %24 = arith.addf %21, %23 : vector<8x1024xf32>
    %cst_16 = arith.constant 0.000000e+00 : f32
    %25 = vector.broadcast %cst_16 : f32 to vector<8x1024xf32>
    %26 = arith.cmpf ogt, %24, %25 : vector<8x1024xf32>
    %cst_17 = arith.constant 1.000000e+00 : f32
    %cst_18 = arith.constant 2.000000e-01 : f32
    %27 = vector.broadcast %cst_17 : f32 to vector<8x1024xf32>
    %28 = vector.broadcast %cst_18 : f32 to vector<8x1024xf32>
    %29 = arith.select %26, %27, %28 : vector<8x1024xi1>, vector<8x1024xf32>
    %cst_19 = arith.constant 0.000000e+00 : f32
    %30 = vector.broadcast %cst_19 : f32 to vector<8x1024xf32>
    %31 = arith.cmpf ogt, %24, %30 : vector<8x1024xf32>
    %c1_i32_20 = arith.constant 1 : i32
    %c0_i32_21 = arith.constant 0 : i32
    %32 = vector.broadcast %c1_i32_20 : i32 to vector<8x1024xi32>
    %33 = vector.broadcast %c0_i32_21 : i32 to vector<8x1024xi32>
    %34 = arith.select %31, %32, %33 : vector<8x1024xi1>, vector<8x1024xi32>
    %35 = arith.trunci %34 : vector<8x1024xi32> to vector<8x1024xi8>
    %c0_22 = arith.constant 0 : index
    %c0_23 = arith.constant 0 : index
    %36 = vector.load %arg10[%c0_22, %c0_23] : memref<8x1024xi8, #tpu.memory_space<vmem>>, vector<8x1024xi8>
    tpu.vector_store %arg10[%c0_22, %c0_23], %35 {strides = array<i32>} : memref<8x1024xi8, #tpu.memory_space<vmem>>, vector<8x1024xi8>,
    %37 = arith.mulf %24, %29 : vector<8x1024xf32>
    %c0_24 = arith.constant 0 : index
    %c0_25 = arith.constant 0 : index
    %38 = vector.load %arg6[%c0_24, %c0_25] : memref<1x1024xf32, #tpu.memory_space<vmem>>, vector<1x1024xf32>
    %39 = vector.broadcast %38 : vector<1x1024xf32> to vector<8x1024xf32>
    %40 = arith.mulf %37, %39 : vector<8x1024xf32>
    %cst_26 = arith.constant dense<0.000000e+00> : vector<8xf32>
    %41 = vector.multi_reduction <add>, %40, %cst_26 [1] : vector<8x1024xf32> to vector<8xf32>
    %42 = vector.shape_cast %41 : vector<8xf32> to vector<8x1xf32>
    %43 = vector.shape_cast %42 : vector<8x1xf32> to vector<8x1xf32>
    %44 = vector.broadcast %43 : vector<8x1xf32> to vector<8x128xf32>
    %c0_27 = arith.constant 0 : index
    %c0_28 = arith.constant 0 : index
    %45 = vector.load %arg7[%c0_27, %c0_28] : memref<1x128xf32, #tpu.memory_space<vmem>>, vector<1x128xf32>
    %46 = vector.broadcast %45 : vector<1x128xf32> to vector<8x128xf32>
    %47 = arith.addf %44, %46 : vector<8x128xf32>
    %c0_29 = arith.constant 0 : index
    %c0_30 = arith.constant 0 : index
    %48 = vector.load %arg8[%c0_29, %c0_30] : memref<8x128xf32, #tpu.memory_space<vmem>>, vector<8x128xf32>
    tpu.vector_store %arg8[%c0_29, %c0_30], %47 {strides = array<i32>} : memref<8x128xf32, #tpu.memory_space<vmem>>, vector<8x128xf32>,
    return
  }
  func.func @transform_0(%arg0: i32) -> (i32, i32) {
    %c0_i32 = arith.constant 0 : i32
    %c0_i32_0 = arith.constant 0 : i32
    return %arg0, %c0_i32 : i32, i32
  }
  func.func @transform_1(%arg0: i32) -> (i32, i32) {
    %c0_i32 = arith.constant 0 : i32
    %c0_i32_0 = arith.constant 0 : i32
    %c0_i32_1 = arith.constant 0 : i32
    return %c0_i32, %c0_i32_0 : i32, i32
  }
  func.func @transform_2(%arg0: i32) -> (i32, i32) {
    %c0_i32 = arith.constant 0 : i32
    %c0_i32_0 = arith.constant 0 : i32
    %c0_i32_1 = arith.constant 0 : i32
    return %c0_i32, %c0_i32_0 : i32, i32
  }
  func.func @transform_3(%arg0: i32) -> (i32, i32) {
    %c0_i32 = arith.constant 0 : i32
    %c0_i32_0 = arith.constant 0 : i32
    %c0_i32_1 = arith.constant 0 : i32
    return %c0_i32, %c0_i32_0 : i32, i32
  }
  func.func @transform_4(%arg0: i32) -> (i32, i32) {
    %c0_i32 = arith.constant 0 : i32
    %c0_i32_0 = arith.constant 0 : i32
    %c0_i32_1 = arith.constant 0 : i32
    return %c0_i32, %c0_i32_0 : i32, i32
  }
  func.func @transform_5(%arg0: i32) -> (i32, i32) {
    %c0_i32 = arith.constant 0 : i32
    %c0_i32_0 = arith.constant 0 : i32
    %c0_i32_1 = arith.constant 0 : i32
    return %c0_i32, %c0_i32_0 : i32, i32
  }
  func.func @transform_6(%arg0: i32) -> (i32, i32) {
    %c0_i32 = arith.constant 0 : i32
    %c0_i32_0 = arith.constant 0 : i32
    %c0_i32_1 = arith.constant 0 : i32
    return %c0_i32, %c0_i32_0 : i32, i32
  }
  func.func @transform_7(%arg0: i32) -> (i32, i32) {
    %c0_i32 = arith.constant 0 : i32
    %c0_i32_0 = arith.constant 0 : i32
    return %arg0, %c0_i32 : i32, i32
  }
  func.func @transform_8(%arg0: i32) -> (i32, i32) {
    %c0_i32 = arith.constant 0 : i32
    %c0_i32_0 = arith.constant 0 : i32
    return %arg0, %c0_i32 : i32, i32
  }
  func.func @transform_9(%arg0: i32) -> (i32, i32) {
    %c0_i32 = arith.constant 0 : i32
    %c0_i32_0 = arith.constant 0 : i32
    return %arg0, %c0_i32 : i32, i32
  }
}

</mosaic_0001>

<bundles_post_ra>
// kernel: gen_loss.1
= control target key start
LH: loop header
LB: loop body
LE: loop exit
PB: predicated region body
PF: predicated region fallthrough
CT: control target
= control target key end

     0   :  { %15 = vsyncpa [#allocation3], 0  ;;  %s24373_s0 = inlined_call_operand.vmem [shape: bf16[8,1024], index: 0, kind: input, shape index: {}]   ;;  %s24374_s1 = inlined_call_operand.vmem [shape: bf16[1024,2048], index: 1, kind: input, shape index: {}]   ;;  %s24375_s2 = inlined_call_operand.vmem [shape: f32[1,2048], index: 2, kind: input, shape index: {}]   ;;  %s24376_s3 = inlined_call_operand.vmem [shape: bf16[2048,1024], index: 3, kind: input, shape index: {}]   ;;  %s24377_s4 = inlined_call_operand.vmem [shape: f32[1,1024], index: 4, kind: input, shape index: {}]   ;;  %s24378_s5 = inlined_call_operand.vmem [shape: f32[1,1024], index: 5, kind: input, shape index: {}]   ;;  %s24379_s6 = inlined_call_operand.vmem [shape: f32[1,128], index: 6, kind: input, shape index: {}]   ;;  %s24380_s7 = inlined_call_operand.vmem [shape: f32[8,128], index: 7, kind: output, shape index: {0}]   ;;  %s24381_s8 = inlined_call_operand.hbm [shape: s8[8,2048], index: 8, kind: output, shape index: {1}]   ;;  %s24382_s9 = inlined_call_operand.hbm [shape: s8[8,1024], index: 9, kind: output, shape index: {2}]  }
   0x1   :  { %v35_v0 = vld [vmem:[%s24374_s1] sm:$0xff]  ;;  %v36_v2 = vld [vmem:[%s24374_s1 + $0x8] sm:$0xff] }
   0x2   :  { %v43_v1 = vld [vmem:[%s24374_s1 + $0x40] sm:$0xff]  ;;  %v44_v4 = vld [vmem:[%s24374_s1 + $0x48] sm:$0xff] }
   0x3   :  { %v15346_v3 = vcombine.high %v35_v0, %v43_v1  ;;  %v15345_v5 = vcombine.low %v35_v0, %v43_v1  ;;  %v51_v6 = vld [vmem:[%s24374_s1 + $0x80] sm:$0xff]  ;;  %v15348_v8 = vcombine.high %v36_v2, %v44_v4  ;;  %v15347_v9 = vcombine.low %v36_v2, %v44_v4  ;;  %v52_v11 = vld [vmem:[%s24374_s1 + $0x88] sm:$0xff] }
   0x4   :  { %v59_v7 = vld [vmem:[%s24374_s1 + $0xc0] sm:$0xff]  ;;  %v60_v12 = vld [vmem:[%s24374_s1 + $0xc8] sm:$0xff] }
   0x5   :  { %v15362_v10 = vcombine.high %v51_v6, %v59_v7  ;;  %v67_v13 = vld [vmem:[%s24374_s1 + $0x100] sm:$0xff]  ;;  %6291 = vmatprep.subr.bf16.mxu0 %v15346_v3  ;;  %v15364_v14 = vcombine.high %v52_v11, %v60_v12  ;;  %v68_v16 = vld [vmem:[%s24374_s1 + $0x108] sm:$0xff]  ;;  %6455 = vmatprep.subr.bf16.mxu1 %v15348_v8  ;;  %v15361_v18 = vcombine.low %v51_v6, %v59_v7 }
   0x6   :  { %v75_v15 = vld [vmem:[%s24374_s1 + $0x140] sm:$0xff]  ;;  %v76_v17 = vld [vmem:[%s24374_s1 + $0x148] sm:$0xff]  ;;  %6292 = vmatpush1.bf16.msra.mxu0 %v15345_v5  ;;  %6456 = vmatpush1.bf16.msra.mxu1 %v15347_v9  ;;  %v15363_v19 = vcombine.low %v52_v11, %v60_v12 }
   0x7   :  { %6293 = vmatprep.subr.bf16.mxu0 %v15362_v10  ;;  %v15378_v20 = vcombine.high %v67_v13, %v75_v15  ;;  %6457 = vmatprep.subr.bf16.mxu1 %v15364_v14  ;;  %v15380_v21 = vcombine.high %v68_v16, %v76_v17  ;;  %v83_v22 = vld [vmem:[%s24374_s1 + $0x180] sm:$0xff]  ;;  %v84_v24 = vld [vmem:[%s24374_s1 + $0x188] sm:$0xff]  ;;  %v15377_v26 = vcombine.low %v67_v13, %v75_v15 }
   0x8   :  { %v91_v23 = vld [vmem:[%s24374_s1 + $0x1c0] sm:$0xff]  ;;  %v92_v25 = vld [vmem:[%s24374_s1 + $0x1c8] sm:$0xff]  ;;  %v15379_v27 = vcombine.low %v68_v16, %v76_v17 }
   0x9   :  { %v15394_v28 = vcombine.high %v83_v22, %v91_v23  ;;  %v15396_v29 = vcombine.high %v84_v24, %v92_v25  ;;  %v99_v30 = vld [vmem:[%s24374_s1 + $0x200] sm:$0xff]  ;;  %v100_v32 = vld [vmem:[%s24374_s1 + $0x208] sm:$0xff]  ;;  %v15393_v34 = vcombine.low %v83_v22, %v91_v23  ;;  %v15395_v35 = vcombine.low %v84_v24, %v92_v25 }
   0xa   :  { %6294 = vmatpush1.bf16.msra.mxu0 %v15361_v18  ;;  %6458 = vmatpush1.bf16.msra.mxu1 %v15363_v19  ;;  %v107_v31 = vld [vmem:[%s24374_s1 + $0x240] sm:$0xff]  ;;  %v108_v33 = vld [vmem:[%s24374_s1 + $0x248] sm:$0xff] }
   0xb   :  { %6295 = vmatprep.subr.bf16.mxu0 %v15378_v20  ;;  %6459 = vmatprep.subr.bf16.mxu1 %v15380_v21  ;;  %v15410_v36 = vcombine.high %v99_v30, %v107_v31  ;;  %v15412_v37 = vcombine.high %v100_v32, %v108_v33  ;;  %v115_v38 = vld [vmem:[%s24374_s1 + $0x280] sm:$0xff]  ;;  %v116_v40 = vld [vmem:[%s24374_s1 + $0x288] sm:$0xff]  ;;  %v15409_v42 = vcombine.low %v99_v30, %v107_v31 }
   0xc   :  { %v123_v39 = vld [vmem:[%s24374_s1 + $0x2c0] sm:$0xff]  ;;  %v124_v41 = vld [vmem:[%s24374_s1 + $0x2c8] sm:$0xff]  ;;  %v15411_v43 = vcombine.low %v100_v32, %v108_v33 }
   0xd   :  { %v15426_v44 = vcombine.high %v115_v38, %v123_v39  ;;  %v15428_v45 = vcombine.high %v116_v40, %v124_v41  ;;  %v131_v46 = vld [vmem:[%s24374_s1 + $0x300] sm:$0xff]  ;;  %v132_v48 = vld [vmem:[%s24374_s1 + $0x308] sm:$0xff]  ;;  %v15425_v50 = vcombine.low %v115_v38, %v123_v39  ;;  %v15427_v51 = vcombine.low %v116_v40, %v124_v41 }
   0xe   :  { %6296 = vmatpush1.bf16.msra.mxu0 %v15377_v26  ;;  %6460 = vmatpush1.bf16.msra.mxu1 %v15379_v27  ;;  %v139_v47 = vld [vmem:[%s24374_s1 + $0x340] sm:$0xff]  ;;  %v140_v49 = vld [vmem:[%s24374_s1 + $0x348] sm:$0xff] }
   0xf   :  { %6297 = vmatprep.subr.bf16.mxu0 %v15394_v28  ;;  %6461 = vmatprep.subr.bf16.mxu1 %v15396_v29  ;;  %v15442_v52 = vcombine.high %v131_v46, %v139_v47  ;;  %v17831_v53 = vld [vmem:[%s24373_s0] sm:$0xff]  ;;  %v15444_v54 = vcombine.high %v132_v48, %v140_v49  ;;  %v148_v58 = vld [vmem:[%s24374_s1 + $0x388] sm:$0xff]  ;;  %v15441_v60 = vcombine.low %v131_v46, %v139_v47 }
  0x10   :  { %v147_v55 = vld [vmem:[%s24374_s1 + $0x380] sm:$0xff]  ;;  %v17841_v57 = vcombine.high %v17831_v53, %v17831_v53  ;;  %v156_v59 = vld [vmem:[%s24374_s1 + $0x3c8] sm:$0xff]  ;;  %v15443_v61 = vcombine.low %v132_v48, %v140_v49 }
  0x11   :  { %v155_v56 = vld [vmem:[%s24374_s1 + $0x3c0] sm:$0xff]  ;;  %v15460_v63 = vcombine.high %v148_v58, %v156_v59  ;;  %v164_v2 = vld [vmem:[%s24374_s1 + $0x408] sm:$0xff]  ;;  %v15459_v5 = vcombine.low %v148_v58, %v156_v59 }
  0x12   :  { %6298 = vmatpush1.bf16.msra.mxu0 %v15393_v34  ;;  %6462 = vmatpush1.bf16.msra.mxu1 %v15395_v35  ;;  %v15458_v62 = vcombine.high %v147_v55, %v155_v56  ;;  %v163_v0 = vld [vmem:[%s24374_s1 + $0x400] sm:$0xff]  ;;  %v172_v3 = vld [vmem:[%s24374_s1 + $0x448] sm:$0xff]  ;;  %v15457_v4 = vcombine.low %v147_v55, %v155_v56 }
  0x13   :  { %6299 = vmatprep.subr.bf16.mxu0 %v15410_v36  ;;  %6463 = vmatprep.subr.bf16.mxu1 %v15412_v37  ;;  %v171_v1 = vld [vmem:[%s24374_s1 + $0x440] sm:$0xff]  ;;  %v15476_v7 = vcombine.high %v164_v2, %v172_v3  ;;  %v180_v10 = vld [vmem:[%s24374_s1 + $0x488] sm:$0xff]  ;;  %v15475_v13 = vcombine.low %v164_v2, %v172_v3 }
  0x14   :  { %6323 = vmatprep.mubr.bf16.mxu0 %v17841_v57  ;;  %6487 = vmatprep.mubr.bf16.mxu1 %v17841_v57  ;;  %v15474_v6 = vcombine.high %v163_v0, %v171_v1  ;;  %v179_v8 = vld [vmem:[%s24374_s1 + $0x480] sm:$0xff]  ;;  %v188_v11 = vld [vmem:[%s24374_s1 + $0x4c8] sm:$0xff]  ;;  %v15473_v12 = vcombine.low %v163_v0, %v171_v1 }
  0x15   :  { %v187_v9 = vld [vmem:[%s24374_s1 + $0x4c0] sm:$0xff]  ;;  %v15492_v15 = vcombine.high %v180_v10, %v188_v11  ;;  %v196_v18 = vld [vmem:[%s24374_s1 + $0x508] sm:$0xff]  ;;  %v15491_v21 = vcombine.low %v180_v10, %v188_v11 }
  0x16   :  { %6300 = vmatpush1.bf16.msra.mxu0 %v15409_v42  ;;  %6464 = vmatpush1.bf16.msra.mxu1 %v15411_v43  ;;  %v15490_v14 = vcombine.high %v179_v8, %v187_v9  ;;  %v195_v16 = vld [vmem:[%s24374_s1 + $0x500] sm:$0xff]  ;;  %v204_v19 = vld [vmem:[%s24374_s1 + $0x548] sm:$0xff]  ;;  %v15489_v20 = vcombine.low %v179_v8, %v187_v9 }
  0x17   :  { %6301 = vmatprep.subr.bf16.mxu0 %v15426_v44  ;;  %6465 = vmatprep.subr.bf16.mxu1 %v15428_v45  ;;  %v203_v17 = vld [vmem:[%s24374_s1 + $0x540] sm:$0xff]  ;;  %v15508_v23 = vcombine.high %v196_v18, %v204_v19  ;;  %v212_v26 = vld [vmem:[%s24374_s1 + $0x588] sm:$0xff]  ;;  %v15507_v29 = vcombine.low %v196_v18, %v204_v19 }
  0x18   :  { %v15506_v22 = vcombine.high %v195_v16, %v203_v17  ;;  %v211_v24 = vld [vmem:[%s24374_s1 + $0x580] sm:$0xff]  ;;  %v220_v27 = vld [vmem:[%s24374_s1 + $0x5c8] sm:$0xff]  ;;  %v15505_v28 = vcombine.low %v195_v16, %v203_v17 }
  0x19   :  { %v219_v25 = vld [vmem:[%s24374_s1 + $0x5c0] sm:$0xff]  ;;  %v15524_v31 = vcombine.high %v212_v26, %v220_v27  ;;  %v228_v34 = vld [vmem:[%s24374_s1 + $0x608] sm:$0xff]  ;;  %v15523_v37 = vcombine.low %v212_v26, %v220_v27 }
  0x1a   :  { %6302 = vmatpush1.bf16.msra.mxu0 %v15425_v50  ;;  %6466 = vmatpush1.bf16.msra.mxu1 %v15427_v51  ;;  %v15522_v30 = vcombine.high %v211_v24, %v219_v25  ;;  %v227_v32 = vld [vmem:[%s24374_s1 + $0x600] sm:$0xff]  ;;  %v236_v35 = vld [vmem:[%s24374_s1 + $0x648] sm:$0xff]  ;;  %v15521_v36 = vcombine.low %v211_v24, %v219_v25 }
  0x1b   :  { %6303 = vmatprep.subr.bf16.mxu0 %v15442_v52  ;;  %6467 = vmatprep.subr.bf16.mxu1 %v15444_v54  ;;  %v235_v33 = vld [vmem:[%s24374_s1 + $0x640] sm:$0xff]  ;;  %v15540_v39 = vcombine.high %v228_v34, %v236_v35  ;;  %v244_v42 = vld [vmem:[%s24374_s1 + $0x688] sm:$0xff]  ;;  %v15539_v45 = vcombine.low %v228_v34, %v236_v35 }
  0x1c   :  { %v15538_v38 = vcombine.high %v227_v32, %v235_v33  ;;  %v243_v40 = vld [vmem:[%s24374_s1 + $0x680] sm:$0xff]  ;;  %v252_v43 = vld [vmem:[%s24374_s1 + $0x6c8] sm:$0xff]  ;;  %v15537_v44 = vcombine.low %v227_v32, %v235_v33 }
  0x1d   :  { %v251_v41 = vld [vmem:[%s24374_s1 + $0x6c0] sm:$0xff]  ;;  %v15556_v47 = vcombine.high %v244_v42, %v252_v43  ;;  %v260_v50 = vld [vmem:[%s24374_s1 + $0x708] sm:$0xff]  ;;  %v15555_v54 = vcombine.low %v244_v42, %v252_v43 }
  0x1e   :  { %6304 = vmatpush1.bf16.msra.mxu0 %v15441_v60  ;;  %6468 = vmatpush1.bf16.msra.mxu1 %v15443_v61  ;;  %v15554_v46 = vcombine.high %v243_v40, %v251_v41  ;;  %v259_v48 = vld [vmem:[%s24374_s1 + $0x700] sm:$0xff]  ;;  %v268_v51 = vld [vmem:[%s24374_s1 + $0x748] sm:$0xff]  ;;  %v15553_v52 = vcombine.low %v243_v40, %v251_v41 }
  0x1f   :  { %6305 = vmatprep.subr.bf16.mxu0 %v15458_v62  ;;  %6469 = vmatprep.subr.bf16.mxu1 %v15460_v63  ;;  %v267_v49 = vld [vmem:[%s24374_s1 + $0x740] sm:$0xff]  ;;  %v15572_v56 = vcombine.high %v260_v50, %v268_v51  ;;  %v276_v60 = vld [vmem:[%s24374_s1 + $0x788] sm:$0xff]  ;;  %v15571_v63 = vcombine.low %v260_v50, %v268_v51 }
  0x20   :  { %v15570_v55 = vcombine.high %v259_v48, %v267_v49  ;;  %v275_v58 = vld [vmem:[%s24374_s1 + $0x780] sm:$0xff]  ;;  %v284_v61 = vld [vmem:[%s24374_s1 + $0x7c8] sm:$0xff]  ;;  %v15569_v62 = vcombine.low %v259_v48, %v267_v49 }
  0x21   :  { %v283_v59 = vld [vmem:[%s24374_s1 + $0x7c0] sm:$0xff]  ;;  %v15588_v1 = vcombine.high %v276_v60, %v284_v61 }
  0x22   :  { %6306 = vmatpush1.bf16.msra.mxu0 %v15457_v4  ;;  %6470 = vmatpush1.bf16.msra.mxu1 %v15459_v5  ;;  %v15586_v0 = vcombine.high %v275_v58, %v283_v59  ;;  %v291_v2 = vld [vmem:[%s24374_s1 + $0x800] sm:$0xff]  ;;  %v292_v4 = vld [vmem:[%s24374_s1 + $0x808] sm:$0xff] }
  0x23   :  { %6307 = vmatprep.subr.bf16.mxu0 %v15474_v6  ;;  %6471 = vmatprep.subr.bf16.mxu1 %v15476_v7  ;;  %v299_v3 = vld [vmem:[%s24374_s1 + $0x840] sm:$0xff]  ;;  %v300_v5 = vld [vmem:[%s24374_s1 + $0x848] sm:$0xff]  ;;  %v15585_v6 = vcombine.low %v275_v58, %v283_v59  ;;  %v15587_v7 = vcombine.low %v276_v60, %v284_v61 }
  0x24   :  { %v15602_v8 = vcombine.high %v291_v2, %v299_v3  ;;  %v15604_v9 = vcombine.high %v292_v4, %v300_v5  ;;  %v307_v10 = vld [vmem:[%s24374_s1 + $0x880] sm:$0xff]  ;;  %v15601_v16 = vcombine.low %v291_v2, %v299_v3 }
  0x25   :  { %v315_v11 = vld [vmem:[%s24374_s1 + $0x8c0] sm:$0xff] }
  0x26   :  { %6308 = vmatpush1.bf16.msra.mxu0 %v15473_v12  ;;  %6472 = vmatpush1.bf16.msra.mxu1 %v15475_v13  ;;  %v17967_v12 = vcombine.low %v17831_v53, %v17831_v53  ;;  %v308_v13 = vld [vmem:[%s24374_s1 + $0x888] sm:$0xff] }
  0x27   :  { %6309 = vmatprep.subr.bf16.mxu0 %v15490_v14  ;;  %6473 = vmatprep.subr.bf16.mxu1 %v15492_v15  ;;  %v316_v14 = vld [vmem:[%s24374_s1 + $0x8c8] sm:$0xff] }
  0x28   :  { %v17978_v15 = vld [vmem:[%s24373_s0 + $0x8] sm:$0xff] }
  0x2a   :  { %6310 = vmatpush1.bf16.msra.mxu0 %v15489_v20  ;;  %6474 = vmatpush1.bf16.msra.mxu1 %v15491_v21 }
  0x2b   :  { %6311 = vmatprep.subr.bf16.mxu0 %v15506_v22  ;;  %6475 = vmatprep.subr.bf16.mxu1 %v15508_v23 }
  0x2e   :  { %6312 = vmatpush1.bf16.msra.mxu0 %v15505_v28  ;;  %6476 = vmatpush1.bf16.msra.mxu1 %v15507_v29 }
  0x2f   :  { %6313 = vmatprep.subr.bf16.mxu0 %v15522_v30  ;;  %6477 = vmatprep.subr.bf16.mxu1 %v15524_v31 }
  0x32   :  { %6314 = vmatpush1.bf16.msra.mxu0 %v15521_v36  ;;  %6478 = vmatpush1.bf16.msra.mxu1 %v15523_v37 }
  0x33   :  { %6315 = vmatprep.subr.bf16.mxu0 %v15538_v38  ;;  %6479 = vmatprep.subr.bf16.mxu1 %v15540_v39 }
  0x36   :  { %6316 = vmatpush1.bf16.msra.mxu0 %v15537_v44  ;;  %6480 = vmatpush1.bf16.msra.mxu1 %v15539_v45 }
  0x37   :  { %6317 = vmatprep.subr.bf16.mxu0 %v15554_v46  ;;  %6481 = vmatprep.subr.bf16.mxu1 %v15556_v47 }
  0x3a   :  { %6318 = vmatpush1.bf16.msra.mxu0 %v15553_v52  ;;  %6482 = vmatpush1.bf16.msra.mxu1 %v15555_v54 }
  0x3b   :  { %6319 = vmatprep.subr.bf16.mxu0 %v15570_v55  ;;  %6483 = vmatprep.subr.bf16.mxu1 %v15572_v56 }
  0x3e   :  { %6320 = vmatpush1.bf16.msra.mxu0 %v15569_v62  ;;  %6484 = vmatpush1.bf16.msra.mxu1 %v15571_v63 }
  0x3f   :  { %6321 = vmatprep.subr.bf16.mxu0 %v15586_v0  ;;  %6485 = vmatprep.subr.bf16.mxu1 %v15588_v1 }
  0x42   :  { %6322 = vmatpush1.bf16.msra.mxu0 %v15585_v6 }
  0x43   :  { %16 = vsyncpa [#allocation5], 0  ;;  %6486 = vmatpush1.bf16.msra.mxu1 %v15587_v7  ;;  %6332 = vmatprep.subr.bf16.mxu0 %v15602_v8  ;;  %v15603_v53 = vcombine.low %v292_v4, %v300_v5  ;;  %v15618_v17 = vcombine.high %v307_v10, %v315_v11  ;;  %v15620_v18 = vcombine.high %v308_v13, %v316_v14  ;;  %v323_v19 = vld [vmem:[%s24374_s1 + $0x900] sm:$0xff]  ;;  %v324_v22 = vld [vmem:[%s24374_s1 + $0x908] sm:$0xff]  ;;  %s17693_s10 = smov [#allocation4]  }
  0x44   :  { %6496 = vmatprep.subr.bf16.mxu1 %v15604_v9  ;;  %v331_v20 = vld [vmem:[%s24374_s1 + $0x940] sm:$0xff]  ;;  %v17988_v21 = vcombine.high %v17978_v15, %v17978_v15  ;;  %v332_v23 = vld [vmem:[%s24374_s1 + $0x948] sm:$0xff]  ;;  %v15617_v24 = vcombine.low %v307_v10, %v315_v11  ;;  %v15619_v25 = vcombine.low %v308_v13, %v316_v14  ;;  %s15323_s11 = sshll.u32 %s17693_s10, 4  ;;  %s15324_s11 = int_to_ptr.vmem [resolvable:$true] %s15323_s11 }
  0x45   :  { %6324 = vmatmul.mubr.bf16.vlgmr.msra.gmra.mrb[0].mxu0 %v17967_v12  ;;  %v15634_v26 = vcombine.high %v323_v19, %v331_v20  ;;  %v15636_v27 = vcombine.high %v324_v22, %v332_v23  ;;  %v339_v28 = vld [vmem:[%s24374_s1 + $0x980] sm:$0xff]  ;;  %v340_v30 = vld [vmem:[%s24374_s1 + $0x988] sm:$0xff]  ;;  %v15633_v32 = vcombine.low %v323_v19, %v331_v20  ;;  %v15635_v33 = vcombine.low %v324_v22, %v332_v23 }
  0x46   :  { %6333 = vmatpush1.bf16.msra.mxu0 %v15601_v16  ;;  %6488 = vmatmul.mubr.bf16.vlgmr.msra.gmra.mrb[0].mxu1 %v17967_v12  ;;  %v347_v29 = vld [vmem:[%s24374_s1 + $0x9c0] sm:$0xff]  ;;  %v348_v31 = vld [vmem:[%s24374_s1 + $0x9c8] sm:$0xff] }
  0x47   :  { %6497 = vmatpush1.bf16.msra.mxu1 %v15603_v53  ;;  %6334 = vmatprep.subr.bf16.mxu0 %v15618_v17  ;;  %v15650_v34 = vcombine.high %v339_v28, %v347_v29  ;;  %v15652_v35 = vcombine.high %v340_v30, %v348_v31  ;;  %v355_v36 = vld [vmem:[%s24374_s1 + $0xa00] sm:$0xff]  ;;  %v356_v38 = vld [vmem:[%s24374_s1 + $0xa08] sm:$0xff]  ;;  %v15649_v40 = vcombine.low %v339_v28, %v347_v29 }
  0x48   :  { %6498 = vmatprep.subr.bf16.mxu1 %v15620_v18  ;;  %6364 = vmatprep.mubr.bf16.mxu0 %v17988_v21  ;;  %v363_v37 = vld [vmem:[%s24374_s1 + $0xa40] sm:$0xff]  ;;  %v364_v39 = vld [vmem:[%s24374_s1 + $0xa48] sm:$0xff]  ;;  %v15651_v41 = vcombine.low %v340_v30, %v348_v31 }
  0x49   :  { %6528 = vmatprep.mubr.bf16.mxu1 %v17988_v21  ;;  %v15666_v42 = vcombine.high %v355_v36, %v363_v37  ;;  %v15668_v43 = vcombine.high %v356_v38, %v364_v39  ;;  %v371_v44 = vld [vmem:[%s24374_s1 + $0xa80] sm:$0xff]  ;;  %v372_v46 = vld [vmem:[%s24374_s1 + $0xa88] sm:$0xff]  ;;  %v15665_v48 = vcombine.low %v355_v36, %v363_v37  ;;  %v15667_v49 = vcombine.low %v356_v38, %v364_v39 }
  0x4a   :  { %6335 = vmatpush1.bf16.msra.mxu0 %v15617_v24  ;;  %v379_v45 = vld [vmem:[%s24374_s1 + $0xac0] sm:$0xff]  ;;  %v380_v47 = vld [vmem:[%s24374_s1 + $0xac8] sm:$0xff] }
  0x4b   :  { %6499 = vmatpush1.bf16.msra.mxu1 %v15619_v25  ;;  %6336 = vmatprep.subr.bf16.mxu0 %v15634_v26  ;;  %v15682_v50 = vcombine.high %v371_v44, %v379_v45  ;;  %v15684_v51 = vcombine.high %v372_v46, %v380_v47  ;;  %v387_v52 = vld [vmem:[%s24374_s1 + $0xb00] sm:$0xff]  ;;  %v388_v55 = vld [vmem:[%s24374_s1 + $0xb08] sm:$0xff]  ;;  %v15681_v58 = vcombine.low %v371_v44, %v379_v45 }
  0x4c   :  { %6500 = vmatprep.subr.bf16.mxu1 %v15636_v27  ;;  %v395_v54 = vld [vmem:[%s24374_s1 + $0xb40] sm:$0xff]  ;;  %v396_v56 = vld [vmem:[%s24374_s1 + $0xb48] sm:$0xff]  ;;  %v15683_v59 = vcombine.low %v372_v46, %v380_v47 }
  0x4d   :  { %v15698_v60 = vcombine.high %v387_v52, %v395_v54  ;;  %v15700_v61 = vcombine.high %v388_v55, %v396_v56  ;;  %v403_v62 = vld [vmem:[%s24374_s1 + $0xb80] sm:$0xff]  ;;  %v404_v0 = vld [vmem:[%s24374_s1 + $0xb88] sm:$0xff]  ;;  %v15697_v2 = vcombine.low %v387_v52, %v395_v54  ;;  %v15699_v3 = vcombine.low %v388_v55, %v396_v56 }
  0x4e   :  { %6337 = vmatpush1.bf16.msra.mxu0 %v15633_v32  ;;  %v411_v63 = vld [vmem:[%s24374_s1 + $0xbc0] sm:$0xff]  ;;  %v412_v1 = vld [vmem:[%s24374_s1 + $0xbc8] sm:$0xff] }
  0x4f   :  { %6501 = vmatpush1.bf16.msra.mxu1 %v15635_v33  ;;  %6338 = vmatprep.subr.bf16.mxu0 %v15650_v34  ;;  %v15714_v4 = vcombine.high %v403_v62, %v411_v63  ;;  %v15716_v5 = vcombine.high %v404_v0, %v412_v1  ;;  %v419_v6 = vld [vmem:[%s24374_s1 + $0xc00] sm:$0xff]  ;;  %v420_v8 = vld [vmem:[%s24374_s1 + $0xc08] sm:$0xff]  ;;  %v15713_v10 = vcombine.low %v403_v62, %v411_v63 }
  0x50   :  { %6502 = vmatprep.subr.bf16.mxu1 %v15652_v35  ;;  %v427_v7 = vld [vmem:[%s24374_s1 + $0xc40] sm:$0xff]  ;;  %v428_v9 = vld [vmem:[%s24374_s1 + $0xc48] sm:$0xff]  ;;  %v15715_v11 = vcombine.low %v404_v0, %v412_v1 }
  0x51   :  { %v15730_v13 = vcombine.high %v419_v6, %v427_v7  ;;  %v15732_v14 = vcombine.high %v420_v8, %v428_v9  ;;  %v435_v16 = vld [vmem:[%s24374_s1 + $0xc80] sm:$0xff]  ;;  %v436_v17 = vld [vmem:[%s24374_s1 + $0xc88] sm:$0xff]  ;;  %v15729_v19 = vcombine.low %v419_v6, %v427_v7  ;;  %v15731_v20 = vcombine.low %v420_v8, %v428_v9 }
  0x52   :  { %6339 = vmatpush1.bf16.msra.mxu0 %v15649_v40  ;;  %v443_v53 = vld [vmem:[%s24374_s1 + $0xcc0] sm:$0xff]  ;;  %v444_v18 = vld [vmem:[%s24374_s1 + $0xcc8] sm:$0xff] }
  0x53   :  { %6503 = vmatpush1.bf16.msra.mxu1 %v15651_v41  ;;  %6340 = vmatprep.subr.bf16.mxu0 %v15666_v42  ;;  %v15746_v22 = vcombine.high %v435_v16, %v443_v53  ;;  %v15748_v23 = vcombine.high %v436_v17, %v444_v18  ;;  %v451_v24 = vld [vmem:[%s24374_s1 + $0xd00] sm:$0xff]  ;;  %v452_v26 = vld [vmem:[%s24374_s1 + $0xd08] sm:$0xff]  ;;  %v15745_v28 = vcombine.low %v435_v16, %v443_v53 }
  0x54   :  { %6504 = vmatprep.subr.bf16.mxu1 %v15668_v43  ;;  %v459_v25 = vld [vmem:[%s24374_s1 + $0xd40] sm:$0xff]  ;;  %v460_v27 = vld [vmem:[%s24374_s1 + $0xd48] sm:$0xff]  ;;  %v15747_v29 = vcombine.low %v436_v17, %v444_v18 }
  0x55   :  { %v15762_v30 = vcombine.high %v451_v24, %v459_v25  ;;  %v15764_v31 = vcombine.high %v452_v26, %v460_v27  ;;  %v467_v32 = vld [vmem:[%s24374_s1 + $0xd80] sm:$0xff]  ;;  %v468_v34 = vld [vmem:[%s24374_s1 + $0xd88] sm:$0xff]  ;;  %v15761_v36 = vcombine.low %v451_v24, %v459_v25  ;;  %v15763_v37 = vcombine.low %v452_v26, %v460_v27  ;;  %v18187_v25 = vld [vmem:[%s24373_s0 + $0x10] sm:$0xff] }
  0x56   :  { %6341 = vmatpush1.bf16.msra.mxu0 %v15665_v48  ;;  %v475_v33 = vld [vmem:[%s24374_s1 + $0xdc0] sm:$0xff]  ;;  %v476_v35 = vld [vmem:[%s24374_s1 + $0xdc8] sm:$0xff] }
  0x57   :  { %6505 = vmatpush1.bf16.msra.mxu1 %v15667_v49  ;;  %6342 = vmatprep.subr.bf16.mxu0 %v15682_v50  ;;  %v15778_v38 = vcombine.high %v467_v32, %v475_v33  ;;  %v15780_v39 = vcombine.high %v468_v34, %v476_v35  ;;  %v483_v40 = vld [vmem:[%s24374_s1 + $0xe00] sm:$0xff]  ;;  %v484_v42 = vld [vmem:[%s24374_s1 + $0xe08] sm:$0xff]  ;;  %v15777_v44 = vcombine.low %v467_v32, %v475_v33 }
  0x58   :  { %6506 = vmatprep.subr.bf16.mxu1 %v15684_v51  ;;  %v491_v41 = vld [vmem:[%s24374_s1 + $0xe40] sm:$0xff]  ;;  %v492_v43 = vld [vmem:[%s24374_s1 + $0xe48] sm:$0xff]  ;;  %v15779_v45 = vcombine.low %v468_v34, %v476_v35 }
  0x59   :  { %v15794_v46 = vcombine.high %v483_v40, %v491_v41  ;;  %v15796_v47 = vcombine.high %v484_v42, %v492_v43  ;;  %v499_v48 = vld [vmem:[%s24374_s1 + $0xe80] sm:$0xff]  ;;  %v500_v50 = vld [vmem:[%s24374_s1 + $0xe88] sm:$0xff]  ;;  %v15793_v52 = vcombine.low %v483_v40, %v491_v41  ;;  %v15795_v54 = vcombine.low %v484_v42, %v492_v43 }
  0x5a   :  { %6343 = vmatpush1.bf16.msra.mxu0 %v15681_v58  ;;  %v507_v49 = vld [vmem:[%s24374_s1 + $0xec0] sm:$0xff]  ;;  %v508_v51 = vld [vmem:[%s24374_s1 + $0xec8] sm:$0xff] }
  0x5b   :  { %6507 = vmatpush1.bf16.msra.mxu1 %v15683_v59  ;;  %6344 = vmatprep.subr.bf16.mxu0 %v15698_v60  ;;  %v15810_v55 = vcombine.high %v499_v48, %v507_v49  ;;  %v15812_v56 = vcombine.high %v500_v50, %v508_v51  ;;  %v515_v58 = vld [vmem:[%s24374_s1 + $0xf00] sm:$0xff]  ;;  %v516_v60 = vld [vmem:[%s24374_s1 + $0xf08] sm:$0xff]  ;;  %v15809_v62 = vcombine.low %v499_v48, %v507_v49 }
  0x5c   :  { %6508 = vmatprep.subr.bf16.mxu1 %v15700_v61  ;;  %v523_v59 = vld [vmem:[%s24374_s1 + $0xf40] sm:$0xff]  ;;  %v524_v61 = vld [vmem:[%s24374_s1 + $0xf48] sm:$0xff]  ;;  %v15811_v63 = vcombine.low %v500_v50, %v508_v51 }
  0x5d   :  { %v15826_v0 = vcombine.high %v515_v58, %v523_v59  ;;  %v15828_v1 = vcombine.high %v516_v60, %v524_v61  ;;  %v15825_v6 = vcombine.low %v515_v58, %v523_v59  ;;  %v15827_v7 = vcombine.low %v516_v60, %v524_v61  ;;  %v572_v24 = vld [vmem:[%s24374_s1 + $0x10c8] sm:$0xff] }
  0x5e   :  { %6345 = vmatpush1.bf16.msra.mxu0 %v15697_v2  ;;  %v531_v2 = vld [vmem:[%s24374_s1 + $0xf80] sm:$0xff]  ;;  %v580_v32 = vld [vmem:[%s24374_s1 + $0x1108] sm:$0xff] }
  0x5f   :  { %6509 = vmatpush1.bf16.msra.mxu1 %v15699_v3  ;;  %6346 = vmatprep.subr.bf16.mxu0 %v15714_v4  ;;  %v539_v3 = vld [vmem:[%s24374_s1 + $0xfc0] sm:$0xff]  ;;  %v532_v4 = vld [vmem:[%s24374_s1 + $0xf88] sm:$0xff] }
  0x60   :  { %6510 = vmatprep.subr.bf16.mxu1 %v15716_v5  ;;  %v540_v5 = vld [vmem:[%s24374_s1 + $0xfc8] sm:$0xff]  ;;  %v15842_v8 = vcombine.high %v531_v2, %v539_v3  ;;  %v15841_v16 = vcombine.low %v531_v2, %v539_v3 }
  0x61   :  { %v15844_v9 = vcombine.high %v532_v4, %v540_v5  ;;  %v15843_v53 = vcombine.low %v532_v4, %v540_v5  ;;  %v588_v33 = vld [vmem:[%s24374_s1 + $0x1148] sm:$0xff] }
  0x62   :  { %6347 = vmatpush1.bf16.msra.mxu0 %v15713_v10  ;;  %v547_v10 = vld [vmem:[%s24374_s1 + $0x1000] sm:$0xff]  ;;  %v596_v40 = vld [vmem:[%s24374_s1 + $0x1188] sm:$0xff]  ;;  %v15891_v43 = vcombine.low %v580_v32, %v588_v33 }
  0x63   :  { %6511 = vmatpush1.bf16.msra.mxu1 %v15715_v11  ;;  %6348 = vmatprep.subr.bf16.mxu0 %v15730_v13  ;;  %v555_v11 = vld [vmem:[%s24374_s1 + $0x1040] sm:$0xff]  ;;  %v548_v13 = vld [vmem:[%s24374_s1 + $0x1008] sm:$0xff] }
  0x64   :  { %6512 = vmatprep.subr.bf16.mxu1 %v15732_v14  ;;  %v556_v14 = vld [vmem:[%s24374_s1 + $0x1048] sm:$0xff]  ;;  %v15858_v17 = vcombine.high %v547_v10, %v555_v11  ;;  %v15857_v26 = vcombine.low %v547_v10, %v555_v11 }
  0x65   :  { %v15860_v18 = vcombine.high %v548_v13, %v556_v14  ;;  %v15859_v27 = vcombine.low %v548_v13, %v556_v14  ;;  %v604_v41 = vld [vmem:[%s24374_s1 + $0x11c8] sm:$0xff] }
  0x66   :  { %6349 = vmatpush1.bf16.msra.mxu0 %v15729_v19  ;;  %v563_v19 = vld [vmem:[%s24374_s1 + $0x1080] sm:$0xff]  ;;  %v612_v48 = vld [vmem:[%s24374_s1 + $0x1208] sm:$0xff]  ;;  %v15907_v51 = vcombine.low %v596_v40, %v604_v41 }
  0x67   :  { %6513 = vmatpush1.bf16.msra.mxu1 %v15731_v20  ;;  %6350 = vmatprep.subr.bf16.mxu0 %v15746_v22  ;;  %v571_v20 = vld [vmem:[%s24374_s1 + $0x10c0] sm:$0xff]  ;;  %v18176_v22 = vcombine.low %v17978_v15, %v17978_v15  ;;  %v620_v49 = vld [vmem:[%s24374_s1 + $0x1248] sm:$0xff] }
  0x68   :  { %6514 = vmatprep.subr.bf16.mxu1 %v15748_v23  ;;  %v564_v23 = vld [vmem:[%s24374_s1 + $0x1088] sm:$0xff]  ;;  %v15874_v15 = vcombine.high %v563_v19, %v571_v20  ;;  %v15873_v34 = vcombine.low %v563_v19, %v571_v20  ;;  %v15923_v61 = vcombine.low %v612_v48, %v620_v49 }
  0x69   :  { %v15875_v35 = vcombine.low %v564_v23, %v572_v24  ;;  %v628_v58 = vld [vmem:[%s24374_s1 + $0x1288] sm:$0xff] }
  0x6a   :  { %6351 = vmatpush1.bf16.msra.mxu0 %v15745_v28  ;;  %v15876_v28 = vcombine.high %v564_v23, %v572_v24  ;;  %v636_v59 = vld [vmem:[%s24374_s1 + $0x12c8] sm:$0xff] }
  0x6b   :  { %6515 = vmatpush1.bf16.msra.mxu1 %v15747_v29  ;;  %6352 = vmatprep.subr.bf16.mxu0 %v15762_v30  ;;  %v579_v29 = vld [vmem:[%s24374_s1 + $0x1100] sm:$0xff]  ;;  %v644_v2 = vld [vmem:[%s24374_s1 + $0x1308] sm:$0xff]  ;;  %v15939_v5 = vcombine.low %v628_v58, %v636_v59 }
  0x6c   :  { %6516 = vmatprep.subr.bf16.mxu1 %v15764_v31  ;;  %v587_v30 = vld [vmem:[%s24374_s1 + $0x1140] sm:$0xff]  ;;  %v18197_v31 = vcombine.high %v18187_v25, %v18187_v25  ;;  %v652_v3 = vld [vmem:[%s24374_s1 + $0x1348] sm:$0xff] }
  0x6d   :  { %v15889_v42 = vcombine.low %v579_v29, %v587_v30  ;;  %v660_v10 = vld [vmem:[%s24374_s1 + $0x1388] sm:$0xff]  ;;  %v15955_v14 = vcombine.low %v644_v2, %v652_v3 }
  0x6e   :  { %6353 = vmatpush1.bf16.msra.mxu0 %v15761_v36  ;;  %v15890_v36 = vcombine.high %v579_v29, %v587_v30  ;;  %v668_v11 = vld [vmem:[%s24374_s1 + $0x13c8] sm:$0xff] }
  0x6f   :  { %6517 = vmatpush1.bf16.msra.mxu1 %v15763_v37  ;;  %6354 = vmatprep.subr.bf16.mxu0 %v15778_v38  ;;  %v15892_v37 = vcombine.high %v580_v32, %v588_v33  ;;  %v595_v38 = vld [vmem:[%s24374_s1 + $0x1180] sm:$0xff]  ;;  %v676_v19 = vld [vmem:[%s24374_s1 + $0x1408] sm:$0xff]  ;;  %v15971_v24 = vcombine.low %v660_v10, %v668_v11 }
  0x70   :  { %6518 = vmatprep.subr.bf16.mxu1 %v15780_v39  ;;  %v603_v39 = vld [vmem:[%s24374_s1 + $0x11c0] sm:$0xff]  ;;  %v684_v20 = vld [vmem:[%s24374_s1 + $0x1448] sm:$0xff] }
  0x71   :  { %v15905_v50 = vcombine.low %v595_v38, %v603_v39  ;;  %v692_v29 = vld [vmem:[%s24374_s1 + $0x1488] sm:$0xff]  ;;  %v15987_v33 = vcombine.low %v676_v19, %v684_v20 }
  0x72   :  { %6355 = vmatpush1.bf16.msra.mxu0 %v15777_v44  ;;  %v15906_v44 = vcombine.high %v595_v38, %v603_v39  ;;  %v700_v30 = vld [vmem:[%s24374_s1 + $0x14c8] sm:$0xff] }
  0x73   :  { %6519 = vmatpush1.bf16.msra.mxu1 %v15779_v45  ;;  %6356 = vmatprep.subr.bf16.mxu0 %v15794_v46  ;;  %v15908_v45 = vcombine.high %v596_v40, %v604_v41  ;;  %v611_v46 = vld [vmem:[%s24374_s1 + $0x1200] sm:$0xff]  ;;  %v708_v38 = vld [vmem:[%s24374_s1 + $0x1508] sm:$0xff]  ;;  %v16003_v41 = vcombine.low %v692_v29, %v700_v30 }
  0x74   :  { %6520 = vmatprep.subr.bf16.mxu1 %v15796_v47  ;;  %v619_v47 = vld [vmem:[%s24374_s1 + $0x1240] sm:$0xff]  ;;  %v716_v39 = vld [vmem:[%s24374_s1 + $0x1548] sm:$0xff] }
  0x75   :  { %v15921_v60 = vcombine.low %v611_v46, %v619_v47 }
  0x76   :  { %6357 = vmatpush1.bf16.msra.mxu0 %v15793_v52  ;;  %v15922_v52 = vcombine.high %v611_v46, %v619_v47  ;;  %v724_v46 = vld [vmem:[%s24374_s1 + $0x1588] sm:$0xff] }
  0x77   :  { %6521 = vmatpush1.bf16.msra.mxu1 %v15795_v54  ;;  %6358 = vmatprep.subr.bf16.mxu0 %v15810_v55  ;;  %v15924_v54 = vcombine.high %v612_v48, %v620_v49  ;;  %v627_v55 = vld [vmem:[%s24374_s1 + $0x1280] sm:$0xff]  ;;  %v732_v47 = vld [vmem:[%s24374_s1 + $0x15c8] sm:$0xff]  ;;  %v16019_v49 = vcombine.low %v708_v38, %v716_v39 }
  0x78   :  { %6522 = vmatprep.subr.bf16.mxu1 %v15812_v56  ;;  %v635_v56 = vld [vmem:[%s24374_s1 + $0x12c0] sm:$0xff] }
  0x79   :  { %v15937_v4 = vcombine.low %v627_v55, %v635_v56 }
  0x7a   :  { %6359 = vmatpush1.bf16.msra.mxu0 %v15809_v62  ;;  %v15938_v62 = vcombine.high %v627_v55, %v635_v56  ;;  %v740_v55 = vld [vmem:[%s24374_s1 + $0x1608] sm:$0xff] }
  0x7b   :  { %6523 = vmatpush1.bf16.msra.mxu1 %v15811_v63  ;;  %6360 = vmatprep.subr.bf16.mxu0 %v15826_v0  ;;  %v15940_v63 = vcombine.high %v628_v58, %v636_v59  ;;  %v643_v0 = vld [vmem:[%s24374_s1 + $0x1300] sm:$0xff]  ;;  %v748_v56 = vld [vmem:[%s24374_s1 + $0x1648] sm:$0xff]  ;;  %v16035_v59 = vcombine.low %v724_v46, %v732_v47 }
  0x7c   :  { %6524 = vmatprep.subr.bf16.mxu1 %v15828_v1  ;;  %v651_v1 = vld [vmem:[%s24374_s1 + $0x1340] sm:$0xff] }
  0x7d   :  { %v15953_v13 = vcombine.low %v643_v0, %v651_v1 }
  0x7e   :  { %6361 = vmatpush1.bf16.msra.mxu0 %v15825_v6  ;;  %v15954_v6 = vcombine.high %v643_v0, %v651_v1  ;;  %v756_v0 = vld [vmem:[%s24374_s1 + $0x1688] sm:$0xff] }
  0x7f   :  { %6525 = vmatpush1.bf16.msra.mxu1 %v15827_v7  ;;  %6362 = vmatprep.subr.bf16.mxu0 %v15842_v8  ;;  %v15956_v7 = vcombine.high %v644_v2, %v652_v3  ;;  %v659_v8 = vld [vmem:[%s24374_s1 + $0x1380] sm:$0xff]  ;;  %v764_v1 = vld [vmem:[%s24374_s1 + $0x16c8] sm:$0xff]  ;;  %v16051_v3 = vcombine.low %v740_v55, %v748_v56 }
  0x80   :  { %6526 = vmatprep.subr.bf16.mxu1 %v15844_v9  ;;  %v667_v9 = vld [vmem:[%s24374_s1 + $0x13c0] sm:$0xff] }
  0x81   :  { %v15969_v23 = vcombine.low %v659_v8, %v667_v9 }
  0x82   :  { %6363 = vmatpush1.bf16.msra.mxu0 %v15841_v16  ;;  %v15970_v16 = vcombine.high %v659_v8, %v667_v9  ;;  %v772_v8 = vld [vmem:[%s24374_s1 + $0x1708] sm:$0xff] }
  0x83   :  { %6527 = vmatpush1.bf16.msra.mxu1 %v15843_v53  ;;  %6373 = vmatprep.subr.bf16.mxu0 %v15858_v17  ;;  %v15972_v53 = vcombine.high %v660_v10, %v668_v11  ;;  %v675_v17 = vld [vmem:[%s24374_s1 + $0x1400] sm:$0xff]  ;;  %v780_v9 = vld [vmem:[%s24374_s1 + $0x1748] sm:$0xff]  ;;  %v16067_v11 = vcombine.low %v756_v0, %v764_v1 }
  0x84   :  { %6537 = vmatprep.subr.bf16.mxu1 %v15860_v18  ;;  %v683_v18 = vld [vmem:[%s24374_s1 + $0x1440] sm:$0xff] }
  0x85   :  { %6365 = vmatmul.mubr.bf16.vlgmr.msra.gmra.mrb[0].mxu0 %v18176_v22  ;;  %v15985_v32 = vcombine.low %v675_v17, %v683_v18 }
  0x86   :  { %6374 = vmatpush1.bf16.msra.mxu0 %v15857_v26  ;;  %6529 = vmatmul.mubr.bf16.vlgmr.msra.gmra.mrb[0].mxu1 %v18176_v22  ;;  %v15986_v26 = vcombine.high %v675_v17, %v683_v18  ;;  %v788_v17 = vld [vmem:[%s24374_s1 + $0x1788] sm:$0xff] }
  0x87   :  { %6538 = vmatpush1.bf16.msra.mxu1 %v15859_v27  ;;  %6375 = vmatprep.subr.bf16.mxu0 %v15874_v15  ;;  %v15988_v27 = vcombine.high %v676_v19, %v684_v20  ;;  %v691_v15 = vld [vmem:[%s24374_s1 + $0x1480] sm:$0xff]  ;;  %v796_v18 = vld [vmem:[%s24374_s1 + $0x17c8] sm:$0xff]  ;;  %v16083_v20 = vcombine.low %v772_v8, %v780_v9 }
  0x88   :  { %6539 = vmatprep.subr.bf16.mxu1 %v15876_v28  ;;  %6405 = vmatprep.mubr.bf16.mxu0 %v18197_v31  ;;  %v699_v28 = vld [vmem:[%s24374_s1 + $0x14c0] sm:$0xff] }
  0x89   :  { %6569 = vmatprep.mubr.bf16.mxu1 %v18197_v31  ;;  %v16001_v40 = vcombine.low %v691_v15, %v699_v28 }
  0x8a   :  { %6376 = vmatpush1.bf16.msra.mxu0 %v15873_v34  ;;  %v16002_v34 = vcombine.high %v691_v15, %v699_v28  ;;  %v804_v15 = vld [vmem:[%s24374_s1 + $0x1808] sm:$0xff] }
  0x8b   :  { %6540 = vmatpush1.bf16.msra.mxu1 %v15875_v35  ;;  %6377 = vmatprep.subr.bf16.mxu0 %v15890_v36  ;;  %v16004_v35 = vcombine.high %v692_v29, %v700_v30  ;;  %v707_v36 = vld [vmem:[%s24374_s1 + $0x1500] sm:$0xff]  ;;  %v812_v28 = vld [vmem:[%s24374_s1 + $0x1848] sm:$0xff]  ;;  %v16099_v30 = vcombine.low %v788_v17, %v796_v18 }
  0x8c   :  { %6541 = vmatprep.subr.bf16.mxu1 %v15892_v37  ;;  %v715_v37 = vld [vmem:[%s24374_s1 + $0x1540] sm:$0xff] }
  0x8d   :  { %v16017_v48 = vcombine.low %v707_v36, %v715_v37 }
  0x8e   :  { %6378 = vmatpush1.bf16.msra.mxu0 %v15889_v42  ;;  %v16018_v42 = vcombine.high %v707_v36, %v715_v37  ;;  %v18385_v36 = vcombine.low %v18187_v25, %v18187_v25  ;;  %v820_v37 = vld [vmem:[%s24374_s1 + $0x1888] sm:$0xff] }
  0x8f   :  { %6542 = vmatpush1.bf16.msra.mxu1 %v15891_v43  ;;  %6379 = vmatprep.subr.bf16.mxu0 %v15906_v44  ;;  %v16020_v43 = vcombine.high %v708_v38, %v716_v39  ;;  %v723_v44 = vld [vmem:[%s24374_s1 + $0x1580] sm:$0xff]  ;;  %v828_v38 = vld [vmem:[%s24374_s1 + $0x18c8] sm:$0xff]  ;;  %v18396_v39 = vld [vmem:[%s24373_s0 + $0x18] sm:$0xff] }
  0x90   :  { %6543 = vmatprep.subr.bf16.mxu1 %v15908_v45  ;;  %v731_v45 = vld [vmem:[%s24374_s1 + $0x15c0] sm:$0xff] }
  0x91   :  { %v16033_v58 = vcombine.low %v723_v44, %v731_v45 }
  0x92   :  { %6380 = vmatpush1.bf16.msra.mxu0 %v15905_v50  ;;  %v16034_v50 = vcombine.high %v723_v44, %v731_v45  ;;  %v843_v44 = vld [vmem:[%s24374_s1 + $0x1940] sm:$0xff]  ;;  %v18406_v45 = vcombine.high %v18396_v39, %v18396_v39 }
  0x93   :  { %6544 = vmatpush1.bf16.msra.mxu1 %v15907_v51  ;;  %6381 = vmatprep.subr.bf16.mxu0 %v15922_v52  ;;  %v16036_v51 = vcombine.high %v724_v46, %v732_v47  ;;  %v739_v52 = vld [vmem:[%s24374_s1 + $0x1600] sm:$0xff]  ;;  %v836_v46 = vld [vmem:[%s24374_s1 + $0x1908] sm:$0xff] }
  0x94   :  { %6545 = vmatprep.subr.bf16.mxu1 %v15924_v54  ;;  %v747_v54 = vld [vmem:[%s24374_s1 + $0x1640] sm:$0xff]  ;;  %v844_v47 = vld [vmem:[%s24374_s1 + $0x1948] sm:$0xff] }
  0x95   :  { %v16049_v2 = vcombine.low %v739_v52, %v747_v54 }
  0x96   :  { %6382 = vmatpush1.bf16.msra.mxu0 %v15921_v60  ;;  %v16050_v60 = vcombine.high %v739_v52, %v747_v54  ;;  %v851_v52 = vld [vmem:[%s24374_s1 + $0x1980] sm:$0xff] }
  0x97   :  { %6546 = vmatpush1.bf16.msra.mxu1 %v15923_v61  ;;  %6383 = vmatprep.subr.bf16.mxu0 %v15938_v62  ;;  %v16052_v61 = vcombine.high %v740_v55, %v748_v56  ;;  %v755_v62 = vld [vmem:[%s24374_s1 + $0x1680] sm:$0xff]  ;;  %v852_v55 = vld [vmem:[%s24374_s1 + $0x1988] sm:$0xff] }
  0x98   :  { %6547 = vmatprep.subr.bf16.mxu1 %v15940_v63  ;;  %v763_v63 = vld [vmem:[%s24374_s1 + $0x16c0] sm:$0xff]  ;;  %v860_v56 = vld [vmem:[%s24374_s1 + $0x19c8] sm:$0xff] }
  0x99   :  { %v16065_v10 = vcombine.low %v755_v62, %v763_v63  ;;  %v859_v54 = vld [vmem:[%s24374_s1 + $0x19c0] sm:$0xff] }
  0x9a   :  { %6384 = vmatpush1.bf16.msra.mxu0 %v15937_v4  ;;  %v16066_v4 = vcombine.high %v755_v62, %v763_v63  ;;  %v867_v62 = vld [vmem:[%s24374_s1 + $0x1a00] sm:$0xff] }
  0x9b   :  { %6548 = vmatpush1.bf16.msra.mxu1 %v15939_v5  ;;  %6385 = vmatprep.subr.bf16.mxu0 %v15954_v6  ;;  %v16068_v5 = vcombine.high %v756_v0, %v764_v1  ;;  %v771_v6 = vld [vmem:[%s24374_s1 + $0x1700] sm:$0xff]  ;;  %v868_v0 = vld [vmem:[%s24374_s1 + $0x1a08] sm:$0xff] }
  0x9c   :  { %6549 = vmatprep.subr.bf16.mxu1 %v15956_v7  ;;  %v779_v7 = vld [vmem:[%s24374_s1 + $0x1740] sm:$0xff]  ;;  %v876_v1 = vld [vmem:[%s24374_s1 + $0x1a48] sm:$0xff] }
  0x9d   :  { %v16081_v19 = vcombine.low %v771_v6, %v779_v7  ;;  %v875_v63 = vld [vmem:[%s24374_s1 + $0x1a40] sm:$0xff] }
  0x9e   :  { %6386 = vmatpush1.bf16.msra.mxu0 %v15953_v13  ;;  %v16082_v13 = vcombine.high %v771_v6, %v779_v7  ;;  %v883_v6 = vld [vmem:[%s24374_s1 + $0x1a80] sm:$0xff] }
  0x9f   :  { %6550 = vmatpush1.bf16.msra.mxu1 %v15955_v14  ;;  %6387 = vmatprep.subr.bf16.mxu0 %v15970_v16  ;;  %v16084_v14 = vcombine.high %v772_v8, %v780_v9  ;;  %v787_v16 = vld [vmem:[%s24374_s1 + $0x1780] sm:$0xff]  ;;  %v884_v8 = vld [vmem:[%s24374_s1 + $0x1a88] sm:$0xff] }
  0xa0   :  { %6551 = vmatprep.subr.bf16.mxu1 %v15972_v53  ;;  %v795_v53 = vld [vmem:[%s24374_s1 + $0x17c0] sm:$0xff]  ;;  %v892_v9 = vld [vmem:[%s24374_s1 + $0x1ac8] sm:$0xff] }
  0xa1   :  { %v16097_v29 = vcombine.low %v787_v16, %v795_v53  ;;  %v891_v7 = vld [vmem:[%s24374_s1 + $0x1ac0] sm:$0xff] }
  0xa2   :  { %6388 = vmatpush1.bf16.msra.mxu0 %v15969_v23  ;;  %v16098_v23 = vcombine.high %v787_v16, %v795_v53  ;;  %v899_v16 = vld [vmem:[%s24374_s1 + $0x1b00] sm:$0xff] }
  0xa3   :  { %6552 = vmatpush1.bf16.msra.mxu1 %v15971_v24  ;;  %6389 = vmatprep.subr.bf16.mxu0 %v15986_v26  ;;  %v16100_v24 = vcombine.high %v788_v17, %v796_v18  ;;  %v803_v26 = vld [vmem:[%s24374_s1 + $0x1800] sm:$0xff]  ;;  %v900_v17 = vld [vmem:[%s24374_s1 + $0x1b08] sm:$0xff] }
  0xa4   :  { %6553 = vmatprep.subr.bf16.mxu1 %v15988_v27  ;;  %v811_v27 = vld [vmem:[%s24374_s1 + $0x1840] sm:$0xff]  ;;  %v908_v18 = vld [vmem:[%s24374_s1 + $0x1b48] sm:$0xff] }
  0xa5   :  { %v907_v53 = vld [vmem:[%s24374_s1 + $0x1b40] sm:$0xff] }
  0xa6   :  { %6390 = vmatpush1.bf16.msra.mxu0 %v15985_v32  ;;  %v16114_v32 = vcombine.high %v803_v26, %v811_v27 }
  0xa7   :  { %6554 = vmatpush1.bf16.msra.mxu1 %v15987_v33  ;;  %6391 = vmatprep.subr.bf16.mxu0 %v16002_v34  ;;  %v16116_v33 = vcombine.high %v804_v15, %v812_v28  ;;  %v819_v34 = vld [vmem:[%s24374_s1 + $0x1880] sm:$0xff] }
  0xa8   :  { %6555 = vmatprep.subr.bf16.mxu1 %v16004_v35  ;;  %v827_v35 = vld [vmem:[%s24374_s1 + $0x18c0] sm:$0xff] }
  0xa9   :  { %v16130_v25 = vcombine.high %v819_v34, %v827_v35 }
  0xaa   :  { %6392 = vmatpush1.bf16.msra.mxu0 %v16001_v40  ;;  %v16113_v40 = vcombine.low %v803_v26, %v811_v27  ;;  %v915_v26 = vld [vmem:[%s24374_s1 + $0x1b80] sm:$0xff] }
  0xab   :  { %6556 = vmatpush1.bf16.msra.mxu1 %v16003_v41  ;;  %6393 = vmatprep.subr.bf16.mxu0 %v16018_v42  ;;  %v16115_v41 = vcombine.low %v804_v15, %v812_v28  ;;  %v16132_v42 = vcombine.high %v820_v37, %v828_v38  ;;  %v923_v27 = vld [vmem:[%s24374_s1 + $0x1bc0] sm:$0xff]  ;;  %v916_v15 = vld [vmem:[%s24374_s1 + $0x1b88] sm:$0xff] }
  0xac   :  { %6557 = vmatprep.subr.bf16.mxu1 %v16020_v43  ;;  %v835_v43 = vld [vmem:[%s24374_s1 + $0x1900] sm:$0xff]  ;;  %v924_v28 = vld [vmem:[%s24374_s1 + $0x1bc8] sm:$0xff] }
  0xae   :  { %6394 = vmatpush1.bf16.msra.mxu0 %v16017_v48  ;;  %v16129_v48 = vcombine.low %v819_v34, %v827_v35  ;;  %v931_v34 = vld [vmem:[%s24374_s1 + $0x1c00] sm:$0xff] }
  0xaf   :  { %6558 = vmatpush1.bf16.msra.mxu1 %v16019_v49  ;;  %6395 = vmatprep.subr.bf16.mxu0 %v16034_v50  ;;  %v16131_v49 = vcombine.low %v820_v37, %v828_v38  ;;  %v16146_v50 = vcombine.high %v835_v43, %v843_v44  ;;  %v939_v35 = vld [vmem:[%s24374_s1 + $0x1c40] sm:$0xff]  ;;  %v932_v37 = vld [vmem:[%s24374_s1 + $0x1c08] sm:$0xff] }
  0xb0   :  { %6559 = vmatprep.subr.bf16.mxu1 %v16036_v51  ;;  %v16148_v51 = vcombine.high %v836_v46, %v844_v47  ;;  %v940_v38 = vld [vmem:[%s24374_s1 + $0x1c48] sm:$0xff] }
  0xb2   :  { %6396 = vmatpush1.bf16.msra.mxu0 %v16033_v58  ;;  %v16145_v58 = vcombine.low %v835_v43, %v843_v44  ;;  %v947_v43 = vld [vmem:[%s24374_s1 + $0x1c80] sm:$0xff] }
  0xb3   :  { %6560 = vmatpush1.bf16.msra.mxu1 %v16035_v59  ;;  %6397 = vmatprep.subr.bf16.mxu0 %v16050_v60  ;;  %v16147_v59 = vcombine.low %v836_v46, %v844_v47  ;;  %v16162_v60 = vcombine.high %v851_v52, %v859_v54  ;;  %v955_v44 = vld [vmem:[%s24374_s1 + $0x1cc0] sm:$0xff]  ;;  %v948_v46 = vld [vmem:[%s24374_s1 + $0x1c88] sm:$0xff] }
  0xb4   :  { %6561 = vmatprep.subr.bf16.mxu1 %v16052_v61  ;;  %v16164_v61 = vcombine.high %v852_v55, %v860_v56  ;;  %v956_v47 = vld [vmem:[%s24374_s1 + $0x1cc8] sm:$0xff] }
  0xb6   :  { %6398 = vmatpush1.bf16.msra.mxu0 %v16049_v2  ;;  %v16161_v2 = vcombine.low %v851_v52, %v859_v54  ;;  %v963_v52 = vld [vmem:[%s24374_s1 + $0x1d00] sm:$0xff] }
  0xb7   :  { %6562 = vmatpush1.bf16.msra.mxu1 %v16051_v3  ;;  %6399 = vmatprep.subr.bf16.mxu0 %v16066_v4  ;;  %v16163_v3 = vcombine.low %v852_v55, %v860_v56  ;;  %v16178_v4 = vcombine.high %v867_v62, %v875_v63  ;;  %v971_v54 = vld [vmem:[%s24374_s1 + $0x1d40] sm:$0xff]  ;;  %v964_v55 = vld [vmem:[%s24374_s1 + $0x1d08] sm:$0xff] }
  0xb8   :  { %6563 = vmatprep.subr.bf16.mxu1 %v16068_v5  ;;  %v16180_v5 = vcombine.high %v868_v0, %v876_v1  ;;  %v972_v56 = vld [vmem:[%s24374_s1 + $0x1d48] sm:$0xff] }
  0xba   :  { %6400 = vmatpush1.bf16.msra.mxu0 %v16065_v10  ;;  %v16177_v10 = vcombine.low %v867_v62, %v875_v63  ;;  %v979_v62 = vld [vmem:[%s24374_s1 + $0x1d80] sm:$0xff] }
  0xbb   :  { %6564 = vmatpush1.bf16.msra.mxu1 %v16067_v11  ;;  %6401 = vmatprep.subr.bf16.mxu0 %v16082_v13  ;;  %v16179_v11 = vcombine.low %v868_v0, %v876_v1  ;;  %v16194_v13 = vcombine.high %v883_v6, %v891_v7  ;;  %v987_v63 = vld [vmem:[%s24374_s1 + $0x1dc0] sm:$0xff]  ;;  %v980_v0 = vld [vmem:[%s24374_s1 + $0x1d88] sm:$0xff] }
  0xbc   :  { %6565 = vmatprep.subr.bf16.mxu1 %v16084_v14  ;;  %v16196_v14 = vcombine.high %v884_v8, %v892_v9  ;;  %v988_v1 = vld [vmem:[%s24374_s1 + $0x1dc8] sm:$0xff] }
  0xbe   :  { %6402 = vmatpush1.bf16.msra.mxu0 %v16081_v19  ;;  %v16193_v19 = vcombine.low %v883_v6, %v891_v7  ;;  %v995_v6 = vld [vmem:[%s24374_s1 + $0x1e00] sm:$0xff] }
  0xbf   :  { %6566 = vmatpush1.bf16.msra.mxu1 %v16083_v20  ;;  %6403 = vmatprep.subr.bf16.mxu0 %v16098_v23  ;;  %v16195_v20 = vcombine.low %v884_v8, %v892_v9  ;;  %v16210_v23 = vcombine.high %v899_v16, %v907_v53  ;;  %v1003_v7 = vld [vmem:[%s24374_s1 + $0x1e40] sm:$0xff]  ;;  %v996_v8 = vld [vmem:[%s24374_s1 + $0x1e08] sm:$0xff] }
  0xc0   :  { %6567 = vmatprep.subr.bf16.mxu1 %v16100_v24  ;;  %v16212_v24 = vcombine.high %v900_v17, %v908_v18  ;;  %v1004_v9 = vld [vmem:[%s24374_s1 + $0x1e48] sm:$0xff] }
  0xc2   :  { %6404 = vmatpush1.bf16.msra.mxu0 %v16097_v29  ;;  %v16209_v29 = vcombine.low %v899_v16, %v907_v53  ;;  %v1011_v16 = vld [vmem:[%s24374_s1 + $0x1e80] sm:$0xff] }
  0xc3   :  { %6568 = vmatpush1.bf16.msra.mxu1 %v16099_v30  ;;  %6414 = vmatprep.subr.bf16.mxu0 %v16114_v32  ;;  %v16211_v30 = vcombine.low %v900_v17, %v908_v18  ;;  %v16226_v32 = vcombine.high %v915_v26, %v923_v27  ;;  %v1019_v53 = vld [vmem:[%s24374_s1 + $0x1ec0] sm:$0xff]  ;;  %v1012_v17 = vld [vmem:[%s24374_s1 + $0x1e88] sm:$0xff] }
  0xc4   :  { %6578 = vmatprep.subr.bf16.mxu1 %v16116_v33  ;;  %v16228_v33 = vcombine.high %v916_v15, %v924_v28  ;;  %v1020_v18 = vld [vmem:[%s24374_s1 + $0x1ec8] sm:$0xff] }
  0xc5   :  { %6406 = vmatmul.mubr.bf16.vlgmr.msra.gmra.mrb[0].mxu0 %v18385_v36 }
  0xc6   :  { %6415 = vmatpush1.bf16.msra.mxu0 %v16113_v40  ;;  %6570 = vmatmul.mubr.bf16.vlgmr.msra.gmra.mrb[0].mxu1 %v18385_v36  ;;  %v16225_v40 = vcombine.low %v915_v26, %v923_v27  ;;  %v1027_v26 = vld [vmem:[%s24374_s1 + $0x1f00] sm:$0xff] }
  0xc7   :  { %6579 = vmatpush1.bf16.msra.mxu1 %v16115_v41  ;;  %6416 = vmatprep.subr.bf16.mxu0 %v16130_v25  ;;  %v16227_v41 = vcombine.low %v916_v15, %v924_v28  ;;  %v16242_v25 = vcombine.high %v931_v34, %v939_v35  ;;  %v1035_v27 = vld [vmem:[%s24374_s1 + $0x1f40] sm:$0xff]  ;;  %v1028_v15 = vld [vmem:[%s24374_s1 + $0x1f08] sm:$0xff] }
  0xc8   :  { %6580 = vmatprep.subr.bf16.mxu1 %v16132_v42  ;;  %6446 = vmatprep.mubr.bf16.mxu0 %v18406_v45  ;;  %v16244_v42 = vcombine.high %v932_v37, %v940_v38  ;;  %v1036_v28 = vld [vmem:[%s24374_s1 + $0x1f48] sm:$0xff] }
  0xc9   :  { %6610 = vmatprep.mubr.bf16.mxu1 %v18406_v45 }
  0xca   :  { %6417 = vmatpush1.bf16.msra.mxu0 %v16129_v48  ;;  %v16241_v48 = vcombine.low %v931_v34, %v939_v35  ;;  %v1043_v34 = vld [vmem:[%s24374_s1 + $0x1f80] sm:$0xff] }
  0xcb   :  { %6581 = vmatpush1.bf16.msra.mxu1 %v16131_v49  ;;  %6418 = vmatprep.subr.bf16.mxu0 %v16146_v50  ;;  %v16243_v49 = vcombine.low %v932_v37, %v940_v38  ;;  %v16258_v50 = vcombine.high %v947_v43, %v955_v44  ;;  %v1051_v35 = vld [vmem:[%s24374_s1 + $0x1fc0] sm:$0xff]  ;;  %v1044_v37 = vld [vmem:[%s24374_s1 + $0x1f88] sm:$0xff] }
  0xcc   :  { %6582 = vmatprep.subr.bf16.mxu1 %v16148_v51  ;;  %v16260_v51 = vcombine.high %v948_v46, %v956_v47  ;;  %v1052_v38 = vld [vmem:[%s24374_s1 + $0x1fc8] sm:$0xff] }
  0xce   :  { %6419 = vmatpush1.bf16.msra.mxu0 %v16145_v58  ;;  %v16257_v58 = vcombine.low %v947_v43, %v955_v44  ;;  %v37_v43 = vld [vmem:[%s24374_s1 + $0x10] sm:$0xff] }
  0xcf   :  { %6583 = vmatpush1.bf16.msra.mxu1 %v16147_v59  ;;  %6420 = vmatprep.subr.bf16.mxu0 %v16162_v60  ;;  %v16259_v59 = vcombine.low %v948_v46, %v956_v47  ;;  %v16274_v60 = vcombine.high %v963_v52, %v971_v54  ;;  %v45_v44 = vld [vmem:[%s24374_s1 + $0x50] sm:$0xff]  ;;  %v38_v46 = vld [vmem:[%s24374_s1 + $0x18] sm:$0xff] }
  0xd0   :  { %6584 = vmatprep.subr.bf16.mxu1 %v16164_v61  ;;  %v16276_v61 = vcombine.high %v964_v55, %v972_v56  ;;  %v46_v47 = vld [vmem:[%s24374_s1 + $0x58] sm:$0xff] }
  0xd2   :  { %6421 = vmatpush1.bf16.msra.mxu0 %v16161_v2  ;;  %v16273_v2 = vcombine.low %v963_v52, %v971_v54  ;;  %v53_v52 = vld [vmem:[%s24374_s1 + $0x90] sm:$0xff] }
  0xd3   :  { %6585 = vmatpush1.bf16.msra.mxu1 %v16163_v3  ;;  %6422 = vmatprep.subr.bf16.mxu0 %v16178_v4  ;;  %v16275_v3 = vcombine.low %v964_v55, %v972_v56  ;;  %v16290_v4 = vcombine.high %v979_v62, %v987_v63  ;;  %v61_v54 = vld [vmem:[%s24374_s1 + $0xd0] sm:$0xff]  ;;  %v18594_v55 = vcombine.low %v18396_v39, %v18396_v39  ;;  %v54_v56 = vld [vmem:[%s24374_s1 + $0x98] sm:$0xff] }
  0xd4   :  { %6586 = vmatprep.subr.bf16.mxu1 %v16180_v5  ;;  %v16292_v5 = vcombine.high %v980_v0, %v988_v1  ;;  %v69_v39 = vld [vmem:[%s24374_s1 + $0x110] sm:$0xff] }
  0xd6   :  { %6423 = vmatpush1.bf16.msra.mxu0 %v16177_v10  ;;  %v16289_v10 = vcombine.low %v979_v62, %v987_v63  ;;  %v77_v63 = vld [vmem:[%s24374_s1 + $0x150] sm:$0xff] }
  0xd7   :  { %6587 = vmatpush1.bf16.msra.mxu1 %v16179_v11  ;;  %6424 = vmatprep.subr.bf16.mxu0 %v16194_v13  ;;  %v16291_v11 = vcombine.low %v980_v0, %v988_v1  ;;  %v16306_v13 = vcombine.high %v995_v6, %v1003_v7  ;;  %v70_v0 = vld [vmem:[%s24374_s1 + $0x118] sm:$0xff] }
  0xd8   :  { %6588 = vmatprep.subr.bf16.mxu1 %v16196_v14  ;;  %v16308_v14 = vcombine.high %v996_v8, %v1004_v9  ;;  %v78_v1 = vld [vmem:[%s24374_s1 + $0x158] sm:$0xff] }
  0xda   :  { %6425 = vmatpush1.bf16.msra.mxu0 %v16193_v19  ;;  %v16305_v19 = vcombine.low %v995_v6, %v1003_v7  ;;  %v85_v6 = vld [vmem:[%s24374_s1 + $0x190] sm:$0xff] }
  0xdb   :  { %6589 = vmatpush1.bf16.msra.mxu1 %v16195_v20  ;;  %6426 = vmatprep.subr.bf16.mxu0 %v16210_v23  ;;  %v16307_v20 = vcombine.low %v996_v8, %v1004_v9  ;;  %v16322_v23 = vcombine.high %v1011_v16, %v1019_v53  ;;  %v93_v7 = vld [vmem:[%s24374_s1 + $0x1d0] sm:$0xff]  ;;  %v86_v8 = vld [vmem:[%s24374_s1 + $0x198] sm:$0xff] }
  0xdc   :  { %6590 = vmatprep.subr.bf16.mxu1 %v16212_v24  ;;  %v16324_v24 = vcombine.high %v1012_v17, %v1020_v18  ;;  %v94_v9 = vld [vmem:[%s24374_s1 + $0x1d8] sm:$0xff] }
  0xde   :  { %6427 = vmatpush1.bf16.msra.mxu0 %v16209_v29  ;;  %v16321_v29 = vcombine.low %v1011_v16, %v1019_v53  ;;  %v101_v16 = vld [vmem:[%s24374_s1 + $0x210] sm:$0xff] }
  0xdf   :  { %6591 = vmatpush1.bf16.msra.mxu1 %v16211_v30  ;;  %6428 = vmatprep.subr.bf16.mxu0 %v16226_v32  ;;  %v16323_v30 = vcombine.low %v1012_v17, %v1020_v18  ;;  %v16338_v32 = vcombine.high %v1027_v26, %v1035_v27  ;;  %v109_v53 = vld [vmem:[%s24374_s1 + $0x250] sm:$0xff]  ;;  %v102_v17 = vld [vmem:[%s24374_s1 + $0x218] sm:$0xff] }
  0xe0   :  { %6592 = vmatprep.subr.bf16.mxu1 %v16228_v33  ;;  %v16340_v33 = vcombine.high %v1028_v15, %v1036_v28  ;;  %v110_v18 = vld [vmem:[%s24374_s1 + $0x258] sm:$0xff] }
  0xe2   :  { %6429 = vmatpush1.bf16.msra.mxu0 %v16225_v40  ;;  %v16337_v40 = vcombine.low %v1027_v26, %v1035_v27  ;;  %v117_v26 = vld [vmem:[%s24374_s1 + $0x290] sm:$0xff] }
  0xe3   :  { %6593 = vmatpush1.bf16.msra.mxu1 %v16227_v41  ;;  %6430 = vmatprep.subr.bf16.mxu0 %v16242_v25  ;;  %v16339_v41 = vcombine.low %v1028_v15, %v1036_v28  ;;  %v16354_v25 = vcombine.high %v1043_v34, %v1051_v35  ;;  %v125_v27 = vld [vmem:[%s24374_s1 + $0x2d0] sm:$0xff]  ;;  %v118_v15 = vld [vmem:[%s24374_s1 + $0x298] sm:$0xff] }
  0xe4   :  { %6594 = vmatprep.subr.bf16.mxu1 %v16244_v42  ;;  %v16356_v42 = vcombine.high %v1044_v37, %v1052_v38  ;;  %v126_v28 = vld [vmem:[%s24374_s1 + $0x2d8] sm:$0xff] }
  0xe6   :  { %6431 = vmatpush1.bf16.msra.mxu0 %v16241_v48  ;;  %v16353_v48 = vcombine.low %v1043_v34, %v1051_v35  ;;  %v133_v34 = vld [vmem:[%s24374_s1 + $0x310] sm:$0xff] }
  0xe7   :  { %6595 = vmatpush1.bf16.msra.mxu1 %v16243_v49  ;;  %6432 = vmatprep.subr.bf16.mxu0 %v16258_v50  ;;  %v16355_v49 = vcombine.low %v1044_v37, %v1052_v38  ;;  %v15350_v50 = vcombine.high %v37_v43, %v45_v44  ;;  %v141_v35 = vld [vmem:[%s24374_s1 + $0x350] sm:$0xff]  ;;  %v134_v37 = vld [vmem:[%s24374_s1 + $0x318] sm:$0xff] }
  0xe8   :  { %6596 = vmatprep.subr.bf16.mxu1 %v16260_v51  ;;  %v15352_v51 = vcombine.high %v38_v46, %v46_v47  ;;  %v142_v38 = vld [vmem:[%s24374_s1 + $0x358] sm:$0xff] }
  0xea   :  { %6433 = vmatpush1.bf16.msra.mxu0 %v16257_v58  ;;  %v62_v58 = vld [vmem:[%s24374_s1 + $0xd8] sm:$0xff] }
  0xeb   :  { %6597 = vmatpush1.bf16.msra.mxu1 %v16259_v59  ;;  %6434 = vmatprep.subr.bf16.mxu0 %v16274_v60  ;;  %v15349_v59 = vcombine.low %v37_v43, %v45_v44  ;;  %v15351_v60 = vcombine.low %v38_v46, %v46_v47  ;;  %v15368_v62 = vcombine.high %v54_v56, %v62_v58  ;;  %v149_v43 = vld [vmem:[%s24374_s1 + $0x390] sm:$0xff]  ;;  %v150_v46 = vld [vmem:[%s24374_s1 + $0x398] sm:$0xff] }
  0xec   :  { %6598 = vmatprep.subr.bf16.mxu1 %v16276_v61  ;;  %v15366_v61 = vcombine.high %v53_v52, %v61_v54  ;;  %v157_v44 = vld [vmem:[%s24374_s1 + $0x3d0] sm:$0xff]  ;;  %v158_v47 = vld [vmem:[%s24374_s1 + $0x3d8] sm:$0xff] }
  0xee   :  { %6435 = vmatpush1.bf16.msra.mxu0 %v16273_v2  ;;  %v15365_v2 = vcombine.low %v53_v52, %v61_v54  ;;  %v165_v52 = vld [vmem:[%s24374_s1 + $0x410] sm:$0xff] }
  0xef   :  { %6599 = vmatpush1.bf16.msra.mxu1 %v16275_v3  ;;  %6436 = vmatprep.subr.bf16.mxu0 %v16290_v4  ;;  %v15367_v3 = vcombine.low %v54_v56, %v62_v58  ;;  %v15382_v4 = vcombine.high %v69_v39, %v77_v63  ;;  %v173_v54 = vld [vmem:[%s24374_s1 + $0x450] sm:$0xff]  ;;  %v166_v56 = vld [vmem:[%s24374_s1 + $0x418] sm:$0xff] }
  0xf0   :  { %6600 = vmatprep.subr.bf16.mxu1 %v16292_v5  ;;  %v15384_v5 = vcombine.high %v70_v0, %v78_v1  ;;  %v174_v58 = vld [vmem:[%s24374_s1 + $0x458] sm:$0xff] }
  0xf2   :  { %6437 = vmatpush1.bf16.msra.mxu0 %v16289_v10  ;;  %v15381_v10 = vcombine.low %v69_v39, %v77_v63  ;;  %v181_v39 = vld [vmem:[%s24374_s1 + $0x490] sm:$0xff] }
  0xf3   :  { %6601 = vmatpush1.bf16.msra.mxu1 %v16291_v11  ;;  %6438 = vmatprep.subr.bf16.mxu0 %v16306_v13  ;;  %v15383_v11 = vcombine.low %v70_v0, %v78_v1  ;;  %v15398_v13 = vcombine.high %v85_v6, %v93_v7  ;;  %v189_v63 = vld [vmem:[%s24374_s1 + $0x4d0] sm:$0xff]  ;;  %v182_v0 = vld [vmem:[%s24374_s1 + $0x498] sm:$0xff] }
  0xf4   :  { %6602 = vmatprep.subr.bf16.mxu1 %v16308_v14  ;;  %v15400_v14 = vcombine.high %v86_v8, %v94_v9  ;;  %v190_v1 = vld [vmem:[%s24374_s1 + $0x4d8] sm:$0xff] }
  0xf6   :  { %6439 = vmatpush1.bf16.msra.mxu0 %v16305_v19  ;;  %v15397_v19 = vcombine.low %v85_v6, %v93_v7  ;;  %v197_v6 = vld [vmem:[%s24374_s1 + $0x510] sm:$0xff] }
  0xf7   :  { %6603 = vmatpush1.bf16.msra.mxu1 %v16307_v20  ;;  %6440 = vmatprep.subr.bf16.mxu0 %v16322_v23  ;;  %v15399_v20 = vcombine.low %v86_v8, %v94_v9  ;;  %v15414_v23 = vcombine.high %v101_v16, %v109_v53  ;;  %v205_v7 = vld [vmem:[%s24374_s1 + $0x550] sm:$0xff]  ;;  %v198_v8 = vld [vmem:[%s24374_s1 + $0x518] sm:$0xff] }
  0xf8   :  { %6604 = vmatprep.subr.bf16.mxu1 %v16324_v24  ;;  %v15416_v24 = vcombine.high %v102_v17, %v110_v18  ;;  %v206_v9 = vld [vmem:[%s24374_s1 + $0x558] sm:$0xff] }
  0xfa   :  { %6441 = vmatpush1.bf16.msra.mxu0 %v16321_v29  ;;  %v15413_v29 = vcombine.low %v101_v16, %v109_v53  ;;  %v213_v16 = vld [vmem:[%s24374_s1 + $0x590] sm:$0xff] }
  0xfb   :  { %6605 = vmatpush1.bf16.msra.mxu1 %v16323_v30  ;;  %6442 = vmatprep.subr.bf16.mxu0 %v16338_v32  ;;  %v15415_v30 = vcombine.low %v102_v17, %v110_v18  ;;  %v15430_v32 = vcombine.high %v117_v26, %v125_v27  ;;  %v221_v53 = vld [vmem:[%s24374_s1 + $0x5d0] sm:$0xff]  ;;  %v214_v17 = vld [vmem:[%s24374_s1 + $0x598] sm:$0xff] }
  0xfc   :  { %6606 = vmatprep.subr.bf16.mxu1 %v16340_v33  ;;  %v15432_v33 = vcombine.high %v118_v15, %v126_v28  ;;  %v222_v18 = vld [vmem:[%s24374_s1 + $0x5d8] sm:$0xff] }
  0xfe   :  { %6443 = vmatpush1.bf16.msra.mxu0 %v16337_v40  ;;  %v15429_v40 = vcombine.low %v117_v26, %v125_v27  ;;  %v229_v26 = vld [vmem:[%s24374_s1 + $0x610] sm:$0xff] }
  0xff   :  { %6607 = vmatpush1.bf16.msra.mxu1 %v16339_v41  ;;  %6444 = vmatprep.subr.bf16.mxu0 %v16354_v25  ;;  %v15431_v41 = vcombine.low %v118_v15, %v126_v28  ;;  %v15446_v25 = vcombine.high %v133_v34, %v141_v35  ;;  %v237_v27 = vld [vmem:[%s24374_s1 + $0x650] sm:$0xff]  ;;  %v230_v15 = vld [vmem:[%s24374_s1 + $0x618] sm:$0xff] }
 0x100   :  { %6608 = vmatprep.subr.bf16.mxu1 %v16356_v42  ;;  %v15448_v42 = vcombine.high %v134_v37, %v142_v38  ;;  %v238_v28 = vld [vmem:[%s24374_s1 + $0x658] sm:$0xff] }
 0x102   :  { %6445 = vmatpush1.bf16.msra.mxu0 %v16353_v48  ;;  %v15445_v48 = vcombine.low %v133_v34, %v141_v35  ;;  %v245_v34 = vld [vmem:[%s24374_s1 + $0x690] sm:$0xff] }
 0x103   :  { %6609 = vmatpush1.bf16.msra.mxu1 %v16355_v49  ;;  %6619 = vmatprep.subr.bf16.mxu0 %v15350_v50  ;;  %v15447_v49 = vcombine.low %v134_v37, %v142_v38  ;;  %v15462_v50 = vcombine.high %v149_v43, %v157_v44  ;;  %v253_v35 = vld [vmem:[%s24374_s1 + $0x6d0] sm:$0xff]  ;;  %v246_v37 = vld [vmem:[%s24374_s1 + $0x698] sm:$0xff] }
 0x104   :  { %6783 = vmatprep.subr.bf16.mxu1 %v15352_v51  ;;  %v15464_v51 = vcombine.high %v150_v46, %v158_v47  ;;  %v254_v38 = vld [vmem:[%s24374_s1 + $0x6d8] sm:$0xff] }
 0x105   :  { %6447 = vmatmul.mubr.bf16.vlgmr.msra.gmra.mrb[0].mxu0 %v18594_v55 }
 0x106   :  { %6611 = vmatmul.mubr.bf16.vlgmr.msra.gmra.mrb[0].mxu1 %v18594_v55  ;;  %6620 = vmatpush1.bf16.msra.mxu0 %v15349_v59  ;;  %v15461_v59 = vcombine.low %v149_v43, %v157_v44  ;;  %v261_v43 = vld [vmem:[%s24374_s1 + $0x710] sm:$0xff] }
 0x107   :  { %6784 = vmatpush1.bf16.msra.mxu1 %v15351_v60  ;;  %6621 = vmatprep.subr.bf16.mxu0 %v15366_v61  ;;  %v15463_v60 = vcombine.low %v150_v46, %v158_v47  ;;  %v15478_v61 = vcombine.high %v165_v52, %v173_v54  ;;  %v269_v44 = vld [vmem:[%s24374_s1 + $0x750] sm:$0xff]  ;;  %v262_v46 = vld [vmem:[%s24374_s1 + $0x718] sm:$0xff] }
 0x108   :  { %6785 = vmatprep.subr.bf16.mxu1 %v15368_v62  ;;  %6651 = vmatprep.mubr.bf16.mxu0 %v17841_v57  ;;  %v15480_v62 = vcombine.high %v166_v56, %v174_v58  ;;  %v270_v47 = vld [vmem:[%s24374_s1 + $0x758] sm:$0xff] }
 0x109   :  { %6815 = vmatprep.mubr.bf16.mxu1 %v17841_v57 }
 0x10a   :  { %6622 = vmatpush1.bf16.msra.mxu0 %v15365_v2  ;;  %v15477_v2 = vcombine.low %v165_v52, %v173_v54  ;;  %v277_v52 = vld [vmem:[%s24374_s1 + $0x790] sm:$0xff] }
 0x10b   :  { %6786 = vmatpush1.bf16.msra.mxu1 %v15367_v3  ;;  %6623 = vmatprep.subr.bf16.mxu0 %v15382_v4  ;;  %v15479_v3 = vcombine.low %v166_v56, %v174_v58  ;;  %v15494_v4 = vcombine.high %v181_v39, %v189_v63  ;;  %v285_v54 = vld [vmem:[%s24374_s1 + $0x7d0] sm:$0xff]  ;;  %v278_v56 = vld [vmem:[%s24374_s1 + $0x798] sm:$0xff] }
 0x10c   :  { %6787 = vmatprep.subr.bf16.mxu1 %v15384_v5  ;;  %v15496_v5 = vcombine.high %v182_v0, %v190_v1  ;;  %v286_v58 = vld [vmem:[%s24374_s1 + $0x7d8] sm:$0xff] }
 0x10e   :  { %6624 = vmatpush1.bf16.msra.mxu0 %v15381_v10  ;;  %v15493_v10 = vcombine.low %v181_v39, %v189_v63  ;;  %v293_v39 = vld [vmem:[%s24374_s1 + $0x810] sm:$0xff] }
 0x10f   :  { %6788 = vmatpush1.bf16.msra.mxu1 %v15383_v11  ;;  %6625 = vmatprep.subr.bf16.mxu0 %v15398_v13  ;;  %v15495_v11 = vcombine.low %v182_v0, %v190_v1  ;;  %v15510_v13 = vcombine.high %v197_v6, %v205_v7  ;;  %v301_v63 = vld [vmem:[%s24374_s1 + $0x850] sm:$0xff]  ;;  %v294_v0 = vld [vmem:[%s24374_s1 + $0x818] sm:$0xff] }
 0x110   :  { %6789 = vmatprep.subr.bf16.mxu1 %v15400_v14  ;;  %v15512_v14 = vcombine.high %v198_v8, %v206_v9  ;;  %v302_v1 = vld [vmem:[%s24374_s1 + $0x858] sm:$0xff] }
 0x112   :  { %6626 = vmatpush1.bf16.msra.mxu0 %v15397_v19  ;;  %v15509_v19 = vcombine.low %v197_v6, %v205_v7  ;;  %v309_v6 = vld [vmem:[%s24374_s1 + $0x890] sm:$0xff] }
 0x113   :  { %6790 = vmatpush1.bf16.msra.mxu1 %v15399_v20  ;;  %6627 = vmatprep.subr.bf16.mxu0 %v15414_v23  ;;  %v15511_v20 = vcombine.low %v198_v8, %v206_v9  ;;  %v15526_v23 = vcombine.high %v213_v16, %v221_v53  ;;  %v317_v7 = vld [vmem:[%s24374_s1 + $0x8d0] sm:$0xff]  ;;  %v310_v8 = vld [vmem:[%s24374_s1 + $0x898] sm:$0xff] }
 0x114   :  { %6791 = vmatprep.subr.bf16.mxu1 %v15416_v24  ;;  %v15528_v24 = vcombine.high %v214_v17, %v222_v18  ;;  %v318_v9 = vld [vmem:[%s24374_s1 + $0x8d8] sm:$0xff] }
 0x116   :  { %6628 = vmatpush1.bf16.msra.mxu0 %v15413_v29  ;;  %v15525_v29 = vcombine.low %v213_v16, %v221_v53  ;;  %v325_v16 = vld [vmem:[%s24374_s1 + $0x910] sm:$0xff] }
 0x117   :  { %6792 = vmatpush1.bf16.msra.mxu1 %v15415_v30  ;;  %6629 = vmatprep.subr.bf16.mxu0 %v15430_v32  ;;  %v15527_v30 = vcombine.low %v214_v17, %v222_v18  ;;  %v15542_v32 = vcombine.high %v229_v26, %v237_v27  ;;  %v333_v53 = vld [vmem:[%s24374_s1 + $0x950] sm:$0xff]  ;;  %v326_v17 = vld [vmem:[%s24374_s1 + $0x918] sm:$0xff] }
 0x118   :  { %6793 = vmatprep.subr.bf16.mxu1 %v15432_v33  ;;  %v15544_v33 = vcombine.high %v230_v15, %v238_v28  ;;  %v334_v18 = vld [vmem:[%s24374_s1 + $0x958] sm:$0xff] }
 0x11a   :  { %6630 = vmatpush1.bf16.msra.mxu0 %v15429_v40  ;;  %v15541_v40 = vcombine.low %v229_v26, %v237_v27  ;;  %v341_v26 = vld [vmem:[%s24374_s1 + $0x990] sm:$0xff] }
 0x11b   :  { %6794 = vmatpush1.bf16.msra.mxu1 %v15431_v41  ;;  %6631 = vmatprep.subr.bf16.mxu0 %v15446_v25  ;;  %v15543_v41 = vcombine.low %v230_v15, %v238_v28  ;;  %v15558_v25 = vcombine.high %v245_v34, %v253_v35  ;;  %v349_v27 = vld [vmem:[%s24374_s1 + $0x9d0] sm:$0xff]  ;;  %v342_v15 = vld [vmem:[%s24374_s1 + $0x998] sm:$0xff] }
 0x11c   :  { %6795 = vmatprep.subr.bf16.mxu1 %v15448_v42  ;;  %v15560_v42 = vcombine.high %v246_v37, %v254_v38  ;;  %v350_v28 = vld [vmem:[%s24374_s1 + $0x9d8] sm:$0xff] }
 0x11e   :  { %6632 = vmatpush1.bf16.msra.mxu0 %v15445_v48  ;;  %v15557_v48 = vcombine.low %v245_v34, %v253_v35  ;;  %v357_v34 = vld [vmem:[%s24374_s1 + $0xa10] sm:$0xff] }
 0x11f   :  { %6796 = vmatpush1.bf16.msra.mxu1 %v15447_v49  ;;  %6633 = vmatprep.subr.bf16.mxu0 %v15462_v50  ;;  %v15559_v49 = vcombine.low %v246_v37, %v254_v38  ;;  %v15574_v50 = vcombine.high %v261_v43, %v269_v44  ;;  %v365_v35 = vld [vmem:[%s24374_s1 + $0xa50] sm:$0xff]  ;;  %v358_v37 = vld [vmem:[%s24374_s1 + $0xa18] sm:$0xff] }
 0x120   :  { %6797 = vmatprep.subr.bf16.mxu1 %v15464_v51  ;;  %v15576_v51 = vcombine.high %v262_v46, %v270_v47  ;;  %v366_v38 = vld [vmem:[%s24374_s1 + $0xa58] sm:$0xff] }
 0x122   :  { %6634 = vmatpush1.bf16.msra.mxu0 %v15461_v59  ;;  %v15573_v59 = vcombine.low %v261_v43, %v269_v44  ;;  %v373_v43 = vld [vmem:[%s24374_s1 + $0xa90] sm:$0xff] }
 0x123   :  { %6798 = vmatpush1.bf16.msra.mxu1 %v15463_v60  ;;  %6635 = vmatprep.subr.bf16.mxu0 %v15478_v61  ;;  %v15575_v60 = vcombine.low %v262_v46, %v270_v47  ;;  %v15590_v61 = vcombine.high %v277_v52, %v285_v54  ;;  %v381_v44 = vld [vmem:[%s24374_s1 + $0xad0] sm:$0xff]  ;;  %v374_v46 = vld [vmem:[%s24374_s1 + $0xa98] sm:$0xff] }
 0x124   :  { %6799 = vmatprep.subr.bf16.mxu1 %v15480_v62  ;;  %v15592_v62 = vcombine.high %v278_v56, %v286_v58  ;;  %v382_v47 = vld [vmem:[%s24374_s1 + $0xad8] sm:$0xff] }
 0x126   :  { %6636 = vmatpush1.bf16.msra.mxu0 %v15477_v2  ;;  %v15589_v2 = vcombine.low %v277_v52, %v285_v54  ;;  %v389_v52 = vld [vmem:[%s24374_s1 + $0xb10] sm:$0xff] }
 0x127   :  { %6800 = vmatpush1.bf16.msra.mxu1 %v15479_v3  ;;  %6637 = vmatprep.subr.bf16.mxu0 %v15494_v4  ;;  %v15591_v3 = vcombine.low %v278_v56, %v286_v58  ;;  %v15606_v4 = vcombine.high %v293_v39, %v301_v63  ;;  %v397_v54 = vld [vmem:[%s24374_s1 + $0xb50] sm:$0xff]  ;;  %v390_v56 = vld [vmem:[%s24374_s1 + $0xb18] sm:$0xff] }
 0x128   :  { %6801 = vmatprep.subr.bf16.mxu1 %v15496_v5  ;;  %v15608_v5 = vcombine.high %v294_v0, %v302_v1  ;;  %v398_v58 = vld [vmem:[%s24374_s1 + $0xb58] sm:$0xff] }
 0x12a   :  { %6638 = vmatpush1.bf16.msra.mxu0 %v15493_v10  ;;  %v15605_v10 = vcombine.low %v293_v39, %v301_v63  ;;  %v405_v39 = vld [vmem:[%s24374_s1 + $0xb90] sm:$0xff] }
 0x12b   :  { %6802 = vmatpush1.bf16.msra.mxu1 %v15495_v11  ;;  %6639 = vmatprep.subr.bf16.mxu0 %v15510_v13  ;;  %v15607_v11 = vcombine.low %v294_v0, %v302_v1  ;;  %v15622_v13 = vcombine.high %v309_v6, %v317_v7  ;;  %v413_v63 = vld [vmem:[%s24374_s1 + $0xbd0] sm:$0xff]  ;;  %v406_v0 = vld [vmem:[%s24374_s1 + $0xb98] sm:$0xff] }
 0x12c   :  { %6803 = vmatprep.subr.bf16.mxu1 %v15512_v14  ;;  %v15624_v14 = vcombine.high %v310_v8, %v318_v9  ;;  %v414_v1 = vld [vmem:[%s24374_s1 + $0xbd8] sm:$0xff] }
 0x12e   :  { %6640 = vmatpush1.bf16.msra.mxu0 %v15509_v19  ;;  %v15621_v19 = vcombine.low %v309_v6, %v317_v7  ;;  %v421_v6 = vld [vmem:[%s24374_s1 + $0xc10] sm:$0xff] }
 0x12f   :  { %6804 = vmatpush1.bf16.msra.mxu1 %v15511_v20  ;;  %6641 = vmatprep.subr.bf16.mxu0 %v15526_v23  ;;  %v15623_v20 = vcombine.low %v310_v8, %v318_v9  ;;  %v15638_v23 = vcombine.high %v325_v16, %v333_v53  ;;  %v429_v7 = vld [vmem:[%s24374_s1 + $0xc50] sm:$0xff]  ;;  %v422_v8 = vld [vmem:[%s24374_s1 + $0xc18] sm:$0xff] }
 0x130   :  { %6805 = vmatprep.subr.bf16.mxu1 %v15528_v24  ;;  %v15640_v24 = vcombine.high %v326_v17, %v334_v18  ;;  %v430_v9 = vld [vmem:[%s24374_s1 + $0xc58] sm:$0xff] }
 0x132   :  { %6642 = vmatpush1.bf16.msra.mxu0 %v15525_v29  ;;  %v15637_v29 = vcombine.low %v325_v16, %v333_v53  ;;  %v437_v16 = vld [vmem:[%s24374_s1 + $0xc90] sm:$0xff] }
 0x133   :  { %6806 = vmatpush1.bf16.msra.mxu1 %v15527_v30  ;;  %6643 = vmatprep.subr.bf16.mxu0 %v15542_v32  ;;  %v15639_v30 = vcombine.low %v326_v17, %v334_v18  ;;  %v15654_v32 = vcombine.high %v341_v26, %v349_v27  ;;  %v445_v53 = vld [vmem:[%s24374_s1 + $0xcd0] sm:$0xff]  ;;  %v438_v17 = vld [vmem:[%s24374_s1 + $0xc98] sm:$0xff] }
 0x134   :  { %6807 = vmatprep.subr.bf16.mxu1 %v15544_v33  ;;  %v15656_v33 = vcombine.high %v342_v15, %v350_v28  ;;  %v446_v18 = vld [vmem:[%s24374_s1 + $0xcd8] sm:$0xff] }
 0x136   :  { %6644 = vmatpush1.bf16.msra.mxu0 %v15541_v40  ;;  %v15653_v40 = vcombine.low %v341_v26, %v349_v27  ;;  %v453_v26 = vld [vmem:[%s24374_s1 + $0xd10] sm:$0xff] }
 0x137   :  { %6808 = vmatpush1.bf16.msra.mxu1 %v15543_v41  ;;  %6645 = vmatprep.subr.bf16.mxu0 %v15558_v25  ;;  %v15655_v41 = vcombine.low %v342_v15, %v350_v28  ;;  %v15670_v25 = vcombine.high %v357_v34, %v365_v35  ;;  %v461_v27 = vld [vmem:[%s24374_s1 + $0xd50] sm:$0xff]  ;;  %v454_v15 = vld [vmem:[%s24374_s1 + $0xd18] sm:$0xff] }
 0x138   :  { %6809 = vmatprep.subr.bf16.mxu1 %v15560_v42  ;;  %v15672_v42 = vcombine.high %v358_v37, %v366_v38  ;;  %v462_v28 = vld [vmem:[%s24374_s1 + $0xd58] sm:$0xff] }
 0x13a   :  { %6646 = vmatpush1.bf16.msra.mxu0 %v15557_v48  ;;  %v15669_v48 = vcombine.low %v357_v34, %v365_v35  ;;  %v469_v34 = vld [vmem:[%s24374_s1 + $0xd90] sm:$0xff] }
 0x13b   :  { %6810 = vmatpush1.bf16.msra.mxu1 %v15559_v49  ;;  %6647 = vmatprep.subr.bf16.mxu0 %v15574_v50  ;;  %v15671_v49 = vcombine.low %v358_v37, %v366_v38  ;;  %v15686_v50 = vcombine.high %v373_v43, %v381_v44  ;;  %v477_v35 = vld [vmem:[%s24374_s1 + $0xdd0] sm:$0xff]  ;;  %v470_v37 = vld [vmem:[%s24374_s1 + $0xd98] sm:$0xff] }
 0x13c   :  { %6811 = vmatprep.subr.bf16.mxu1 %v15576_v51  ;;  %v15688_v51 = vcombine.high %v374_v46, %v382_v47  ;;  %v478_v38 = vld [vmem:[%s24374_s1 + $0xdd8] sm:$0xff] }
 0x13e   :  { %6648 = vmatpush1.bf16.msra.mxu0 %v15573_v59  ;;  %v15685_v59 = vcombine.low %v373_v43, %v381_v44  ;;  %v485_v43 = vld [vmem:[%s24374_s1 + $0xe10] sm:$0xff] }
 0x13f   :  { %6812 = vmatpush1.bf16.msra.mxu1 %v15575_v60  ;;  %6649 = vmatprep.subr.bf16.mxu0 %v15590_v61  ;;  %v15687_v60 = vcombine.low %v374_v46, %v382_v47  ;;  %v15702_v61 = vcombine.high %v389_v52, %v397_v54  ;;  %v493_v44 = vld [vmem:[%s24374_s1 + $0xe50] sm:$0xff]  ;;  %v486_v46 = vld [vmem:[%s24374_s1 + $0xe18] sm:$0xff] }
 0x140   :  { %6813 = vmatprep.subr.bf16.mxu1 %v15592_v62  ;;  %v15704_v62 = vcombine.high %v390_v56, %v398_v58  ;;  %v494_v47 = vld [vmem:[%s24374_s1 + $0xe58] sm:$0xff] }
 0x142   :  { %6650 = vmatpush1.bf16.msra.mxu0 %v15589_v2  ;;  %v15701_v2 = vcombine.low %v389_v52, %v397_v54  ;;  %v501_v52 = vld [vmem:[%s24374_s1 + $0xe90] sm:$0xff] }
 0x143   :  { %6814 = vmatpush1.bf16.msra.mxu1 %v15591_v3  ;;  %6660 = vmatprep.subr.bf16.mxu0 %v15606_v4  ;;  %v15703_v3 = vcombine.low %v390_v56, %v398_v58  ;;  %v15718_v4 = vcombine.high %v405_v39, %v413_v63  ;;  %v509_v54 = vld [vmem:[%s24374_s1 + $0xed0] sm:$0xff]  ;;  %v502_v56 = vld [vmem:[%s24374_s1 + $0xe98] sm:$0xff] }
 0x144   :  { %6824 = vmatprep.subr.bf16.mxu1 %v15608_v5  ;;  %v15720_v5 = vcombine.high %v406_v0, %v414_v1  ;;  %v510_v58 = vld [vmem:[%s24374_s1 + $0xed8] sm:$0xff] }
 0x145   :  { %6652 = vmatmul.mubr.bf16.vlgmr.msra.gmra.mrb[4].mxu0 %v17967_v12 }
 0x146   :  { %6661 = vmatpush1.bf16.msra.mxu0 %v15605_v10  ;;  %6816 = vmatmul.mubr.bf16.vlgmr.msra.gmra.mrb[4].mxu1 %v17967_v12  ;;  %v15717_v10 = vcombine.low %v405_v39, %v413_v63  ;;  %v517_v39 = vld [vmem:[%s24374_s1 + $0xf10] sm:$0xff] }
 0x147   :  { %6825 = vmatpush1.bf16.msra.mxu1 %v15607_v11  ;;  %6662 = vmatprep.subr.bf16.mxu0 %v15622_v13  ;;  %v15719_v11 = vcombine.low %v406_v0, %v414_v1  ;;  %v15734_v13 = vcombine.high %v421_v6, %v429_v7  ;;  %v525_v63 = vld [vmem:[%s24374_s1 + $0xf50] sm:$0xff]  ;;  %v518_v0 = vld [vmem:[%s24374_s1 + $0xf18] sm:$0xff] }
 0x148   :  { %6826 = vmatprep.subr.bf16.mxu1 %v15624_v14  ;;  %6692 = vmatprep.mubr.bf16.mxu0 %v17988_v21  ;;  %v15736_v14 = vcombine.high %v422_v8, %v430_v9  ;;  %v526_v1 = vld [vmem:[%s24374_s1 + $0xf58] sm:$0xff] }
 0x149   :  { %6856 = vmatprep.mubr.bf16.mxu1 %v17988_v21 }
 0x14a   :  { %6663 = vmatpush1.bf16.msra.mxu0 %v15621_v19  ;;  %v15733_v19 = vcombine.low %v421_v6, %v429_v7  ;;  %v533_v6 = vld [vmem:[%s24374_s1 + $0xf90] sm:$0xff] }
 0x14b   :  { %6827 = vmatpush1.bf16.msra.mxu1 %v15623_v20  ;;  %6664 = vmatprep.subr.bf16.mxu0 %v15638_v23  ;;  %v15735_v20 = vcombine.low %v422_v8, %v430_v9  ;;  %v15750_v23 = vcombine.high %v437_v16, %v445_v53  ;;  %v541_v7 = vld [vmem:[%s24374_s1 + $0xfd0] sm:$0xff]  ;;  %v534_v8 = vld [vmem:[%s24374_s1 + $0xf98] sm:$0xff] }
 0x14c   :  { %6828 = vmatprep.subr.bf16.mxu1 %v15640_v24  ;;  %v15752_v24 = vcombine.high %v438_v17, %v446_v18  ;;  %v542_v9 = vld [vmem:[%s24374_s1 + $0xfd8] sm:$0xff] }
 0x14e   :  { %6665 = vmatpush1.bf16.msra.mxu0 %v15637_v29  ;;  %v15749_v29 = vcombine.low %v437_v16, %v445_v53  ;;  %v549_v16 = vld [vmem:[%s24374_s1 + $0x1010] sm:$0xff] }
 0x14f   :  { %6829 = vmatpush1.bf16.msra.mxu1 %v15639_v30  ;;  %6666 = vmatprep.subr.bf16.mxu0 %v15654_v32  ;;  %v15751_v30 = vcombine.low %v438_v17, %v446_v18  ;;  %v15766_v32 = vcombine.high %v453_v26, %v461_v27  ;;  %v557_v53 = vld [vmem:[%s24374_s1 + $0x1050] sm:$0xff]  ;;  %v550_v17 = vld [vmem:[%s24374_s1 + $0x1018] sm:$0xff] }
 0x150   :  { %6830 = vmatprep.subr.bf16.mxu1 %v15656_v33  ;;  %v15768_v33 = vcombine.high %v454_v15, %v462_v28  ;;  %v558_v18 = vld [vmem:[%s24374_s1 + $0x1058] sm:$0xff] }
 0x152   :  { %6667 = vmatpush1.bf16.msra.mxu0 %v15653_v40  ;;  %v15765_v40 = vcombine.low %v453_v26, %v461_v27  ;;  %v565_v26 = vld [vmem:[%s24374_s1 + $0x1090] sm:$0xff] }
 0x153   :  { %6831 = vmatpush1.bf16.msra.mxu1 %v15655_v41  ;;  %6668 = vmatprep.subr.bf16.mxu0 %v15670_v25  ;;  %v15767_v41 = vcombine.low %v454_v15, %v462_v28  ;;  %v15782_v25 = vcombine.high %v469_v34, %v477_v35  ;;  %v573_v27 = vld [vmem:[%s24374_s1 + $0x10d0] sm:$0xff]  ;;  %v566_v15 = vld [vmem:[%s24374_s1 + $0x1098] sm:$0xff] }
 0x154   :  { %6832 = vmatprep.subr.bf16.mxu1 %v15672_v42  ;;  %v15784_v42 = vcombine.high %v470_v37, %v478_v38  ;;  %v574_v28 = vld [vmem:[%s24374_s1 + $0x10d8] sm:$0xff] }
 0x156   :  { %6669 = vmatpush1.bf16.msra.mxu0 %v15669_v48  ;;  %v15781_v48 = vcombine.low %v469_v34, %v477_v35  ;;  %v581_v34 = vld [vmem:[%s24374_s1 + $0x1110] sm:$0xff] }
 0x157   :  { %6833 = vmatpush1.bf16.msra.mxu1 %v15671_v49  ;;  %6670 = vmatprep.subr.bf16.mxu0 %v15686_v50  ;;  %v15783_v49 = vcombine.low %v470_v37, %v478_v38  ;;  %v15798_v50 = vcombine.high %v485_v43, %v493_v44  ;;  %v589_v35 = vld [vmem:[%s24374_s1 + $0x1150] sm:$0xff]  ;;  %v582_v37 = vld [vmem:[%s24374_s1 + $0x1118] sm:$0xff] }
 0x158   :  { %6834 = vmatprep.subr.bf16.mxu1 %v15688_v51  ;;  %v15800_v51 = vcombine.high %v486_v46, %v494_v47  ;;  %v590_v38 = vld [vmem:[%s24374_s1 + $0x1158] sm:$0xff] }
 0x15a   :  { %6671 = vmatpush1.bf16.msra.mxu0 %v15685_v59  ;;  %v15797_v59 = vcombine.low %v485_v43, %v493_v44  ;;  %v597_v43 = vld [vmem:[%s24374_s1 + $0x1190] sm:$0xff] }
 0x15b   :  { %6835 = vmatpush1.bf16.msra.mxu1 %v15687_v60  ;;  %6672 = vmatprep.subr.bf16.mxu0 %v15702_v61  ;;  %v15799_v60 = vcombine.low %v486_v46, %v494_v47  ;;  %v15814_v61 = vcombine.high %v501_v52, %v509_v54  ;;  %v605_v44 = vld [vmem:[%s24374_s1 + $0x11d0] sm:$0xff]  ;;  %v598_v46 = vld [vmem:[%s24374_s1 + $0x1198] sm:$0xff] }
 0x15c   :  { %6836 = vmatprep.subr.bf16.mxu1 %v15704_v62  ;;  %v15816_v62 = vcombine.high %v502_v56, %v510_v58  ;;  %v606_v47 = vld [vmem:[%s24374_s1 + $0x11d8] sm:$0xff] }
 0x15e   :  { %6673 = vmatpush1.bf16.msra.mxu0 %v15701_v2  ;;  %v15813_v2 = vcombine.low %v501_v52, %v509_v54  ;;  %v613_v52 = vld [vmem:[%s24374_s1 + $0x1210] sm:$0xff] }
 0x15f   :  { %6837 = vmatpush1.bf16.msra.mxu1 %v15703_v3  ;;  %6674 = vmatprep.subr.bf16.mxu0 %v15718_v4  ;;  %v15815_v3 = vcombine.low %v502_v56, %v510_v58  ;;  %v15830_v4 = vcombine.high %v517_v39, %v525_v63  ;;  %v621_v54 = vld [vmem:[%s24374_s1 + $0x1250] sm:$0xff]  ;;  %v614_v56 = vld [vmem:[%s24374_s1 + $0x1218] sm:$0xff] }
 0x160   :  { %6838 = vmatprep.subr.bf16.mxu1 %v15720_v5  ;;  %v15832_v5 = vcombine.high %v518_v0, %v526_v1  ;;  %v622_v58 = vld [vmem:[%s24374_s1 + $0x1258] sm:$0xff] }
 0x162   :  { %6675 = vmatpush1.bf16.msra.mxu0 %v15717_v10  ;;  %v15829_v10 = vcombine.low %v517_v39, %v525_v63  ;;  %v629_v39 = vld [vmem:[%s24374_s1 + $0x1290] sm:$0xff] }
 0x163   :  { %6839 = vmatpush1.bf16.msra.mxu1 %v15719_v11  ;;  %6676 = vmatprep.subr.bf16.mxu0 %v15734_v13  ;;  %v15831_v11 = vcombine.low %v518_v0, %v526_v1  ;;  %v15846_v13 = vcombine.high %v533_v6, %v541_v7  ;;  %v637_v63 = vld [vmem:[%s24374_s1 + $0x12d0] sm:$0xff]  ;;  %v630_v0 = vld [vmem:[%s24374_s1 + $0x1298] sm:$0xff] }
 0x164   :  { %6840 = vmatprep.subr.bf16.mxu1 %v15736_v14  ;;  %v15848_v14 = vcombine.high %v534_v8, %v542_v9  ;;  %v638_v1 = vld [vmem:[%s24374_s1 + $0x12d8] sm:$0xff] }
 0x166   :  { %6677 = vmatpush1.bf16.msra.mxu0 %v15733_v19  ;;  %v15845_v19 = vcombine.low %v533_v6, %v541_v7  ;;  %v645_v6 = vld [vmem:[%s24374_s1 + $0x1310] sm:$0xff] }
 0x167   :  { %6841 = vmatpush1.bf16.msra.mxu1 %v15735_v20  ;;  %6678 = vmatprep.subr.bf16.mxu0 %v15750_v23  ;;  %v15847_v20 = vcombine.low %v534_v8, %v542_v9  ;;  %v15862_v23 = vcombine.high %v549_v16, %v557_v53  ;;  %v653_v7 = vld [vmem:[%s24374_s1 + $0x1350] sm:$0xff]  ;;  %v646_v8 = vld [vmem:[%s24374_s1 + $0x1318] sm:$0xff] }
 0x168   :  { %6842 = vmatprep.subr.bf16.mxu1 %v15752_v24  ;;  %v15864_v24 = vcombine.high %v550_v17, %v558_v18  ;;  %v654_v9 = vld [vmem:[%s24374_s1 + $0x1358] sm:$0xff] }
 0x16a   :  { %6679 = vmatpush1.bf16.msra.mxu0 %v15749_v29  ;;  %v15861_v29 = vcombine.low %v549_v16, %v557_v53  ;;  %v661_v16 = vld [vmem:[%s24374_s1 + $0x1390] sm:$0xff] }
 0x16b   :  { %6843 = vmatpush1.bf16.msra.mxu1 %v15751_v30  ;;  %6680 = vmatprep.subr.bf16.mxu0 %v15766_v32  ;;  %v15863_v30 = vcombine.low %v550_v17, %v558_v18  ;;  %v15878_v32 = vcombine.high %v565_v26, %v573_v27  ;;  %v669_v53 = vld [vmem:[%s24374_s1 + $0x13d0] sm:$0xff]  ;;  %v662_v17 = vld [vmem:[%s24374_s1 + $0x1398] sm:$0xff] }
 0x16c   :  { %6844 = vmatprep.subr.bf16.mxu1 %v15768_v33  ;;  %v15880_v33 = vcombine.high %v566_v15, %v574_v28  ;;  %v670_v18 = vld [vmem:[%s24374_s1 + $0x13d8] sm:$0xff] }
 0x16e   :  { %6681 = vmatpush1.bf16.msra.mxu0 %v15765_v40  ;;  %v15877_v40 = vcombine.low %v565_v26, %v573_v27  ;;  %v677_v26 = vld [vmem:[%s24374_s1 + $0x1410] sm:$0xff] }
 0x16f   :  { %6845 = vmatpush1.bf16.msra.mxu1 %v15767_v41  ;;  %6682 = vmatprep.subr.bf16.mxu0 %v15782_v25  ;;  %v15879_v41 = vcombine.low %v566_v15, %v574_v28  ;;  %v15894_v25 = vcombine.high %v581_v34, %v589_v35  ;;  %v685_v27 = vld [vmem:[%s24374_s1 + $0x1450] sm:$0xff]  ;;  %v678_v15 = vld [vmem:[%s24374_s1 + $0x1418] sm:$0xff] }
 0x170   :  { %6846 = vmatprep.subr.bf16.mxu1 %v15784_v42  ;;  %v15896_v42 = vcombine.high %v582_v37, %v590_v38  ;;  %v686_v28 = vld [vmem:[%s24374_s1 + $0x1458] sm:$0xff] }
 0x172   :  { %6683 = vmatpush1.bf16.msra.mxu0 %v15781_v48  ;;  %v15893_v48 = vcombine.low %v581_v34, %v589_v35  ;;  %v693_v34 = vld [vmem:[%s24374_s1 + $0x1490] sm:$0xff] }
 0x173   :  { %6847 = vmatpush1.bf16.msra.mxu1 %v15783_v49  ;;  %6684 = vmatprep.subr.bf16.mxu0 %v15798_v50  ;;  %v15895_v49 = vcombine.low %v582_v37, %v590_v38  ;;  %v15910_v50 = vcombine.high %v597_v43, %v605_v44  ;;  %v701_v35 = vld [vmem:[%s24374_s1 + $0x14d0] sm:$0xff]  ;;  %v694_v37 = vld [vmem:[%s24374_s1 + $0x1498] sm:$0xff] }
 0x174   :  { %6848 = vmatprep.subr.bf16.mxu1 %v15800_v51  ;;  %v15912_v51 = vcombine.high %v598_v46, %v606_v47  ;;  %v702_v38 = vld [vmem:[%s24374_s1 + $0x14d8] sm:$0xff] }
 0x176   :  { %6685 = vmatpush1.bf16.msra.mxu0 %v15797_v59  ;;  %v15909_v59 = vcombine.low %v597_v43, %v605_v44  ;;  %v709_v43 = vld [vmem:[%s24374_s1 + $0x1510] sm:$0xff] }
 0x177   :  { %6849 = vmatpush1.bf16.msra.mxu1 %v15799_v60  ;;  %6686 = vmatprep.subr.bf16.mxu0 %v15814_v61  ;;  %v15911_v60 = vcombine.low %v598_v46, %v606_v47  ;;  %v15926_v61 = vcombine.high %v613_v52, %v621_v54  ;;  %v717_v44 = vld [vmem:[%s24374_s1 + $0x1550] sm:$0xff]  ;;  %v710_v46 = vld [vmem:[%s24374_s1 + $0x1518] sm:$0xff] }
 0x178   :  { %6850 = vmatprep.subr.bf16.mxu1 %v15816_v62  ;;  %v15928_v62 = vcombine.high %v614_v56, %v622_v58  ;;  %v718_v47 = vld [vmem:[%s24374_s1 + $0x1558] sm:$0xff] }
 0x17a   :  { %6687 = vmatpush1.bf16.msra.mxu0 %v15813_v2  ;;  %v15925_v2 = vcombine.low %v613_v52, %v621_v54  ;;  %v725_v52 = vld [vmem:[%s24374_s1 + $0x1590] sm:$0xff] }
 0x17b   :  { %6851 = vmatpush1.bf16.msra.mxu1 %v15815_v3  ;;  %6688 = vmatprep.subr.bf16.mxu0 %v15830_v4  ;;  %v15927_v3 = vcombine.low %v614_v56, %v622_v58  ;;  %v15942_v4 = vcombine.high %v629_v39, %v637_v63  ;;  %v733_v54 = vld [vmem:[%s24374_s1 + $0x15d0] sm:$0xff]  ;;  %v726_v56 = vld [vmem:[%s24374_s1 + $0x1598] sm:$0xff] }
 0x17c   :  { %6852 = vmatprep.subr.bf16.mxu1 %v15832_v5  ;;  %v15944_v5 = vcombine.high %v630_v0, %v638_v1  ;;  %v734_v58 = vld [vmem:[%s24374_s1 + $0x15d8] sm:$0xff] }
 0x17e   :  { %6689 = vmatpush1.bf16.msra.mxu0 %v15829_v10  ;;  %v15941_v10 = vcombine.low %v629_v39, %v637_v63  ;;  %v741_v39 = vld [vmem:[%s24374_s1 + $0x1610] sm:$0xff] }
 0x17f   :  { %6853 = vmatpush1.bf16.msra.mxu1 %v15831_v11  ;;  %6690 = vmatprep.subr.bf16.mxu0 %v15846_v13  ;;  %v15943_v11 = vcombine.low %v630_v0, %v638_v1  ;;  %v15958_v13 = vcombine.high %v645_v6, %v653_v7  ;;  %v749_v63 = vld [vmem:[%s24374_s1 + $0x1650] sm:$0xff]  ;;  %v742_v0 = vld [vmem:[%s24374_s1 + $0x1618] sm:$0xff] }
 0x180   :  { %6854 = vmatprep.subr.bf16.mxu1 %v15848_v14  ;;  %v15960_v14 = vcombine.high %v646_v8, %v654_v9  ;;  %v750_v1 = vld [vmem:[%s24374_s1 + $0x1658] sm:$0xff] }
 0x182   :  { %6691 = vmatpush1.bf16.msra.mxu0 %v15845_v19  ;;  %v15957_v19 = vcombine.low %v645_v6, %v653_v7  ;;  %v757_v6 = vld [vmem:[%s24374_s1 + $0x1690] sm:$0xff] }
 0x183   :  { %6855 = vmatpush1.bf16.msra.mxu1 %v15847_v20  ;;  %6701 = vmatprep.subr.bf16.mxu0 %v15862_v23  ;;  %v15959_v20 = vcombine.low %v646_v8, %v654_v9  ;;  %v15974_v23 = vcombine.high %v661_v16, %v669_v53  ;;  %v765_v7 = vld [vmem:[%s24374_s1 + $0x16d0] sm:$0xff]  ;;  %v758_v8 = vld [vmem:[%s24374_s1 + $0x1698] sm:$0xff] }
 0x184   :  { %6865 = vmatprep.subr.bf16.mxu1 %v15864_v24  ;;  %v15976_v24 = vcombine.high %v662_v17, %v670_v18  ;;  %v766_v9 = vld [vmem:[%s24374_s1 + $0x16d8] sm:$0xff] }
 0x185   :  { %6693 = vmatmul.mubr.bf16.vlgmr.msra.gmra.mrb[4].mxu0 %v18176_v22 }
 0x186   :  { %6702 = vmatpush1.bf16.msra.mxu0 %v15861_v29  ;;  %6857 = vmatmul.mubr.bf16.vlgmr.msra.gmra.mrb[4].mxu1 %v18176_v22  ;;  %v15973_v29 = vcombine.low %v661_v16, %v669_v53  ;;  %v773_v16 = vld [vmem:[%s24374_s1 + $0x1710] sm:$0xff] }
 0x187   :  { %6866 = vmatpush1.bf16.msra.mxu1 %v15863_v30  ;;  %6703 = vmatprep.subr.bf16.mxu0 %v15878_v32  ;;  %v15975_v30 = vcombine.low %v662_v17, %v670_v18  ;;  %v15990_v32 = vcombine.high %v677_v26, %v685_v27  ;;  %v781_v53 = vld [vmem:[%s24374_s1 + $0x1750] sm:$0xff]  ;;  %v774_v17 = vld [vmem:[%s24374_s1 + $0x1718] sm:$0xff] }
 0x188   :  { %6867 = vmatprep.subr.bf16.mxu1 %v15880_v33  ;;  %6733 = vmatprep.mubr.bf16.mxu0 %v18197_v31  ;;  %v15992_v33 = vcombine.high %v678_v15, %v686_v28  ;;  %v782_v18 = vld [vmem:[%s24374_s1 + $0x1758] sm:$0xff] }
 0x189   :  { %6897 = vmatprep.mubr.bf16.mxu1 %v18197_v31 }
 0x18a   :  { %6704 = vmatpush1.bf16.msra.mxu0 %v15877_v40  ;;  %v15989_v40 = vcombine.low %v677_v26, %v685_v27  ;;  %v789_v26 = vld [vmem:[%s24374_s1 + $0x1790] sm:$0xff] }
 0x18b   :  { %6868 = vmatpush1.bf16.msra.mxu1 %v15879_v41  ;;  %6705 = vmatprep.subr.bf16.mxu0 %v15894_v25  ;;  %v15991_v41 = vcombine.low %v678_v15, %v686_v28  ;;  %v16006_v25 = vcombine.high %v693_v34, %v701_v35  ;;  %v797_v27 = vld [vmem:[%s24374_s1 + $0x17d0] sm:$0xff]  ;;  %v790_v15 = vld [vmem:[%s24374_s1 + $0x1798] sm:$0xff] }
 0x18c   :  { %6869 = vmatprep.subr.bf16.mxu1 %v15896_v42  ;;  %v16008_v42 = vcombine.high %v694_v37, %v702_v38  ;;  %v798_v28 = vld [vmem:[%s24374_s1 + $0x17d8] sm:$0xff] }
 0x18e   :  { %6706 = vmatpush1.bf16.msra.mxu0 %v15893_v48  ;;  %v16005_v48 = vcombine.low %v693_v34, %v701_v35  ;;  %v805_v34 = vld [vmem:[%s24374_s1 + $0x1810] sm:$0xff] }
 0x18f   :  { %6870 = vmatpush1.bf16.msra.mxu1 %v15895_v49  ;;  %6707 = vmatprep.subr.bf16.mxu0 %v15910_v50  ;;  %v16007_v49 = vcombine.low %v694_v37, %v702_v38  ;;  %v16022_v50 = vcombine.high %v709_v43, %v717_v44  ;;  %v813_v35 = vld [vmem:[%s24374_s1 + $0x1850] sm:$0xff]  ;;  %v806_v37 = vld [vmem:[%s24374_s1 + $0x1818] sm:$0xff] }
 0x190   :  { %6871 = vmatprep.subr.bf16.mxu1 %v15912_v51  ;;  %v16024_v51 = vcombine.high %v710_v46, %v718_v47  ;;  %v814_v38 = vld [vmem:[%s24374_s1 + $0x1858] sm:$0xff] }
 0x192   :  { %6708 = vmatpush1.bf16.msra.mxu0 %v15909_v59  ;;  %v16021_v59 = vcombine.low %v709_v43, %v717_v44  ;;  %v821_v43 = vld [vmem:[%s24374_s1 + $0x1890] sm:$0xff] }
 0x193   :  { %6872 = vmatpush1.bf16.msra.mxu1 %v15911_v60  ;;  %6709 = vmatprep.subr.bf16.mxu0 %v15926_v61  ;;  %v16023_v60 = vcombine.low %v710_v46, %v718_v47  ;;  %v16038_v61 = vcombine.high %v725_v52, %v733_v54  ;;  %v829_v44 = vld [vmem:[%s24374_s1 + $0x18d0] sm:$0xff]  ;;  %v822_v46 = vld [vmem:[%s24374_s1 + $0x1898] sm:$0xff] }
 0x194   :  { %6873 = vmatprep.subr.bf16.mxu1 %v15928_v62  ;;  %v16040_v62 = vcombine.high %v726_v56, %v734_v58  ;;  %v830_v47 = vld [vmem:[%s24374_s1 + $0x18d8] sm:$0xff] }
 0x196   :  { %6710 = vmatpush1.bf16.msra.mxu0 %v15925_v2  ;;  %v16037_v2 = vcombine.low %v725_v52, %v733_v54  ;;  %v837_v52 = vld [vmem:[%s24374_s1 + $0x1910] sm:$0xff] }
 0x197   :  { %6874 = vmatpush1.bf16.msra.mxu1 %v15927_v3  ;;  %6711 = vmatprep.subr.bf16.mxu0 %v15942_v4  ;;  %v16039_v3 = vcombine.low %v726_v56, %v734_v58  ;;  %v16054_v4 = vcombine.high %v741_v39, %v749_v63  ;;  %v845_v54 = vld [vmem:[%s24374_s1 + $0x1950] sm:$0xff]  ;;  %v838_v56 = vld [vmem:[%s24374_s1 + $0x1918] sm:$0xff] }
 0x198   :  { %6875 = vmatprep.subr.bf16.mxu1 %v15944_v5  ;;  %v16056_v5 = vcombine.high %v742_v0, %v750_v1  ;;  %v846_v58 = vld [vmem:[%s24374_s1 + $0x1958] sm:$0xff] }
 0x19a   :  { %6712 = vmatpush1.bf16.msra.mxu0 %v15941_v10  ;;  %v16053_v10 = vcombine.low %v741_v39, %v749_v63  ;;  %v853_v39 = vld [vmem:[%s24374_s1 + $0x1990] sm:$0xff] }
 0x19b   :  { %6876 = vmatpush1.bf16.msra.mxu1 %v15943_v11  ;;  %6713 = vmatprep.subr.bf16.mxu0 %v15958_v13  ;;  %v16055_v11 = vcombine.low %v742_v0, %v750_v1  ;;  %v16070_v13 = vcombine.high %v757_v6, %v765_v7  ;;  %v861_v63 = vld [vmem:[%s24374_s1 + $0x19d0] sm:$0xff]  ;;  %v854_v0 = vld [vmem:[%s24374_s1 + $0x1998] sm:$0xff] }
 0x19c   :  { %6877 = vmatprep.subr.bf16.mxu1 %v15960_v14  ;;  %v16072_v14 = vcombine.high %v758_v8, %v766_v9  ;;  %v862_v1 = vld [vmem:[%s24374_s1 + $0x19d8] sm:$0xff] }
 0x19e   :  { %6714 = vmatpush1.bf16.msra.mxu0 %v15957_v19  ;;  %v16069_v19 = vcombine.low %v757_v6, %v765_v7  ;;  %v16168_v6 = vcombine.high %v854_v0, %v862_v1  ;;  %v869_v7 = vld [vmem:[%s24374_s1 + $0x1a10] sm:$0xff] }
 0x19f   :  { %6878 = vmatpush1.bf16.msra.mxu1 %v15959_v20  ;;  %6715 = vmatprep.subr.bf16.mxu0 %v15974_v23  ;;  %v16071_v20 = vcombine.low %v758_v8, %v766_v9  ;;  %v16086_v23 = vcombine.high %v773_v16, %v781_v53  ;;  %v877_v8 = vld [vmem:[%s24374_s1 + $0x1a50] sm:$0xff]  ;;  %v870_v9 = vld [vmem:[%s24374_s1 + $0x1a18] sm:$0xff] }
 0x1a0   :  { %6879 = vmatprep.subr.bf16.mxu1 %v15976_v24  ;;  %v16088_v24 = vcombine.high %v774_v17, %v782_v18 }
 0x1a2   :  { %6716 = vmatpush1.bf16.msra.mxu0 %v15973_v29  ;;  %v16085_v29 = vcombine.low %v773_v16, %v781_v53  ;;  %v16182_v16 = vcombine.high %v869_v7, %v877_v8 }
 0x1a3   :  { %6880 = vmatpush1.bf16.msra.mxu1 %v15975_v30  ;;  %6717 = vmatprep.subr.bf16.mxu0 %v15990_v32  ;;  %v16087_v30 = vcombine.low %v774_v17, %v782_v18  ;;  %v16102_v32 = vcombine.high %v789_v26, %v797_v27  ;;  %v885_v17 = vld [vmem:[%s24374_s1 + $0x1a90] sm:$0xff] }
 0x1a4   :  { %6881 = vmatprep.subr.bf16.mxu1 %v15992_v33  ;;  %v16104_v33 = vcombine.high %v790_v15, %v798_v28  ;;  %v893_v18 = vld [vmem:[%s24374_s1 + $0x1ad0] sm:$0xff] }
 0x1a6   :  { %6718 = vmatpush1.bf16.msra.mxu0 %v15989_v40  ;;  %v16101_v40 = vcombine.low %v789_v26, %v797_v27  ;;  %v1059_v26 = vld [vmem:[%s24375_s2] sm:$0xff] }
 0x1a7   :  { %6882 = vmatpush1.bf16.msra.mxu1 %v15991_v41  ;;  %6719 = vmatprep.subr.bf16.mxu0 %v16006_v25  ;;  %v16103_v41 = vcombine.low %v790_v15, %v798_v28  ;;  %v16118_v25 = vcombine.high %v805_v34, %v813_v35 }
 0x1a8   :  { %6883 = vmatprep.subr.bf16.mxu1 %v16008_v42  ;;  %v16120_v42 = vcombine.high %v806_v37, %v814_v38 }
 0x1aa   :  { %6720 = vmatpush1.bf16.msra.mxu0 %v16005_v48  ;;  %v16117_v48 = vcombine.low %v805_v34, %v813_v35  ;;  %v909_v34 = vld [vmem:[%s24374_s1 + $0x1b50] sm:$0xff] }
 0x1ab   :  { %6884 = vmatpush1.bf16.msra.mxu1 %v16007_v49  ;;  %6721 = vmatprep.subr.bf16.mxu0 %v16022_v50  ;;  %v16119_v49 = vcombine.low %v806_v37, %v814_v38  ;;  %v16134_v50 = vcombine.high %v821_v43, %v829_v44  ;;  %v902_v37 = vld [vmem:[%s24374_s1 + $0x1b18] sm:$0xff] }
 0x1ac   :  { %6885 = vmatprep.subr.bf16.mxu1 %v16024_v51  ;;  %v16136_v51 = vcombine.high %v822_v46, %v830_v47  ;;  %v910_v38 = vld [vmem:[%s24374_s1 + $0x1b58] sm:$0xff] }
 0x1ae   :  { %6722 = vmatpush1.bf16.msra.mxu0 %v16021_v59  ;;  %v16133_v59 = vcombine.low %v821_v43, %v829_v44 }
 0x1af   :  { %6886 = vmatpush1.bf16.msra.mxu1 %v16023_v60  ;;  %6723 = vmatprep.subr.bf16.mxu0 %v16038_v61  ;;  %v16135_v60 = vcombine.low %v822_v46, %v830_v47  ;;  %v16150_v61 = vcombine.high %v837_v52, %v845_v54  ;;  %v917_v46 = vld [vmem:[%s24374_s1 + $0x1b90] sm:$0xff] }
 0x1b0   :  { %6887 = vmatprep.subr.bf16.mxu1 %v16040_v62  ;;  %v16152_v62 = vcombine.high %v838_v56, %v846_v58  ;;  %v925_v47 = vld [vmem:[%s24374_s1 + $0x1bd0] sm:$0xff] }
 0x1b2   :  { %6724 = vmatpush1.bf16.msra.mxu0 %v16037_v2  ;;  %v1063_v2 = vlaneseq }
 0x1b3   :  { %6888 = vmatpush1.bf16.msra.mxu1 %v16039_v3  ;;  %6725 = vmatprep.subr.bf16.mxu0 %v16054_v4  ;;  %v16149_v3 = vcombine.low %v837_v52, %v845_v54  ;;  %v16151_v4 = vcombine.low %v838_v56, %v846_v58 }
 0x1b4   :  { %6889 = vmatprep.subr.bf16.mxu1 %v16056_v5  ;;  %v16166_v5 = vcombine.high %v853_v39, %v861_v63 }
 0x1b6   :  { %6726 = vmatpush1.bf16.msra.mxu0 %v16053_v10  ;;  %v878_v10 = vld [vmem:[%s24374_s1 + $0x1a58] sm:$0xff] }
 0x1b7   :  { %6890 = vmatpush1.bf16.msra.mxu1 %v16055_v11  ;;  %6727 = vmatprep.subr.bf16.mxu0 %v16070_v13  ;;  %v19230_v11 = vshrl.u32 %v1063_v2, 7  ;;  %v16165_v13 = vcombine.low %v853_v39, %v861_v63  ;;  %v16184_v53 = vcombine.high %v870_v9, %v878_v10  ;;  %v16183_v28 = vcombine.low %v870_v9, %v878_v10 }
 0x1b8   :  { %6891 = vmatprep.subr.bf16.mxu1 %v16072_v14  ;;  %v16167_v14 = vcombine.low %v854_v0, %v862_v1  ;;  %v16229_v63 = vcombine.low %v917_v46, %v925_v47  ;;  %v16230_v0 = vcombine.high %v917_v46, %v925_v47  ;;  %v17691_v9 = vmov 0  }
 0x1b9   :  { %v19251_v27 = vsub.s32 2, %v19230_v11  ;;  %v19254_v15 = vsub.s32 1, %v19230_v11 }
 0x1ba   :  { %6728 = vmatpush1.bf16.msra.mxu0 %v16069_v19  ;;  %v19239_v19 = vsub.s32 0, %v19230_v11 }
 0x1bb   :  { %6892 = vmatpush1.bf16.msra.mxu1 %v16071_v20  ;;  %6729 = vmatprep.subr.bf16.mxu0 %v16086_v23  ;;  %v886_v20 = vld [vmem:[%s24374_s1 + $0x1a98] sm:$0xff] }
 0x1bc   :  { %6893 = vmatprep.subr.bf16.mxu1 %v16088_v24  ;;  %v894_v23 = vld [vmem:[%s24374_s1 + $0x1ad8] sm:$0xff]  ;;  %v16181_v24 = vcombine.low %v869_v7, %v877_v8  ;;  %v1066_v35 = vrot.slane %v1059_v26, %v19239_v19  ;;  %v17690_v7 = vmov 0.2  }
 0x1bd   :  { %v16199_v43 = vcombine.low %v886_v20, %v894_v23 }
 0x1be   :  { %6730 = vmatpush1.bf16.msra.mxu0 %v16085_v29  ;;  %v19257_v29 = vsub.s32 3, %v19230_v11 }
 0x1bf   :  { %6894 = vmatpush1.bf16.msra.mxu1 %v16087_v30  ;;  %6731 = vmatprep.subr.bf16.mxu0 %v16102_v32  ;;  %v16198_v30 = vcombine.high %v885_v17, %v893_v18  ;;  %v16200_v32 = vcombine.high %v886_v20, %v894_v23  ;;  %v934_v20 = vld [vmem:[%s24374_s1 + $0x1c18] sm:$0xff] }
 0x1c0   :  { %6895 = vmatprep.subr.bf16.mxu1 %v16104_v33  ;;  %v901_v33 = vld [vmem:[%s24374_s1 + $0x1b10] sm:$0xff]  ;;  %v942_v23 = vld [vmem:[%s24374_s1 + $0x1c58] sm:$0xff] }
 0x1c1   :  { %v16214_v44 = vcombine.high %v901_v33, %v909_v34  ;;  %v16213_v58 = vcombine.low %v901_v33, %v909_v34 }
 0x1c2   :  { %6732 = vmatpush1.bf16.msra.mxu0 %v16101_v40  ;;  %v1074_v40 = vrot.slane %v1059_v26, %v19251_v27 }
 0x1c3   :  { %6896 = vmatpush1.bf16.msra.mxu1 %v16103_v41  ;;  %6742 = vmatprep.subr.bf16.mxu0 %v16118_v25  ;;  %v1070_v41 = vrot.slane %v1059_v26, %v19254_v15  ;;  %v16197_v25 = vcombine.low %v885_v17, %v893_v18 }
 0x1c4   :  { %6906 = vmatprep.subr.bf16.mxu1 %v16120_v42  ;;  %v1078_v42 = vrot.slane %v1059_v26, %v19257_v29 }
 0x1c5   :  { %6734 = vmatmul.mubr.bf16.vlgmr.msra.gmra.mrb[4].mxu0 %v18385_v36 }
 0x1c6   :  { %6743 = vmatpush1.bf16.msra.mxu0 %v16117_v48  ;;  %6898 = vmatmul.mubr.bf16.vlgmr.msra.gmra.mrb[4].mxu1 %v18385_v36 }
 0x1c7   :  { %6907 = vmatpush1.bf16.msra.mxu1 %v16119_v49  ;;  %6744 = vmatprep.subr.bf16.mxu0 %v16134_v50  ;;  %v16216_v49 = vcombine.high %v902_v37, %v910_v38  ;;  %v918_v50 = vld [vmem:[%s24374_s1 + $0x1b98] sm:$0xff] }
 0x1c8   :  { %6908 = vmatprep.subr.bf16.mxu1 %v16136_v51  ;;  %6774 = vmatprep.mubr.bf16.mxu0 %v18406_v45  ;;  %v926_v51 = vld [vmem:[%s24374_s1 + $0x1bd8] sm:$0xff] }
 0x1c9   :  { %6938 = vmatprep.mubr.bf16.mxu1 %v18406_v45 }
 0x1ca   :  { %6745 = vmatpush1.bf16.msra.mxu0 %v16133_v59  ;;  %v16215_v59 = vcombine.low %v902_v37, %v910_v38  ;;  %v16248_v38 = vcombine.high %v934_v20, %v942_v23 }
 0x1cb   :  { %6909 = vmatpush1.bf16.msra.mxu1 %v16135_v60  ;;  %6746 = vmatprep.subr.bf16.mxu0 %v16150_v61 }
 0x1cc   :  { %6910 = vmatprep.subr.bf16.mxu1 %v16152_v62 }
 0x1ce   :  { %6747 = vmatpush1.bf16.msra.mxu0 %v16149_v3 }
 0x1cf   :  { %6911 = vmatpush1.bf16.msra.mxu1 %v16151_v4  ;;  %6748 = vmatprep.subr.bf16.mxu0 %v16166_v5  ;;  %v16231_v4 = vcombine.low %v918_v50, %v926_v51  ;;  %v16232_v5 = vcombine.high %v918_v50, %v926_v51  ;;  %v973_v50 = vld [vmem:[%s24374_s1 + $0x1d50] sm:$0xff]  ;;  %v966_v51 = vld [vmem:[%s24374_s1 + $0x1d18] sm:$0xff] }
 0x1d0   :  { %6912 = vmatprep.subr.bf16.mxu1 %v16168_v6  ;;  %v933_v6 = vld [vmem:[%s24374_s1 + $0x1c10] sm:$0xff] }
 0x1d2   :  { %6749 = vmatpush1.bf16.msra.mxu0 %v16165_v13 }
 0x1d3   :  { %6913 = vmatpush1.bf16.msra.mxu1 %v16167_v14  ;;  %6750 = vmatprep.subr.bf16.mxu0 %v16182_v16  ;;  %v941_v14 = vld [vmem:[%s24374_s1 + $0x1c50] sm:$0xff] }
 0x1d4   :  { %6914 = vmatprep.subr.bf16.mxu1 %v16184_v53  ;;  %v16246_v34 = vcombine.high %v933_v6, %v941_v14 }
 0x1d6   :  { %6751 = vmatpush1.bf16.msra.mxu0 %v16181_v24 }
 0x1d7   :  { %6915 = vmatpush1.bf16.msra.mxu1 %v16183_v28  ;;  %6752 = vmatprep.subr.bf16.mxu0 %v16198_v30 }
 0x1d8   :  { %v6448_v48 = vpop.f32.mrb[0].mxu0  ;;  %6916 = vmatprep.subr.bf16.mxu1 %v16200_v32 }
 0x1d9   :  { %v17394_v52 = vadd.f32 %v6448_v48, %v1066_v35  ;;  %v6612_v54 = vpop.f32.mrb[0].mxu1  ;;  %v6450_v56 = vpop.f32.mrb[1].mxu0 }
 0x1da   :  { %v17396_v60 = vadd.f32 %v6612_v54, %v1074_v40  ;;  %v17395_v61 = vadd.f32 %v6450_v56, %v1070_v41  ;;  %v6614_v62 = vpop.f32.mrb[1].mxu1  ;;  %v6452_v39 = vpop.f32.mrb[2].mxu0  ;;  %6753 = vmatpush1.bf16.msra.mxu0 %v16197_v25  ;;  %v949_v40 = vld [vmem:[%s24374_s1 + $0x1c90] sm:$0xff]  ;;  %v950_v25 = vld [vmem:[%s24374_s1 + $0x1c98] sm:$0xff] }
 0x1db   :  { %vm7603_vm0 = vcmp.gt.f32.partialorder %v17394_v52, 0.0  ;;  %v17397_v1 = vadd.f32 %v6614_v62, %v1078_v42  ;;  %v6616_v2 = vpop.f32.mrb[2].mxu1  ;;  %6917 = vmatpush1.bf16.msra.mxu1 %v16199_v43  ;;  %v6453_v3 = vpop.f32.mrb[3].mxu0  ;;  %6754 = vmatprep.subr.bf16.mxu0 %v16214_v44  ;;  %v957_v41 = vld [vmem:[%s24374_s1 + $0x1cd0] sm:$0xff]  ;;  %v958_v42 = vld [vmem:[%s24374_s1 + $0x1cd8] sm:$0xff]  ;;  %v16245_v43 = vcombine.low %v933_v6, %v941_v14  ;;  %v16247_v44 = vcombine.low %v934_v20, %v942_v23 }
 0x1dc   :  { %v7619_v8 = vsel %vm7603_vm0, 1.0, %v17690_v7  ;;  %v7635_v10 = vsel %vm7603_vm0, 1, %v17691_v9  ;;  %vm7605_vm1 = vcmp.gt.f32.partialorder %v17396_v60, 0.0  ;;  %vm7604_vm2 = vcmp.gt.f32.partialorder %v17395_v61, 0.0  ;;  %v6617_v13 = vpop.f32.mrb[3].mxu1  ;;  %6918 = vmatprep.subr.bf16.mxu1 %v16216_v49  ;;  %v965_v49 = vld [vmem:[%s24374_s1 + $0x1d10] sm:$0xff] }
 0x1dd   :  { %v19295_v16 = vmul.f32 %v17394_v52, %v7619_v8  ;;  %v7621_v53 = vsel %vm7605_vm1, 1.0, %v17690_v7  ;;  %v7637_v17 = vsel %vm7605_vm1, 1, %v17691_v9  ;;  %v7620_v18 = vsel %vm7604_vm2, 1.0, %v17690_v7  ;;  %v974_v52 = vld [vmem:[%s24374_s1 + $0x1d58] sm:$0xff]  ;;  %v997_v3 = vld [vmem:[%s24374_s1 + $0x1e10] sm:$0xff] }
 0x1de   :  { %v19306_v24 = vmul.f32 %v17396_v60, %v7621_v53  ;;  %v7636_v26 = vsel %vm7604_vm2, 1, %v17691_v9  ;;  %v19309_v28 = vmul.f32 %v17395_v61, %v7620_v18  ;;  %vm7606_vm3 = vcmp.gt.f32.partialorder %v17397_v1, 0.0  ;;  %6755 = vmatpush1.bf16.msra.mxu0 %v16213_v58  ;;  %v981_v60 = vld [vmem:[%s24374_s1 + $0x1d90] sm:$0xff]  ;;  %v982_v62 = vld [vmem:[%s24374_s1 + $0x1d98] sm:$0xff] }
 0x1df   :  { %v7651_v30 = vpack.c.b16 %v7636_v26, %v7635_v10  ;;  %v7622_v32 = vsel %vm7606_vm3, 1.0, %v17690_v7  ;;  %v7638_v33 = vsel %vm7606_vm3, 1, %v17691_v9  ;;  %6919 = vmatpush1.bf16.msra.mxu1 %v16215_v59  ;;  %6756 = vmatprep.subr.bf16.mxu0 %v16230_v0  ;;  %v16262_v46 = vcombine.high %v949_v40, %v957_v41  ;;  %v989_v61 = vld [vmem:[%s24374_s1 + $0x1dd0] sm:$0xff]  ;;  %v990_v39 = vld [vmem:[%s24374_s1 + $0x1dd8] sm:$0xff] }
 0x1e0   :  { %v7652_v35 = vpack.c.b16 %v7638_v33, %v7637_v17  ;;  %v19313_v37 = vmul.f32 %v17397_v1, %v7622_v32  ;;  %6920 = vmatprep.subr.bf16.mxu1 %v16232_v5  ;;  %v16264_v48 = vcombine.high %v950_v25, %v958_v42  ;;  %v16261_v54 = vcombine.low %v949_v40, %v957_v41  ;;  %v998_v5 = vld [vmem:[%s24374_s1 + $0x1e18] sm:$0xff]  ;;  %v1013_v53 = vld [vmem:[%s24374_s1 + $0x1e90] sm:$0xff] }
 0x1e1   :  { %v16263_v56 = vcombine.low %v950_v25, %v958_v42  ;;  %v16278_v58 = vcombine.high %v965_v49, %v973_v50  ;;  %v16280_v59 = vcombine.high %v966_v51, %v974_v52  ;;  %v16279_v0 = vcombine.low %v966_v51, %v974_v52  ;;  %v1006_v6 = vld [vmem:[%s24374_s1 + $0x1e58] sm:$0xff]  ;;  %v1021_v17 = vld [vmem:[%s24374_s1 + $0x1ed0] sm:$0xff]  ;;  %v39_v52 = vld [vmem:[%s24374_s1 + $0x20] sm:$0xff] }
 0x1e2   :  { %6757 = vmatpush1.bf16.msra.mxu0 %v16229_v63  ;;  %v7653_v47 = vpack.c.b8 %v7652_v35, %v7651_v30  ;;  %v16277_v63 = vcombine.low %v965_v49, %v973_v50  ;;  %v16294_v1 = vcombine.high %v981_v60, %v989_v61  ;;  %v16296_v2 = vcombine.high %v982_v62, %v990_v39  ;;  %v1014_v18 = vld [vmem:[%s24374_s1 + $0x1e98] sm:$0xff]  ;;  %v1029_v33 = vld [vmem:[%s24374_s1 + $0x1f10] sm:$0xff] }
 0x1e3   :  { %6921 = vmatpush1.bf16.msra.mxu1 %v16231_v4  ;;  %6758 = vmatprep.subr.bf16.mxu0 %v16246_v34  ;;  %v1005_v4 = vld [vmem:[%s24374_s1 + $0x1e50] sm:$0xff]  ;;  %v16293_v8 = vcombine.low %v981_v60, %v989_v61  ;;  %v16295_v10 = vcombine.low %v982_v62, %v990_v39  ;;  %v16312_v14 = vcombine.high %v998_v5, %v1006_v6  ;;  %v1022_v20 = vld [vmem:[%s24374_s1 + $0x1ed8] sm:$0xff]  ;;  %v55_v39 = vld [vmem:[%s24374_s1 + $0xa0] sm:$0xff] }
 0x1e4   :  { %6922 = vmatprep.subr.bf16.mxu1 %v16248_v38  ;;  %7663 = vst [vmem:[#allocation2] sm:$0xff] %v7653_v47  ;;  %v16310_v13 = vcombine.high %v997_v3, %v1005_v4  ;;  %v16309_v23 = vcombine.low %v997_v3, %v1005_v4  ;;  %v16311_v26 = vcombine.low %v998_v5, %v1006_v6  ;;  %v1037_v34 = vld [vmem:[%s24374_s1 + $0x1f50] sm:$0xff]  ;;  %v1030_v35 = vld [vmem:[%s24374_s1 + $0x1f18] sm:$0xff]  ;;  %v71_v6 = vld [vmem:[%s24374_s1 + $0x120] sm:$0xff] }
 0x1e5   :  { %v16326_v30 = vcombine.high %v1013_v53, %v1021_v17  ;;  %v16328_v32 = vcombine.high %v1014_v18, %v1022_v20  ;;  %v1038_v38 = vld [vmem:[%s24374_s1 + $0x1f58] sm:$0xff]  ;;  %v16325_v40 = vcombine.low %v1013_v53, %v1021_v17  ;;  %v16327_v41 = vcombine.low %v1014_v18, %v1022_v20  ;;  %v87_v20 = vld [vmem:[%s24374_s1 + $0x1a0] sm:$0xff] }
 0x1e6   :  { %6759 = vmatpush1.bf16.msra.mxu0 %v16245_v43  ;;  %v16342_v25 = vcombine.high %v1029_v33, %v1037_v34  ;;  %v16344_v42 = vcombine.high %v1030_v35, %v1038_v38  ;;  %v1045_v43 = vld [vmem:[%s24374_s1 + $0x1f90] sm:$0xff]  ;;  %v1054_v47 = vld [vmem:[%s24374_s1 + $0x1fd8] sm:$0xff]  ;;  %v16343_v49 = vcombine.low %v1030_v35, %v1038_v38  ;;  %v103_v38 = vld [vmem:[%s24374_s1 + $0x220] sm:$0xff] }
 0x1e7   :  { %6923 = vmatpush1.bf16.msra.mxu1 %v16247_v44  ;;  %6760 = vmatprep.subr.bf16.mxu0 %v16262_v46  ;;  %v1053_v44 = vld [vmem:[%s24374_s1 + $0x1fd0] sm:$0xff]  ;;  %v1046_v46 = vld [vmem:[%s24374_s1 + $0x1f98] sm:$0xff] }
 0x1e8   :  { %6924 = vmatprep.subr.bf16.mxu1 %v16264_v48  ;;  %v16341_v48 = vcombine.low %v1029_v33, %v1037_v34  ;;  %v16358_v50 = vcombine.high %v1045_v43, %v1053_v44  ;;  %v16360_v51 = vcombine.high %v1046_v46, %v1054_v47  ;;  %v16359_v60 = vcombine.low %v1046_v46, %v1054_v47  ;;  %v119_v47 = vld [vmem:[%s24374_s1 + $0x2a0] sm:$0xff] }
 0x1ea   :  { %6761 = vmatpush1.bf16.msra.mxu0 %v16261_v54  ;;  %v47_v54 = vld [vmem:[%s24374_s1 + $0x60] sm:$0xff] }
 0x1eb   :  { %6925 = vmatpush1.bf16.msra.mxu1 %v16263_v56  ;;  %6762 = vmatprep.subr.bf16.mxu0 %v16278_v58  ;;  %v40_v56 = vld [vmem:[%s24374_s1 + $0x28] sm:$0xff]  ;;  %v15354_v61 = vcombine.high %v39_v52, %v47_v54 }
 0x1ec   :  { %6926 = vmatprep.subr.bf16.mxu1 %v16280_v59  ;;  %v48_v58 = vld [vmem:[%s24374_s1 + $0x68] sm:$0xff]  ;;  %v16357_v59 = vcombine.low %v1045_v43, %v1053_v44 }
 0x1ed   :  { %v15356_v62 = vcombine.high %v40_v56, %v48_v58  ;;  %v15355_v3 = vcombine.low %v40_v56, %v48_v58  ;;  %v135_v58 = vld [vmem:[%s24374_s1 + $0x320] sm:$0xff] }
 0x1ee   :  { %6763 = vmatpush1.bf16.msra.mxu0 %v16277_v63  ;;  %v63_v63 = vld [vmem:[%s24374_s1 + $0xe0] sm:$0xff] }
 0x1ef   :  { %6927 = vmatpush1.bf16.msra.mxu1 %v16279_v0  ;;  %6764 = vmatprep.subr.bf16.mxu0 %v16294_v1  ;;  %v56_v0 = vld [vmem:[%s24374_s1 + $0xa8] sm:$0xff]  ;;  %v15370_v4 = vcombine.high %v55_v39, %v63_v63 }
 0x1f0   :  { %6928 = vmatprep.subr.bf16.mxu1 %v16296_v2  ;;  %v64_v1 = vld [vmem:[%s24374_s1 + $0xe8] sm:$0xff]  ;;  %v15353_v2 = vcombine.low %v39_v52, %v47_v54 }
 0x1f1   :  { %v15372_v5 = vcombine.high %v56_v0, %v64_v1  ;;  %v15371_v53 = vcombine.low %v56_v0, %v64_v1  ;;  %v151_v1 = vld [vmem:[%s24374_s1 + $0x3a0] sm:$0xff] }
 0x1f2   :  { %6765 = vmatpush1.bf16.msra.mxu0 %v16293_v8  ;;  %v79_v8 = vld [vmem:[%s24374_s1 + $0x160] sm:$0xff] }
 0x1f3   :  { %6929 = vmatpush1.bf16.msra.mxu1 %v16295_v10  ;;  %6766 = vmatprep.subr.bf16.mxu0 %v16310_v13  ;;  %v72_v10 = vld [vmem:[%s24374_s1 + $0x128] sm:$0xff]  ;;  %v15386_v17 = vcombine.high %v71_v6, %v79_v8 }
 0x1f4   :  { %6930 = vmatprep.subr.bf16.mxu1 %v16312_v14  ;;  %v80_v13 = vld [vmem:[%s24374_s1 + $0x168] sm:$0xff]  ;;  %v15369_v14 = vcombine.low %v55_v39, %v63_v63 }
 0x1f5   :  { %v15388_v18 = vcombine.high %v72_v10, %v80_v13  ;;  %v15387_v33 = vcombine.low %v72_v10, %v80_v13  ;;  %v167_v13 = vld [vmem:[%s24374_s1 + $0x420] sm:$0xff] }
 0x1f6   :  { %6767 = vmatpush1.bf16.msra.mxu0 %v16309_v23  ;;  %v95_v23 = vld [vmem:[%s24374_s1 + $0x1e0] sm:$0xff] }
 0x1f7   :  { %6931 = vmatpush1.bf16.msra.mxu1 %v16311_v26  ;;  %6768 = vmatprep.subr.bf16.mxu0 %v16326_v30  ;;  %v88_v26 = vld [vmem:[%s24374_s1 + $0x1a8] sm:$0xff]  ;;  %v15402_v34 = vcombine.high %v87_v20, %v95_v23 }
 0x1f8   :  { %6932 = vmatprep.subr.bf16.mxu1 %v16328_v32  ;;  %v96_v30 = vld [vmem:[%s24374_s1 + $0x1e8] sm:$0xff]  ;;  %v15385_v32 = vcombine.low %v71_v6, %v79_v8 }
 0x1f9   :  { %v15404_v35 = vcombine.high %v88_v26, %v96_v30  ;;  %v15403_v43 = vcombine.low %v88_v26, %v96_v30  ;;  %v183_v30 = vld [vmem:[%s24374_s1 + $0x4a0] sm:$0xff] }
 0x1fa   :  { %6769 = vmatpush1.bf16.msra.mxu0 %v16325_v40  ;;  %v111_v40 = vld [vmem:[%s24374_s1 + $0x260] sm:$0xff] }
 0x1fb   :  { %6933 = vmatpush1.bf16.msra.mxu1 %v16327_v41  ;;  %6770 = vmatprep.subr.bf16.mxu0 %v16342_v25  ;;  %v104_v41 = vld [vmem:[%s24374_s1 + $0x228] sm:$0xff]  ;;  %v15418_v44 = vcombine.high %v103_v38, %v111_v40 }
 0x1fc   :  { %6934 = vmatprep.subr.bf16.mxu1 %v16344_v42  ;;  %v112_v25 = vld [vmem:[%s24374_s1 + $0x268] sm:$0xff]  ;;  %v15401_v42 = vcombine.low %v87_v20, %v95_v23 }
 0x1fd   :  { %v15420_v46 = vcombine.high %v104_v41, %v112_v25  ;;  %v15419_v52 = vcombine.low %v104_v41, %v112_v25  ;;  %v199_v25 = vld [vmem:[%s24374_s1 + $0x520] sm:$0xff] }
 0x1fe   :  { %6771 = vmatpush1.bf16.msra.mxu0 %v16341_v48  ;;  %v127_v48 = vld [vmem:[%s24374_s1 + $0x2e0] sm:$0xff] }
 0x1ff   :  { %6935 = vmatpush1.bf16.msra.mxu1 %v16343_v49  ;;  %6772 = vmatprep.subr.bf16.mxu0 %v16358_v50  ;;  %v120_v49 = vld [vmem:[%s24374_s1 + $0x2a8] sm:$0xff]  ;;  %v15434_v54 = vcombine.high %v119_v47, %v127_v48 }
 0x200   :  { %6936 = vmatprep.subr.bf16.mxu1 %v16360_v51  ;;  %v128_v50 = vld [vmem:[%s24374_s1 + $0x2e8] sm:$0xff]  ;;  %v15417_v51 = vcombine.low %v103_v38, %v111_v40 }
 0x201   :  { %v15436_v56 = vcombine.high %v120_v49, %v128_v50  ;;  %v15435_v39 = vcombine.low %v120_v49, %v128_v50  ;;  %v215_v50 = vld [vmem:[%s24374_s1 + $0x5a0] sm:$0xff] }
 0x202   :  { %6773 = vmatpush1.bf16.msra.mxu0 %v16357_v59  ;;  %v143_v59 = vld [vmem:[%s24374_s1 + $0x360] sm:$0xff] }
 0x203   :  { %6937 = vmatpush1.bf16.msra.mxu1 %v16359_v60  ;;  %6947 = vmatprep.subr.bf16.mxu0 %v15354_v61  ;;  %v136_v60 = vld [vmem:[%s24374_s1 + $0x328] sm:$0xff]  ;;  %v15450_v63 = vcombine.high %v135_v58, %v143_v59 }
 0x204   :  { %7111 = vmatprep.subr.bf16.mxu1 %v15356_v62  ;;  %v144_v61 = vld [vmem:[%s24374_s1 + $0x368] sm:$0xff]  ;;  %v15433_v62 = vcombine.low %v119_v47, %v127_v48 }
 0x205   :  { %6775 = vmatmul.mubr.bf16.vlgmr.msra.gmra.mrb[4].mxu0 %v18594_v55  ;;  %v15452_v0 = vcombine.high %v136_v60, %v144_v61  ;;  %v15451_v6 = vcombine.low %v136_v60, %v144_v61  ;;  %v231_v61 = vld [vmem:[%s24374_s1 + $0x620] sm:$0xff] }
 0x206   :  { %6939 = vmatmul.mubr.bf16.vlgmr.msra.gmra.mrb[4].mxu1 %v18594_v55  ;;  %6948 = vmatpush1.bf16.msra.mxu0 %v15353_v2  ;;  %v159_v2 = vld [vmem:[%s24374_s1 + $0x3e0] sm:$0xff] }
 0x207   :  { %7112 = vmatpush1.bf16.msra.mxu1 %v15355_v3  ;;  %6949 = vmatprep.subr.bf16.mxu0 %v15370_v4  ;;  %v152_v3 = vld [vmem:[%s24374_s1 + $0x3a8] sm:$0xff]  ;;  %v15466_v8 = vcombine.high %v151_v1, %v159_v2 }
 0x208   :  { %7113 = vmatprep.subr.bf16.mxu1 %v15372_v5  ;;  %6979 = vmatprep.mubr.bf16.mxu0 %v17841_v57  ;;  %v160_v4 = vld [vmem:[%s24374_s1 + $0x3e8] sm:$0xff]  ;;  %v15449_v5 = vcombine.low %v135_v58, %v143_v59 }
 0x209   :  { %7143 = vmatprep.mubr.bf16.mxu1 %v17841_v57  ;;  %v15468_v10 = vcombine.high %v152_v3, %v160_v4  ;;  %v15467_v20 = vcombine.low %v152_v3, %v160_v4  ;;  %v247_v4 = vld [vmem:[%s24374_s1 + $0x6a0] sm:$0xff] }
 0x20a   :  { %6950 = vmatpush1.bf16.msra.mxu0 %v15369_v14  ;;  %v175_v14 = vld [vmem:[%s24374_s1 + $0x460] sm:$0xff] }
 0x20b   :  { %7114 = vmatpush1.bf16.msra.mxu1 %v15371_v53  ;;  %6951 = vmatprep.subr.bf16.mxu0 %v15386_v17  ;;  %v168_v53 = vld [vmem:[%s24374_s1 + $0x428] sm:$0xff]  ;;  %v15482_v23 = vcombine.high %v167_v13, %v175_v14 }
 0x20c   :  { %7115 = vmatprep.subr.bf16.mxu1 %v15388_v18  ;;  %v176_v17 = vld [vmem:[%s24374_s1 + $0x468] sm:$0xff]  ;;  %v15465_v18 = vcombine.low %v151_v1, %v159_v2 }
 0x20d   :  { %v15484_v26 = vcombine.high %v168_v53, %v176_v17  ;;  %v15483_v38 = vcombine.low %v168_v53, %v176_v17  ;;  %v263_v17 = vld [vmem:[%s24374_s1 + $0x720] sm:$0xff] }
 0x20e   :  { %6952 = vmatpush1.bf16.msra.mxu0 %v15385_v32  ;;  %v191_v32 = vld [vmem:[%s24374_s1 + $0x4e0] sm:$0xff] }
 0x20f   :  { %7116 = vmatpush1.bf16.msra.mxu1 %v15387_v33  ;;  %6953 = vmatprep.subr.bf16.mxu0 %v15402_v34  ;;  %v184_v33 = vld [vmem:[%s24374_s1 + $0x4a8] sm:$0xff]  ;;  %v15498_v40 = vcombine.high %v183_v30, %v191_v32 }
 0x210   :  { %7117 = vmatprep.subr.bf16.mxu1 %v15404_v35  ;;  %v192_v34 = vld [vmem:[%s24374_s1 + $0x4e8] sm:$0xff]  ;;  %v15481_v35 = vcombine.low %v167_v13, %v175_v14 }
 0x211   :  { %v15500_v41 = vcombine.high %v184_v33, %v192_v34  ;;  %v15499_v47 = vcombine.low %v184_v33, %v192_v34  ;;  %v279_v34 = vld [vmem:[%s24374_s1 + $0x7a0] sm:$0xff] }
 0x212   :  { %6954 = vmatpush1.bf16.msra.mxu0 %v15401_v42  ;;  %v207_v42 = vld [vmem:[%s24374_s1 + $0x560] sm:$0xff] }
 0x213   :  { %7118 = vmatpush1.bf16.msra.mxu1 %v15403_v43  ;;  %6955 = vmatprep.subr.bf16.mxu0 %v15418_v44  ;;  %v200_v43 = vld [vmem:[%s24374_s1 + $0x528] sm:$0xff]  ;;  %v15514_v48 = vcombine.high %v199_v25, %v207_v42 }
 0x214   :  { %7119 = vmatprep.subr.bf16.mxu1 %v15420_v46  ;;  %v208_v44 = vld [vmem:[%s24374_s1 + $0x568] sm:$0xff]  ;;  %v15497_v46 = vcombine.low %v183_v30, %v191_v32 }
 0x215   :  { %v15516_v49 = vcombine.high %v200_v43, %v208_v44  ;;  %v15515_v58 = vcombine.low %v200_v43, %v208_v44  ;;  %v295_v44 = vld [vmem:[%s24374_s1 + $0x820] sm:$0xff] }
 0x216   :  { %6956 = vmatpush1.bf16.msra.mxu0 %v15417_v51  ;;  %v223_v51 = vld [vmem:[%s24374_s1 + $0x5e0] sm:$0xff] }
 0x217   :  { %7120 = vmatpush1.bf16.msra.mxu1 %v15419_v52  ;;  %6957 = vmatprep.subr.bf16.mxu0 %v15434_v54  ;;  %v216_v52 = vld [vmem:[%s24374_s1 + $0x5a8] sm:$0xff]  ;;  %v15530_v59 = vcombine.high %v215_v50, %v223_v51 }
 0x218   :  { %7121 = vmatprep.subr.bf16.mxu1 %v15436_v56  ;;  %v224_v54 = vld [vmem:[%s24374_s1 + $0x5e8] sm:$0xff]  ;;  %v15513_v56 = vcombine.low %v199_v25, %v207_v42 }
 0x219   :  { %v15532_v60 = vcombine.high %v216_v52, %v224_v54  ;;  %v15531_v1 = vcombine.low %v216_v52, %v224_v54  ;;  %v311_v54 = vld [vmem:[%s24374_s1 + $0x8a0] sm:$0xff] }
 0x21a   :  { %6958 = vmatpush1.bf16.msra.mxu0 %v15433_v62  ;;  %v239_v62 = vld [vmem:[%s24374_s1 + $0x660] sm:$0xff] }
 0x21b   :  { %7122 = vmatpush1.bf16.msra.mxu1 %v15435_v39  ;;  %6959 = vmatprep.subr.bf16.mxu0 %v15450_v63  ;;  %v232_v39 = vld [vmem:[%s24374_s1 + $0x628] sm:$0xff]  ;;  %v15546_v2 = vcombine.high %v231_v61, %v239_v62 }
 0x21c   :  { %7123 = vmatprep.subr.bf16.mxu1 %v15452_v0  ;;  %v240_v63 = vld [vmem:[%s24374_s1 + $0x668] sm:$0xff]  ;;  %v15529_v0 = vcombine.low %v215_v50, %v223_v51 }
 0x21d   :  { %v15548_v3 = vcombine.high %v232_v39, %v240_v63  ;;  %v15547_v13 = vcombine.low %v232_v39, %v240_v63  ;;  %v327_v63 = vld [vmem:[%s24374_s1 + $0x920] sm:$0xff] }
 0x21e   :  { %6960 = vmatpush1.bf16.msra.mxu0 %v15449_v5  ;;  %v255_v5 = vld [vmem:[%s24374_s1 + $0x6e0] sm:$0xff] }
 0x21f   :  { %7124 = vmatpush1.bf16.msra.mxu1 %v15451_v6  ;;  %6961 = vmatprep.subr.bf16.mxu0 %v15466_v8  ;;  %v248_v6 = vld [vmem:[%s24374_s1 + $0x6a8] sm:$0xff]  ;;  %v15562_v14 = vcombine.high %v247_v4, %v255_v5 }
 0x220   :  { %7125 = vmatprep.subr.bf16.mxu1 %v15468_v10  ;;  %v256_v8 = vld [vmem:[%s24374_s1 + $0x6e8] sm:$0xff]  ;;  %v15545_v10 = vcombine.low %v231_v61, %v239_v62 }
 0x221   :  { %v15564_v53 = vcombine.high %v248_v6, %v256_v8  ;;  %v15563_v30 = vcombine.low %v248_v6, %v256_v8  ;;  %v343_v8 = vld [vmem:[%s24374_s1 + $0x9a0] sm:$0xff] }
 0x222   :  { %6962 = vmatpush1.bf16.msra.mxu0 %v15465_v18  ;;  %v271_v18 = vld [vmem:[%s24374_s1 + $0x760] sm:$0xff] }
 0x223   :  { %7126 = vmatpush1.bf16.msra.mxu1 %v15467_v20  ;;  %6963 = vmatprep.subr.bf16.mxu0 %v15482_v23  ;;  %v264_v20 = vld [vmem:[%s24374_s1 + $0x728] sm:$0xff]  ;;  %v15578_v32 = vcombine.high %v263_v17, %v271_v18 }
 0x224   :  { %7127 = vmatprep.subr.bf16.mxu1 %v15484_v26  ;;  %v272_v23 = vld [vmem:[%s24374_s1 + $0x768] sm:$0xff]  ;;  %v15561_v26 = vcombine.low %v247_v4, %v255_v5 }
 0x225   :  { %v15580_v33 = vcombine.high %v264_v20, %v272_v23  ;;  %v15579_v25 = vcombine.low %v264_v20, %v272_v23  ;;  %v359_v23 = vld [vmem:[%s24374_s1 + $0xa20] sm:$0xff] }
 0x226   :  { %6964 = vmatpush1.bf16.msra.mxu0 %v15481_v35  ;;  %v287_v35 = vld [vmem:[%s24374_s1 + $0x7e0] sm:$0xff] }
 0x227   :  { %7128 = vmatpush1.bf16.msra.mxu1 %v15483_v38  ;;  %6965 = vmatprep.subr.bf16.mxu0 %v15498_v40  ;;  %v280_v38 = vld [vmem:[%s24374_s1 + $0x7a8] sm:$0xff]  ;;  %v15594_v42 = vcombine.high %v279_v34, %v287_v35 }
 0x228   :  { %7129 = vmatprep.subr.bf16.mxu1 %v15500_v41  ;;  %v288_v40 = vld [vmem:[%s24374_s1 + $0x7e8] sm:$0xff]  ;;  %v15577_v41 = vcombine.low %v263_v17, %v271_v18 }
 0x229   :  { %v15596_v43 = vcombine.high %v280_v38, %v288_v40  ;;  %v15595_v50 = vcombine.low %v280_v38, %v288_v40  ;;  %v375_v40 = vld [vmem:[%s24374_s1 + $0xaa0] sm:$0xff] }
 0x22a   :  { %6966 = vmatpush1.bf16.msra.mxu0 %v15497_v46  ;;  %v303_v46 = vld [vmem:[%s24374_s1 + $0x860] sm:$0xff] }
 0x22b   :  { %7130 = vmatpush1.bf16.msra.mxu1 %v15499_v47  ;;  %6967 = vmatprep.subr.bf16.mxu0 %v15514_v48  ;;  %v296_v47 = vld [vmem:[%s24374_s1 + $0x828] sm:$0xff]  ;;  %v15610_v51 = vcombine.high %v295_v44, %v303_v46 }
 0x22c   :  { %7131 = vmatprep.subr.bf16.mxu1 %v15516_v49  ;;  %v304_v48 = vld [vmem:[%s24374_s1 + $0x868] sm:$0xff]  ;;  %v15593_v49 = vcombine.low %v279_v34, %v287_v35 }
 0x22d   :  { %v15612_v52 = vcombine.high %v296_v47, %v304_v48  ;;  %v15611_v61 = vcombine.low %v296_v47, %v304_v48  ;;  %v391_v48 = vld [vmem:[%s24374_s1 + $0xb20] sm:$0xff] }
 0x22e   :  { %6968 = vmatpush1.bf16.msra.mxu0 %v15513_v56  ;;  %v319_v56 = vld [vmem:[%s24374_s1 + $0x8e0] sm:$0xff] }
 0x22f   :  { %7132 = vmatpush1.bf16.msra.mxu1 %v15515_v58  ;;  %6969 = vmatprep.subr.bf16.mxu0 %v15530_v59  ;;  %v312_v58 = vld [vmem:[%s24374_s1 + $0x8a8] sm:$0xff]  ;;  %v15626_v62 = vcombine.high %v311_v54, %v319_v56 }
 0x230   :  { %7133 = vmatprep.subr.bf16.mxu1 %v15532_v60  ;;  %v320_v59 = vld [vmem:[%s24374_s1 + $0x8e8] sm:$0xff]  ;;  %v15609_v60 = vcombine.low %v295_v44, %v303_v46 }
 0x231   :  { %v15628_v39 = vcombine.high %v312_v58, %v320_v59  ;;  %v15627_v4 = vcombine.low %v312_v58, %v320_v59  ;;  %v407_v59 = vld [vmem:[%s24374_s1 + $0xba0] sm:$0xff] }
 0x232   :  { %6970 = vmatpush1.bf16.msra.mxu0 %v15529_v0  ;;  %v335_v0 = vld [vmem:[%s24374_s1 + $0x960] sm:$0xff] }
 0x233   :  { %7134 = vmatpush1.bf16.msra.mxu1 %v15531_v1  ;;  %6971 = vmatprep.subr.bf16.mxu0 %v15546_v2  ;;  %v328_v1 = vld [vmem:[%s24374_s1 + $0x928] sm:$0xff]  ;;  %v15642_v5 = vcombine.high %v327_v63, %v335_v0 }
 0x234   :  { %7135 = vmatprep.subr.bf16.mxu1 %v15548_v3  ;;  %v336_v2 = vld [vmem:[%s24374_s1 + $0x968] sm:$0xff]  ;;  %v15625_v3 = vcombine.low %v311_v54, %v319_v56 }
 0x235   :  { %v15644_v6 = vcombine.high %v328_v1, %v336_v2  ;;  %v15643_v17 = vcombine.low %v328_v1, %v336_v2  ;;  %v423_v2 = vld [vmem:[%s24374_s1 + $0xc20] sm:$0xff] }
 0x236   :  { %6972 = vmatpush1.bf16.msra.mxu0 %v15545_v10  ;;  %v351_v10 = vld [vmem:[%s24374_s1 + $0x9e0] sm:$0xff] }
 0x237   :  { %7136 = vmatpush1.bf16.msra.mxu1 %v15547_v13  ;;  %6973 = vmatprep.subr.bf16.mxu0 %v15562_v14  ;;  %v344_v13 = vld [vmem:[%s24374_s1 + $0x9a8] sm:$0xff]  ;;  %v15658_v18 = vcombine.high %v343_v8, %v351_v10 }
 0x238   :  { %7137 = vmatprep.subr.bf16.mxu1 %v15564_v53  ;;  %v352_v14 = vld [vmem:[%s24374_s1 + $0x9e8] sm:$0xff]  ;;  %v15641_v53 = vcombine.low %v327_v63, %v335_v0 }
 0x239   :  { %v15660_v20 = vcombine.high %v344_v13, %v352_v14  ;;  %v15659_v34 = vcombine.low %v344_v13, %v352_v14  ;;  %v439_v14 = vld [vmem:[%s24374_s1 + $0xca0] sm:$0xff] }
 0x23a   :  { %6974 = vmatpush1.bf16.msra.mxu0 %v15561_v26  ;;  %v367_v26 = vld [vmem:[%s24374_s1 + $0xa60] sm:$0xff] }
 0x23b   :  { %7138 = vmatpush1.bf16.msra.mxu1 %v15563_v30  ;;  %6975 = vmatprep.subr.bf16.mxu0 %v15578_v32  ;;  %v360_v30 = vld [vmem:[%s24374_s1 + $0xa28] sm:$0xff]  ;;  %v15674_v35 = vcombine.high %v359_v23, %v367_v26 }
 0x23c   :  { %7139 = vmatprep.subr.bf16.mxu1 %v15580_v33  ;;  %v368_v32 = vld [vmem:[%s24374_s1 + $0xa68] sm:$0xff]  ;;  %v15657_v33 = vcombine.low %v343_v8, %v351_v10 }
 0x23d   :  { %v15676_v38 = vcombine.high %v360_v30, %v368_v32  ;;  %v15675_v44 = vcombine.low %v360_v30, %v368_v32  ;;  %v455_v32 = vld [vmem:[%s24374_s1 + $0xd20] sm:$0xff] }
 0x23e   :  { %6976 = vmatpush1.bf16.msra.mxu0 %v15577_v41  ;;  %v383_v41 = vld [vmem:[%s24374_s1 + $0xae0] sm:$0xff] }
 0x23f   :  { %7140 = vmatpush1.bf16.msra.mxu1 %v15579_v25  ;;  %6977 = vmatprep.subr.bf16.mxu0 %v15594_v42  ;;  %v376_v25 = vld [vmem:[%s24374_s1 + $0xaa8] sm:$0xff]  ;;  %v15690_v46 = vcombine.high %v375_v40, %v383_v41 }
 0x240   :  { %7141 = vmatprep.subr.bf16.mxu1 %v15596_v43  ;;  %v384_v42 = vld [vmem:[%s24374_s1 + $0xae8] sm:$0xff]  ;;  %v15673_v43 = vcombine.low %v359_v23, %v367_v26 }
 0x241   :  { %v15692_v47 = vcombine.high %v376_v25, %v384_v42  ;;  %v15691_v54 = vcombine.low %v376_v25, %v384_v42  ;;  %v471_v42 = vld [vmem:[%s24374_s1 + $0xda0] sm:$0xff] }
 0x242   :  { %6978 = vmatpush1.bf16.msra.mxu0 %v15593_v49  ;;  %v399_v49 = vld [vmem:[%s24374_s1 + $0xb60] sm:$0xff] }
 0x243   :  { %7142 = vmatpush1.bf16.msra.mxu1 %v15595_v50  ;;  %6988 = vmatprep.subr.bf16.mxu0 %v15610_v51  ;;  %v392_v50 = vld [vmem:[%s24374_s1 + $0xb28] sm:$0xff]  ;;  %v15706_v56 = vcombine.high %v391_v48, %v399_v49 }
 0x244   :  { %7152 = vmatprep.subr.bf16.mxu1 %v15612_v52  ;;  %v400_v51 = vld [vmem:[%s24374_s1 + $0xb68] sm:$0xff]  ;;  %v15689_v52 = vcombine.low %v375_v40, %v383_v41 }
 0x245   :  { %6980 = vmatmul.mubr.bf16.vlgmr.msra.gmra.mrb[8].mxu0 %v17967_v12  ;;  %v15708_v58 = vcombine.high %v392_v50, %v400_v51  ;;  %v15707_v63 = vcombine.low %v392_v50, %v400_v51  ;;  %v487_v51 = vld [vmem:[%s24374_s1 + $0xe20] sm:$0xff] }
 0x246   :  { %6989 = vmatpush1.bf16.msra.mxu0 %v15609_v60  ;;  %7144 = vmatmul.mubr.bf16.vlgmr.msra.gmra.mrb[8].mxu1 %v17967_v12  ;;  %v415_v60 = vld [vmem:[%s24374_s1 + $0xbe0] sm:$0xff] }
 0x247   :  { %7153 = vmatpush1.bf16.msra.mxu1 %v15611_v61  ;;  %6990 = vmatprep.subr.bf16.mxu0 %v15626_v62  ;;  %v408_v61 = vld [vmem:[%s24374_s1 + $0xba8] sm:$0xff]  ;;  %v15722_v0 = vcombine.high %v407_v59, %v415_v60 }
 0x248   :  { %7154 = vmatprep.subr.bf16.mxu1 %v15628_v39  ;;  %7020 = vmatprep.mubr.bf16.mxu0 %v17988_v21  ;;  %v416_v62 = vld [vmem:[%s24374_s1 + $0xbe8] sm:$0xff]  ;;  %v15705_v39 = vcombine.low %v391_v48, %v399_v49 }
 0x249   :  { %7184 = vmatprep.mubr.bf16.mxu1 %v17988_v21  ;;  %v15724_v1 = vcombine.high %v408_v61, %v416_v62  ;;  %v15723_v8 = vcombine.low %v408_v61, %v416_v62  ;;  %v503_v62 = vld [vmem:[%s24374_s1 + $0xea0] sm:$0xff] }
 0x24a   :  { %6991 = vmatpush1.bf16.msra.mxu0 %v15625_v3  ;;  %v431_v3 = vld [vmem:[%s24374_s1 + $0xc60] sm:$0xff] }
 0x24b   :  { %7155 = vmatpush1.bf16.msra.mxu1 %v15627_v4  ;;  %6992 = vmatprep.subr.bf16.mxu0 %v15642_v5  ;;  %v424_v4 = vld [vmem:[%s24374_s1 + $0xc28] sm:$0xff]  ;;  %v15738_v10 = vcombine.high %v423_v2, %v431_v3 }
 0x24c   :  { %7156 = vmatprep.subr.bf16.mxu1 %v15644_v6  ;;  %v432_v5 = vld [vmem:[%s24374_s1 + $0xc68] sm:$0xff]  ;;  %v15721_v6 = vcombine.low %v407_v59, %v415_v60 }
 0x24d   :  { %v15740_v13 = vcombine.high %v424_v4, %v432_v5  ;;  %v15739_v23 = vcombine.low %v424_v4, %v432_v5  ;;  %v519_v5 = vld [vmem:[%s24374_s1 + $0xf20] sm:$0xff] }
 0x24e   :  { %6993 = vmatpush1.bf16.msra.mxu0 %v15641_v53  ;;  %v447_v53 = vld [vmem:[%s24374_s1 + $0xce0] sm:$0xff] }
 0x24f   :  { %7157 = vmatpush1.bf16.msra.mxu1 %v15643_v17  ;;  %6994 = vmatprep.subr.bf16.mxu0 %v15658_v18  ;;  %v440_v17 = vld [vmem:[%s24374_s1 + $0xca8] sm:$0xff]  ;;  %v15754_v26 = vcombine.high %v439_v14, %v447_v53 }
 0x250   :  { %7158 = vmatprep.subr.bf16.mxu1 %v15660_v20  ;;  %v448_v18 = vld [vmem:[%s24374_s1 + $0xce8] sm:$0xff]  ;;  %v15737_v20 = vcombine.low %v423_v2, %v431_v3 }
 0x251   :  { %v15756_v30 = vcombine.high %v440_v17, %v448_v18  ;;  %v15755_v40 = vcombine.low %v440_v17, %v448_v18  ;;  %v535_v18 = vld [vmem:[%s24374_s1 + $0xfa0] sm:$0xff] }
 0x252   :  { %6995 = vmatpush1.bf16.msra.mxu0 %v15657_v33  ;;  %v463_v33 = vld [vmem:[%s24374_s1 + $0xd60] sm:$0xff] }
 0x253   :  { %7159 = vmatpush1.bf16.msra.mxu1 %v15659_v34  ;;  %6996 = vmatprep.subr.bf16.mxu0 %v15674_v35  ;;  %v456_v34 = vld [vmem:[%s24374_s1 + $0xd28] sm:$0xff]  ;;  %v15770_v41 = vcombine.high %v455_v32, %v463_v33 }
 0x254   :  { %7160 = vmatprep.subr.bf16.mxu1 %v15676_v38  ;;  %v464_v35 = vld [vmem:[%s24374_s1 + $0xd68] sm:$0xff]  ;;  %v15753_v38 = vcombine.low %v439_v14, %v447_v53 }
 0x255   :  { %v15772_v25 = vcombine.high %v456_v34, %v464_v35  ;;  %v15771_v48 = vcombine.low %v456_v34, %v464_v35  ;;  %v551_v35 = vld [vmem:[%s24374_s1 + $0x1020] sm:$0xff] }
 0x256   :  { %6997 = vmatpush1.bf16.msra.mxu0 %v15673_v43  ;;  %v479_v43 = vld [vmem:[%s24374_s1 + $0xde0] sm:$0xff] }
 0x257   :  { %7161 = vmatpush1.bf16.msra.mxu1 %v15675_v44  ;;  %6998 = vmatprep.subr.bf16.mxu0 %v15690_v46  ;;  %v472_v44 = vld [vmem:[%s24374_s1 + $0xda8] sm:$0xff]  ;;  %v15786_v49 = vcombine.high %v471_v42, %v479_v43 }
 0x258   :  { %7162 = vmatprep.subr.bf16.mxu1 %v15692_v47  ;;  %v480_v46 = vld [vmem:[%s24374_s1 + $0xde8] sm:$0xff]  ;;  %v15769_v47 = vcombine.low %v455_v32, %v463_v33 }
 0x259   :  { %v15788_v50 = vcombine.high %v472_v44, %v480_v46  ;;  %v15787_v59 = vcombine.low %v472_v44, %v480_v46  ;;  %v567_v46 = vld [vmem:[%s24374_s1 + $0x10a0] sm:$0xff] }
 0x25a   :  { %6999 = vmatpush1.bf16.msra.mxu0 %v15689_v52  ;;  %v495_v52 = vld [vmem:[%s24374_s1 + $0xe60] sm:$0xff] }
 0x25b   :  { %7163 = vmatpush1.bf16.msra.mxu1 %v15691_v54  ;;  %7000 = vmatprep.subr.bf16.mxu0 %v15706_v56  ;;  %v488_v54 = vld [vmem:[%s24374_s1 + $0xe28] sm:$0xff]  ;;  %v15802_v60 = vcombine.high %v487_v51, %v495_v52 }
 0x25c   :  { %7164 = vmatprep.subr.bf16.mxu1 %v15708_v58  ;;  %v496_v56 = vld [vmem:[%s24374_s1 + $0xe68] sm:$0xff]  ;;  %v15785_v58 = vcombine.low %v471_v42, %v479_v43 }
 0x25d   :  { %v15804_v61 = vcombine.high %v488_v54, %v496_v56  ;;  %v15803_v2 = vcombine.low %v488_v54, %v496_v56  ;;  %v583_v56 = vld [vmem:[%s24374_s1 + $0x1120] sm:$0xff] }
 0x25e   :  { %7001 = vmatpush1.bf16.msra.mxu0 %v15705_v39  ;;  %v511_v39 = vld [vmem:[%s24374_s1 + $0xee0] sm:$0xff] }
 0x25f   :  { %7165 = vmatpush1.bf16.msra.mxu1 %v15707_v63  ;;  %7002 = vmatprep.subr.bf16.mxu0 %v15722_v0  ;;  %v504_v63 = vld [vmem:[%s24374_s1 + $0xea8] sm:$0xff]  ;;  %v15818_v3 = vcombine.high %v503_v62, %v511_v39 }
 0x260   :  { %7166 = vmatprep.subr.bf16.mxu1 %v15724_v1  ;;  %v512_v0 = vld [vmem:[%s24374_s1 + $0xee8] sm:$0xff]  ;;  %v15801_v1 = vcombine.low %v487_v51, %v495_v52 }
 0x261   :  { %v15820_v4 = vcombine.high %v504_v63, %v512_v0  ;;  %v15819_v14 = vcombine.low %v504_v63, %v512_v0  ;;  %v599_v0 = vld [vmem:[%s24374_s1 + $0x11a0] sm:$0xff] }
 0x262   :  { %7003 = vmatpush1.bf16.msra.mxu0 %v15721_v6  ;;  %v527_v6 = vld [vmem:[%s24374_s1 + $0xf60] sm:$0xff] }
 0x263   :  { %7167 = vmatpush1.bf16.msra.mxu1 %v15723_v8  ;;  %7004 = vmatprep.subr.bf16.mxu0 %v15738_v10  ;;  %v520_v8 = vld [vmem:[%s24374_s1 + $0xf28] sm:$0xff]  ;;  %v15834_v53 = vcombine.high %v519_v5, %v527_v6 }
 0x264   :  { %7168 = vmatprep.subr.bf16.mxu1 %v15740_v13  ;;  %v528_v10 = vld [vmem:[%s24374_s1 + $0xf68] sm:$0xff]  ;;  %v15817_v13 = vcombine.low %v503_v62, %v511_v39 }
 0x265   :  { %v15836_v17 = vcombine.high %v520_v8, %v528_v10  ;;  %v15835_v32 = vcombine.low %v520_v8, %v528_v10  ;;  %v615_v10 = vld [vmem:[%s24374_s1 + $0x1220] sm:$0xff] }
 0x266   :  { %7005 = vmatpush1.bf16.msra.mxu0 %v15737_v20  ;;  %v543_v20 = vld [vmem:[%s24374_s1 + $0xfe0] sm:$0xff] }
 0x267   :  { %7169 = vmatpush1.bf16.msra.mxu1 %v15739_v23  ;;  %7006 = vmatprep.subr.bf16.mxu0 %v15754_v26  ;;  %v536_v23 = vld [vmem:[%s24374_s1 + $0xfa8] sm:$0xff]  ;;  %v15850_v33 = vcombine.high %v535_v18, %v543_v20 }
 0x268   :  { %7170 = vmatprep.subr.bf16.mxu1 %v15756_v30  ;;  %v544_v26 = vld [vmem:[%s24374_s1 + $0xfe8] sm:$0xff]  ;;  %v15833_v30 = vcombine.low %v519_v5, %v527_v6 }
 0x269   :  { %v15852_v34 = vcombine.high %v536_v23, %v544_v26  ;;  %v15851_v42 = vcombine.low %v536_v23, %v544_v26  ;;  %v631_v26 = vld [vmem:[%s24374_s1 + $0x12a0] sm:$0xff] }
 0x26a   :  { %7007 = vmatpush1.bf16.msra.mxu0 %v15753_v38  ;;  %v559_v38 = vld [vmem:[%s24374_s1 + $0x1060] sm:$0xff] }
 0x26b   :  { %7171 = vmatpush1.bf16.msra.mxu1 %v15755_v40  ;;  %7008 = vmatprep.subr.bf16.mxu0 %v15770_v41  ;;  %v552_v40 = vld [vmem:[%s24374_s1 + $0x1028] sm:$0xff]  ;;  %v15866_v43 = vcombine.high %v551_v35, %v559_v38 }
 0x26c   :  { %7172 = vmatprep.subr.bf16.mxu1 %v15772_v25  ;;  %v560_v41 = vld [vmem:[%s24374_s1 + $0x1068] sm:$0xff]  ;;  %v15849_v25 = vcombine.low %v535_v18, %v543_v20 }
 0x26d   :  { %v15868_v44 = vcombine.high %v552_v40, %v560_v41  ;;  %v15867_v51 = vcombine.low %v552_v40, %v560_v41  ;;  %v647_v41 = vld [vmem:[%s24374_s1 + $0x1320] sm:$0xff] }
 0x26e   :  { %7009 = vmatpush1.bf16.msra.mxu0 %v15769_v47  ;;  %v575_v47 = vld [vmem:[%s24374_s1 + $0x10e0] sm:$0xff] }
 0x26f   :  { %7173 = vmatpush1.bf16.msra.mxu1 %v15771_v48  ;;  %7010 = vmatprep.subr.bf16.mxu0 %v15786_v49  ;;  %v568_v48 = vld [vmem:[%s24374_s1 + $0x10a8] sm:$0xff]  ;;  %v15882_v52 = vcombine.high %v567_v46, %v575_v47 }
 0x270   :  { %7174 = vmatprep.subr.bf16.mxu1 %v15788_v50  ;;  %v576_v49 = vld [vmem:[%s24374_s1 + $0x10e8] sm:$0xff]  ;;  %v15865_v50 = vcombine.low %v551_v35, %v559_v38 }
 0x271   :  { %v15884_v54 = vcombine.high %v568_v48, %v576_v49  ;;  %v15883_v62 = vcombine.low %v568_v48, %v576_v49  ;;  %v663_v49 = vld [vmem:[%s24374_s1 + $0x13a0] sm:$0xff] }
 0x272   :  { %7011 = vmatpush1.bf16.msra.mxu0 %v15785_v58  ;;  %v591_v58 = vld [vmem:[%s24374_s1 + $0x1160] sm:$0xff] }
 0x273   :  { %7175 = vmatpush1.bf16.msra.mxu1 %v15787_v59  ;;  %7012 = vmatprep.subr.bf16.mxu0 %v15802_v60  ;;  %v584_v59 = vld [vmem:[%s24374_s1 + $0x1128] sm:$0xff]  ;;  %v15898_v39 = vcombine.high %v583_v56, %v591_v58 }
 0x274   :  { %7176 = vmatprep.subr.bf16.mxu1 %v15804_v61  ;;  %v592_v60 = vld [vmem:[%s24374_s1 + $0x1168] sm:$0xff]  ;;  %v15881_v61 = vcombine.low %v567_v46, %v575_v47 }
 0x275   :  { %v15900_v63 = vcombine.high %v584_v59, %v592_v60  ;;  %v15899_v5 = vcombine.low %v584_v59, %v592_v60  ;;  %v679_v60 = vld [vmem:[%s24374_s1 + $0x1420] sm:$0xff] }
 0x276   :  { %7013 = vmatpush1.bf16.msra.mxu0 %v15801_v1  ;;  %v607_v1 = vld [vmem:[%s24374_s1 + $0x11e0] sm:$0xff] }
 0x277   :  { %7177 = vmatpush1.bf16.msra.mxu1 %v15803_v2  ;;  %7014 = vmatprep.subr.bf16.mxu0 %v15818_v3  ;;  %v600_v2 = vld [vmem:[%s24374_s1 + $0x11a8] sm:$0xff]  ;;  %v15914_v6 = vcombine.high %v599_v0, %v607_v1 }
 0x278   :  { %7178 = vmatprep.subr.bf16.mxu1 %v15820_v4  ;;  %v608_v3 = vld [vmem:[%s24374_s1 + $0x11e8] sm:$0xff]  ;;  %v15897_v4 = vcombine.low %v583_v56, %v591_v58 }
 0x279   :  { %v15916_v8 = vcombine.high %v600_v2, %v608_v3  ;;  %v15915_v18 = vcombine.low %v600_v2, %v608_v3  ;;  %v695_v3 = vld [vmem:[%s24374_s1 + $0x14a0] sm:$0xff] }
 0x27a   :  { %7015 = vmatpush1.bf16.msra.mxu0 %v15817_v13  ;;  %v623_v13 = vld [vmem:[%s24374_s1 + $0x1260] sm:$0xff] }
 0x27b   :  { %7179 = vmatpush1.bf16.msra.mxu1 %v15819_v14  ;;  %7016 = vmatprep.subr.bf16.mxu0 %v15834_v53  ;;  %v616_v14 = vld [vmem:[%s24374_s1 + $0x1228] sm:$0xff]  ;;  %v15930_v20 = vcombine.high %v615_v10, %v623_v13 }
 0x27c   :  { %7180 = vmatprep.subr.bf16.mxu1 %v15836_v17  ;;  %v624_v53 = vld [vmem:[%s24374_s1 + $0x1268] sm:$0xff]  ;;  %v15913_v17 = vcombine.low %v599_v0, %v607_v1 }
 0x27d   :  { %v15932_v23 = vcombine.high %v616_v14, %v624_v53  ;;  %v15931_v35 = vcombine.low %v616_v14, %v624_v53  ;;  %v711_v53 = vld [vmem:[%s24374_s1 + $0x1520] sm:$0xff] }
 0x27e   :  { %7017 = vmatpush1.bf16.msra.mxu0 %v15833_v30  ;;  %v639_v30 = vld [vmem:[%s24374_s1 + $0x12e0] sm:$0xff] }
 0x27f   :  { %7181 = vmatpush1.bf16.msra.mxu1 %v15835_v32  ;;  %7018 = vmatprep.subr.bf16.mxu0 %v15850_v33  ;;  %v632_v32 = vld [vmem:[%s24374_s1 + $0x12a8] sm:$0xff]  ;;  %v15946_v38 = vcombine.high %v631_v26, %v639_v30 }
 0x280   :  { %7182 = vmatprep.subr.bf16.mxu1 %v15852_v34  ;;  %v640_v33 = vld [vmem:[%s24374_s1 + $0x12e8] sm:$0xff]  ;;  %v15929_v34 = vcombine.low %v615_v10, %v623_v13 }
 0x281   :  { %v15948_v40 = vcombine.high %v632_v32, %v640_v33  ;;  %v15947_v46 = vcombine.low %v632_v32, %v640_v33  ;;  %v727_v33 = vld [vmem:[%s24374_s1 + $0x15a0] sm:$0xff] }
 0x282   :  { %7019 = vmatpush1.bf16.msra.mxu0 %v15849_v25  ;;  %v655_v25 = vld [vmem:[%s24374_s1 + $0x1360] sm:$0xff] }
 0x283   :  { %7183 = vmatpush1.bf16.msra.mxu1 %v15851_v42  ;;  %7029 = vmatprep.subr.bf16.mxu0 %v15866_v43  ;;  %v648_v42 = vld [vmem:[%s24374_s1 + $0x1328] sm:$0xff]  ;;  %v15962_v47 = vcombine.high %v647_v41, %v655_v25 }
 0x284   :  { %7193 = vmatprep.subr.bf16.mxu1 %v15868_v44  ;;  %v656_v43 = vld [vmem:[%s24374_s1 + $0x1368] sm:$0xff]  ;;  %v15945_v44 = vcombine.low %v631_v26, %v639_v30 }
 0x285   :  { %7021 = vmatmul.mubr.bf16.vlgmr.msra.gmra.mrb[8].mxu0 %v18176_v22  ;;  %v15964_v48 = vcombine.high %v648_v42, %v656_v43  ;;  %v15963_v56 = vcombine.low %v648_v42, %v656_v43  ;;  %v743_v43 = vld [vmem:[%s24374_s1 + $0x1620] sm:$0xff] }
 0x286   :  { %7030 = vmatpush1.bf16.msra.mxu0 %v15865_v50  ;;  %7185 = vmatmul.mubr.bf16.vlgmr.msra.gmra.mrb[8].mxu1 %v18176_v22  ;;  %v671_v50 = vld [vmem:[%s24374_s1 + $0x13e0] sm:$0xff] }
 0x287   :  { %7194 = vmatpush1.bf16.msra.mxu1 %v15867_v51  ;;  %7031 = vmatprep.subr.bf16.mxu0 %v15882_v52  ;;  %v664_v51 = vld [vmem:[%s24374_s1 + $0x13a8] sm:$0xff]  ;;  %v15978_v58 = vcombine.high %v663_v49, %v671_v50 }
 0x288   :  { %7195 = vmatprep.subr.bf16.mxu1 %v15884_v54  ;;  %7061 = vmatprep.mubr.bf16.mxu0 %v18197_v31  ;;  %v672_v52 = vld [vmem:[%s24374_s1 + $0x13e8] sm:$0xff]  ;;  %v15961_v54 = vcombine.low %v647_v41, %v655_v25 }
 0x289   :  { %7225 = vmatprep.mubr.bf16.mxu1 %v18197_v31  ;;  %v15980_v59 = vcombine.high %v664_v51, %v672_v52  ;;  %v15979_v0 = vcombine.low %v664_v51, %v672_v52  ;;  %v759_v52 = vld [vmem:[%s24374_s1 + $0x16a0] sm:$0xff] }
 0x28a   :  { %7032 = vmatpush1.bf16.msra.mxu0 %v15881_v61  ;;  %v687_v61 = vld [vmem:[%s24374_s1 + $0x1460] sm:$0xff] }
 0x28b   :  { %7196 = vmatpush1.bf16.msra.mxu1 %v15883_v62  ;;  %7033 = vmatprep.subr.bf16.mxu0 %v15898_v39  ;;  %v680_v62 = vld [vmem:[%s24374_s1 + $0x1428] sm:$0xff]  ;;  %v15994_v1 = vcombine.high %v679_v60, %v687_v61 }
 0x28c   :  { %7197 = vmatprep.subr.bf16.mxu1 %v15900_v63  ;;  %v688_v39 = vld [vmem:[%s24374_s1 + $0x1468] sm:$0xff]  ;;  %v15977_v63 = vcombine.low %v663_v49, %v671_v50 }
 0x28d   :  { %v15996_v2 = vcombine.high %v680_v62, %v688_v39  ;;  %v15995_v10 = vcombine.low %v680_v62, %v688_v39  ;;  %v775_v39 = vld [vmem:[%s24374_s1 + $0x1720] sm:$0xff] }
 0x28e   :  { %7034 = vmatpush1.bf16.msra.mxu0 %v15897_v4  ;;  %v703_v4 = vld [vmem:[%s24374_s1 + $0x14e0] sm:$0xff] }
 0x28f   :  { %7198 = vmatpush1.bf16.msra.mxu1 %v15899_v5  ;;  %7035 = vmatprep.subr.bf16.mxu0 %v15914_v6  ;;  %v696_v5 = vld [vmem:[%s24374_s1 + $0x14a8] sm:$0xff]  ;;  %v16010_v13 = vcombine.high %v695_v3, %v703_v4 }
 0x290   :  { %7199 = vmatprep.subr.bf16.mxu1 %v15916_v8  ;;  %v704_v6 = vld [vmem:[%s24374_s1 + $0x14e8] sm:$0xff]  ;;  %v15993_v8 = vcombine.low %v679_v60, %v687_v61 }
 0x291   :  { %v16012_v14 = vcombine.high %v696_v5, %v704_v6  ;;  %v16011_v26 = vcombine.low %v696_v5, %v704_v6  ;;  %v791_v6 = vld [vmem:[%s24374_s1 + $0x17a0] sm:$0xff] }
 0x292   :  { %7036 = vmatpush1.bf16.msra.mxu0 %v15913_v17  ;;  %v719_v17 = vld [vmem:[%s24374_s1 + $0x1560] sm:$0xff] }
 0x293   :  { %7200 = vmatpush1.bf16.msra.mxu1 %v15915_v18  ;;  %7037 = vmatprep.subr.bf16.mxu0 %v15930_v20  ;;  %v712_v18 = vld [vmem:[%s24374_s1 + $0x1528] sm:$0xff]  ;;  %v16026_v30 = vcombine.high %v711_v53, %v719_v17 }
 0x294   :  { %7201 = vmatprep.subr.bf16.mxu1 %v15932_v23  ;;  %v720_v20 = vld [vmem:[%s24374_s1 + $0x1568] sm:$0xff]  ;;  %v16009_v23 = vcombine.low %v695_v3, %v703_v4 }
 0x295   :  { %v16028_v32 = vcombine.high %v712_v18, %v720_v20  ;;  %v16027_v41 = vcombine.low %v712_v18, %v720_v20  ;;  %v807_v20 = vld [vmem:[%s24374_s1 + $0x1820] sm:$0xff] }
 0x296   :  { %7038 = vmatpush1.bf16.msra.mxu0 %v15929_v34  ;;  %v735_v34 = vld [vmem:[%s24374_s1 + $0x15e0] sm:$0xff] }
 0x297   :  { %7202 = vmatpush1.bf16.msra.mxu1 %v15931_v35  ;;  %7039 = vmatprep.subr.bf16.mxu0 %v15946_v38  ;;  %v728_v35 = vld [vmem:[%s24374_s1 + $0x15a8] sm:$0xff]  ;;  %v16042_v25 = vcombine.high %v727_v33, %v735_v34 }
 0x298   :  { %7203 = vmatprep.subr.bf16.mxu1 %v15948_v40  ;;  %v736_v38 = vld [vmem:[%s24374_s1 + $0x15e8] sm:$0xff]  ;;  %v16025_v40 = vcombine.low %v711_v53, %v719_v17 }
 0x299   :  { %v16044_v42 = vcombine.high %v728_v35, %v736_v38  ;;  %v16043_v49 = vcombine.low %v728_v35, %v736_v38  ;;  %v823_v38 = vld [vmem:[%s24374_s1 + $0x18a0] sm:$0xff] }
 0x29a   :  { %7040 = vmatpush1.bf16.msra.mxu0 %v15945_v44  ;;  %v751_v44 = vld [vmem:[%s24374_s1 + $0x1660] sm:$0xff] }
 0x29b   :  { %7204 = vmatpush1.bf16.msra.mxu1 %v15947_v46  ;;  %7041 = vmatprep.subr.bf16.mxu0 %v15962_v47  ;;  %v744_v46 = vld [vmem:[%s24374_s1 + $0x1628] sm:$0xff]  ;;  %v16058_v50 = vcombine.high %v743_v43, %v751_v44 }
 0x29c   :  { %7205 = vmatprep.subr.bf16.mxu1 %v15964_v48  ;;  %v752_v47 = vld [vmem:[%s24374_s1 + $0x1668] sm:$0xff]  ;;  %v16041_v48 = vcombine.low %v727_v33, %v735_v34 }
 0x29d   :  { %v16060_v51 = vcombine.high %v744_v46, %v752_v47  ;;  %v16059_v60 = vcombine.low %v744_v46, %v752_v47  ;;  %v839_v47 = vld [vmem:[%s24374_s1 + $0x1920] sm:$0xff] }
 0x29e   :  { %7042 = vmatpush1.bf16.msra.mxu0 %v15961_v54  ;;  %v767_v54 = vld [vmem:[%s24374_s1 + $0x16e0] sm:$0xff] }
 0x29f   :  { %7206 = vmatpush1.bf16.msra.mxu1 %v15963_v56  ;;  %7043 = vmatprep.subr.bf16.mxu0 %v15978_v58  ;;  %v760_v56 = vld [vmem:[%s24374_s1 + $0x16a8] sm:$0xff]  ;;  %v16074_v61 = vcombine.high %v759_v52, %v767_v54 }
 0x2a0   :  { %7207 = vmatprep.subr.bf16.mxu1 %v15980_v59  ;;  %v768_v58 = vld [vmem:[%s24374_s1 + $0x16e8] sm:$0xff]  ;;  %v16057_v59 = vcombine.low %v743_v43, %v751_v44 }
 0x2a1   :  { %v16076_v62 = vcombine.high %v760_v56, %v768_v58  ;;  %v16075_v3 = vcombine.low %v760_v56, %v768_v58  ;;  %v855_v58 = vld [vmem:[%s24374_s1 + $0x19a0] sm:$0xff] }
 0x2a2   :  { %7044 = vmatpush1.bf16.msra.mxu0 %v15977_v63  ;;  %v783_v63 = vld [vmem:[%s24374_s1 + $0x1760] sm:$0xff] }
 0x2a3   :  { %7208 = vmatpush1.bf16.msra.mxu1 %v15979_v0  ;;  %7045 = vmatprep.subr.bf16.mxu0 %v15994_v1  ;;  %v776_v0 = vld [vmem:[%s24374_s1 + $0x1728] sm:$0xff]  ;;  %v16090_v4 = vcombine.high %v775_v39, %v783_v63 }
 0x2a4   :  { %7209 = vmatprep.subr.bf16.mxu1 %v15996_v2  ;;  %v784_v1 = vld [vmem:[%s24374_s1 + $0x1768] sm:$0xff]  ;;  %v16073_v2 = vcombine.low %v759_v52, %v767_v54 }
 0x2a5   :  { %v16092_v5 = vcombine.high %v776_v0, %v784_v1  ;;  %v16091_v53 = vcombine.low %v776_v0, %v784_v1  ;;  %v871_v1 = vld [vmem:[%s24374_s1 + $0x1a20] sm:$0xff] }
 0x2a6   :  { %7046 = vmatpush1.bf16.msra.mxu0 %v15993_v8  ;;  %v799_v8 = vld [vmem:[%s24374_s1 + $0x17e0] sm:$0xff] }
 0x2a7   :  { %7210 = vmatpush1.bf16.msra.mxu1 %v15995_v10  ;;  %7047 = vmatprep.subr.bf16.mxu0 %v16010_v13  ;;  %v792_v10 = vld [vmem:[%s24374_s1 + $0x17a8] sm:$0xff]  ;;  %v16106_v17 = vcombine.high %v791_v6, %v799_v8 }
 0x2a8   :  { %7211 = vmatprep.subr.bf16.mxu1 %v16012_v14  ;;  %v800_v13 = vld [vmem:[%s24374_s1 + $0x17e8] sm:$0xff]  ;;  %v16089_v14 = vcombine.low %v775_v39, %v783_v63 }
 0x2a9   :  { %v16108_v18 = vcombine.high %v792_v10, %v800_v13  ;;  %v16107_v33 = vcombine.low %v792_v10, %v800_v13  ;;  %v887_v13 = vld [vmem:[%s24374_s1 + $0x1aa0] sm:$0xff] }
 0x2aa   :  { %7048 = vmatpush1.bf16.msra.mxu0 %v16009_v23  ;;  %v815_v23 = vld [vmem:[%s24374_s1 + $0x1860] sm:$0xff] }
 0x2ab   :  { %7212 = vmatpush1.bf16.msra.mxu1 %v16011_v26  ;;  %7049 = vmatprep.subr.bf16.mxu0 %v16026_v30  ;;  %v808_v26 = vld [vmem:[%s24374_s1 + $0x1828] sm:$0xff]  ;;  %v16122_v34 = vcombine.high %v807_v20, %v815_v23 }
 0x2ac   :  { %7213 = vmatprep.subr.bf16.mxu1 %v16028_v32  ;;  %v816_v30 = vld [vmem:[%s24374_s1 + $0x1868] sm:$0xff]  ;;  %v16105_v32 = vcombine.low %v791_v6, %v799_v8 }
 0x2ad   :  { %v16124_v35 = vcombine.high %v808_v26, %v816_v30  ;;  %v16123_v43 = vcombine.low %v808_v26, %v816_v30  ;;  %v20070_v26 = vsub.s32 5, %v19230_v11 }
 0x2ae   :  { %7050 = vmatpush1.bf16.msra.mxu0 %v16025_v40  ;;  %v831_v40 = vld [vmem:[%s24374_s1 + $0x18e0] sm:$0xff] }
 0x2af   :  { %7214 = vmatpush1.bf16.msra.mxu1 %v16027_v41  ;;  %7051 = vmatprep.subr.bf16.mxu0 %v16042_v25  ;;  %v824_v41 = vld [vmem:[%s24374_s1 + $0x18a8] sm:$0xff]  ;;  %v16138_v44 = vcombine.high %v823_v38, %v831_v40 }
 0x2b0   :  { %7215 = vmatprep.subr.bf16.mxu1 %v16044_v42  ;;  %v832_v25 = vld [vmem:[%s24374_s1 + $0x18e8] sm:$0xff]  ;;  %v16121_v42 = vcombine.low %v807_v20, %v815_v23  ;;  %v20067_v23 = vsub.s32 6, %v19230_v11 }
 0x2b1   :  { %v16140_v46 = vcombine.high %v824_v41, %v832_v25  ;;  %v16139_v52 = vcombine.low %v824_v41, %v832_v25  ;;  %v912_v25 = vld [vmem:[%s24374_s1 + $0x1b68] sm:$0xff] }
 0x2b2   :  { %7052 = vmatpush1.bf16.msra.mxu0 %v16041_v48  ;;  %v847_v48 = vld [vmem:[%s24374_s1 + $0x1960] sm:$0xff] }
 0x2b3   :  { %7216 = vmatpush1.bf16.msra.mxu1 %v16043_v49  ;;  %7053 = vmatprep.subr.bf16.mxu0 %v16058_v50  ;;  %v840_v49 = vld [vmem:[%s24374_s1 + $0x1928] sm:$0xff]  ;;  %v16154_v54 = vcombine.high %v839_v47, %v847_v48 }
 0x2b4   :  { %7217 = vmatprep.subr.bf16.mxu1 %v16060_v51  ;;  %v848_v50 = vld [vmem:[%s24374_s1 + $0x1968] sm:$0xff]  ;;  %v16137_v51 = vcombine.low %v823_v38, %v831_v40  ;;  %v911_v38 = vld [vmem:[%s24374_s1 + $0x1b60] sm:$0xff] }
 0x2b5   :  { %v16156_v56 = vcombine.high %v840_v49, %v848_v50  ;;  %v16155_v39 = vcombine.low %v840_v49, %v848_v50  ;;  %v17638_v40 = vld [vmem:[%s24375_s2] sm:$0xff] }
 0x2b6   :  { %7054 = vmatpush1.bf16.msra.mxu0 %v16057_v59  ;;  %v863_v59 = vld [vmem:[%s24374_s1 + $0x19e0] sm:$0xff] }
 0x2b7   :  { %7218 = vmatpush1.bf16.msra.mxu1 %v16059_v60  ;;  %7055 = vmatprep.subr.bf16.mxu0 %v16074_v61  ;;  %v856_v60 = vld [vmem:[%s24374_s1 + $0x19a8] sm:$0xff]  ;;  %v16170_v63 = vcombine.high %v855_v58, %v863_v59  ;;  %v919_v49 = vld [vmem:[%s24374_s1 + $0x1ba0] sm:$0xff] }
 0x2b8   :  { %7219 = vmatprep.subr.bf16.mxu1 %v16076_v62  ;;  %v864_v61 = vld [vmem:[%s24374_s1 + $0x19e8] sm:$0xff]  ;;  %v16153_v62 = vcombine.low %v839_v47, %v847_v48  ;;  %v927_v50 = vld [vmem:[%s24374_s1 + $0x1be0] sm:$0xff] }
 0x2b9   :  { %v16172_v0 = vcombine.high %v856_v60, %v864_v61  ;;  %v16171_v6 = vcombine.low %v856_v60, %v864_v61 }
 0x2ba   :  { %7056 = vmatpush1.bf16.msra.mxu0 %v16073_v2  ;;  %v879_v2 = vld [vmem:[%s24374_s1 + $0x1a60] sm:$0xff] }
 0x2bb   :  { %7220 = vmatpush1.bf16.msra.mxu1 %v16075_v3  ;;  %7057 = vmatprep.subr.bf16.mxu0 %v16090_v4  ;;  %v872_v3 = vld [vmem:[%s24374_s1 + $0x1a28] sm:$0xff]  ;;  %v16186_v8 = vcombine.high %v871_v1, %v879_v2  ;;  %v16185_v20 = vcombine.low %v871_v1, %v879_v2  ;;  %v16233_v2 = vcombine.low %v919_v49, %v927_v50 }
 0x2bc   :  { %7221 = vmatprep.subr.bf16.mxu1 %v16092_v5  ;;  %v880_v4 = vld [vmem:[%s24374_s1 + $0x1a68] sm:$0xff]  ;;  %v16169_v5 = vcombine.low %v855_v58, %v863_v59 }
 0x2bd   :  { %v16188_v10 = vcombine.high %v872_v3, %v880_v4  ;;  %v16187_v30 = vcombine.low %v872_v3, %v880_v4  ;;  %v16234_v3 = vcombine.high %v919_v49, %v927_v50  ;;  %v951_v50 = vld [vmem:[%s24374_s1 + $0x1ca0] sm:$0xff] }
 0x2be   :  { %7058 = vmatpush1.bf16.msra.mxu0 %v16089_v14  ;;  %v895_v14 = vld [vmem:[%s24374_s1 + $0x1ae0] sm:$0xff] }
 0x2bf   :  { %7222 = vmatpush1.bf16.msra.mxu1 %v16091_v53  ;;  %7059 = vmatprep.subr.bf16.mxu0 %v16106_v17  ;;  %v20058_v53 = vsub.s32 4, %v19230_v11  ;;  %v888_v17 = vld [vmem:[%s24374_s1 + $0x1aa8] sm:$0xff] }
 0x2c0   :  { %7223 = vmatprep.subr.bf16.mxu1 %v16108_v18  ;;  %v896_v18 = vld [vmem:[%s24374_s1 + $0x1ae8] sm:$0xff] }
 0x2c1   :  { %v1082_v41 = vrot.slane %v17638_v40, %v20058_v53  ;;  %v16203_v47 = vcombine.low %v888_v17, %v896_v18 }
 0x2c2   :  { %7060 = vmatpush1.bf16.msra.mxu0 %v16105_v32  ;;  %v20073_v32 = vsub.s32 7, %v19230_v11  ;;  %v904_v11 = vld [vmem:[%s24374_s1 + $0x1b28] sm:$0xff] }
 0x2c3   :  { %7224 = vmatpush1.bf16.msra.mxu1 %v16107_v33  ;;  %7070 = vmatprep.subr.bf16.mxu0 %v16122_v34  ;;  %v16202_v33 = vcombine.high %v887_v13, %v895_v14  ;;  %v16204_v34 = vcombine.high %v888_v17, %v896_v18 }
 0x2c4   :  { %7234 = vmatprep.subr.bf16.mxu1 %v16124_v35  ;;  %v903_v35 = vld [vmem:[%s24374_s1 + $0x1b20] sm:$0xff] }
 0x2c5   :  { %7062 = vmatmul.mubr.bf16.vlgmr.msra.gmra.mrb[8].mxu0 %v18385_v36  ;;  %v16218_v48 = vcombine.high %v903_v35, %v911_v38  ;;  %v16217_v61 = vcombine.low %v903_v35, %v911_v38  ;;  %v936_v38 = vld [vmem:[%s24374_s1 + $0x1c28] sm:$0xff] }
 0x2c6   :  { %7071 = vmatpush1.bf16.msra.mxu0 %v16121_v42  ;;  %7226 = vmatmul.mubr.bf16.vlgmr.msra.gmra.mrb[8].mxu1 %v18385_v36  ;;  %v1090_v42 = vrot.slane %v17638_v40, %v20067_v23 }
 0x2c7   :  { %7235 = vmatpush1.bf16.msra.mxu1 %v16123_v43  ;;  %7072 = vmatprep.subr.bf16.mxu0 %v16138_v44  ;;  %v1086_v43 = vrot.slane %v17638_v40, %v20070_v26  ;;  %v16201_v44 = vcombine.low %v887_v13, %v895_v14  ;;  %v935_v13 = vld [vmem:[%s24374_s1 + $0x1c20] sm:$0xff] }
 0x2c8   :  { %7236 = vmatprep.subr.bf16.mxu1 %v16140_v46  ;;  %7102 = vmatprep.mubr.bf16.mxu0 %v18406_v45  ;;  %v1094_v46 = vrot.slane %v17638_v40, %v20073_v32  ;;  %v944_v40 = vld [vmem:[%s24374_s1 + $0x1c68] sm:$0xff] }
 0x2c9   :  { %7266 = vmatprep.mubr.bf16.mxu1 %v18406_v45  ;;  %v16252_v49 = vcombine.high %v936_v38, %v944_v40 }
 0x2ca   :  { %7073 = vmatpush1.bf16.msra.mxu0 %v16137_v51 }
 0x2cb   :  { %7237 = vmatpush1.bf16.msra.mxu1 %v16139_v52  ;;  %7074 = vmatprep.subr.bf16.mxu0 %v16154_v54  ;;  %v16220_v52 = vcombine.high %v904_v11, %v912_v25  ;;  %v920_v54 = vld [vmem:[%s24374_s1 + $0x1ba8] sm:$0xff] }
 0x2cc   :  { %7238 = vmatprep.subr.bf16.mxu1 %v16156_v56  ;;  %v928_v56 = vld [vmem:[%s24374_s1 + $0x1be8] sm:$0xff] }
 0x2ce   :  { %7075 = vmatpush1.bf16.msra.mxu0 %v16153_v62  ;;  %v16219_v62 = vcombine.low %v904_v11, %v912_v25 }
 0x2cf   :  { %7239 = vmatpush1.bf16.msra.mxu1 %v16155_v39  ;;  %7076 = vmatprep.subr.bf16.mxu0 %v16170_v63 }
 0x2d0   :  { %7240 = vmatprep.subr.bf16.mxu1 %v16172_v0 }
 0x2d2   :  { %7077 = vmatpush1.bf16.msra.mxu0 %v16169_v5 }
 0x2d3   :  { %7241 = vmatpush1.bf16.msra.mxu1 %v16171_v6  ;;  %7078 = vmatprep.subr.bf16.mxu0 %v16186_v8  ;;  %v16235_v8 = vcombine.low %v920_v54, %v928_v56 }
 0x2d4   :  { %7242 = vmatprep.subr.bf16.mxu1 %v16188_v10  ;;  %v16236_v10 = vcombine.high %v920_v54, %v928_v56  ;;  %v960_v54 = vld [vmem:[%s24374_s1 + $0x1ce8] sm:$0xff] }
 0x2d6   :  { %7079 = vmatpush1.bf16.msra.mxu0 %v16185_v20  ;;  %v943_v20 = vld [vmem:[%s24374_s1 + $0x1c60] sm:$0xff] }
 0x2d7   :  { %7243 = vmatpush1.bf16.msra.mxu1 %v16187_v30  ;;  %7080 = vmatprep.subr.bf16.mxu0 %v16202_v33  ;;  %v16249_v56 = vcombine.low %v935_v13, %v943_v20 }
 0x2d8   :  { %v6776_v51 = vpop.f32.mrb[4].mxu0  ;;  %7244 = vmatprep.subr.bf16.mxu1 %v16204_v34 }
 0x2d9   :  { %v17398_v58 = vadd.f32 %v6776_v51, %v1082_v41  ;;  %v6940_v59 = vpop.f32.mrb[4].mxu1  ;;  %v6778_v60 = vpop.f32.mrb[5].mxu0  ;;  %v959_v51 = vld [vmem:[%s24374_s1 + $0x1ce0] sm:$0xff] }
 0x2da   :  { %v17400_v39 = vadd.f32 %v6940_v59, %v1090_v42  ;;  %v17399_v63 = vadd.f32 %v6778_v60, %v1086_v43  ;;  %v6942_v0 = vpop.f32.mrb[5].mxu1  ;;  %v6780_v1 = vpop.f32.mrb[6].mxu0  ;;  %7081 = vmatpush1.bf16.msra.mxu0 %v16201_v44  ;;  %v16266_v59 = vcombine.high %v951_v50, %v959_v51 }
 0x2db   :  { %vm7607_vm4 = vcmp.gt.f32.partialorder %v17398_v58, 0.0  ;;  %v17401_v4 = vadd.f32 %v6942_v0, %v1094_v46  ;;  %v6944_v5 = vpop.f32.mrb[6].mxu1  ;;  %7245 = vmatpush1.bf16.msra.mxu1 %v16203_v47  ;;  %v6781_v6 = vpop.f32.mrb[7].mxu0  ;;  %7082 = vmatprep.subr.bf16.mxu0 %v16218_v48  ;;  %v16250_v46 = vcombine.high %v935_v13, %v943_v20  ;;  %v976_v0 = vld [vmem:[%s24374_s1 + $0x1d68] sm:$0xff]  ;;  %v16265_v1 = vcombine.low %v951_v50, %v959_v51  ;;  %v999_v20 = vld [vmem:[%s24374_s1 + $0x1e20] sm:$0xff] }
 0x2dc   :  { %v7623_v14 = vsel %vm7607_vm4, 1.0, %v17690_v7  ;;  %v7639_v17 = vsel %vm7607_vm4, 1, %v17691_v9  ;;  %vm7609_vm5 = vcmp.gt.f32.partialorder %v17400_v39, 0.0  ;;  %vm7608_vm6 = vcmp.gt.f32.partialorder %v17399_v63, 0.0  ;;  %v6945_v18 = vpop.f32.mrb[7].mxu1  ;;  %7246 = vmatprep.subr.bf16.mxu1 %v16220_v52  ;;  %v952_v52 = vld [vmem:[%s24374_s1 + $0x1ca8] sm:$0xff] }
 0x2dd   :  { %v20114_v30 = vmul.f32 %v17398_v58, %v7623_v14  ;;  %v7625_v33 = vsel %vm7609_vm5, 1.0, %v17690_v7  ;;  %v7641_v34 = vsel %vm7609_vm5, 1, %v17691_v9  ;;  %v7624_v35 = vsel %vm7608_vm6, 1.0, %v17690_v7  ;;  %v983_v5 = vld [vmem:[%s24374_s1 + $0x1da0] sm:$0xff] }
 0x2de   :  { %v20125_v41 = vmul.f32 %v17400_v39, %v7625_v33  ;;  %v7640_v11 = vsel %vm7608_vm6, 1, %v17691_v9  ;;  %v20128_v25 = vmul.f32 %v17399_v63, %v7624_v35  ;;  %vm7610_vm7 = vcmp.gt.f32.partialorder %v17401_v4, 0.0  ;;  %7083 = vmatpush1.bf16.msra.mxu0 %v16217_v61  ;;  %v975_v39 = vld [vmem:[%s24374_s1 + $0x1d60] sm:$0xff]  ;;  %v968_v63 = vld [vmem:[%s24374_s1 + $0x1d28] sm:$0xff] }
 0x2df   :  { %v7654_v42 = vpack.c.b16 %v7640_v11, %v7639_v17  ;;  %v7626_v43 = vsel %vm7610_vm7, 1.0, %v17690_v7  ;;  %v7642_v44 = vsel %vm7610_vm7, 1, %v17691_v9  ;;  %7247 = vmatpush1.bf16.msra.mxu1 %v16219_v62  ;;  %7084 = vmatprep.subr.bf16.mxu0 %v16234_v3  ;;  %v16251_v58 = vcombine.low %v936_v38, %v944_v40  ;;  %v967_v62 = vld [vmem:[%s24374_s1 + $0x1d20] sm:$0xff]  ;;  %v1008_v35 = vld [vmem:[%s24374_s1 + $0x1e68] sm:$0xff] }
 0x2e0   :  { %v7655_v47 = vpack.c.b16 %v7642_v44, %v7641_v34  ;;  %v20132_v48 = vmul.f32 %v17401_v4, %v7626_v43  ;;  %7248 = vmatprep.subr.bf16.mxu1 %v16236_v10  ;;  %v16268_v61 = vcombine.high %v952_v52, %v960_v54  ;;  %v16282_v3 = vcombine.high %v967_v62, %v975_v39  ;;  %v991_v6 = vld [vmem:[%s24374_s1 + $0x1de0] sm:$0xff]  ;;  %v992_v10 = vld [vmem:[%s24374_s1 + $0x1de8] sm:$0xff] }
 0x2e1   :  { %v16284_v4 = vcombine.high %v968_v63, %v976_v0  ;;  %v16281_v13 = vcombine.low %v967_v62, %v975_v39  ;;  %v16283_v14 = vcombine.low %v968_v63, %v976_v0  ;;  %v16298_v17 = vcombine.high %v983_v5, %v991_v6  ;;  %v1007_v33 = vld [vmem:[%s24374_s1 + $0x1e60] sm:$0xff]  ;;  %v1000_v34 = vld [vmem:[%s24374_s1 + $0x1e28] sm:$0xff] }
 0x2e2   :  { %7085 = vmatpush1.bf16.msra.mxu0 %v16233_v2  ;;  %v7656_v60 = vpack.c.b8 %v7655_v47, %v7654_v42  ;;  %v16267_v2 = vcombine.low %v952_v52, %v960_v54  ;;  %v16297_v38 = vcombine.low %v983_v5, %v991_v6  ;;  %v16314_v11 = vcombine.high %v999_v20, %v1007_v33  ;;  %v1015_v43 = vld [vmem:[%s24374_s1 + $0x1ea0] sm:$0xff]  ;;  %v1024_v47 = vld [vmem:[%s24374_s1 + $0x1ee8] sm:$0xff] }
 0x2e3   :  { %7249 = vmatpush1.bf16.msra.mxu1 %v16235_v8  ;;  %7086 = vmatprep.subr.bf16.mxu0 %v16250_v46  ;;  %v984_v8 = vld [vmem:[%s24374_s1 + $0x1da8] sm:$0xff]  ;;  %v16316_v42 = vcombine.high %v1000_v34, %v1008_v35  ;;  %v1023_v44 = vld [vmem:[%s24374_s1 + $0x1ee0] sm:$0xff]  ;;  %v16315_v50 = vcombine.low %v1000_v34, %v1008_v35  ;;  %v57_v34 = vld [vmem:[%s24374_s1 + $0xb0] sm:$0xff] }
 0x2e4   :  { %7250 = vmatprep.subr.bf16.mxu1 %v16252_v49  ;;  %7664 = vst [vmem:[#allocation2 + $0x8] sm:$0xff] %v7656_v60  ;;  %v16300_v18 = vcombine.high %v984_v8, %v992_v10  ;;  %v16299_v40 = vcombine.low %v984_v8, %v992_v10  ;;  %v1016_v46 = vld [vmem:[%s24374_s1 + $0x1ea8] sm:$0xff]  ;;  %v16313_v49 = vcombine.low %v999_v20, %v1007_v33  ;;  %v1031_v54 = vld [vmem:[%s24374_s1 + $0x1f20] sm:$0xff]  ;;  %v41_v8 = vld [vmem:[%s24374_s1 + $0x30] sm:$0xff] }
 0x2e5   :  { %v16330_v51 = vcombine.high %v1015_v43, %v1023_v44  ;;  %v16332_v52 = vcombine.high %v1016_v46, %v1024_v47  ;;  %v16329_v60 = vcombine.low %v1015_v43, %v1023_v44  ;;  %v1047_v63 = vld [vmem:[%s24374_s1 + $0x1fa0] sm:$0xff]  ;;  %v49_v10 = vld [vmem:[%s24374_s1 + $0x70] sm:$0xff] }
 0x2e6   :  { %7087 = vmatpush1.bf16.msra.mxu0 %v16249_v56  ;;  %v1039_v56 = vld [vmem:[%s24374_s1 + $0x1f60] sm:$0xff]  ;;  %v15358_v20 = vcombine.high %v41_v8, %v49_v10  ;;  %v65_v35 = vld [vmem:[%s24374_s1 + $0xf0] sm:$0xff] }
 0x2e7   :  { %7251 = vmatpush1.bf16.msra.mxu1 %v16251_v58  ;;  %7088 = vmatprep.subr.bf16.mxu0 %v16266_v59  ;;  %v1032_v58 = vld [vmem:[%s24374_s1 + $0x1f28] sm:$0xff]  ;;  %v16346_v62 = vcombine.high %v1031_v54, %v1039_v56  ;;  %v1055_v0 = vld [vmem:[%s24374_s1 + $0x1fe0] sm:$0xff]  ;;  %v15374_v43 = vcombine.high %v57_v34, %v65_v35 }
 0x2e8   :  { %7252 = vmatprep.subr.bf16.mxu1 %v16268_v61  ;;  %v1040_v59 = vld [vmem:[%s24374_s1 + $0x1f68] sm:$0xff]  ;;  %v16331_v61 = vcombine.low %v1016_v46, %v1024_v47  ;;  %v16362_v5 = vcombine.high %v1047_v63, %v1055_v0  ;;  %v73_v46 = vld [vmem:[%s24374_s1 + $0x130] sm:$0xff] }
 0x2e9   :  { %v16348_v39 = vcombine.high %v1032_v58, %v1040_v59  ;;  %v81_v47 = vld [vmem:[%s24374_s1 + $0x170] sm:$0xff] }
 0x2ea   :  { %7089 = vmatpush1.bf16.msra.mxu0 %v16265_v1  ;;  %v1048_v1 = vld [vmem:[%s24374_s1 + $0x1fa8] sm:$0xff] }
 0x2eb   :  { %7253 = vmatpush1.bf16.msra.mxu1 %v16267_v2  ;;  %7090 = vmatprep.subr.bf16.mxu0 %v16282_v3  ;;  %v1056_v2 = vld [vmem:[%s24374_s1 + $0x1fe8] sm:$0xff]  ;;  %v16345_v3 = vcombine.low %v1031_v54, %v1039_v56  ;;  %v15390_v54 = vcombine.high %v73_v46, %v81_v47 }
 0x2ec   :  { %7254 = vmatprep.subr.bf16.mxu1 %v16284_v4  ;;  %v16347_v4 = vcombine.low %v1032_v58, %v1040_v59  ;;  %v16364_v6 = vcombine.high %v1048_v1, %v1056_v2  ;;  %v89_v58 = vld [vmem:[%s24374_s1 + $0x1b0] sm:$0xff] }
 0x2ed   :  { %v97_v59 = vld [vmem:[%s24374_s1 + $0x1f0] sm:$0xff] }
 0x2ee   :  { %7091 = vmatpush1.bf16.msra.mxu0 %v16281_v13  ;;  %v42_v13 = vld [vmem:[%s24374_s1 + $0x38] sm:$0xff] }
 0x2ef   :  { %7255 = vmatpush1.bf16.msra.mxu1 %v16283_v14  ;;  %7092 = vmatprep.subr.bf16.mxu0 %v16298_v17  ;;  %v50_v14 = vld [vmem:[%s24374_s1 + $0x78] sm:$0xff]  ;;  %v16361_v17 = vcombine.low %v1047_v63, %v1055_v0  ;;  %v15406_v63 = vcombine.high %v89_v58, %v97_v59 }
 0x2f0   :  { %7256 = vmatprep.subr.bf16.mxu1 %v16300_v18  ;;  %v16363_v18 = vcombine.low %v1048_v1, %v1056_v2  ;;  %v15360_v33 = vcombine.high %v42_v13, %v50_v14  ;;  %v105_v1 = vld [vmem:[%s24374_s1 + $0x230] sm:$0xff] }
 0x2f1   :  { %v113_v2 = vld [vmem:[%s24374_s1 + $0x270] sm:$0xff] }
 0x2f2   :  { %7093 = vmatpush1.bf16.msra.mxu0 %v16297_v38  ;;  %v58_v38 = vld [vmem:[%s24374_s1 + $0xb8] sm:$0xff] }
 0x2f3   :  { %7257 = vmatpush1.bf16.msra.mxu1 %v16299_v40  ;;  %7094 = vmatprep.subr.bf16.mxu0 %v16314_v11  ;;  %v66_v40 = vld [vmem:[%s24374_s1 + $0xf8] sm:$0xff]  ;;  %v15357_v11 = vcombine.low %v41_v8, %v49_v10  ;;  %v121_v10 = vld [vmem:[%s24374_s1 + $0x2b0] sm:$0xff] }
 0x2f4   :  { %7258 = vmatprep.subr.bf16.mxu1 %v16316_v42  ;;  %v15359_v42 = vcombine.low %v42_v13, %v50_v14  ;;  %v15376_v44 = vcombine.high %v58_v38, %v66_v40  ;;  %v129_v13 = vld [vmem:[%s24374_s1 + $0x2f0] sm:$0xff]  ;;  %v122_v14 = vld [vmem:[%s24374_s1 + $0x2b8] sm:$0xff] }
 0x2f6   :  { %7095 = vmatpush1.bf16.msra.mxu0 %v16313_v49  ;;  %v74_v49 = vld [vmem:[%s24374_s1 + $0x138] sm:$0xff] }
 0x2f7   :  { %7259 = vmatpush1.bf16.msra.mxu1 %v16315_v50  ;;  %7096 = vmatprep.subr.bf16.mxu0 %v16330_v51  ;;  %v82_v50 = vld [vmem:[%s24374_s1 + $0x178] sm:$0xff]  ;;  %v15373_v51 = vcombine.low %v57_v34, %v65_v35  ;;  %v137_v35 = vld [vmem:[%s24374_s1 + $0x330] sm:$0xff] }
 0x2f8   :  { %7260 = vmatprep.subr.bf16.mxu1 %v16332_v52  ;;  %v15375_v52 = vcombine.low %v58_v38, %v66_v40  ;;  %v15392_v56 = vcombine.high %v74_v49, %v82_v50  ;;  %v145_v38 = vld [vmem:[%s24374_s1 + $0x370] sm:$0xff]  ;;  %v138_v40 = vld [vmem:[%s24374_s1 + $0x338] sm:$0xff] }
 0x2fa   :  { %7097 = vmatpush1.bf16.msra.mxu0 %v16329_v60  ;;  %v90_v60 = vld [vmem:[%s24374_s1 + $0x1b8] sm:$0xff] }
 0x2fb   :  { %7261 = vmatpush1.bf16.msra.mxu1 %v16331_v61  ;;  %7098 = vmatprep.subr.bf16.mxu0 %v16346_v62  ;;  %v98_v61 = vld [vmem:[%s24374_s1 + $0x1f8] sm:$0xff]  ;;  %v15389_v62 = vcombine.low %v73_v46, %v81_v47  ;;  %v153_v47 = vld [vmem:[%s24374_s1 + $0x3b0] sm:$0xff] }
 0x2fc   :  { %7262 = vmatprep.subr.bf16.mxu1 %v16348_v39  ;;  %v15391_v39 = vcombine.low %v74_v49, %v82_v50  ;;  %v15408_v0 = vcombine.high %v90_v60, %v98_v61  ;;  %v161_v49 = vld [vmem:[%s24374_s1 + $0x3f0] sm:$0xff]  ;;  %v154_v50 = vld [vmem:[%s24374_s1 + $0x3b8] sm:$0xff] }
 0x2fe   :  { %7099 = vmatpush1.bf16.msra.mxu0 %v16345_v3  ;;  %v114_v3 = vld [vmem:[%s24374_s1 + $0x278] sm:$0xff] }
 0x2ff   :  { %7263 = vmatpush1.bf16.msra.mxu1 %v16347_v4  ;;  %7100 = vmatprep.subr.bf16.mxu0 %v16362_v5  ;;  %v15405_v4 = vcombine.low %v89_v58, %v97_v59  ;;  %v15407_v5 = vcombine.low %v90_v60, %v98_v61  ;;  %v169_v59 = vld [vmem:[%s24374_s1 + $0x430] sm:$0xff]  ;;  %v170_v61 = vld [vmem:[%s24374_s1 + $0x438] sm:$0xff] }
 0x300   :  { %7264 = vmatprep.subr.bf16.mxu1 %v16364_v6  ;;  %v15422_v6 = vcombine.high %v105_v1, %v113_v2  ;;  %v177_v60 = vld [vmem:[%s24374_s1 + $0x470] sm:$0xff] }
 0x302   :  { %7101 = vmatpush1.bf16.msra.mxu0 %v16361_v17  ;;  %v130_v17 = vld [vmem:[%s24374_s1 + $0x2f8] sm:$0xff] }
 0x303   :  { %7265 = vmatpush1.bf16.msra.mxu1 %v16363_v18  ;;  %7275 = vmatprep.subr.bf16.mxu0 %v15358_v20  ;;  %v15421_v18 = vcombine.low %v105_v1, %v113_v2  ;;  %v15440_v34 = vcombine.high %v122_v14, %v130_v17  ;;  %v185_v2 = vld [vmem:[%s24374_s1 + $0x4b0] sm:$0xff] }
 0x304   :  { %7439 = vmatprep.subr.bf16.mxu1 %v15360_v33  ;;  %v15438_v33 = vcombine.high %v121_v10, %v129_v13 }
 0x305   :  { %7103 = vmatmul.mubr.bf16.vlgmr.msra.gmra.mrb[8].mxu0 %v18594_v55 }
 0x306   :  { %7267 = vmatmul.mubr.bf16.vlgmr.msra.gmra.mrb[8].mxu1 %v18594_v55  ;;  %7276 = vmatpush1.bf16.msra.mxu0 %v15357_v11  ;;  %v146_v11 = vld [vmem:[%s24374_s1 + $0x378] sm:$0xff] }
 0x307   :  { %7440 = vmatpush1.bf16.msra.mxu1 %v15359_v42  ;;  %7277 = vmatprep.subr.bf16.mxu0 %v15374_v43  ;;  %v15437_v42 = vcombine.low %v121_v10, %v129_v13  ;;  %v15439_v43 = vcombine.low %v122_v14, %v130_v17  ;;  %v15456_v46 = vcombine.high %v138_v40, %v146_v11  ;;  %v201_v13 = vld [vmem:[%s24374_s1 + $0x530] sm:$0xff]  ;;  %v202_v17 = vld [vmem:[%s24374_s1 + $0x538] sm:$0xff] }
 0x308   :  { %7441 = vmatprep.subr.bf16.mxu1 %v15376_v44  ;;  %7307 = vmatprep.mubr.bf16.mxu0 %v17841_v57  ;;  %v15454_v44 = vcombine.high %v137_v35, %v145_v38  ;;  %v209_v14 = vld [vmem:[%s24374_s1 + $0x570] sm:$0xff] }
 0x309   :  { %7471 = vmatprep.mubr.bf16.mxu1 %v17841_v57  ;;  %v106_v57 = vld [vmem:[%s24374_s1 + $0x238] sm:$0xff] }
 0x30a   :  { %7278 = vmatpush1.bf16.msra.mxu0 %v15373_v51  ;;  %v15424_v8 = vcombine.high %v106_v57, %v114_v3  ;;  %v15423_v20 = vcombine.low %v106_v57, %v114_v3  ;;  %v162_v51 = vld [vmem:[%s24374_s1 + $0x3f8] sm:$0xff]  ;;  %v193_v57 = vld [vmem:[%s24374_s1 + $0x4f0] sm:$0xff] }
 0x30b   :  { %7442 = vmatpush1.bf16.msra.mxu1 %v15375_v52  ;;  %7279 = vmatprep.subr.bf16.mxu0 %v15390_v54  ;;  %v15453_v52 = vcombine.low %v137_v35, %v145_v38  ;;  %v15455_v54 = vcombine.low %v138_v40, %v146_v11  ;;  %v15472_v58 = vcombine.high %v154_v50, %v162_v51  ;;  %v186_v3 = vld [vmem:[%s24374_s1 + $0x4b8] sm:$0xff]  ;;  %v217_v38 = vld [vmem:[%s24374_s1 + $0x5b0] sm:$0xff] }
 0x30c   :  { %7443 = vmatprep.subr.bf16.mxu1 %v15392_v56  ;;  %v15470_v56 = vcombine.high %v153_v47, %v161_v49  ;;  %v225_v40 = vld [vmem:[%s24374_s1 + $0x5f0] sm:$0xff]  ;;  %v218_v11 = vld [vmem:[%s24374_s1 + $0x5b8] sm:$0xff] }
 0x30e   :  { %7280 = vmatpush1.bf16.msra.mxu0 %v15389_v62  ;;  %v178_v62 = vld [vmem:[%s24374_s1 + $0x478] sm:$0xff] }
 0x30f   :  { %7444 = vmatpush1.bf16.msra.mxu1 %v15391_v39  ;;  %7281 = vmatprep.subr.bf16.mxu0 %v15406_v63  ;;  %v15469_v39 = vcombine.low %v153_v47, %v161_v49  ;;  %v15471_v63 = vcombine.low %v154_v50, %v162_v51  ;;  %v15488_v1 = vcombine.high %v170_v61, %v178_v62  ;;  %v233_v49 = vld [vmem:[%s24374_s1 + $0x630] sm:$0xff]  ;;  %v234_v51 = vld [vmem:[%s24374_s1 + $0x638] sm:$0xff] }
 0x310   :  { %7445 = vmatprep.subr.bf16.mxu1 %v15408_v0  ;;  %v15486_v0 = vcombine.high %v169_v59, %v177_v60  ;;  %v241_v50 = vld [vmem:[%s24374_s1 + $0x670] sm:$0xff] }
 0x312   :  { %7282 = vmatpush1.bf16.msra.mxu0 %v15405_v4  ;;  %v194_v4 = vld [vmem:[%s24374_s1 + $0x4f8] sm:$0xff] }
 0x313   :  { %7446 = vmatpush1.bf16.msra.mxu1 %v15407_v5  ;;  %7283 = vmatprep.subr.bf16.mxu0 %v15422_v6  ;;  %v15485_v5 = vcombine.low %v169_v59, %v177_v60  ;;  %v15487_v6 = vcombine.low %v170_v61, %v178_v62  ;;  %v15504_v10 = vcombine.high %v186_v3, %v194_v4  ;;  %v249_v60 = vld [vmem:[%s24374_s1 + $0x6b0] sm:$0xff]  ;;  %v250_v62 = vld [vmem:[%s24374_s1 + $0x6b8] sm:$0xff] }
 0x314   :  { %7447 = vmatprep.subr.bf16.mxu1 %v15424_v8  ;;  %v15502_v8 = vcombine.high %v185_v2, %v193_v57  ;;  %v257_v61 = vld [vmem:[%s24374_s1 + $0x6f0] sm:$0xff] }
 0x316   :  { %7284 = vmatpush1.bf16.msra.mxu0 %v15421_v18  ;;  %v210_v18 = vld [vmem:[%s24374_s1 + $0x578] sm:$0xff] }
 0x317   :  { %7448 = vmatpush1.bf16.msra.mxu1 %v15423_v20  ;;  %7285 = vmatprep.subr.bf16.mxu0 %v15438_v33  ;;  %v15501_v20 = vcombine.low %v185_v2, %v193_v57  ;;  %v15503_v33 = vcombine.low %v186_v3, %v194_v4  ;;  %v15520_v35 = vcombine.high %v202_v17, %v210_v18  ;;  %v265_v57 = vld [vmem:[%s24374_s1 + $0x730] sm:$0xff]  ;;  %v266_v4 = vld [vmem:[%s24374_s1 + $0x738] sm:$0xff] }
 0x318   :  { %7449 = vmatprep.subr.bf16.mxu1 %v15440_v34  ;;  %v15518_v34 = vcombine.high %v201_v13, %v209_v14  ;;  %v273_v3 = vld [vmem:[%s24374_s1 + $0x770] sm:$0xff] }
 0x31a   :  { %7286 = vmatpush1.bf16.msra.mxu0 %v15437_v42  ;;  %v226_v42 = vld [vmem:[%s24374_s1 + $0x5f8] sm:$0xff] }
 0x31b   :  { %7450 = vmatpush1.bf16.msra.mxu1 %v15439_v43  ;;  %7287 = vmatprep.subr.bf16.mxu0 %v15454_v44  ;;  %v15517_v43 = vcombine.low %v201_v13, %v209_v14  ;;  %v15519_v44 = vcombine.low %v202_v17, %v210_v18  ;;  %v15536_v47 = vcombine.high %v218_v11, %v226_v42  ;;  %v281_v14 = vld [vmem:[%s24374_s1 + $0x7b0] sm:$0xff]  ;;  %v282_v18 = vld [vmem:[%s24374_s1 + $0x7b8] sm:$0xff] }
 0x31c   :  { %7451 = vmatprep.subr.bf16.mxu1 %v15456_v46  ;;  %v15534_v46 = vcombine.high %v217_v38, %v225_v40  ;;  %v289_v17 = vld [vmem:[%s24374_s1 + $0x7f0] sm:$0xff] }
 0x31e   :  { %7288 = vmatpush1.bf16.msra.mxu0 %v15453_v52  ;;  %v242_v52 = vld [vmem:[%s24374_s1 + $0x678] sm:$0xff] }
 0x31f   :  { %7452 = vmatpush1.bf16.msra.mxu1 %v15455_v54  ;;  %7289 = vmatprep.subr.bf16.mxu0 %v15470_v56  ;;  %v15533_v54 = vcombine.low %v217_v38, %v225_v40  ;;  %v15535_v56 = vcombine.low %v218_v11, %v226_v42  ;;  %v15552_v59 = vcombine.high %v234_v51, %v242_v52  ;;  %v297_v40 = vld [vmem:[%s24374_s1 + $0x830] sm:$0xff]  ;;  %v298_v42 = vld [vmem:[%s24374_s1 + $0x838] sm:$0xff] }
 0x320   :  { %7453 = vmatprep.subr.bf16.mxu1 %v15472_v58  ;;  %v15550_v58 = vcombine.high %v233_v49, %v241_v50  ;;  %v305_v11 = vld [vmem:[%s24374_s1 + $0x870] sm:$0xff] }
 0x322   :  { %7290 = vmatpush1.bf16.msra.mxu0 %v15469_v39  ;;  %v258_v39 = vld [vmem:[%s24374_s1 + $0x6f8] sm:$0xff] }
 0x323   :  { %7454 = vmatpush1.bf16.msra.mxu1 %v15471_v63  ;;  %7291 = vmatprep.subr.bf16.mxu0 %v15486_v0  ;;  %v15549_v63 = vcombine.low %v233_v49, %v241_v50  ;;  %v15551_v0 = vcombine.low %v234_v51, %v242_v52  ;;  %v15568_v2 = vcombine.high %v250_v62, %v258_v39  ;;  %v313_v50 = vld [vmem:[%s24374_s1 + $0x8b0] sm:$0xff]  ;;  %v314_v52 = vld [vmem:[%s24374_s1 + $0x8b8] sm:$0xff] }
 0x324   :  { %7455 = vmatprep.subr.bf16.mxu1 %v15488_v1  ;;  %v15566_v1 = vcombine.high %v249_v60, %v257_v61  ;;  %v321_v51 = vld [vmem:[%s24374_s1 + $0x8f0] sm:$0xff] }
 0x326   :  { %7292 = vmatpush1.bf16.msra.mxu0 %v15485_v5  ;;  %v274_v5 = vld [vmem:[%s24374_s1 + $0x778] sm:$0xff] }
 0x327   :  { %7456 = vmatpush1.bf16.msra.mxu1 %v15487_v6  ;;  %7293 = vmatprep.subr.bf16.mxu0 %v15502_v8  ;;  %v15565_v6 = vcombine.low %v249_v60, %v257_v61  ;;  %v15567_v8 = vcombine.low %v250_v62, %v258_v39  ;;  %v15584_v13 = vcombine.high %v266_v4, %v274_v5  ;;  %v329_v61 = vld [vmem:[%s24374_s1 + $0x930] sm:$0xff]  ;;  %v330_v39 = vld [vmem:[%s24374_s1 + $0x938] sm:$0xff] }
 0x328   :  { %7457 = vmatprep.subr.bf16.mxu1 %v15504_v10  ;;  %v15582_v10 = vcombine.high %v265_v57, %v273_v3  ;;  %v337_v62 = vld [vmem:[%s24374_s1 + $0x970] sm:$0xff] }
 0x32a   :  { %7294 = vmatpush1.bf16.msra.mxu0 %v15501_v20  ;;  %v290_v20 = vld [vmem:[%s24374_s1 + $0x7f8] sm:$0xff] }
 0x32b   :  { %7458 = vmatpush1.bf16.msra.mxu1 %v15503_v33  ;;  %7295 = vmatprep.subr.bf16.mxu0 %v15518_v34  ;;  %v15581_v33 = vcombine.low %v265_v57, %v273_v3  ;;  %v15583_v34 = vcombine.low %v266_v4, %v274_v5  ;;  %v15600_v38 = vcombine.high %v282_v18, %v290_v20  ;;  %v345_v3 = vld [vmem:[%s24374_s1 + $0x9b0] sm:$0xff]  ;;  %v354_v5 = vld [vmem:[%s24374_s1 + $0x9f8] sm:$0xff] }
 0x32c   :  { %7459 = vmatprep.subr.bf16.mxu1 %v15520_v35  ;;  %v15598_v35 = vcombine.high %v281_v14, %v289_v17  ;;  %v353_v4 = vld [vmem:[%s24374_s1 + $0x9f0] sm:$0xff] }
 0x32e   :  { %7296 = vmatpush1.bf16.msra.mxu0 %v15517_v43  ;;  %v306_v43 = vld [vmem:[%s24374_s1 + $0x878] sm:$0xff] }
 0x32f   :  { %7460 = vmatpush1.bf16.msra.mxu1 %v15519_v44  ;;  %7297 = vmatprep.subr.bf16.mxu0 %v15534_v46  ;;  %v15597_v44 = vcombine.low %v281_v14, %v289_v17  ;;  %v15599_v46 = vcombine.low %v282_v18, %v290_v20  ;;  %v15616_v49 = vcombine.high %v298_v42, %v306_v43  ;;  %v361_v14 = vld [vmem:[%s24374_s1 + $0xa30] sm:$0xff]  ;;  %v370_v18 = vld [vmem:[%s24374_s1 + $0xa78] sm:$0xff] }
 0x330   :  { %7461 = vmatprep.subr.bf16.mxu1 %v15536_v47  ;;  %v15614_v47 = vcombine.high %v297_v40, %v305_v11  ;;  %v369_v17 = vld [vmem:[%s24374_s1 + $0xa70] sm:$0xff]  ;;  %v15661_v20 = vcombine.low %v345_v3, %v353_v4 }
 0x332   :  { %7298 = vmatpush1.bf16.msra.mxu0 %v15533_v54  ;;  %v322_v54 = vld [vmem:[%s24374_s1 + $0x8f8] sm:$0xff] }
 0x333   :  { %7462 = vmatpush1.bf16.msra.mxu1 %v15535_v56  ;;  %7299 = vmatprep.subr.bf16.mxu0 %v15550_v58  ;;  %v15613_v56 = vcombine.low %v297_v40, %v305_v11  ;;  %v15615_v58 = vcombine.low %v298_v42, %v306_v43  ;;  %v15632_v60 = vcombine.high %v314_v52, %v322_v54  ;;  %v385_v40 = vld [vmem:[%s24374_s1 + $0xaf0] sm:$0xff]  ;;  %v378_v11 = vld [vmem:[%s24374_s1 + $0xab8] sm:$0xff] }
 0x334   :  { %7463 = vmatprep.subr.bf16.mxu1 %v15552_v59  ;;  %v15630_v59 = vcombine.high %v313_v50, %v321_v51  ;;  %v386_v42 = vld [vmem:[%s24374_s1 + $0xaf8] sm:$0xff]  ;;  %v15677_v43 = vcombine.low %v361_v14, %v369_v17 }
 0x336   :  { %7300 = vmatpush1.bf16.msra.mxu0 %v15549_v63  ;;  %v338_v63 = vld [vmem:[%s24374_s1 + $0x978] sm:$0xff] }
 0x337   :  { %7464 = vmatpush1.bf16.msra.mxu1 %v15551_v0  ;;  %7301 = vmatprep.subr.bf16.mxu0 %v15566_v1  ;;  %v15629_v0 = vcombine.low %v313_v50, %v321_v51  ;;  %v15631_v1 = vcombine.low %v314_v52, %v322_v54  ;;  %v15648_v57 = vcombine.high %v330_v39, %v338_v63  ;;  %v401_v50 = vld [vmem:[%s24374_s1 + $0xb70] sm:$0xff]  ;;  %v394_v51 = vld [vmem:[%s24374_s1 + $0xb38] sm:$0xff] }
 0x338   :  { %7465 = vmatprep.subr.bf16.mxu1 %v15568_v2  ;;  %v15646_v2 = vcombine.high %v329_v61, %v337_v62  ;;  %v402_v52 = vld [vmem:[%s24374_s1 + $0xb78] sm:$0xff] }
 0x33a   :  { %7302 = vmatpush1.bf16.msra.mxu0 %v15565_v6  ;;  %v15645_v6 = vcombine.low %v329_v61, %v337_v62  ;;  %v417_v61 = vld [vmem:[%s24374_s1 + $0xbf0] sm:$0xff]  ;;  %v410_v62 = vld [vmem:[%s24374_s1 + $0xbb8] sm:$0xff] }
 0x33b   :  { %7466 = vmatpush1.bf16.msra.mxu1 %v15567_v8  ;;  %7303 = vmatprep.subr.bf16.mxu0 %v15582_v10  ;;  %v15647_v8 = vcombine.low %v330_v39, %v338_v63  ;;  %v15662_v10 = vcombine.high %v345_v3, %v353_v4  ;;  %v418_v39 = vld [vmem:[%s24374_s1 + $0xbf8] sm:$0xff]  ;;  %v433_v3 = vld [vmem:[%s24374_s1 + $0xc70] sm:$0xff] }
 0x33c   :  { %7467 = vmatprep.subr.bf16.mxu1 %v15584_v13  ;;  %v426_v4 = vld [vmem:[%s24374_s1 + $0xc38] sm:$0xff] }
 0x33e   :  { %7304 = vmatpush1.bf16.msra.mxu0 %v15581_v33 }
 0x33f   :  { %7468 = vmatpush1.bf16.msra.mxu1 %v15583_v34  ;;  %7305 = vmatprep.subr.bf16.mxu0 %v15598_v35  ;;  %v15678_v34 = vcombine.high %v361_v14, %v369_v17  ;;  %v449_v14 = vld [vmem:[%s24374_s1 + $0xcf0] sm:$0xff]  ;;  %v442_v17 = vld [vmem:[%s24374_s1 + $0xcb8] sm:$0xff] }
 0x340   :  { %7469 = vmatprep.subr.bf16.mxu1 %v15600_v38  ;;  %v377_v38 = vld [vmem:[%s24374_s1 + $0xab0] sm:$0xff] }
 0x341   :  { %v15693_v54 = vcombine.low %v377_v38, %v385_v40 }
 0x342   :  { %7306 = vmatpush1.bf16.msra.mxu0 %v15597_v44 }
 0x343   :  { %7470 = vmatpush1.bf16.msra.mxu1 %v15599_v46  ;;  %7316 = vmatprep.subr.bf16.mxu0 %v15614_v47  ;;  %v15694_v46 = vcombine.high %v377_v38, %v385_v40  ;;  %v15696_v47 = vcombine.high %v378_v11, %v386_v42  ;;  %v465_v38 = vld [vmem:[%s24374_s1 + $0xd70] sm:$0xff]  ;;  %v458_v40 = vld [vmem:[%s24374_s1 + $0xd38] sm:$0xff] }
 0x344   :  { %7480 = vmatprep.subr.bf16.mxu1 %v15616_v49  ;;  %v393_v49 = vld [vmem:[%s24374_s1 + $0xb30] sm:$0xff] }
 0x345   :  { %7308 = vmatmul.mubr.bf16.vlgmr.msra.gmra.mrb[12].mxu0 %v17967_v12  ;;  %v15709_v63 = vcombine.low %v393_v49, %v401_v50 }
 0x346   :  { %7317 = vmatpush1.bf16.msra.mxu0 %v15613_v56  ;;  %7472 = vmatmul.mubr.bf16.vlgmr.msra.gmra.mrb[12].mxu1 %v17967_v12  ;;  %v346_v12 = vld [vmem:[%s24374_s1 + $0x9b8] sm:$0xff]  ;;  %v15695_v56 = vcombine.low %v378_v11, %v386_v42 }
 0x347   :  { %7481 = vmatpush1.bf16.msra.mxu1 %v15615_v58  ;;  %7318 = vmatprep.subr.bf16.mxu0 %v15630_v59  ;;  %v15664_v13 = vcombine.high %v346_v12, %v354_v5  ;;  %v15663_v33 = vcombine.low %v346_v12, %v354_v5  ;;  %v15710_v58 = vcombine.high %v393_v49, %v401_v50  ;;  %v434_v12 = vld [vmem:[%s24374_s1 + $0xc78] sm:$0xff]  ;;  %v481_v49 = vld [vmem:[%s24374_s1 + $0xdf0] sm:$0xff] }
 0x348   :  { %7482 = vmatprep.subr.bf16.mxu1 %v15632_v60  ;;  %7348 = vmatprep.mubr.bf16.mxu0 %v17988_v21  ;;  %v15712_v59 = vcombine.high %v394_v51, %v402_v52  ;;  %v409_v60 = vld [vmem:[%s24374_s1 + $0xbb0] sm:$0xff]  ;;  %v466_v11 = vld [vmem:[%s24374_s1 + $0xd78] sm:$0xff] }
 0x349   :  { %7512 = vmatprep.mubr.bf16.mxu1 %v17988_v21  ;;  %v362_v21 = vld [vmem:[%s24374_s1 + $0xa38] sm:$0xff]  ;;  %v15725_v5 = vcombine.low %v409_v60, %v417_v61 }
 0x34a   :  { %7319 = vmatpush1.bf16.msra.mxu0 %v15629_v0  ;;  %v15680_v35 = vcombine.high %v362_v21, %v370_v18  ;;  %v15679_v44 = vcombine.low %v362_v21, %v370_v18  ;;  %v15711_v0 = vcombine.low %v394_v51, %v402_v52  ;;  %v450_v21 = vld [vmem:[%s24374_s1 + $0xcf8] sm:$0xff] }
 0x34b   :  { %7483 = vmatpush1.bf16.msra.mxu1 %v15631_v1  ;;  %7320 = vmatprep.subr.bf16.mxu0 %v15646_v2  ;;  %v15726_v1 = vcombine.high %v409_v60, %v417_v61  ;;  %v15728_v2 = vcombine.high %v410_v62, %v418_v39  ;;  %v474_v50 = vld [vmem:[%s24374_s1 + $0xdb8] sm:$0xff]  ;;  %v497_v60 = vld [vmem:[%s24374_s1 + $0xe70] sm:$0xff] }
 0x34c   :  { %7484 = vmatprep.subr.bf16.mxu1 %v15648_v57  ;;  %v425_v57 = vld [vmem:[%s24374_s1 + $0xc30] sm:$0xff]  ;;  %v482_v51 = vld [vmem:[%s24374_s1 + $0xdf8] sm:$0xff] }
 0x34d   :  { %v15741_v18 = vcombine.low %v425_v57, %v433_v3  ;;  %v490_v61 = vld [vmem:[%s24374_s1 + $0xe38] sm:$0xff] }
 0x34e   :  { %7321 = vmatpush1.bf16.msra.mxu0 %v15645_v6  ;;  %v15727_v6 = vcombine.low %v410_v62, %v418_v39  ;;  %v498_v62 = vld [vmem:[%s24374_s1 + $0xe78] sm:$0xff] }
 0x34f   :  { %7485 = vmatpush1.bf16.msra.mxu1 %v15647_v8  ;;  %7322 = vmatprep.subr.bf16.mxu0 %v15662_v10  ;;  %v15742_v8 = vcombine.high %v425_v57, %v433_v3  ;;  %v15744_v10 = vcombine.high %v426_v4, %v434_v12  ;;  %v513_v57 = vld [vmem:[%s24374_s1 + $0xef0] sm:$0xff]  ;;  %v506_v3 = vld [vmem:[%s24374_s1 + $0xeb8] sm:$0xff] }
 0x350   :  { %7486 = vmatprep.subr.bf16.mxu1 %v15664_v13  ;;  %v441_v13 = vld [vmem:[%s24374_s1 + $0xcb0] sm:$0xff] }
 0x351   :  { %v15757_v42 = vcombine.low %v441_v13, %v449_v14 }
 0x352   :  { %7323 = vmatpush1.bf16.msra.mxu0 %v15661_v20  ;;  %v15743_v20 = vcombine.low %v426_v4, %v434_v12  ;;  %v514_v4 = vld [vmem:[%s24374_s1 + $0xef8] sm:$0xff] }
 0x353   :  { %7487 = vmatpush1.bf16.msra.mxu1 %v15663_v33  ;;  %7324 = vmatprep.subr.bf16.mxu0 %v15678_v34  ;;  %v15758_v33 = vcombine.high %v441_v13, %v449_v14  ;;  %v15760_v34 = vcombine.high %v442_v17, %v450_v21  ;;  %v529_v13 = vld [vmem:[%s24374_s1 + $0xf70] sm:$0xff]  ;;  %v522_v14 = vld [vmem:[%s24374_s1 + $0xf38] sm:$0xff] }
 0x354   :  { %7488 = vmatprep.subr.bf16.mxu1 %v15680_v35  ;;  %v457_v35 = vld [vmem:[%s24374_s1 + $0xd30] sm:$0xff] }
 0x355   :  { %v15773_v52 = vcombine.low %v457_v35, %v465_v38 }
 0x356   :  { %7325 = vmatpush1.bf16.msra.mxu0 %v15677_v43  ;;  %v15759_v43 = vcombine.low %v442_v17, %v450_v21  ;;  %v530_v17 = vld [vmem:[%s24374_s1 + $0xf78] sm:$0xff] }
 0x357   :  { %7489 = vmatpush1.bf16.msra.mxu1 %v15679_v44  ;;  %7326 = vmatprep.subr.bf16.mxu0 %v15694_v46  ;;  %v15774_v44 = vcombine.high %v457_v35, %v465_v38  ;;  %v15776_v46 = vcombine.high %v458_v40, %v466_v11  ;;  %v545_v35 = vld [vmem:[%s24374_s1 + $0xff0] sm:$0xff]  ;;  %v538_v38 = vld [vmem:[%s24374_s1 + $0xfb8] sm:$0xff] }
 0x358   :  { %7490 = vmatprep.subr.bf16.mxu1 %v15696_v47  ;;  %v473_v47 = vld [vmem:[%s24374_s1 + $0xdb0] sm:$0xff] }
 0x359   :  { %v15789_v39 = vcombine.low %v473_v47, %v481_v49 }
 0x35a   :  { %7327 = vmatpush1.bf16.msra.mxu0 %v15693_v54  ;;  %v15775_v54 = vcombine.low %v458_v40, %v466_v11  ;;  %v546_v40 = vld [vmem:[%s24374_s1 + $0xff8] sm:$0xff] }
 0x35b   :  { %7491 = vmatpush1.bf16.msra.mxu1 %v15695_v56  ;;  %7328 = vmatprep.subr.bf16.mxu0 %v15710_v58  ;;  %v15790_v56 = vcombine.high %v473_v47, %v481_v49  ;;  %v15792_v58 = vcombine.high %v474_v50, %v482_v51  ;;  %v561_v47 = vld [vmem:[%s24374_s1 + $0x1070] sm:$0xff]  ;;  %v554_v49 = vld [vmem:[%s24374_s1 + $0x1038] sm:$0xff] }
 0x35c   :  { %7492 = vmatprep.subr.bf16.mxu1 %v15712_v59  ;;  %v489_v59 = vld [vmem:[%s24374_s1 + $0xe30] sm:$0xff] }
 0x35d   :  { %v15805_v12 = vcombine.low %v489_v59, %v497_v60 }
 0x35e   :  { %7329 = vmatpush1.bf16.msra.mxu0 %v15709_v63  ;;  %v15791_v63 = vcombine.low %v474_v50, %v482_v51  ;;  %v562_v50 = vld [vmem:[%s24374_s1 + $0x1078] sm:$0xff] }
 0x35f   :  { %7493 = vmatpush1.bf16.msra.mxu1 %v15711_v0  ;;  %7330 = vmatprep.subr.bf16.mxu0 %v15726_v1  ;;  %v15806_v0 = vcombine.high %v489_v59, %v497_v60  ;;  %v15808_v1 = vcombine.high %v490_v61, %v498_v62  ;;  %v577_v59 = vld [vmem:[%s24374_s1 + $0x10f0] sm:$0xff]  ;;  %v570_v60 = vld [vmem:[%s24374_s1 + $0x10b8] sm:$0xff] }
 0x360   :  { %7494 = vmatprep.subr.bf16.mxu1 %v15728_v2  ;;  %v505_v2 = vld [vmem:[%s24374_s1 + $0xeb0] sm:$0xff] }
 0x361   :  { %v15821_v21 = vcombine.low %v505_v2, %v513_v57 }
 0x362   :  { %7331 = vmatpush1.bf16.msra.mxu0 %v15725_v5  ;;  %v15807_v5 = vcombine.low %v490_v61, %v498_v62  ;;  %v578_v61 = vld [vmem:[%s24374_s1 + $0x10f8] sm:$0xff] }
 0x363   :  { %7495 = vmatpush1.bf16.msra.mxu1 %v15727_v6  ;;  %7332 = vmatprep.subr.bf16.mxu0 %v15742_v8  ;;  %v15822_v6 = vcombine.high %v505_v2, %v513_v57  ;;  %v15824_v8 = vcombine.high %v506_v3, %v514_v4  ;;  %v593_v2 = vld [vmem:[%s24374_s1 + $0x1170] sm:$0xff]  ;;  %v586_v57 = vld [vmem:[%s24374_s1 + $0x1138] sm:$0xff] }
 0x364   :  { %7496 = vmatprep.subr.bf16.mxu1 %v15744_v10  ;;  %v521_v10 = vld [vmem:[%s24374_s1 + $0xf30] sm:$0xff] }
 0x365   :  { %v15837_v11 = vcombine.low %v521_v10, %v529_v13 }
 0x366   :  { %7333 = vmatpush1.bf16.msra.mxu0 %v15741_v18  ;;  %v15823_v18 = vcombine.low %v506_v3, %v514_v4  ;;  %v594_v3 = vld [vmem:[%s24374_s1 + $0x1178] sm:$0xff] }
 0x367   :  { %7497 = vmatpush1.bf16.msra.mxu1 %v15743_v20  ;;  %7334 = vmatprep.subr.bf16.mxu0 %v15758_v33  ;;  %v15838_v20 = vcombine.high %v521_v10, %v529_v13  ;;  %v15840_v33 = vcombine.high %v522_v14, %v530_v17  ;;  %v609_v10 = vld [vmem:[%s24374_s1 + $0x11f0] sm:$0xff]  ;;  %v610_v13 = vld [vmem:[%s24374_s1 + $0x11f8] sm:$0xff] }
 0x368   :  { %7498 = vmatprep.subr.bf16.mxu1 %v15760_v34  ;;  %v537_v34 = vld [vmem:[%s24374_s1 + $0xfb0] sm:$0xff] }
 0x369   :  { %v15853_v51 = vcombine.low %v537_v34, %v545_v35 }
 0x36a   :  { %7335 = vmatpush1.bf16.msra.mxu0 %v15757_v42  ;;  %v15839_v42 = vcombine.low %v522_v14, %v530_v17  ;;  %v15903_v17 = vcombine.low %v586_v57, %v594_v3 }
 0x36b   :  { %7499 = vmatpush1.bf16.msra.mxu1 %v15759_v43  ;;  %7336 = vmatprep.subr.bf16.mxu0 %v15774_v44  ;;  %v15854_v43 = vcombine.high %v537_v34, %v545_v35  ;;  %v15856_v44 = vcombine.high %v538_v38, %v546_v40  ;;  %v626_v34 = vld [vmem:[%s24374_s1 + $0x1278] sm:$0xff] }
 0x36c   :  { %7500 = vmatprep.subr.bf16.mxu1 %v15776_v46  ;;  %v553_v46 = vld [vmem:[%s24374_s1 + $0x1030] sm:$0xff] }
 0x36d   :  { %v15869_v62 = vcombine.low %v553_v46, %v561_v47 }
 0x36e   :  { %7337 = vmatpush1.bf16.msra.mxu0 %v15773_v52  ;;  %v15855_v52 = vcombine.low %v538_v38, %v546_v40 }
 0x36f   :  { %7501 = vmatpush1.bf16.msra.mxu1 %v15775_v54  ;;  %7338 = vmatprep.subr.bf16.mxu0 %v15790_v56  ;;  %v15870_v54 = vcombine.high %v553_v46, %v561_v47  ;;  %v15872_v56 = vcombine.high %v554_v49, %v562_v50  ;;  %v642_v46 = vld [vmem:[%s24374_s1 + $0x12f8] sm:$0xff] }
 0x370   :  { %7502 = vmatprep.subr.bf16.mxu1 %v15792_v58  ;;  %v569_v58 = vld [vmem:[%s24374_s1 + $0x10b0] sm:$0xff] }
 0x371   :  { %v15885_v4 = vcombine.low %v569_v58, %v577_v59 }
 0x372   :  { %7339 = vmatpush1.bf16.msra.mxu0 %v15789_v39  ;;  %v15871_v39 = vcombine.low %v554_v49, %v562_v50 }
 0x373   :  { %7503 = vmatpush1.bf16.msra.mxu1 %v15791_v63  ;;  %7340 = vmatprep.subr.bf16.mxu0 %v15806_v0  ;;  %v15886_v63 = vcombine.high %v569_v58, %v577_v59  ;;  %v15888_v0 = vcombine.high %v570_v60, %v578_v61  ;;  %v658_v58 = vld [vmem:[%s24374_s1 + $0x1378] sm:$0xff] }
 0x374   :  { %7504 = vmatprep.subr.bf16.mxu1 %v15808_v1  ;;  %v585_v1 = vld [vmem:[%s24374_s1 + $0x1130] sm:$0xff] }
 0x375   :  { %v15901_v14 = vcombine.low %v585_v1, %v593_v2 }
 0x376   :  { %7341 = vmatpush1.bf16.msra.mxu0 %v15805_v12  ;;  %v15887_v12 = vcombine.low %v570_v60, %v578_v61 }
 0x377   :  { %7505 = vmatpush1.bf16.msra.mxu1 %v15807_v5  ;;  %7342 = vmatprep.subr.bf16.mxu0 %v15822_v6  ;;  %v15902_v5 = vcombine.high %v585_v1, %v593_v2  ;;  %v15904_v6 = vcombine.high %v586_v57, %v594_v3  ;;  %v674_v1 = vld [vmem:[%s24374_s1 + $0x13f8] sm:$0xff] }
 0x378   :  { %7506 = vmatprep.subr.bf16.mxu1 %v15824_v8  ;;  %v601_v8 = vld [vmem:[%s24374_s1 + $0x11b0] sm:$0xff] }
 0x379   :  { %v15917_v35 = vcombine.low %v601_v8, %v609_v10 }
 0x37a   :  { %7343 = vmatpush1.bf16.msra.mxu0 %v15821_v21  ;;  %v15918_v21 = vcombine.high %v601_v8, %v609_v10  ;;  %v690_v8 = vld [vmem:[%s24374_s1 + $0x1478] sm:$0xff] }
 0x37b   :  { %7507 = vmatpush1.bf16.msra.mxu1 %v15823_v18  ;;  %7344 = vmatprep.subr.bf16.mxu0 %v15838_v20  ;;  %v617_v20 = vld [vmem:[%s24374_s1 + $0x1230] sm:$0xff] }
 0x37c   :  { %7508 = vmatprep.subr.bf16.mxu1 %v15840_v33  ;;  %v625_v33 = vld [vmem:[%s24374_s1 + $0x1270] sm:$0xff] }
 0x37d   :  { %v15934_v40 = vcombine.high %v617_v20, %v625_v33  ;;  %v15933_v47 = vcombine.low %v617_v20, %v625_v33  ;;  %v706_v20 = vld [vmem:[%s24374_s1 + $0x14f8] sm:$0xff] }
 0x37e   :  { %7345 = vmatpush1.bf16.msra.mxu0 %v15837_v11 }
 0x37f   :  { %7509 = vmatpush1.bf16.msra.mxu1 %v15839_v42  ;;  %7346 = vmatprep.subr.bf16.mxu0 %v15854_v43  ;;  %v633_v42 = vld [vmem:[%s24374_s1 + $0x12b0] sm:$0xff] }
 0x380   :  { %7510 = vmatprep.subr.bf16.mxu1 %v15856_v44  ;;  %v641_v43 = vld [vmem:[%s24374_s1 + $0x12f0] sm:$0xff]  ;;  %v634_v44 = vld [vmem:[%s24374_s1 + $0x12b8] sm:$0xff] }
 0x381   :  { %v15950_v50 = vcombine.high %v633_v42, %v641_v43  ;;  %v15949_v59 = vcombine.low %v633_v42, %v641_v43  ;;  %v15951_v60 = vcombine.low %v634_v44, %v642_v46  ;;  %v722_v42 = vld [vmem:[%s24374_s1 + $0x1578] sm:$0xff] }
 0x382   :  { %7347 = vmatpush1.bf16.msra.mxu0 %v15853_v51  ;;  %v15952_v51 = vcombine.high %v634_v44, %v642_v46 }
 0x383   :  { %7511 = vmatpush1.bf16.msra.mxu1 %v15855_v52  ;;  %7357 = vmatprep.subr.bf16.mxu0 %v15870_v54  ;;  %v649_v52 = vld [vmem:[%s24374_s1 + $0x1330] sm:$0xff] }
 0x384   :  { %7521 = vmatprep.subr.bf16.mxu1 %v15872_v56  ;;  %v657_v54 = vld [vmem:[%s24374_s1 + $0x1370] sm:$0xff]  ;;  %v650_v56 = vld [vmem:[%s24374_s1 + $0x1338] sm:$0xff] }
 0x385   :  { %7349 = vmatmul.mubr.bf16.vlgmr.msra.gmra.mrb[12].mxu0 %v18176_v22  ;;  %v15966_v61 = vcombine.high %v649_v52, %v657_v54  ;;  %v15965_v2 = vcombine.low %v649_v52, %v657_v54  ;;  %v15967_v57 = vcombine.low %v650_v56, %v658_v58  ;;  %v738_v52 = vld [vmem:[%s24374_s1 + $0x15f8] sm:$0xff] }
 0x386   :  { %7358 = vmatpush1.bf16.msra.mxu0 %v15869_v62  ;;  %7513 = vmatmul.mubr.bf16.vlgmr.msra.gmra.mrb[12].mxu1 %v18176_v22  ;;  %v602_v22 = vld [vmem:[%s24374_s1 + $0x11b8] sm:$0xff]  ;;  %v15968_v62 = vcombine.high %v650_v56, %v658_v58 }
 0x387   :  { %7522 = vmatpush1.bf16.msra.mxu1 %v15871_v39  ;;  %7359 = vmatprep.subr.bf16.mxu0 %v15886_v63  ;;  %v15920_v18 = vcombine.high %v602_v22, %v610_v13  ;;  %v15919_v38 = vcombine.low %v602_v22, %v610_v13  ;;  %v665_v39 = vld [vmem:[%s24374_s1 + $0x13b0] sm:$0xff] }
 0x388   :  { %7523 = vmatprep.subr.bf16.mxu1 %v15888_v0  ;;  %7389 = vmatprep.mubr.bf16.mxu0 %v18197_v31  ;;  %v673_v63 = vld [vmem:[%s24374_s1 + $0x13f0] sm:$0xff]  ;;  %v666_v0 = vld [vmem:[%s24374_s1 + $0x13b8] sm:$0xff] }
 0x389   :  { %7553 = vmatprep.mubr.bf16.mxu1 %v18197_v31  ;;  %v618_v31 = vld [vmem:[%s24374_s1 + $0x1238] sm:$0xff]  ;;  %v15982_v3 = vcombine.high %v665_v39, %v673_v63  ;;  %v15981_v10 = vcombine.low %v665_v39, %v673_v63  ;;  %v15983_v22 = vcombine.low %v666_v0, %v674_v1 }
 0x38a   :  { %7360 = vmatpush1.bf16.msra.mxu0 %v15885_v4  ;;  %v15936_v11 = vcombine.high %v618_v31, %v626_v34  ;;  %v15935_v49 = vcombine.low %v618_v31, %v626_v34  ;;  %v15984_v4 = vcombine.high %v666_v0, %v674_v1  ;;  %v754_v39 = vld [vmem:[%s24374_s1 + $0x1678] sm:$0xff] }
 0x38b   :  { %7524 = vmatpush1.bf16.msra.mxu1 %v15887_v12  ;;  %7361 = vmatprep.subr.bf16.mxu0 %v15902_v5  ;;  %v681_v12 = vld [vmem:[%s24374_s1 + $0x1430] sm:$0xff] }
 0x38c   :  { %7525 = vmatprep.subr.bf16.mxu1 %v15904_v6  ;;  %v689_v5 = vld [vmem:[%s24374_s1 + $0x1470] sm:$0xff]  ;;  %v682_v6 = vld [vmem:[%s24374_s1 + $0x1438] sm:$0xff] }
 0x38d   :  { %v15998_v13 = vcombine.high %v681_v12, %v689_v5  ;;  %v15997_v33 = vcombine.low %v681_v12, %v689_v5  ;;  %v15999_v31 = vcombine.low %v682_v6, %v690_v8  ;;  %v770_v12 = vld [vmem:[%s24374_s1 + $0x16f8] sm:$0xff] }
 0x38e   :  { %7362 = vmatpush1.bf16.msra.mxu0 %v15901_v14  ;;  %v16000_v14 = vcombine.high %v682_v6, %v690_v8 }
 0x38f   :  { %7526 = vmatpush1.bf16.msra.mxu1 %v15903_v17  ;;  %7363 = vmatprep.subr.bf16.mxu0 %v15918_v21  ;;  %v697_v17 = vld [vmem:[%s24374_s1 + $0x14b0] sm:$0xff] }
 0x390   :  { %7527 = vmatprep.subr.bf16.mxu1 %v15920_v18  ;;  %v705_v21 = vld [vmem:[%s24374_s1 + $0x14f0] sm:$0xff]  ;;  %v698_v18 = vld [vmem:[%s24374_s1 + $0x14b8] sm:$0xff] }
 0x391   :  { %v16014_v34 = vcombine.high %v697_v17, %v705_v21  ;;  %v16013_v43 = vcombine.low %v697_v17, %v705_v21  ;;  %v16015_v44 = vcombine.low %v698_v18, %v706_v20  ;;  %v786_v17 = vld [vmem:[%s24374_s1 + $0x1778] sm:$0xff] }
 0x392   :  { %7364 = vmatpush1.bf16.msra.mxu0 %v15917_v35  ;;  %v16016_v35 = vcombine.high %v698_v18, %v706_v20 }
 0x393   :  { %7528 = vmatpush1.bf16.msra.mxu1 %v15919_v38  ;;  %7365 = vmatprep.subr.bf16.mxu0 %v15934_v40  ;;  %v713_v38 = vld [vmem:[%s24374_s1 + $0x1530] sm:$0xff] }
 0x394   :  { %7529 = vmatprep.subr.bf16.mxu1 %v15936_v11  ;;  %v721_v40 = vld [vmem:[%s24374_s1 + $0x1570] sm:$0xff]  ;;  %v714_v11 = vld [vmem:[%s24374_s1 + $0x1538] sm:$0xff] }
 0x395   :  { %v16030_v46 = vcombine.high %v713_v38, %v721_v40  ;;  %v16029_v54 = vcombine.low %v713_v38, %v721_v40  ;;  %v16031_v56 = vcombine.low %v714_v11, %v722_v42  ;;  %v802_v38 = vld [vmem:[%s24374_s1 + $0x17f8] sm:$0xff] }
 0x396   :  { %7366 = vmatpush1.bf16.msra.mxu0 %v15933_v47  ;;  %v16032_v47 = vcombine.high %v714_v11, %v722_v42 }
 0x397   :  { %7530 = vmatpush1.bf16.msra.mxu1 %v15935_v49  ;;  %7367 = vmatprep.subr.bf16.mxu0 %v15950_v50  ;;  %v729_v49 = vld [vmem:[%s24374_s1 + $0x15b0] sm:$0xff] }
 0x398   :  { %7531 = vmatprep.subr.bf16.mxu1 %v15952_v51  ;;  %v737_v50 = vld [vmem:[%s24374_s1 + $0x15f0] sm:$0xff]  ;;  %v730_v51 = vld [vmem:[%s24374_s1 + $0x15b8] sm:$0xff] }
 0x399   :  { %v16046_v58 = vcombine.high %v729_v49, %v737_v50  ;;  %v16045_v63 = vcombine.low %v729_v49, %v737_v50  ;;  %v16047_v0 = vcombine.low %v730_v51, %v738_v52  ;;  %v818_v49 = vld [vmem:[%s24374_s1 + $0x1878] sm:$0xff] }
 0x39a   :  { %7368 = vmatpush1.bf16.msra.mxu0 %v15949_v59  ;;  %v16048_v59 = vcombine.high %v730_v51, %v738_v52 }
 0x39b   :  { %7532 = vmatpush1.bf16.msra.mxu1 %v15951_v60  ;;  %7369 = vmatprep.subr.bf16.mxu0 %v15966_v61  ;;  %v745_v60 = vld [vmem:[%s24374_s1 + $0x1630] sm:$0xff] }
 0x39c   :  { %7533 = vmatprep.subr.bf16.mxu1 %v15968_v62  ;;  %v753_v61 = vld [vmem:[%s24374_s1 + $0x1670] sm:$0xff]  ;;  %v746_v62 = vld [vmem:[%s24374_s1 + $0x1638] sm:$0xff] }
 0x39d   :  { %v16062_v1 = vcombine.high %v745_v60, %v753_v61  ;;  %v16061_v5 = vcombine.low %v745_v60, %v753_v61  ;;  %v16063_v6 = vcombine.low %v746_v62, %v754_v39  ;;  %v834_v60 = vld [vmem:[%s24374_s1 + $0x18f8] sm:$0xff] }
 0x39e   :  { %7370 = vmatpush1.bf16.msra.mxu0 %v15965_v2  ;;  %v16064_v2 = vcombine.high %v746_v62, %v754_v39 }
 0x39f   :  { %7534 = vmatpush1.bf16.msra.mxu1 %v15967_v57  ;;  %7371 = vmatprep.subr.bf16.mxu0 %v15982_v3  ;;  %v761_v57 = vld [vmem:[%s24374_s1 + $0x16b0] sm:$0xff] }
 0x3a0   :  { %7535 = vmatprep.subr.bf16.mxu1 %v15984_v4  ;;  %v769_v3 = vld [vmem:[%s24374_s1 + $0x16f0] sm:$0xff]  ;;  %v762_v4 = vld [vmem:[%s24374_s1 + $0x16b8] sm:$0xff] }
 0x3a1   :  { %v16078_v8 = vcombine.high %v761_v57, %v769_v3  ;;  %v16077_v21 = vcombine.low %v761_v57, %v769_v3  ;;  %v16079_v18 = vcombine.low %v762_v4, %v770_v12  ;;  %v850_v57 = vld [vmem:[%s24374_s1 + $0x1978] sm:$0xff] }
 0x3a2   :  { %7372 = vmatpush1.bf16.msra.mxu0 %v15981_v10  ;;  %v16080_v10 = vcombine.high %v762_v4, %v770_v12 }
 0x3a3   :  { %7536 = vmatpush1.bf16.msra.mxu1 %v15983_v22  ;;  %7373 = vmatprep.subr.bf16.mxu0 %v15998_v13  ;;  %v777_v22 = vld [vmem:[%s24374_s1 + $0x1730] sm:$0xff] }
 0x3a4   :  { %7537 = vmatprep.subr.bf16.mxu1 %v16000_v14  ;;  %v785_v13 = vld [vmem:[%s24374_s1 + $0x1770] sm:$0xff]  ;;  %v778_v14 = vld [vmem:[%s24374_s1 + $0x1738] sm:$0xff] }
 0x3a5   :  { %v16094_v20 = vcombine.high %v777_v22, %v785_v13  ;;  %v16093_v40 = vcombine.low %v777_v22, %v785_v13  ;;  %v16095_v11 = vcombine.low %v778_v14, %v786_v17 }
 0x3a6   :  { %7374 = vmatpush1.bf16.msra.mxu0 %v15997_v33  ;;  %v16096_v33 = vcombine.high %v778_v14, %v786_v17 }
 0x3a7   :  { %7538 = vmatpush1.bf16.msra.mxu1 %v15999_v31  ;;  %7375 = vmatprep.subr.bf16.mxu0 %v16014_v34  ;;  %v793_v31 = vld [vmem:[%s24374_s1 + $0x17b0] sm:$0xff] }
 0x3a8   :  { %7539 = vmatprep.subr.bf16.mxu1 %v16016_v35  ;;  %v801_v34 = vld [vmem:[%s24374_s1 + $0x17f0] sm:$0xff]  ;;  %v794_v35 = vld [vmem:[%s24374_s1 + $0x17b8] sm:$0xff] }
 0x3a9   :  { %v16110_v42 = vcombine.high %v793_v31, %v801_v34  ;;  %v16109_v50 = vcombine.low %v793_v31, %v801_v34  ;;  %v16111_v51 = vcombine.low %v794_v35, %v802_v38 }
 0x3aa   :  { %7376 = vmatpush1.bf16.msra.mxu0 %v16013_v43  ;;  %v16112_v43 = vcombine.high %v794_v35, %v802_v38  ;;  %v889_v38 = vld [vmem:[%s24374_s1 + $0x1ab0] sm:$0xff] }
 0x3ab   :  { %7540 = vmatpush1.bf16.msra.mxu1 %v16015_v44  ;;  %7377 = vmatprep.subr.bf16.mxu0 %v16030_v46  ;;  %v809_v44 = vld [vmem:[%s24374_s1 + $0x1830] sm:$0xff] }
 0x3ac   :  { %7541 = vmatprep.subr.bf16.mxu1 %v16032_v47  ;;  %v817_v46 = vld [vmem:[%s24374_s1 + $0x1870] sm:$0xff]  ;;  %v810_v47 = vld [vmem:[%s24374_s1 + $0x1838] sm:$0xff] }
 0x3ad   :  { %v16126_v52 = vcombine.high %v809_v44, %v817_v46  ;;  %v16125_v61 = vcombine.low %v809_v44, %v817_v46  ;;  %v16127_v62 = vcombine.low %v810_v47, %v818_v49  ;;  %v1060_v44 = vld [vmem:[%s24375_s2 + $0x8] sm:$0xff] }
 0x3ae   :  { %7378 = vmatpush1.bf16.msra.mxu0 %v16029_v54  ;;  %v16128_v54 = vcombine.high %v810_v47, %v818_v49 }
 0x3af   :  { %7542 = vmatpush1.bf16.msra.mxu1 %v16031_v56  ;;  %7379 = vmatprep.subr.bf16.mxu0 %v16046_v58  ;;  %v825_v56 = vld [vmem:[%s24374_s1 + $0x18b0] sm:$0xff] }
 0x3b0   :  { %7543 = vmatprep.subr.bf16.mxu1 %v16048_v59  ;;  %v833_v58 = vld [vmem:[%s24374_s1 + $0x18f0] sm:$0xff]  ;;  %v826_v59 = vld [vmem:[%s24374_s1 + $0x18b8] sm:$0xff] }
 0x3b1   :  { %v16142_v39 = vcombine.high %v825_v56, %v833_v58  ;;  %v16141_v3 = vcombine.low %v825_v56, %v833_v58  ;;  %v16143_v4 = vcombine.low %v826_v59, %v834_v60  ;;  %v914_v56 = vld [vmem:[%s24374_s1 + $0x1b78] sm:$0xff]  ;;  %v1106_v58 = vrot.slane %v1060_v44, %v19251_v27 }
 0x3b2   :  { %7380 = vmatpush1.bf16.msra.mxu0 %v16045_v63  ;;  %v16144_v63 = vcombine.high %v826_v59, %v834_v60  ;;  %v1102_v59 = vrot.slane %v1060_v44, %v19254_v15 }
 0x3b3   :  { %7544 = vmatpush1.bf16.msra.mxu1 %v16047_v0  ;;  %7381 = vmatprep.subr.bf16.mxu0 %v16062_v1  ;;  %v841_v0 = vld [vmem:[%s24374_s1 + $0x1930] sm:$0xff] }
 0x3b4   :  { %7545 = vmatprep.subr.bf16.mxu1 %v16064_v2  ;;  %v849_v1 = vld [vmem:[%s24374_s1 + $0x1970] sm:$0xff]  ;;  %v842_v2 = vld [vmem:[%s24374_s1 + $0x1938] sm:$0xff] }
 0x3b5   :  { %v16158_v12 = vcombine.high %v841_v0, %v849_v1  ;;  %v16157_v22 = vcombine.low %v841_v0, %v849_v1  ;;  %v16159_v13 = vcombine.low %v842_v2, %v850_v57  ;;  %v929_v0 = vld [vmem:[%s24374_s1 + $0x1bf0] sm:$0xff] }
 0x3b6   :  { %7382 = vmatpush1.bf16.msra.mxu0 %v16061_v5  ;;  %v16160_v5 = vcombine.high %v842_v2, %v850_v57  ;;  %v922_v57 = vld [vmem:[%s24374_s1 + $0x1bb8] sm:$0xff] }
 0x3b7   :  { %7546 = vmatpush1.bf16.msra.mxu1 %v16063_v6  ;;  %7383 = vmatprep.subr.bf16.mxu0 %v16078_v8  ;;  %v857_v6 = vld [vmem:[%s24374_s1 + $0x19b0] sm:$0xff] }
 0x3b8   :  { %7547 = vmatprep.subr.bf16.mxu1 %v16080_v10  ;;  %v865_v8 = vld [vmem:[%s24374_s1 + $0x19f0] sm:$0xff]  ;;  %v866_v10 = vld [vmem:[%s24374_s1 + $0x19f8] sm:$0xff] }
 0x3b9   :  { %v16174_v14 = vcombine.high %v857_v6, %v865_v8 }
 0x3ba   :  { %7384 = vmatpush1.bf16.msra.mxu0 %v16077_v21  ;;  %v873_v21 = vld [vmem:[%s24374_s1 + $0x1a30] sm:$0xff] }
 0x3bb   :  { %7548 = vmatpush1.bf16.msra.mxu1 %v16079_v18  ;;  %7385 = vmatprep.subr.bf16.mxu0 %v16094_v20  ;;  %v881_v18 = vld [vmem:[%s24374_s1 + $0x1a70] sm:$0xff]  ;;  %v882_v20 = vld [vmem:[%s24374_s1 + $0x1a78] sm:$0xff] }
 0x3bc   :  { %7549 = vmatprep.subr.bf16.mxu1 %v16096_v33  ;;  %v16173_v33 = vcombine.low %v857_v6, %v865_v8  ;;  %v16190_v34 = vcombine.high %v873_v21, %v881_v18 }
 0x3be   :  { %7386 = vmatpush1.bf16.msra.mxu0 %v16093_v40  ;;  %v897_v40 = vld [vmem:[%s24374_s1 + $0x1af0] sm:$0xff] }
 0x3bf   :  { %7550 = vmatpush1.bf16.msra.mxu1 %v16095_v11  ;;  %7387 = vmatprep.subr.bf16.mxu0 %v16110_v42  ;;  %v890_v11 = vld [vmem:[%s24374_s1 + $0x1ab8] sm:$0xff]  ;;  %v16206_v47 = vcombine.high %v889_v38, %v897_v40  ;;  %v16205_v60 = vcombine.low %v889_v38, %v897_v40  ;;  %v945_v40 = vld [vmem:[%s24374_s1 + $0x1c70] sm:$0xff] }
 0x3c0   :  { %7551 = vmatprep.subr.bf16.mxu1 %v16112_v43  ;;  %v898_v42 = vld [vmem:[%s24374_s1 + $0x1af8] sm:$0xff]  ;;  %v16189_v43 = vcombine.low %v873_v21, %v881_v18 }
 0x3c1   :  { %v16208_v49 = vcombine.high %v890_v11, %v898_v42 }
 0x3c2   :  { %7388 = vmatpush1.bf16.msra.mxu0 %v16109_v50  ;;  %v905_v50 = vld [vmem:[%s24374_s1 + $0x1b30] sm:$0xff] }
 0x3c3   :  { %7552 = vmatpush1.bf16.msra.mxu1 %v16111_v51  ;;  %7398 = vmatprep.subr.bf16.mxu0 %v16126_v52  ;;  %v913_v51 = vld [vmem:[%s24374_s1 + $0x1b70] sm:$0xff]  ;;  %v1098_v52 = vrot.slane %v1060_v44, %v19239_v19 }
 0x3c4   :  { %7562 = vmatprep.subr.bf16.mxu1 %v16128_v54  ;;  %v906_v54 = vld [vmem:[%s24374_s1 + $0x1b38] sm:$0xff]  ;;  %v16221_v6 = vcombine.low %v905_v50, %v913_v51 }
 0x3c5   :  { %7390 = vmatmul.mubr.bf16.vlgmr.msra.gmra.mrb[12].mxu0 %v18385_v36  ;;  %v16224_v2 = vcombine.high %v906_v54, %v914_v56  ;;  %v16223_v8 = vcombine.low %v906_v54, %v914_v56 }
 0x3c6   :  { %7399 = vmatpush1.bf16.msra.mxu0 %v16125_v61  ;;  %7554 = vmatmul.mubr.bf16.vlgmr.msra.gmra.mrb[12].mxu1 %v18385_v36  ;;  %v858_v36 = vld [vmem:[%s24374_s1 + $0x19b8] sm:$0xff]  ;;  %v1110_v61 = vrot.slane %v1060_v44, %v19257_v29 }
 0x3c7   :  { %7563 = vmatpush1.bf16.msra.mxu1 %v16127_v62  ;;  %7400 = vmatprep.subr.bf16.mxu0 %v16142_v39  ;;  %v16176_v17 = vcombine.high %v858_v36, %v866_v10  ;;  %v16175_v31 = vcombine.low %v858_v36, %v866_v10  ;;  %v16207_v62 = vcombine.low %v890_v11, %v898_v42 }
 0x3c8   :  { %7564 = vmatprep.subr.bf16.mxu1 %v16144_v63  ;;  %7430 = vmatprep.mubr.bf16.mxu0 %v18406_v45  ;;  %v16222_v39 = vcombine.high %v905_v50, %v913_v51  ;;  %v921_v63 = vld [vmem:[%s24374_s1 + $0x1bb0] sm:$0xff] }
 0x3c9   :  { %7594 = vmatprep.mubr.bf16.mxu1 %v18406_v45  ;;  %v874_v45 = vld [vmem:[%s24374_s1 + $0x1a38] sm:$0xff] }
 0x3ca   :  { %7401 = vmatpush1.bf16.msra.mxu0 %v16141_v3  ;;  %v16192_v35 = vcombine.high %v874_v45, %v882_v20  ;;  %v16191_v46 = vcombine.low %v874_v45, %v882_v20  ;;  %v930_v3 = vld [vmem:[%s24374_s1 + $0x1bf8] sm:$0xff] }
 0x3cb   :  { %7565 = vmatpush1.bf16.msra.mxu1 %v16143_v4  ;;  %7402 = vmatprep.subr.bf16.mxu0 %v16158_v12  ;;  %v16239_v20 = vcombine.low %v922_v57, %v930_v3 }
 0x3cc   :  { %7566 = vmatprep.subr.bf16.mxu1 %v16160_v5 }
 0x3ce   :  { %7403 = vmatpush1.bf16.msra.mxu0 %v16157_v22 }
 0x3cf   :  { %7567 = vmatpush1.bf16.msra.mxu1 %v16159_v13  ;;  %7404 = vmatprep.subr.bf16.mxu0 %v16174_v14  ;;  %v16237_v14 = vcombine.low %v921_v63, %v929_v0 }
 0x3d0   :  { %7568 = vmatprep.subr.bf16.mxu1 %v16176_v17  ;;  %v16238_v17 = vcombine.high %v921_v63, %v929_v0  ;;  %v954_v63 = vld [vmem:[%s24374_s1 + $0x1cb8] sm:$0xff] }
 0x3d1   :  { %v962_v0 = vld [vmem:[%s24374_s1 + $0x1cf8] sm:$0xff] }
 0x3d2   :  { %7405 = vmatpush1.bf16.msra.mxu0 %v16173_v33  ;;  %v16240_v33 = vcombine.high %v922_v57, %v930_v3 }
 0x3d3   :  { %7569 = vmatpush1.bf16.msra.mxu1 %v16175_v31  ;;  %7406 = vmatprep.subr.bf16.mxu0 %v16190_v34  ;;  %v937_v31 = vld [vmem:[%s24374_s1 + $0x1c30] sm:$0xff] }
 0x3d4   :  { %7570 = vmatprep.subr.bf16.mxu1 %v16192_v35 }
 0x3d6   :  { %7407 = vmatpush1.bf16.msra.mxu0 %v16189_v43 }
 0x3d7   :  { %7571 = vmatpush1.bf16.msra.mxu1 %v16191_v46  ;;  %7408 = vmatprep.subr.bf16.mxu0 %v16206_v47  ;;  %v938_v46 = vld [vmem:[%s24374_s1 + $0x1c38] sm:$0xff] }
 0x3d8   :  { %v7104_v1 = vpop.f32.mrb[8].mxu0  ;;  %7572 = vmatprep.subr.bf16.mxu1 %v16208_v49  ;;  %v946_v47 = vld [vmem:[%s24374_s1 + $0x1c78] sm:$0xff] }
 0x3d9   :  { %v17402_v4 = vadd.f32 %v7104_v1, %v1098_v52  ;;  %v7268_v12 = vpop.f32.mrb[8].mxu1  ;;  %v7106_v5 = vpop.f32.mrb[9].mxu0  ;;  %v16253_v1 = vcombine.low %v937_v31, %v945_v40 }
 0x3da   :  { %v17404_v36 = vadd.f32 %v7268_v12, %v1106_v58  ;;  %v17403_v10 = vadd.f32 %v7106_v5, %v1102_v59  ;;  %v7270_v22 = vpop.f32.mrb[9].mxu1  ;;  %v7108_v13 = vpop.f32.mrb[10].mxu0  ;;  %7409 = vmatpush1.bf16.msra.mxu0 %v16205_v60  ;;  %v16254_v58 = vcombine.high %v937_v31, %v945_v40  ;;  %v969_v12 = vld [vmem:[%s24374_s1 + $0x1d30] sm:$0xff]  ;;  %v1010_v40 = vld [vmem:[%s24374_s1 + $0x1e78] sm:$0xff] }
 0x3db   :  { %vm7611_vm8 = vcmp.gt.f32.partialorder %v17402_v4, 0.0  ;;  %v17405_v21 = vadd.f32 %v7270_v22, %v1110_v61  ;;  %v7272_v18 = vpop.f32.mrb[10].mxu1  ;;  %7573 = vmatpush1.bf16.msra.mxu1 %v16207_v62  ;;  %v7109_v45 = vpop.f32.mrb[11].mxu0  ;;  %7410 = vmatprep.subr.bf16.mxu0 %v16222_v39  ;;  %v16256_v61 = vcombine.high %v938_v46, %v946_v47  ;;  %v953_v62 = vld [vmem:[%s24374_s1 + $0x1cb0] sm:$0xff] }
 0x3dc   :  { %v7627_v34 = vsel %vm7611_vm8, 1.0, %v17690_v7  ;;  %v7643_v35 = vsel %vm7611_vm8, 1, %v17691_v9  ;;  %vm7613_vm9 = vcmp.gt.f32.partialorder %v17404_v36, 0.0  ;;  %vm7612_vm10 = vcmp.gt.f32.partialorder %v17403_v10, 0.0  ;;  %v7273_v38 = vpop.f32.mrb[11].mxu1  ;;  %7574 = vmatprep.subr.bf16.mxu1 %v16224_v2  ;;  %v961_v39 = vld [vmem:[%s24374_s1 + $0x1cf0] sm:$0xff] }
 0x3dd   :  { %v20921_v11 = vmul.f32 %v17402_v4, %v7627_v34  ;;  %v7629_v42 = vsel %vm7613_vm9, 1.0, %v17690_v7  ;;  %v7645_v43 = vsel %vm7613_vm9, 1, %v17691_v9  ;;  %v7628_v44 = vsel %vm7612_vm10, 1.0, %v17690_v7  ;;  %v977_v5 = vld [vmem:[%s24374_s1 + $0x1d70] sm:$0xff]  ;;  %v994_v18 = vld [vmem:[%s24374_s1 + $0x1df8] sm:$0xff] }
 0x3de   :  { %v20932_v49 = vmul.f32 %v17404_v36, %v7629_v42  ;;  %v7644_v50 = vsel %vm7612_vm10, 1, %v17691_v9  ;;  %v20935_v51 = vmul.f32 %v17403_v10, %v7628_v44  ;;  %vm7614_vm11 = vcmp.gt.f32.partialorder %v17405_v21, 0.0  ;;  %7411 = vmatpush1.bf16.msra.mxu0 %v16221_v6  ;;  %v970_v6 = vld [vmem:[%s24374_s1 + $0x1d38] sm:$0xff]  ;;  %v1001_v34 = vld [vmem:[%s24374_s1 + $0x1e30] sm:$0xff] }
 0x3df   :  { %v7657_v52 = vpack.c.b16 %v7644_v50, %v7643_v35  ;;  %v7630_v54 = vsel %vm7614_vm11, 1.0, %v17690_v7  ;;  %v7646_v56 = vsel %vm7614_vm11, 1, %v17691_v9  ;;  %7575 = vmatpush1.bf16.msra.mxu1 %v16223_v8  ;;  %7412 = vmatprep.subr.bf16.mxu0 %v16238_v17  ;;  %v16255_v2 = vcombine.low %v938_v46, %v946_v47  ;;  %v978_v8 = vld [vmem:[%s24374_s1 + $0x1d78] sm:$0xff]  ;;  %v993_v17 = vld [vmem:[%s24374_s1 + $0x1df0] sm:$0xff] }
 0x3e0   :  { %v7658_v59 = vpack.c.b16 %v7646_v56, %v7645_v43  ;;  %v20939_v60 = vmul.f32 %v17405_v21, %v7630_v54  ;;  %7576 = vmatprep.subr.bf16.mxu1 %v16240_v33  ;;  %v16270_v57 = vcombine.high %v953_v62, %v961_v39  ;;  %v16272_v4 = vcombine.high %v954_v63, %v962_v0  ;;  %v986_v21 = vld [vmem:[%s24374_s1 + $0x1db8] sm:$0xff]  ;;  %v1009_v35 = vld [vmem:[%s24374_s1 + $0x1e70] sm:$0xff] }
 0x3e1   :  { %v16269_v36 = vcombine.low %v953_v62, %v961_v39  ;;  %v16271_v10 = vcombine.low %v954_v63, %v962_v0  ;;  %v16286_v22 = vcombine.high %v969_v12, %v977_v5  ;;  %v16288_v13 = vcombine.high %v970_v6, %v978_v8  ;;  %v1002_v38 = vld [vmem:[%s24374_s1 + $0x1e38] sm:$0xff]  ;;  %v1017_v47 = vld [vmem:[%s24374_s1 + $0x1eb0] sm:$0xff] }
 0x3e2   :  { %7413 = vmatpush1.bf16.msra.mxu0 %v16237_v14  ;;  %v7659_v3 = vpack.c.b8 %v7658_v59, %v7657_v52  ;;  %v985_v14 = vld [vmem:[%s24374_s1 + $0x1db0] sm:$0xff]  ;;  %v16285_v45 = vcombine.low %v969_v12, %v977_v5  ;;  %v16304_v31 = vcombine.high %v986_v21, %v994_v18  ;;  %v16303_v43 = vcombine.low %v986_v21, %v994_v18  ;;  %v1018_v52 = vld [vmem:[%s24374_s1 + $0x1eb8] sm:$0xff]  ;;  %v7704_v21 = vld [vmem:[%s24376_s3 + $0x28] sm:$0xff] }
 0x3e3   :  { %7577 = vmatpush1.bf16.msra.mxu1 %v16239_v20  ;;  %7414 = vmatprep.subr.bf16.mxu0 %v16254_v58  ;;  %v16287_v20 = vcombine.low %v970_v6, %v978_v8  ;;  %v16302_v33 = vcombine.high %v985_v14, %v993_v17  ;;  %v16301_v42 = vcombine.low %v985_v14, %v993_v17  ;;  %v1025_v50 = vld [vmem:[%s24374_s1 + $0x1ef0] sm:$0xff]  ;;  %v1026_v54 = vld [vmem:[%s24374_s1 + $0x1ef8] sm:$0xff]  ;;  %v7703_v14 = vld [vmem:[%s24376_s3 + $0x20] sm:$0xff] }
 0x3e4   :  { %7578 = vmatprep.subr.bf16.mxu1 %v16256_v61  ;;  %7665 = vst [vmem:[#allocation2 + $0x10] sm:$0xff] %v7659_v3  ;;  %v16318_v44 = vcombine.high %v1001_v34, %v1009_v35  ;;  %v16320_v46 = vcombine.high %v1002_v38, %v1010_v40  ;;  %v16317_v56 = vcombine.low %v1001_v34, %v1009_v35  ;;  %v1033_v62 = vld [vmem:[%s24374_s1 + $0x1f30] sm:$0xff]  ;;  %v1034_v63 = vld [vmem:[%s24374_s1 + $0x1f38] sm:$0xff]  ;;  %v7700_v17 = vld [vmem:[%s24376_s3 + $0x8] sm:$0xff] }
 0x3e5   :  { %v16319_v58 = vcombine.low %v1002_v38, %v1010_v40  ;;  %v16334_v59 = vcombine.high %v1017_v47, %v1025_v50  ;;  %v16336_v61 = vcombine.high %v1018_v52, %v1026_v54  ;;  %v1041_v39 = vld [vmem:[%s24374_s1 + $0x1f70] sm:$0xff]  ;;  %v1042_v0 = vld [vmem:[%s24374_s1 + $0x1f78] sm:$0xff]  ;;  %v7711_v34 = vld [vmem:[%s24376_s3 + $0x60] sm:$0xff] }
 0x3e6   :  { %7415 = vmatpush1.bf16.msra.mxu0 %v16253_v1  ;;  %v16333_v1 = vcombine.low %v1017_v47, %v1025_v50  ;;  %v16352_v3 = vcombine.high %v1034_v63, %v1042_v0  ;;  %v1057_v12 = vld [vmem:[%s24374_s1 + $0x1ff0] sm:$0xff]  ;;  %v1050_v5 = vld [vmem:[%s24374_s1 + $0x1fb8] sm:$0xff]  ;;  %v16349_v8 = vcombine.low %v1033_v62, %v1041_v39  ;;  %v7708_v38 = vld [vmem:[%s24376_s3 + $0x48] sm:$0xff]  ;;  %v21057_v47 = vpack.c.bf16 %v19309_v28, %v19309_v28 }
 0x3e7   :  { %7579 = vmatpush1.bf16.msra.mxu1 %v16255_v2  ;;  %7416 = vmatprep.subr.bf16.mxu0 %v16270_v57  ;;  %v16335_v2 = vcombine.low %v1018_v52, %v1026_v54  ;;  %v16350_v57 = vcombine.high %v1033_v62, %v1041_v39  ;;  %v1058_v6 = vld [vmem:[%s24374_s1 + $0x1ff8] sm:$0xff]  ;;  %v7712_v40 = vld [vmem:[%s24376_s3 + $0x68] sm:$0xff]  ;;  %v7727_v62 = vld [vmem:[%s24376_s3 + $0xe0] sm:$0xff] }
 0x3e8   :  { %7580 = vmatprep.subr.bf16.mxu1 %v16272_v4  ;;  %v1049_v4 = vld [vmem:[%s24374_s1 + $0x1fb0] sm:$0xff]  ;;  %v16380_v50 = vcombine.high %v7708_v38, %v7712_v40  ;;  %v7716_v52 = vld [vmem:[%s24376_s3 + $0x88] sm:$0xff]  ;;  %v16379_v28 = vcombine.low %v7708_v38, %v7712_v40 }
 0x3e9   :  { %v16365_v18 = vcombine.low %v1049_v4, %v1057_v12  ;;  %v7720_v54 = vld [vmem:[%s24376_s3 + $0xa8] sm:$0xff] }
 0x3ea   :  { %7417 = vmatpush1.bf16.msra.mxu0 %v16269_v36  ;;  %v16351_v36 = vcombine.low %v1034_v63, %v1042_v0  ;;  %v7728_v39 = vld [vmem:[%s24376_s3 + $0xe8] sm:$0xff]  ;;  %v16387_v0 = vcombine.low %v7716_v52, %v7720_v54 }
 0x3eb   :  { %7581 = vmatpush1.bf16.msra.mxu1 %v16271_v10  ;;  %7418 = vmatprep.subr.bf16.mxu0 %v16286_v22  ;;  %v16366_v10 = vcombine.high %v1049_v4, %v1057_v12  ;;  %v16368_v22 = vcombine.high %v1050_v5, %v1058_v6  ;;  %v7732_v4 = vld [vmem:[%s24376_s3 + $0x108] sm:$0xff] }
 0x3ec   :  { %7582 = vmatprep.subr.bf16.mxu1 %v16288_v13  ;;  %v7699_v13 = vld [vmem:[%s24376_s3] sm:$0xff]  ;;  %v7736_v12 = vld [vmem:[%s24376_s3 + $0x128] sm:$0xff] }
 0x3ed   :  { %v16369_v35 = vcombine.low %v7699_v13, %v7703_v14 }
 0x3ee   :  { %7419 = vmatpush1.bf16.msra.mxu0 %v16285_v45  ;;  %v16367_v45 = vcombine.low %v1050_v5, %v1058_v6 }
 0x3ef   :  { %7583 = vmatpush1.bf16.msra.mxu1 %v16287_v20  ;;  %7420 = vmatprep.subr.bf16.mxu0 %v16302_v33  ;;  %v16370_v20 = vcombine.high %v7699_v13, %v7703_v14  ;;  %v16372_v33 = vcombine.high %v7700_v17, %v7704_v21  ;;  %v7740_v13 = vld [vmem:[%s24376_s3 + $0x148] sm:$0xff] }
 0x3f0   :  { %7584 = vmatprep.subr.bf16.mxu1 %v16304_v31  ;;  %v7707_v31 = vld [vmem:[%s24376_s3 + $0x40] sm:$0xff]  ;;  %v7744_v14 = vld [vmem:[%s24376_s3 + $0x168] sm:$0xff] }
 0x3f1   :  { %v16411_v38 = vcombine.low %v7740_v13, %v7744_v14 }
 0x3f2   :  { %7421 = vmatpush1.bf16.msra.mxu0 %v16301_v42  ;;  %v16371_v42 = vcombine.low %v7700_v17, %v7704_v21  ;;  %v16403_v21 = vcombine.low %v7732_v4, %v7736_v12 }
 0x3f3   :  { %7585 = vmatpush1.bf16.msra.mxu1 %v16303_v43  ;;  %7422 = vmatprep.subr.bf16.mxu0 %v16318_v44  ;;  %v16378_v43 = vcombine.high %v7707_v31, %v7711_v34  ;;  %v7715_v44 = vld [vmem:[%s24376_s3 + $0x80] sm:$0xff] }
 0x3f4   :  { %7586 = vmatprep.subr.bf16.mxu1 %v16320_v46  ;;  %v7719_v46 = vld [vmem:[%s24376_s3 + $0xa0] sm:$0xff] }
 0x3f5   :  { %v16385_v63 = vcombine.low %v7715_v44, %v7719_v46 }
 0x3f6   :  { %7423 = vmatpush1.bf16.msra.mxu0 %v16317_v56  ;;  %v16377_v56 = vcombine.low %v7707_v31, %v7711_v34  ;;  %v7748_v31 = vld [vmem:[%s24376_s3 + $0x188] sm:$0xff] }
 0x3f7   :  { %7587 = vmatpush1.bf16.msra.mxu1 %v16319_v58  ;;  %7424 = vmatprep.subr.bf16.mxu0 %v16334_v59  ;;  %v16386_v58 = vcombine.high %v7715_v44, %v7719_v46  ;;  %v16388_v59 = vcombine.high %v7716_v52, %v7720_v54  ;;  %v7752_v34 = vld [vmem:[%s24376_s3 + $0x1a8] sm:$0xff]  ;;  %v7759_v44 = vld [vmem:[%s24376_s3 + $0x1e0] sm:$0xff] }
 0x3f8   :  { %7588 = vmatprep.subr.bf16.mxu1 %v16336_v61  ;;  %v7723_v61 = vld [vmem:[%s24376_s3 + $0xc0] sm:$0xff]  ;;  %v7756_v46 = vld [vmem:[%s24376_s3 + $0x1c8] sm:$0xff]  ;;  %v16419_v54 = vcombine.low %v7748_v31, %v7752_v34 }
 0x3f9   :  { %v16393_v5 = vcombine.low %v7723_v61, %v7727_v62 }
 0x3fa   :  { %7425 = vmatpush1.bf16.msra.mxu0 %v16333_v1  ;;  %v16394_v1 = vcombine.high %v7723_v61, %v7727_v62  ;;  %v7764_v61 = vld [vmem:[%s24376_s3 + $0x208] sm:$0xff] }
 0x3fb   :  { %7589 = vmatpush1.bf16.msra.mxu1 %v16335_v2  ;;  %7426 = vmatprep.subr.bf16.mxu0 %v16350_v57  ;;  %v7731_v57 = vld [vmem:[%s24376_s3 + $0x100] sm:$0xff]  ;;  %v7768_v62 = vld [vmem:[%s24376_s3 + $0x228] sm:$0xff] }
 0x3fc   :  { %7590 = vmatprep.subr.bf16.mxu1 %v16352_v3  ;;  %v7735_v3 = vld [vmem:[%s24376_s3 + $0x120] sm:$0xff] }
 0x3fd   :  { %v16401_v17 = vcombine.low %v7731_v57, %v7735_v3 }
 0x3fe   :  { %7427 = vmatpush1.bf16.msra.mxu0 %v16349_v8  ;;  %v16402_v8 = vcombine.high %v7731_v57, %v7735_v3  ;;  %v7772_v57 = vld [vmem:[%s24376_s3 + $0x248] sm:$0xff] }
 0x3ff   :  { %7591 = vmatpush1.bf16.msra.mxu1 %v16351_v36  ;;  %7428 = vmatprep.subr.bf16.mxu0 %v16366_v10  ;;  %v16404_v36 = vcombine.high %v7732_v4, %v7736_v12  ;;  %v7739_v10 = vld [vmem:[%s24376_s3 + $0x140] sm:$0xff]  ;;  %v7776_v3 = vld [vmem:[%s24376_s3 + $0x268] sm:$0xff]  ;;  %v16435_v12 = vcombine.low %v7764_v61, %v7768_v62 }
 0x400   :  { %7592 = vmatprep.subr.bf16.mxu1 %v16368_v22  ;;  %v7743_v22 = vld [vmem:[%s24376_s3 + $0x160] sm:$0xff] }
 0x402   :  { %7429 = vmatpush1.bf16.msra.mxu0 %v16365_v18  ;;  %v16410_v18 = vcombine.high %v7739_v10, %v7743_v22 }
 0x403   :  { %7593 = vmatpush1.bf16.msra.mxu1 %v16367_v45  ;;  %13885 = vmatprep.subr.bf16.mxu0 %v16370_v20  ;;  %v16412_v45 = vcombine.high %v7740_v13, %v7744_v14  ;;  %v7747_v20 = vld [vmem:[%s24376_s3 + $0x180] sm:$0xff]  ;;  %v16443_v14 = vcombine.low %v7772_v57, %v7776_v3 }
 0x404   :  { %14213 = vmatprep.subr.bf16.mxu1 %v16372_v33  ;;  %v7751_v33 = vld [vmem:[%s24376_s3 + $0x1a0] sm:$0xff] }
 0x405   :  { %7431 = vmatmul.mubr.bf16.vlgmr.msra.gmra.mrb[12].mxu0 %v18594_v55  ;;  %v16418_v40 = vcombine.high %v7747_v20, %v7751_v33  ;;  %v16417_v52 = vcombine.low %v7747_v20, %v7751_v33  ;;  %v7788_v20 = vld [vmem:[%s24376_s3 + $0x2c8] sm:$0xff] }
 0x406   :  { %7595 = vmatmul.mubr.bf16.vlgmr.msra.gmra.mrb[12].mxu1 %v18594_v55  ;;  %13886 = vmatpush1.bf16.msra.mxu0 %v16369_v35  ;;  %v7724_v55 = vld [vmem:[%s24376_s3 + $0xc8] sm:$0xff]  ;;  %v16409_v35 = vcombine.low %v7739_v10, %v7743_v22 }
 0x407   :  { %13917 = vmatprep.mubr.bf16.mxu0 %v21057_v47  ;;  %14214 = vmatpush1.bf16.msra.mxu1 %v16371_v42  ;;  %v16396_v2 = vcombine.high %v7724_v55, %v7728_v39  ;;  %v16395_v6 = vcombine.low %v7724_v55, %v7728_v39  ;;  %v16420_v42 = vcombine.high %v7748_v31, %v7752_v34  ;;  %v7780_v10 = vld [vmem:[%s24376_s3 + $0x288] sm:$0xff] }
 0x408   :  { %14245 = vmatprep.mubr.bf16.mxu1 %v21057_v47  ;;  %13887 = vmatprep.subr.bf16.mxu0 %v16378_v43  ;;  %v7755_v43 = vld [vmem:[%s24376_s3 + $0x1c0] sm:$0xff]  ;;  %v7784_v22 = vld [vmem:[%s24376_s3 + $0x2a8] sm:$0xff] }
 0x409   :  { %14215 = vmatprep.subr.bf16.mxu1 %v16380_v50  ;;  %v7760_v50 = vld [vmem:[%s24376_s3 + $0x1e8] sm:$0xff]  ;;  %v16425_v55 = vcombine.low %v7755_v43, %v7759_v44  ;;  %v16451_v34 = vcombine.low %v7780_v10, %v7784_v22 }
 0x40a   :  { %13888 = vmatpush1.bf16.msra.mxu0 %v16377_v56  ;;  %v16426_v56 = vcombine.high %v7755_v43, %v7759_v44  ;;  %v16427_v39 = vcombine.low %v7756_v46, %v7760_v50  ;;  %v7792_v33 = vld [vmem:[%s24376_s3 + $0x2e8] sm:$0xff] }
 0x40b   :  { %14216 = vmatpush1.bf16.msra.mxu1 %v16379_v28  ;;  %13889 = vmatprep.subr.bf16.mxu0 %v16386_v58  ;;  %v16428_v28 = vcombine.high %v7756_v46, %v7760_v50  ;;  %v7763_v58 = vld [vmem:[%s24376_s3 + $0x200] sm:$0xff]  ;;  %v7796_v43 = vld [vmem:[%s24376_s3 + $0x308] sm:$0xff]  ;;  %v16459_v50 = vcombine.low %v7788_v20, %v7792_v33 }
 0x40c   :  { %14217 = vmatprep.subr.bf16.mxu1 %v16388_v59  ;;  %v7767_v59 = vld [vmem:[%s24376_s3 + $0x220] sm:$0xff]  ;;  %v7800_v44 = vld [vmem:[%s24376_s3 + $0x328] sm:$0xff] }
 0x40d   :  { %v16433_v4 = vcombine.low %v7763_v58, %v7767_v59 }
 0x40e   :  { %13890 = vmatpush1.bf16.msra.mxu0 %v16385_v63  ;;  %v16434_v63 = vcombine.high %v7763_v58, %v7767_v59  ;;  %v7804_v58 = vld [vmem:[%s24376_s3 + $0x348] sm:$0xff] }
 0x40f   :  { %14218 = vmatpush1.bf16.msra.mxu1 %v16387_v0  ;;  %13891 = vmatprep.subr.bf16.mxu0 %v16394_v1  ;;  %v16436_v0 = vcombine.high %v7764_v61, %v7768_v62  ;;  %v7771_v1 = vld [vmem:[%s24376_s3 + $0x240] sm:$0xff]  ;;  %v7808_v59 = vld [vmem:[%s24376_s3 + $0x368] sm:$0xff]  ;;  %v16467_v62 = vcombine.low %v7796_v43, %v7800_v44 }
 0x410   :  { %14219 = vmatprep.subr.bf16.mxu1 %v16396_v2  ;;  %v7775_v2 = vld [vmem:[%s24376_s3 + $0x260] sm:$0xff] }
 0x411   :  { %v16441_v13 = vcombine.low %v7771_v1, %v7775_v2 }
 0x412   :  { %13892 = vmatpush1.bf16.msra.mxu0 %v16393_v5  ;;  %v16442_v5 = vcombine.high %v7771_v1, %v7775_v2  ;;  %v7812_v1 = vld [vmem:[%s24376_s3 + $0x388] sm:$0xff] }
 0x413   :  { %14220 = vmatpush1.bf16.msra.mxu1 %v16395_v6  ;;  %13893 = vmatprep.subr.bf16.mxu0 %v16402_v8  ;;  %v16444_v6 = vcombine.high %v7772_v57, %v7776_v3  ;;  %v7779_v8 = vld [vmem:[%s24376_s3 + $0x280] sm:$0xff]  ;;  %v7816_v2 = vld [vmem:[%s24376_s3 + $0x3a8] sm:$0xff]  ;;  %v16475_v3 = vcombine.low %v7804_v58, %v7808_v59 }
 0x414   :  { %14221 = vmatprep.subr.bf16.mxu1 %v16404_v36  ;;  %v7783_v36 = vld [vmem:[%s24376_s3 + $0x2a0] sm:$0xff] }
 0x415   :  { %v16449_v31 = vcombine.low %v7779_v8, %v7783_v36 }
 0x416   :  { %13894 = vmatpush1.bf16.msra.mxu0 %v16401_v17  ;;  %v16450_v17 = vcombine.high %v7779_v8, %v7783_v36  ;;  %v7820_v8 = vld [vmem:[%s24376_s3 + $0x3c8] sm:$0xff] }
 0x417   :  { %14222 = vmatpush1.bf16.msra.mxu1 %v16403_v21  ;;  %13895 = vmatprep.subr.bf16.mxu0 %v16410_v18  ;;  %v16452_v21 = vcombine.high %v7780_v10, %v7784_v22  ;;  %v7787_v18 = vld [vmem:[%s24376_s3 + $0x2c0] sm:$0xff]  ;;  %v7824_v36 = vld [vmem:[%s24376_s3 + $0x3e8] sm:$0xff]  ;;  %v16483_v22 = vcombine.low %v7812_v1, %v7816_v2 }
 0x418   :  { %14223 = vmatprep.subr.bf16.mxu1 %v16412_v45  ;;  %v7791_v45 = vld [vmem:[%s24376_s3 + $0x2e0] sm:$0xff] }
 0x419   :  { %v16457_v46 = vcombine.low %v7787_v18, %v7791_v45 }
 0x41a   :  { %13896 = vmatpush1.bf16.msra.mxu0 %v16409_v35  ;;  %v16458_v35 = vcombine.high %v7787_v18, %v7791_v45  ;;  %v7828_v18 = vld [vmem:[%s24376_s3 + $0x408] sm:$0xff] }
 0x41b   :  { %14224 = vmatpush1.bf16.msra.mxu1 %v16411_v38  ;;  %13897 = vmatprep.subr.bf16.mxu0 %v16418_v40  ;;  %v16460_v38 = vcombine.high %v7788_v20, %v7792_v33  ;;  %v7795_v40 = vld [vmem:[%s24376_s3 + $0x300] sm:$0xff]  ;;  %v7832_v45 = vld [vmem:[%s24376_s3 + $0x428] sm:$0xff]  ;;  %v16491_v33 = vcombine.low %v7820_v8, %v7824_v36 }
 0x41c   :  { %14225 = vmatprep.subr.bf16.mxu1 %v16420_v42  ;;  %v7799_v42 = vld [vmem:[%s24376_s3 + $0x320] sm:$0xff] }
 0x41d   :  { %v16465_v61 = vcombine.low %v7795_v40, %v7799_v42 }
 0x41e   :  { %13898 = vmatpush1.bf16.msra.mxu0 %v16417_v52  ;;  %v16466_v52 = vcombine.high %v7795_v40, %v7799_v42  ;;  %v7836_v42 = vld [vmem:[%s24376_s3 + $0x448] sm:$0xff] }
 0x41f   :  { %14226 = vmatpush1.bf16.msra.mxu1 %v16419_v54  ;;  %13899 = vmatprep.subr.bf16.mxu0 %v16426_v56  ;;  %v16468_v54 = vcombine.high %v7796_v43, %v7800_v44  ;;  %v7803_v56 = vld [vmem:[%s24376_s3 + $0x340] sm:$0xff]  ;;  %v7840_v43 = vld [vmem:[%s24376_s3 + $0x468] sm:$0xff]  ;;  %v21251_v44 = vpack.c.bf16 %v19295_v16, %v19295_v16 }
 0x420   :  { %14227 = vmatprep.subr.bf16.mxu1 %v16428_v28  ;;  %v7807_v28 = vld [vmem:[%s24376_s3 + $0x360] sm:$0xff]  ;;  %v16508_v16 = vcombine.high %v7836_v42, %v7840_v43 }
 0x421   :  { %v16473_v57 = vcombine.low %v7803_v56, %v7807_v28 }
 0x422   :  { %13900 = vmatpush1.bf16.msra.mxu0 %v16425_v55  ;;  %v16474_v55 = vcombine.high %v7803_v56, %v7807_v28  ;;  %v21261_v56 = vpack.c.bf16 %v19313_v37, %v19313_v37  ;;  %v7844_v28 = vld [vmem:[%s24376_s3 + $0x488] sm:$0xff]  ;;  %v16507_v37 = vcombine.low %v7836_v42, %v7840_v43 }
 0x423   :  { %14228 = vmatpush1.bf16.msra.mxu1 %v16427_v39  ;;  %13901 = vmatprep.subr.bf16.mxu0 %v16434_v63  ;;  %v16476_v39 = vcombine.high %v7804_v58, %v7808_v59  ;;  %v7811_v63 = vld [vmem:[%s24376_s3 + $0x380] sm:$0xff]  ;;  %v7848_v58 = vld [vmem:[%s24376_s3 + $0x4a8] sm:$0xff] }
 0x424   :  { %14229 = vmatprep.subr.bf16.mxu1 %v16436_v0  ;;  %v7815_v0 = vld [vmem:[%s24376_s3 + $0x3a0] sm:$0xff] }
 0x425   :  { %v16481_v10 = vcombine.low %v7811_v63, %v7815_v0 }
 0x426   :  { %13902 = vmatpush1.bf16.msra.mxu0 %v16433_v4  ;;  %v16482_v4 = vcombine.high %v7811_v63, %v7815_v0  ;;  %v7852_v63 = vld [vmem:[%s24376_s3 + $0x4c8] sm:$0xff] }
 0x427   :  { %14230 = vmatpush1.bf16.msra.mxu1 %v16435_v12  ;;  %13903 = vmatprep.subr.bf16.mxu0 %v16442_v5  ;;  %v16484_v12 = vcombine.high %v7812_v1, %v7816_v2  ;;  %v7819_v5 = vld [vmem:[%s24376_s3 + $0x3c0] sm:$0xff]  ;;  %v7856_v0 = vld [vmem:[%s24376_s3 + $0x4e8] sm:$0xff]  ;;  %v16515_v2 = vcombine.low %v7844_v28, %v7848_v58 }
 0x428   :  { %14231 = vmatprep.subr.bf16.mxu1 %v16444_v6  ;;  %v7823_v6 = vld [vmem:[%s24376_s3 + $0x3e0] sm:$0xff] }
 0x429   :  { %v16489_v20 = vcombine.low %v7819_v5, %v7823_v6 }
 0x42a   :  { %13904 = vmatpush1.bf16.msra.mxu0 %v16441_v13  ;;  %v16490_v13 = vcombine.high %v7819_v5, %v7823_v6  ;;  %v7860_v5 = vld [vmem:[%s24376_s3 + $0x508] sm:$0xff] }
 0x42b   :  { %14232 = vmatpush1.bf16.msra.mxu1 %v16443_v14  ;;  %13905 = vmatprep.subr.bf16.mxu0 %v16450_v17  ;;  %v16492_v14 = vcombine.high %v7820_v8, %v7824_v36  ;;  %v7827_v17 = vld [vmem:[%s24376_s3 + $0x400] sm:$0xff]  ;;  %v7864_v6 = vld [vmem:[%s24376_s3 + $0x528] sm:$0xff]  ;;  %v16523_v36 = vcombine.low %v7852_v63, %v7856_v0 }
 0x42c   :  { %14233 = vmatprep.subr.bf16.mxu1 %v16452_v21  ;;  %v7831_v21 = vld [vmem:[%s24376_s3 + $0x420] sm:$0xff] }
 0x42d   :  { %v16497_v40 = vcombine.low %v7827_v17, %v7831_v21 }
 0x42e   :  { %13906 = vmatpush1.bf16.msra.mxu0 %v16449_v31  ;;  %v16498_v31 = vcombine.high %v7827_v17, %v7831_v21  ;;  %v7868_v17 = vld [vmem:[%s24376_s3 + $0x548] sm:$0xff] }
 0x42f   :  { %14234 = vmatpush1.bf16.msra.mxu1 %v16451_v34  ;;  %13907 = vmatprep.subr.bf16.mxu0 %v16458_v35  ;;  %v16500_v34 = vcombine.high %v7828_v18, %v7832_v45  ;;  %v7835_v35 = vld [vmem:[%s24376_s3 + $0x440] sm:$0xff]  ;;  %v7872_v21 = vld [vmem:[%s24376_s3 + $0x568] sm:$0xff] }
 0x430   :  { %14235 = vmatprep.subr.bf16.mxu1 %v16460_v38  ;;  %v7839_v38 = vld [vmem:[%s24376_s3 + $0x460] sm:$0xff]  ;;  %v16539_v42 = vcombine.low %v7868_v17, %v7872_v21 }
 0x431   :  { %v16505_v59 = vcombine.low %v7835_v35, %v7839_v38 }
 0x432   :  { %13908 = vmatpush1.bf16.msra.mxu0 %v16457_v46  ;;  %v16499_v46 = vcombine.low %v7828_v18, %v7832_v45  ;;  %v16531_v45 = vcombine.low %v7860_v5, %v7864_v6 }
 0x433   :  { %14236 = vmatpush1.bf16.msra.mxu1 %v16459_v50  ;;  %13909 = vmatprep.subr.bf16.mxu0 %v16466_v52  ;;  %v16506_v50 = vcombine.high %v7835_v35, %v7839_v38  ;;  %v7843_v52 = vld [vmem:[%s24376_s3 + $0x480] sm:$0xff]  ;;  %v7876_v35 = vld [vmem:[%s24376_s3 + $0x588] sm:$0xff] }
 0x434   :  { %14237 = vmatprep.subr.bf16.mxu1 %v16468_v54  ;;  %v7847_v54 = vld [vmem:[%s24376_s3 + $0x4a0] sm:$0xff]  ;;  %v7880_v38 = vld [vmem:[%s24376_s3 + $0x5a8] sm:$0xff] }
 0x435   :  { %v16513_v1 = vcombine.low %v7843_v52, %v7847_v54 }
 0x436   :  { %13910 = vmatpush1.bf16.msra.mxu0 %v16465_v61  ;;  %v16514_v61 = vcombine.high %v7843_v52, %v7847_v54  ;;  %v7887_v52 = vld [vmem:[%s24376_s3 + $0x5e0] sm:$0xff]  ;;  %v7884_v54 = vld [vmem:[%s24376_s3 + $0x5c8] sm:$0xff] }
 0x437   :  { %14238 = vmatpush1.bf16.msra.mxu1 %v16467_v62  ;;  %13911 = vmatprep.subr.bf16.mxu0 %v16474_v55  ;;  %v16516_v62 = vcombine.high %v7844_v28, %v7848_v58  ;;  %v7851_v55 = vld [vmem:[%s24376_s3 + $0x4c0] sm:$0xff]  ;;  %v16547_v58 = vcombine.low %v7876_v35, %v7880_v38 }
 0x438   :  { %14239 = vmatprep.subr.bf16.mxu1 %v16476_v39  ;;  %v7855_v39 = vld [vmem:[%s24376_s3 + $0x4e0] sm:$0xff] }
 0x439   :  { %v16521_v8 = vcombine.low %v7851_v55, %v7855_v39 }
 0x43a   :  { %13912 = vmatpush1.bf16.msra.mxu0 %v16473_v57  ;;  %v16522_v57 = vcombine.high %v7851_v55, %v7855_v39  ;;  %v7892_v55 = vld [vmem:[%s24376_s3 + $0x608] sm:$0xff] }
 0x43b   :  { %14240 = vmatpush1.bf16.msra.mxu1 %v16475_v3  ;;  %13913 = vmatprep.subr.bf16.mxu0 %v16482_v4  ;;  %v16524_v3 = vcombine.high %v7852_v63, %v7856_v0  ;;  %v7859_v4 = vld [vmem:[%s24376_s3 + $0x500] sm:$0xff]  ;;  %v7896_v39 = vld [vmem:[%s24376_s3 + $0x628] sm:$0xff] }
 0x43c   :  { %14241 = vmatprep.subr.bf16.mxu1 %v16484_v12  ;;  %v7863_v12 = vld [vmem:[%s24376_s3 + $0x520] sm:$0xff] }
 0x43d   :  { %v16529_v18 = vcombine.low %v7859_v4, %v7863_v12 }
 0x43e   :  { %13914 = vmatpush1.bf16.msra.mxu0 %v16481_v10  ;;  %v16530_v10 = vcombine.high %v7859_v4, %v7863_v12  ;;  %v7900_v4 = vld [vmem:[%s24376_s3 + $0x648] sm:$0xff] }
 0x43f   :  { %14242 = vmatpush1.bf16.msra.mxu1 %v16483_v22  ;;  %13915 = vmatprep.subr.bf16.mxu0 %v16490_v13  ;;  %v16532_v22 = vcombine.high %v7860_v5, %v7864_v6  ;;  %v7867_v13 = vld [vmem:[%s24376_s3 + $0x540] sm:$0xff]  ;;  %v7904_v12 = vld [vmem:[%s24376_s3 + $0x668] sm:$0xff]  ;;  %v16563_v6 = vcombine.low %v7892_v55, %v7896_v39 }
 0x440   :  { %14243 = vmatprep.subr.bf16.mxu1 %v16492_v14  ;;  %v7871_v14 = vld [vmem:[%s24376_s3 + $0x560] sm:$0xff] }
 0x442   :  { %13916 = vmatpush1.bf16.msra.mxu0 %v16489_v20  ;;  %v16538_v20 = vcombine.high %v7867_v13, %v7871_v14 }
 0x443   :  { %14244 = vmatpush1.bf16.msra.mxu1 %v16491_v33  ;;  %13926 = vmatprep.subr.bf16.mxu0 %v16498_v31  ;;  %v16540_v33 = vcombine.high %v7868_v17, %v7872_v21  ;;  %v7875_v31 = vld [vmem:[%s24376_s3 + $0x580] sm:$0xff]  ;;  %v16571_v21 = vcombine.low %v7900_v4, %v7904_v12 }
 0x444   :  { %14254 = vmatprep.subr.bf16.mxu1 %v16500_v34  ;;  %v7879_v34 = vld [vmem:[%s24376_s3 + $0x5a0] sm:$0xff] }
 0x445   :  { %13918 = vmatmul.mubr.bf16.vlgmr.msra.gmra.mrb[16].mxu0 %v21251_v44  ;;  %v16546_v43 = vcombine.high %v7875_v31, %v7879_v34  ;;  %v16545_v28 = vcombine.low %v7875_v31, %v7879_v34  ;;  %v7916_v31 = vld [vmem:[%s24376_s3 + $0x6c8] sm:$0xff] }
 0x446   :  { %14246 = vmatmul.mubr.bf16.vlgmr.msra.gmra.mrb[16].mxu1 %v21251_v44  ;;  %13927 = vmatpush1.bf16.msra.mxu0 %v16497_v40  ;;  %v16537_v40 = vcombine.low %v7867_v13, %v7871_v14  ;;  %v7908_v13 = vld [vmem:[%s24376_s3 + $0x688] sm:$0xff] }
 0x447   :  { %13958 = vmatprep.mubr.bf16.mxu0 %v21261_v56  ;;  %14255 = vmatpush1.bf16.msra.mxu1 %v16499_v46  ;;  %v16548_v46 = vcombine.high %v7876_v35, %v7880_v38  ;;  %v7912_v14 = vld [vmem:[%s24376_s3 + $0x6a8] sm:$0xff] }
 0x448   :  { %14286 = vmatprep.mubr.bf16.mxu1 %v21261_v56  ;;  %13928 = vmatprep.subr.bf16.mxu0 %v16506_v50  ;;  %v7883_v50 = vld [vmem:[%s24376_s3 + $0x5c0] sm:$0xff]  ;;  %v7920_v34 = vld [vmem:[%s24376_s3 + $0x6e8] sm:$0xff]  ;;  %v16579_v38 = vcombine.low %v7908_v13, %v7912_v14 }
 0x449   :  { %14256 = vmatprep.subr.bf16.mxu1 %v16508_v16  ;;  %v7888_v16 = vld [vmem:[%s24376_s3 + $0x5e8] sm:$0xff]  ;;  %v16553_v63 = vcombine.low %v7883_v50, %v7887_v52 }
 0x44a   :  { %13929 = vmatpush1.bf16.msra.mxu0 %v16505_v59  ;;  %v16554_v59 = vcombine.high %v7883_v50, %v7887_v52  ;;  %v16555_v0 = vcombine.low %v7884_v54, %v7888_v16  ;;  %v7924_v50 = vld [vmem:[%s24376_s3 + $0x708] sm:$0xff] }
 0x44b   :  { %14257 = vmatpush1.bf16.msra.mxu1 %v16507_v37  ;;  %13930 = vmatprep.subr.bf16.mxu0 %v16514_v61  ;;  %v16556_v37 = vcombine.high %v7884_v54, %v7888_v16  ;;  %v7891_v61 = vld [vmem:[%s24376_s3 + $0x600] sm:$0xff]  ;;  %v7928_v52 = vld [vmem:[%s24376_s3 + $0x728] sm:$0xff]  ;;  %v16587_v16 = vcombine.low %v7916_v31, %v7920_v34 }
 0x44c   :  { %14258 = vmatprep.subr.bf16.mxu1 %v16516_v62  ;;  %v7895_v62 = vld [vmem:[%s24376_s3 + $0x620] sm:$0xff] }
 0x44d   :  { %v16561_v5 = vcombine.low %v7891_v61, %v7895_v62 }
 0x44e   :  { %13931 = vmatpush1.bf16.msra.mxu0 %v16513_v1  ;;  %v16562_v1 = vcombine.high %v7891_v61, %v7895_v62  ;;  %v7932_v61 = vld [vmem:[%s24376_s3 + $0x748] sm:$0xff] }
 0x44f   :  { %14259 = vmatpush1.bf16.msra.mxu1 %v16515_v2  ;;  %13932 = vmatprep.subr.bf16.mxu0 %v16522_v57  ;;  %v16564_v2 = vcombine.high %v7892_v55, %v7896_v39  ;;  %v7899_v57 = vld [vmem:[%s24376_s3 + $0x640] sm:$0xff]  ;;  %v7936_v62 = vld [vmem:[%s24376_s3 + $0x768] sm:$0xff]  ;;  %v16595_v39 = vcombine.low %v7924_v50, %v7928_v52 }
 0x450   :  { %14260 = vmatprep.subr.bf16.mxu1 %v16524_v3  ;;  %v7903_v3 = vld [vmem:[%s24376_s3 + $0x660] sm:$0xff] }
 0x451   :  { %v16569_v17 = vcombine.low %v7899_v57, %v7903_v3 }
 0x452   :  { %13933 = vmatpush1.bf16.msra.mxu0 %v16521_v8  ;;  %v16570_v8 = vcombine.high %v7899_v57, %v7903_v3  ;;  %v7940_v57 = vld [vmem:[%s24376_s3 + $0x788] sm:$0xff] }
 0x453   :  { %14261 = vmatpush1.bf16.msra.mxu1 %v16523_v36  ;;  %13934 = vmatprep.subr.bf16.mxu0 %v16530_v10  ;;  %v16572_v36 = vcombine.high %v7900_v4, %v7904_v12  ;;  %v7907_v10 = vld [vmem:[%s24376_s3 + $0x680] sm:$0xff]  ;;  %v7944_v3 = vld [vmem:[%s24376_s3 + $0x7a8] sm:$0xff]  ;;  %v16603_v12 = vcombine.low %v7932_v61, %v7936_v62 }
 0x454   :  { %14262 = vmatprep.subr.bf16.mxu1 %v16532_v22  ;;  %v7911_v22 = vld [vmem:[%s24376_s3 + $0x6a0] sm:$0xff] }
 0x455   :  { %v16577_v35 = vcombine.low %v7907_v10, %v7911_v22 }
 0x456   :  { %13935 = vmatpush1.bf16.msra.mxu0 %v16529_v18  ;;  %v16578_v18 = vcombine.high %v7907_v10, %v7911_v22  ;;  %v7948_v10 = vld [vmem:[%s24376_s3 + $0x7c8] sm:$0xff] }
 0x457   :  { %14263 = vmatpush1.bf16.msra.mxu1 %v16531_v45  ;;  %13936 = vmatprep.subr.bf16.mxu0 %v16538_v20  ;;  %v16580_v45 = vcombine.high %v7908_v13, %v7912_v14  ;;  %v7915_v20 = vld [vmem:[%s24376_s3 + $0x6c0] sm:$0xff]  ;;  %v7952_v22 = vld [vmem:[%s24376_s3 + $0x7e8] sm:$0xff]  ;;  %v16611_v14 = vcombine.low %v7940_v57, %v7944_v3 }
 0x458   :  { %14264 = vmatprep.subr.bf16.mxu1 %v16540_v33  ;;  %v7919_v33 = vld [vmem:[%s24376_s3 + $0x6e0] sm:$0xff] }
 0x459   :  { %v16585_v54 = vcombine.low %v7915_v20, %v7919_v33 }
 0x45a   :  { %13937 = vmatpush1.bf16.msra.mxu0 %v16537_v40  ;;  %v16586_v40 = vcombine.high %v7915_v20, %v7919_v33  ;;  %v7956_v20 = vld [vmem:[%s24376_s3 + $0x808] sm:$0xff] }
 0x45b   :  { %14265 = vmatpush1.bf16.msra.mxu1 %v16539_v42  ;;  %13938 = vmatprep.subr.bf16.mxu0 %v16546_v43  ;;  %v16588_v42 = vcombine.high %v7916_v31, %v7920_v34  ;;  %v7923_v43 = vld [vmem:[%s24376_s3 + $0x700] sm:$0xff]  ;;  %v7960_v33 = vld [vmem:[%s24376_s3 + $0x828] sm:$0xff]  ;;  %v16619_v34 = vcombine.low %v7948_v10, %v7952_v22 }
 0x45c   :  { %14266 = vmatprep.subr.bf16.mxu1 %v16548_v46  ;;  %v7927_v46 = vld [vmem:[%s24376_s3 + $0x720] sm:$0xff] }
 0x45d   :  { %v16593_v55 = vcombine.low %v7923_v43, %v7927_v46 }
 0x45e   :  { %13939 = vmatpush1.bf16.msra.mxu0 %v16545_v28  ;;  %v16594_v28 = vcombine.high %v7923_v43, %v7927_v46  ;;  %v7964_v46 = vld [vmem:[%s24376_s3 + $0x848] sm:$0xff] }
 0x45f   :  { %14267 = vmatpush1.bf16.msra.mxu1 %v16547_v58  ;;  %13940 = vmatprep.subr.bf16.mxu0 %v16554_v59  ;;  %v16596_v58 = vcombine.high %v7924_v50, %v7928_v52  ;;  %v7931_v59 = vld [vmem:[%s24376_s3 + $0x740] sm:$0xff]  ;;  %v7968_v50 = vld [vmem:[%s24376_s3 + $0x868] sm:$0xff]  ;;  %v21455_v52 = vpack.c.bf16 %v19306_v24, %v19306_v24 }
 0x460   :  { %14268 = vmatprep.subr.bf16.mxu1 %v16556_v37  ;;  %v7935_v37 = vld [vmem:[%s24376_s3 + $0x760] sm:$0xff]  ;;  %v16636_v24 = vcombine.high %v7964_v46, %v7968_v50 }
 0x461   :  { %v16601_v4 = vcombine.low %v7931_v59, %v7935_v37 }
 0x462   :  { %13941 = vmatpush1.bf16.msra.mxu0 %v16553_v63  ;;  %v16602_v63 = vcombine.high %v7931_v59, %v7935_v37  ;;  %v21465_v59 = vpack.c.bf16 %v20128_v25, %v20128_v25  ;;  %v7972_v37 = vld [vmem:[%s24376_s3 + $0x888] sm:$0xff]  ;;  %v16635_v25 = vcombine.low %v7964_v46, %v7968_v50 }
 0x463   :  { %14269 = vmatpush1.bf16.msra.mxu1 %v16555_v0  ;;  %13942 = vmatprep.subr.bf16.mxu0 %v16562_v1  ;;  %v16604_v0 = vcombine.high %v7932_v61, %v7936_v62  ;;  %v7939_v1 = vld [vmem:[%s24376_s3 + $0x780] sm:$0xff]  ;;  %v7976_v61 = vld [vmem:[%s24376_s3 + $0x8a8] sm:$0xff] }
 0x464   :  { %14270 = vmatprep.subr.bf16.mxu1 %v16564_v2  ;;  %v7943_v2 = vld [vmem:[%s24376_s3 + $0x7a0] sm:$0xff] }
 0x465   :  { %v16609_v13 = vcombine.low %v7939_v1, %v7943_v2 }
 0x466   :  { %13943 = vmatpush1.bf16.msra.mxu0 %v16561_v5  ;;  %v16610_v5 = vcombine.high %v7939_v1, %v7943_v2  ;;  %v7980_v1 = vld [vmem:[%s24376_s3 + $0x8c8] sm:$0xff] }
 0x467   :  { %14271 = vmatpush1.bf16.msra.mxu1 %v16563_v6  ;;  %13944 = vmatprep.subr.bf16.mxu0 %v16570_v8  ;;  %v16612_v6 = vcombine.high %v7940_v57, %v7944_v3  ;;  %v7947_v8 = vld [vmem:[%s24376_s3 + $0x7c0] sm:$0xff]  ;;  %v7984_v2 = vld [vmem:[%s24376_s3 + $0x8e8] sm:$0xff]  ;;  %v16643_v3 = vcombine.low %v7972_v37, %v7976_v61 }
 0x468   :  { %14272 = vmatprep.subr.bf16.mxu1 %v16572_v36  ;;  %v7951_v36 = vld [vmem:[%s24376_s3 + $0x7e0] sm:$0xff] }
 0x469   :  { %v16617_v31 = vcombine.low %v7947_v8, %v7951_v36 }
 0x46a   :  { %13945 = vmatpush1.bf16.msra.mxu0 %v16569_v17  ;;  %v16618_v17 = vcombine.high %v7947_v8, %v7951_v36  ;;  %v7988_v8 = vld [vmem:[%s24376_s3 + $0x908] sm:$0xff] }
 0x46b   :  { %14273 = vmatpush1.bf16.msra.mxu1 %v16571_v21  ;;  %13946 = vmatprep.subr.bf16.mxu0 %v16578_v18  ;;  %v16620_v21 = vcombine.high %v7948_v10, %v7952_v22  ;;  %v7955_v18 = vld [vmem:[%s24376_s3 + $0x800] sm:$0xff]  ;;  %v7992_v36 = vld [vmem:[%s24376_s3 + $0x928] sm:$0xff]  ;;  %v16651_v22 = vcombine.low %v7980_v1, %v7984_v2 }
 0x46c   :  { %14274 = vmatprep.subr.bf16.mxu1 %v16580_v45  ;;  %v7959_v45 = vld [vmem:[%s24376_s3 + $0x820] sm:$0xff] }
 0x46d   :  { %v16625_v43 = vcombine.low %v7955_v18, %v7959_v45 }
 0x46e   :  { %13947 = vmatpush1.bf16.msra.mxu0 %v16577_v35  ;;  %v16626_v35 = vcombine.high %v7955_v18, %v7959_v45  ;;  %v7996_v18 = vld [vmem:[%s24376_s3 + $0x948] sm:$0xff] }
 0x46f   :  { %14275 = vmatpush1.bf16.msra.mxu1 %v16579_v38  ;;  %13948 = vmatprep.subr.bf16.mxu0 %v16586_v40  ;;  %v16628_v38 = vcombine.high %v7956_v20, %v7960_v33  ;;  %v7963_v40 = vld [vmem:[%s24376_s3 + $0x840] sm:$0xff]  ;;  %v8000_v45 = vld [vmem:[%s24376_s3 + $0x968] sm:$0xff] }
 0x470   :  { %14276 = vmatprep.subr.bf16.mxu1 %v16588_v42  ;;  %v7967_v42 = vld [vmem:[%s24376_s3 + $0x860] sm:$0xff]  ;;  %v16667_v46 = vcombine.low %v7996_v18, %v8000_v45 }
 0x471   :  { %v16633_v62 = vcombine.low %v7963_v40, %v7967_v42 }
 0x472   :  { %13949 = vmatpush1.bf16.msra.mxu0 %v16585_v54  ;;  %v16627_v54 = vcombine.low %v7956_v20, %v7960_v33  ;;  %v16659_v33 = vcombine.low %v7988_v8, %v7992_v36 }
 0x473   :  { %14277 = vmatpush1.bf16.msra.mxu1 %v16587_v16  ;;  %13950 = vmatprep.subr.bf16.mxu0 %v16594_v28  ;;  %v16634_v16 = vcombine.high %v7963_v40, %v7967_v42  ;;  %v7971_v28 = vld [vmem:[%s24376_s3 + $0x880] sm:$0xff]  ;;  %v8004_v40 = vld [vmem:[%s24376_s3 + $0x988] sm:$0xff] }
 0x474   :  { %14278 = vmatprep.subr.bf16.mxu1 %v16596_v58  ;;  %v7975_v58 = vld [vmem:[%s24376_s3 + $0x8a0] sm:$0xff]  ;;  %v8008_v42 = vld [vmem:[%s24376_s3 + $0x9a8] sm:$0xff] }
 0x475   :  { %v16641_v57 = vcombine.low %v7971_v28, %v7975_v58 }
 0x476   :  { %13951 = vmatpush1.bf16.msra.mxu0 %v16593_v55  ;;  %v16642_v55 = vcombine.high %v7971_v28, %v7975_v58  ;;  %v8015_v28 = vld [vmem:[%s24376_s3 + $0x9e0] sm:$0xff]  ;;  %v8012_v58 = vld [vmem:[%s24376_s3 + $0x9c8] sm:$0xff] }
 0x477   :  { %14279 = vmatpush1.bf16.msra.mxu1 %v16595_v39  ;;  %13952 = vmatprep.subr.bf16.mxu0 %v16602_v63  ;;  %v16644_v39 = vcombine.high %v7972_v37, %v7976_v61  ;;  %v7979_v63 = vld [vmem:[%s24376_s3 + $0x8c0] sm:$0xff]  ;;  %v16675_v61 = vcombine.low %v8004_v40, %v8008_v42 }
 0x478   :  { %14280 = vmatprep.subr.bf16.mxu1 %v16604_v0  ;;  %v7983_v0 = vld [vmem:[%s24376_s3 + $0x8e0] sm:$0xff] }
 0x479   :  { %v16649_v10 = vcombine.low %v7979_v63, %v7983_v0 }
 0x47a   :  { %13953 = vmatpush1.bf16.msra.mxu0 %v16601_v4  ;;  %v16650_v4 = vcombine.high %v7979_v63, %v7983_v0  ;;  %v8020_v63 = vld [vmem:[%s24376_s3 + $0xa08] sm:$0xff] }
 0x47b   :  { %14281 = vmatpush1.bf16.msra.mxu1 %v16603_v12  ;;  %13954 = vmatprep.subr.bf16.mxu0 %v16610_v5  ;;  %v16652_v12 = vcombine.high %v7980_v1, %v7984_v2  ;;  %v7987_v5 = vld [vmem:[%s24376_s3 + $0x900] sm:$0xff]  ;;  %v8024_v0 = vld [vmem:[%s24376_s3 + $0xa28] sm:$0xff] }
 0x47c   :  { %14282 = vmatprep.subr.bf16.mxu1 %v16612_v6  ;;  %v7991_v6 = vld [vmem:[%s24376_s3 + $0x920] sm:$0xff] }
 0x47d   :  { %v16657_v20 = vcombine.low %v7987_v5, %v7991_v6 }
 0x47e   :  { %13955 = vmatpush1.bf16.msra.mxu0 %v16609_v13  ;;  %v16658_v13 = vcombine.high %v7987_v5, %v7991_v6  ;;  %v8028_v5 = vld [vmem:[%s24376_s3 + $0xa48] sm:$0xff] }
 0x47f   :  { %14283 = vmatpush1.bf16.msra.mxu1 %v16611_v14  ;;  %13956 = vmatprep.subr.bf16.mxu0 %v16618_v17  ;;  %v16660_v14 = vcombine.high %v7988_v8, %v7992_v36  ;;  %v7995_v17 = vld [vmem:[%s24376_s3 + $0x940] sm:$0xff]  ;;  %v8032_v6 = vld [vmem:[%s24376_s3 + $0xa68] sm:$0xff]  ;;  %v16691_v36 = vcombine.low %v8020_v63, %v8024_v0 }
 0x480   :  { %14284 = vmatprep.subr.bf16.mxu1 %v16620_v21  ;;  %v7999_v21 = vld [vmem:[%s24376_s3 + $0x960] sm:$0xff] }
 0x482   :  { %13957 = vmatpush1.bf16.msra.mxu0 %v16617_v31  ;;  %v16666_v31 = vcombine.high %v7995_v17, %v7999_v21 }
 0x483   :  { %14285 = vmatpush1.bf16.msra.mxu1 %v16619_v34  ;;  %13967 = vmatprep.subr.bf16.mxu0 %v16626_v35  ;;  %v16668_v34 = vcombine.high %v7996_v18, %v8000_v45  ;;  %v8003_v35 = vld [vmem:[%s24376_s3 + $0x980] sm:$0xff]  ;;  %v16699_v45 = vcombine.low %v8028_v5, %v8032_v6 }
 0x484   :  { %14295 = vmatprep.subr.bf16.mxu1 %v16628_v38  ;;  %v8007_v38 = vld [vmem:[%s24376_s3 + $0x9a0] sm:$0xff] }
 0x485   :  { %13959 = vmatmul.mubr.bf16.vlgmr.msra.gmra.mrb[16].mxu0 %v21455_v52  ;;  %v16674_v50 = vcombine.high %v8003_v35, %v8007_v38  ;;  %v16673_v37 = vcombine.low %v8003_v35, %v8007_v38  ;;  %v8044_v35 = vld [vmem:[%s24376_s3 + $0xac8] sm:$0xff] }
 0x486   :  { %14287 = vmatmul.mubr.bf16.vlgmr.msra.gmra.mrb[16].mxu1 %v21455_v52  ;;  %13968 = vmatpush1.bf16.msra.mxu0 %v16625_v43  ;;  %v16665_v43 = vcombine.low %v7995_v17, %v7999_v21  ;;  %v8036_v17 = vld [vmem:[%s24376_s3 + $0xa88] sm:$0xff] }
 0x487   :  { %13999 = vmatprep.mubr.bf16.mxu0 %v21465_v59  ;;  %14296 = vmatpush1.bf16.msra.mxu1 %v16627_v54  ;;  %v16676_v54 = vcombine.high %v8004_v40, %v8008_v42  ;;  %v8040_v21 = vld [vmem:[%s24376_s3 + $0xaa8] sm:$0xff] }
 0x488   :  { %14327 = vmatprep.mubr.bf16.mxu1 %v21465_v59  ;;  %13969 = vmatprep.subr.bf16.mxu0 %v16634_v16  ;;  %v8011_v16 = vld [vmem:[%s24376_s3 + $0x9c0] sm:$0xff]  ;;  %v8048_v38 = vld [vmem:[%s24376_s3 + $0xae8] sm:$0xff]  ;;  %v16707_v42 = vcombine.low %v8036_v17, %v8040_v21 }
 0x489   :  { %14297 = vmatprep.subr.bf16.mxu1 %v16636_v24  ;;  %v8016_v24 = vld [vmem:[%s24376_s3 + $0x9e8] sm:$0xff]  ;;  %v16681_v1 = vcombine.low %v8011_v16, %v8015_v28 }
 0x48a   :  { %13970 = vmatpush1.bf16.msra.mxu0 %v16633_v62  ;;  %v16682_v62 = vcombine.high %v8011_v16, %v8015_v28  ;;  %v16683_v2 = vcombine.low %v8012_v58, %v8016_v24  ;;  %v8052_v16 = vld [vmem:[%s24376_s3 + $0xb08] sm:$0xff] }
 0x48b   :  { %14298 = vmatpush1.bf16.msra.mxu1 %v16635_v25  ;;  %13971 = vmatprep.subr.bf16.mxu0 %v16642_v55  ;;  %v16684_v25 = vcombine.high %v8012_v58, %v8016_v24  ;;  %v8019_v55 = vld [vmem:[%s24376_s3 + $0xa00] sm:$0xff]  ;;  %v8056_v28 = vld [vmem:[%s24376_s3 + $0xb28] sm:$0xff]  ;;  %v16715_v24 = vcombine.low %v8044_v35, %v8048_v38 }
 0x48c   :  { %14299 = vmatprep.subr.bf16.mxu1 %v16644_v39  ;;  %v8023_v39 = vld [vmem:[%s24376_s3 + $0xa20] sm:$0xff] }
 0x48d   :  { %v16689_v8 = vcombine.low %v8019_v55, %v8023_v39 }
 0x48e   :  { %13972 = vmatpush1.bf16.msra.mxu0 %v16641_v57  ;;  %v16690_v57 = vcombine.high %v8019_v55, %v8023_v39  ;;  %v8060_v55 = vld [vmem:[%s24376_s3 + $0xb48] sm:$0xff] }
 0x48f   :  { %14300 = vmatpush1.bf16.msra.mxu1 %v16643_v3  ;;  %13973 = vmatprep.subr.bf16.mxu0 %v16650_v4  ;;  %v16692_v3 = vcombine.high %v8020_v63, %v8024_v0  ;;  %v8027_v4 = vld [vmem:[%s24376_s3 + $0xa40] sm:$0xff]  ;;  %v8064_v39 = vld [vmem:[%s24376_s3 + $0xb68] sm:$0xff]  ;;  %v16723_v0 = vcombine.low %v8052_v16, %v8056_v28 }
 0x490   :  { %14301 = vmatprep.subr.bf16.mxu1 %v16652_v12  ;;  %v8031_v12 = vld [vmem:[%s24376_s3 + $0xa60] sm:$0xff] }
 0x491   :  { %v16697_v18 = vcombine.low %v8027_v4, %v8031_v12 }
 0x492   :  { %13974 = vmatpush1.bf16.msra.mxu0 %v16649_v10  ;;  %v16698_v10 = vcombine.high %v8027_v4, %v8031_v12  ;;  %v8068_v4 = vld [vmem:[%s24376_s3 + $0xb88] sm:$0xff] }
 0x493   :  { %14302 = vmatpush1.bf16.msra.mxu1 %v16651_v22  ;;  %13975 = vmatprep.subr.bf16.mxu0 %v16658_v13  ;;  %v16700_v22 = vcombine.high %v8028_v5, %v8032_v6  ;;  %v8035_v13 = vld [vmem:[%s24376_s3 + $0xa80] sm:$0xff]  ;;  %v8072_v12 = vld [vmem:[%s24376_s3 + $0xba8] sm:$0xff]  ;;  %v16731_v6 = vcombine.low %v8060_v55, %v8064_v39 }
 0x494   :  { %14303 = vmatprep.subr.bf16.mxu1 %v16660_v14  ;;  %v8039_v14 = vld [vmem:[%s24376_s3 + $0xaa0] sm:$0xff] }
 0x495   :  { %v16705_v40 = vcombine.low %v8035_v13, %v8039_v14 }
 0x496   :  { %13976 = vmatpush1.bf16.msra.mxu0 %v16657_v20  ;;  %v16706_v20 = vcombine.high %v8035_v13, %v8039_v14  ;;  %v8076_v13 = vld [vmem:[%s24376_s3 + $0xbc8] sm:$0xff] }
 0x497   :  { %14304 = vmatpush1.bf16.msra.mxu1 %v16659_v33  ;;  %13977 = vmatprep.subr.bf16.mxu0 %v16666_v31  ;;  %v16708_v33 = vcombine.high %v8036_v17, %v8040_v21  ;;  %v8043_v31 = vld [vmem:[%s24376_s3 + $0xac0] sm:$0xff]  ;;  %v8080_v14 = vld [vmem:[%s24376_s3 + $0xbe8] sm:$0xff]  ;;  %v16739_v21 = vcombine.low %v8068_v4, %v8072_v12 }
 0x498   :  { %14305 = vmatprep.subr.bf16.mxu1 %v16668_v34  ;;  %v8047_v34 = vld [vmem:[%s24376_s3 + $0xae0] sm:$0xff] }
 0x499   :  { %v16713_v58 = vcombine.low %v8043_v31, %v8047_v34 }
 0x49a   :  { %13978 = vmatpush1.bf16.msra.mxu0 %v16665_v43  ;;  %v16714_v43 = vcombine.high %v8043_v31, %v8047_v34  ;;  %v8084_v31 = vld [vmem:[%s24376_s3 + $0xc08] sm:$0xff] }
 0x49b   :  { %14306 = vmatpush1.bf16.msra.mxu1 %v16667_v46  ;;  %13979 = vmatprep.subr.bf16.mxu0 %v16674_v50  ;;  %v16716_v46 = vcombine.high %v8044_v35, %v8048_v38  ;;  %v8051_v50 = vld [vmem:[%s24376_s3 + $0xb00] sm:$0xff]  ;;  %v8088_v34 = vld [vmem:[%s24376_s3 + $0xc28] sm:$0xff]  ;;  %v16747_v38 = vcombine.low %v8076_v13, %v8080_v14 }
 0x49c   :  { %14307 = vmatprep.subr.bf16.mxu1 %v16676_v54  ;;  %v8055_v54 = vld [vmem:[%s24376_s3 + $0xb20] sm:$0xff] }
 0x49d   :  { %v16721_v63 = vcombine.low %v8051_v50, %v8055_v54 }
 0x49e   :  { %13980 = vmatpush1.bf16.msra.mxu0 %v16673_v37  ;;  %v16722_v37 = vcombine.high %v8051_v50, %v8055_v54  ;;  %v8092_v54 = vld [vmem:[%s24376_s3 + $0xc48] sm:$0xff] }
 0x49f   :  { %14308 = vmatpush1.bf16.msra.mxu1 %v16675_v61  ;;  %13981 = vmatprep.subr.bf16.mxu0 %v16682_v62  ;;  %v16724_v61 = vcombine.high %v8052_v16, %v8056_v28  ;;  %v8059_v62 = vld [vmem:[%s24376_s3 + $0xb40] sm:$0xff]  ;;  %v8096_v16 = vld [vmem:[%s24376_s3 + $0xc68] sm:$0xff]  ;;  %v21659_v28 = vpack.c.bf16 %v20114_v30, %v20114_v30 }
 0x4a0   :  { %14309 = vmatprep.subr.bf16.mxu1 %v16684_v25  ;;  %v8063_v25 = vld [vmem:[%s24376_s3 + $0xb60] sm:$0xff]  ;;  %v16764_v30 = vcombine.high %v8092_v54, %v8096_v16 }
 0x4a1   :  { %v16729_v5 = vcombine.low %v8059_v62, %v8063_v25 }
 0x4a2   :  { %13982 = vmatpush1.bf16.msra.mxu0 %v16681_v1  ;;  %v16730_v1 = vcombine.high %v8059_v62, %v8063_v25  ;;  %v21669_v62 = vpack.c.bf16 %v20132_v48, %v20132_v48  ;;  %v8100_v25 = vld [vmem:[%s24376_s3 + $0xc88] sm:$0xff]  ;;  %v16763_v48 = vcombine.low %v8092_v54, %v8096_v16 }
 0x4a3   :  { %14310 = vmatpush1.bf16.msra.mxu1 %v16683_v2  ;;  %13983 = vmatprep.subr.bf16.mxu0 %v16690_v57  ;;  %v16732_v2 = vcombine.high %v8060_v55, %v8064_v39  ;;  %v8067_v57 = vld [vmem:[%s24376_s3 + $0xb80] sm:$0xff]  ;;  %v8104_v55 = vld [vmem:[%s24376_s3 + $0xca8] sm:$0xff] }
 0x4a4   :  { %14311 = vmatprep.subr.bf16.mxu1 %v16692_v3  ;;  %v8071_v3 = vld [vmem:[%s24376_s3 + $0xba0] sm:$0xff]  ;;  %v8136_v54 = vld [vmem:[%s24376_s3 + $0xda8] sm:$0xff] }
 0x4a5   :  { %v16737_v17 = vcombine.low %v8067_v57, %v8071_v3 }
 0x4a6   :  { %13984 = vmatpush1.bf16.msra.mxu0 %v16689_v8  ;;  %v16738_v8 = vcombine.high %v8067_v57, %v8071_v3  ;;  %v8108_v57 = vld [vmem:[%s24376_s3 + $0xcc8] sm:$0xff] }
 0x4a7   :  { %14312 = vmatpush1.bf16.msra.mxu1 %v16691_v36  ;;  %13985 = vmatprep.subr.bf16.mxu0 %v16698_v10  ;;  %v16740_v36 = vcombine.high %v8068_v4, %v8072_v12  ;;  %v8075_v10 = vld [vmem:[%s24376_s3 + $0xbc0] sm:$0xff]  ;;  %v8112_v3 = vld [vmem:[%s24376_s3 + $0xce8] sm:$0xff]  ;;  %v16771_v12 = vcombine.low %v8100_v25, %v8104_v55 }
 0x4a8   :  { %14313 = vmatprep.subr.bf16.mxu1 %v16700_v22  ;;  %v8079_v22 = vld [vmem:[%s24376_s3 + $0xbe0] sm:$0xff] }
 0x4a9   :  { %v16745_v35 = vcombine.low %v8075_v10, %v8079_v22 }
 0x4aa   :  { %13986 = vmatpush1.bf16.msra.mxu0 %v16697_v18  ;;  %v16746_v18 = vcombine.high %v8075_v10, %v8079_v22  ;;  %v8116_v10 = vld [vmem:[%s24376_s3 + $0xd08] sm:$0xff] }
 0x4ab   :  { %14314 = vmatpush1.bf16.msra.mxu1 %v16699_v45  ;;  %13987 = vmatprep.subr.bf16.mxu0 %v16706_v20  ;;  %v16748_v45 = vcombine.high %v8076_v13, %v8080_v14  ;;  %v8083_v20 = vld [vmem:[%s24376_s3 + $0xc00] sm:$0xff]  ;;  %v8120_v22 = vld [vmem:[%s24376_s3 + $0xd28] sm:$0xff]  ;;  %v16779_v14 = vcombine.low %v8108_v57, %v8112_v3 }
 0x4ac   :  { %14315 = vmatprep.subr.bf16.mxu1 %v16708_v33  ;;  %v8087_v33 = vld [vmem:[%s24376_s3 + $0xc20] sm:$0xff] }
 0x4ad   :  { %v16753_v50 = vcombine.low %v8083_v20, %v8087_v33 }
 0x4ae   :  { %13988 = vmatpush1.bf16.msra.mxu0 %v16705_v40  ;;  %v16754_v40 = vcombine.high %v8083_v20, %v8087_v33  ;;  %v8124_v20 = vld [vmem:[%s24376_s3 + $0xd48] sm:$0xff] }
 0x4af   :  { %14316 = vmatpush1.bf16.msra.mxu1 %v16707_v42  ;;  %13989 = vmatprep.subr.bf16.mxu0 %v16714_v43  ;;  %v16756_v42 = vcombine.high %v8084_v31, %v8088_v34  ;;  %v8091_v43 = vld [vmem:[%s24376_s3 + $0xc40] sm:$0xff]  ;;  %v8128_v33 = vld [vmem:[%s24376_s3 + $0xd68] sm:$0xff] }
 0x4b0   :  { %14317 = vmatprep.subr.bf16.mxu1 %v16716_v46  ;;  %v8095_v46 = vld [vmem:[%s24376_s3 + $0xc60] sm:$0xff] }
 0x4b1   :  { %v16761_v39 = vcombine.low %v8091_v43, %v8095_v46 }
 0x4b2   :  { %13990 = vmatpush1.bf16.msra.mxu0 %v16713_v58  ;;  %v16755_v58 = vcombine.low %v8084_v31, %v8088_v34  ;;  %v16787_v34 = vcombine.low %v8116_v10, %v8120_v22 }
 0x4b3   :  { %14318 = vmatpush1.bf16.msra.mxu1 %v16715_v24  ;;  %13991 = vmatprep.subr.bf16.mxu0 %v16722_v37  ;;  %v16762_v24 = vcombine.high %v8091_v43, %v8095_v46  ;;  %v8099_v37 = vld [vmem:[%s24376_s3 + $0xc80] sm:$0xff]  ;;  %v17639_v43 = vld [vmem:[%s24375_s2 + $0x8] sm:$0xff] }
 0x4b4   :  { %14319 = vmatprep.subr.bf16.mxu1 %v16724_v61  ;;  %v8103_v61 = vld [vmem:[%s24376_s3 + $0xca0] sm:$0xff]  ;;  %v1114_v46 = vrot.slane %v17639_v43, %v20058_v53  ;;  %v1122_v16 = vrot.slane %v17639_v43, %v20067_v23 }
 0x4b5   :  { %v16769_v4 = vcombine.low %v8099_v37, %v8103_v61 }
 0x4b6   :  { %13992 = vmatpush1.bf16.msra.mxu0 %v16721_v63  ;;  %v16770_v63 = vcombine.high %v8099_v37, %v8103_v61  ;;  %v1126_v37 = vrot.slane %v17639_v43, %v20073_v32  ;;  %v16795_v61 = vcombine.low %v8124_v20, %v8128_v33 }
 0x4b7   :  { %14320 = vmatpush1.bf16.msra.mxu1 %v16723_v0  ;;  %13993 = vmatprep.subr.bf16.mxu0 %v16730_v1  ;;  %v16772_v0 = vcombine.high %v8100_v25, %v8104_v55  ;;  %v8107_v1 = vld [vmem:[%s24376_s3 + $0xcc0] sm:$0xff] }
 0x4b8   :  { %14321 = vmatprep.subr.bf16.mxu1 %v16732_v2  ;;  %v8111_v2 = vld [vmem:[%s24376_s3 + $0xce0] sm:$0xff] }
 0x4b9   :  { %v16777_v13 = vcombine.low %v8107_v1, %v8111_v2  ;;  %v8139_v25 = vld [vmem:[%s24376_s3 + $0xdc0] sm:$0xff] }
 0x4ba   :  { %13994 = vmatpush1.bf16.msra.mxu0 %v16729_v5  ;;  %v16778_v5 = vcombine.high %v8107_v1, %v8111_v2  ;;  %v8143_v55 = vld [vmem:[%s24376_s3 + $0xde0] sm:$0xff] }
 0x4bb   :  { %14322 = vmatpush1.bf16.msra.mxu1 %v16731_v6  ;;  %13995 = vmatprep.subr.bf16.mxu0 %v16738_v8  ;;  %v16780_v6 = vcombine.high %v8108_v57, %v8112_v3  ;;  %v8115_v8 = vld [vmem:[%s24376_s3 + $0xd00] sm:$0xff] }
 0x4bc   :  { %14323 = vmatprep.subr.bf16.mxu1 %v16740_v36  ;;  %v8119_v36 = vld [vmem:[%s24376_s3 + $0xd20] sm:$0xff] }
 0x4bd   :  { %v16785_v31 = vcombine.low %v8115_v8, %v8119_v36 }
 0x4be   :  { %13996 = vmatpush1.bf16.msra.mxu0 %v16737_v17  ;;  %v16786_v17 = vcombine.high %v8115_v8, %v8119_v36  ;;  %v16809_v36 = vcombine.low %v8139_v25, %v8143_v55 }
 0x4bf   :  { %14324 = vmatpush1.bf16.msra.mxu1 %v16739_v21  ;;  %13997 = vmatprep.subr.bf16.mxu0 %v16746_v18  ;;  %v16788_v21 = vcombine.high %v8116_v10, %v8120_v22  ;;  %v8123_v18 = vld [vmem:[%s24376_s3 + $0xd40] sm:$0xff]  ;;  %v16810_v10 = vcombine.high %v8139_v25, %v8143_v55 }
 0x4c0   :  { %14325 = vmatprep.subr.bf16.mxu1 %v16748_v45  ;;  %v8127_v45 = vld [vmem:[%s24376_s3 + $0xd60] sm:$0xff] }
 0x4c1   :  { %v8155_v55 = vld [vmem:[%s24376_s3 + $0xe40] sm:$0xff] }
 0x4c2   :  { %13998 = vmatpush1.bf16.msra.mxu0 %v16745_v35  ;;  %v16794_v35 = vcombine.high %v8123_v18, %v8127_v45 }
 0x4c3   :  { %14326 = vmatpush1.bf16.msra.mxu1 %v16747_v38  ;;  %14008 = vmatprep.subr.bf16.mxu0 %v16754_v40  ;;  %v16796_v38 = vcombine.high %v8124_v20, %v8128_v33  ;;  %v8131_v40 = vld [vmem:[%s24376_s3 + $0xd80] sm:$0xff] }
 0x4c4   :  { %14336 = vmatprep.subr.bf16.mxu1 %v16756_v42  ;;  %v8135_v42 = vld [vmem:[%s24376_s3 + $0xda0] sm:$0xff] }
 0x4c5   :  { %14000 = vmatmul.mubr.bf16.vlgmr.msra.gmra.mrb[16].mxu0 %v21659_v28  ;;  %v16801_v3 = vcombine.low %v8131_v40, %v8135_v42 }
 0x4c6   :  { %14328 = vmatmul.mubr.bf16.vlgmr.msra.gmra.mrb[16].mxu1 %v21659_v28  ;;  %14009 = vmatpush1.bf16.msra.mxu0 %v16753_v50  ;;  %v8132_v50 = vld [vmem:[%s24376_s3 + $0xd88] sm:$0xff] }
 0x4c7   :  { %14040 = vmatprep.mubr.bf16.mxu0 %v21669_v62  ;;  %14337 = vmatpush1.bf16.msra.mxu1 %v16755_v58  ;;  %v1118_v58 = vrot.slane %v17639_v43, %v20070_v26  ;;  %v8152_v43 = vld [vmem:[%s24376_s3 + $0xe28] sm:$0xff] }
 0x4c8   :  { %14368 = vmatprep.mubr.bf16.mxu1 %v21669_v62  ;;  %14010 = vmatprep.subr.bf16.mxu0 %v16762_v24  ;;  %v16793_v24 = vcombine.low %v8123_v18, %v8127_v45  ;;  %v8147_v18 = vld [vmem:[%s24376_s3 + $0xe00] sm:$0xff] }
 0x4c9   :  { %14338 = vmatprep.subr.bf16.mxu1 %v16764_v30  ;;  %v16802_v30 = vcombine.high %v8131_v40, %v8135_v42  ;;  %v8148_v42 = vld [vmem:[%s24376_s3 + $0xe08] sm:$0xff] }
 0x4ca   :  { %14011 = vmatpush1.bf16.msra.mxu0 %v16761_v39  ;;  %v16820_v25 = vcombine.high %v8148_v42, %v8152_v43 }
 0x4cb   :  { %14339 = vmatpush1.bf16.msra.mxu1 %v16763_v48  ;;  %14012 = vmatprep.subr.bf16.mxu0 %v16770_v63  ;;  %v16804_v48 = vcombine.high %v8132_v50, %v8136_v54  ;;  %v8140_v63 = vld [vmem:[%s24376_s3 + $0xdc8] sm:$0xff] }
 0x4cc   :  { %14340 = vmatprep.subr.bf16.mxu1 %v16772_v0  ;;  %v8144_v0 = vld [vmem:[%s24376_s3 + $0xde8] sm:$0xff] }
 0x4ce   :  { %14013 = vmatpush1.bf16.msra.mxu0 %v16769_v4  ;;  %v16803_v4 = vcombine.low %v8132_v50, %v8136_v54 }
 0x4cf   :  { %14341 = vmatpush1.bf16.msra.mxu1 %v16771_v12  ;;  %14014 = vmatprep.subr.bf16.mxu0 %v16778_v5 }
 0x4d0   :  { %14342 = vmatprep.subr.bf16.mxu1 %v16780_v6 }
 0x4d2   :  { %14015 = vmatpush1.bf16.msra.mxu0 %v16777_v13 }
 0x4d3   :  { %14343 = vmatpush1.bf16.msra.mxu1 %v16779_v14  ;;  %14016 = vmatprep.subr.bf16.mxu0 %v16786_v17  ;;  %v16811_v17 = vcombine.low %v8140_v63, %v8144_v0 }
 0x4d4   :  { %14344 = vmatprep.subr.bf16.mxu1 %v16788_v21  ;;  %v16812_v21 = vcombine.high %v8140_v63, %v8144_v0  ;;  %v8160_v63 = vld [vmem:[%s24376_s3 + $0xe68] sm:$0xff] }
 0x4d6   :  { %14017 = vmatpush1.bf16.msra.mxu0 %v16785_v31  ;;  %v8151_v31 = vld [vmem:[%s24376_s3 + $0xe20] sm:$0xff] }
 0x4d7   :  { %14345 = vmatpush1.bf16.msra.mxu1 %v16787_v34  ;;  %14018 = vmatprep.subr.bf16.mxu0 %v16794_v35  ;;  %v16817_v0 = vcombine.low %v8147_v18, %v8151_v31 }
 0x4d8   :  { %v7432_v39 = vpop.f32.mrb[12].mxu0  ;;  %14346 = vmatprep.subr.bf16.mxu1 %v16796_v38 }
 0x4d9   :  { %v17406_v1 = vadd.f32 %v7432_v39, %v1114_v46  ;;  %v7596_v2 = vpop.f32.mrb[12].mxu1  ;;  %v7434_v57 = vpop.f32.mrb[13].mxu0  ;;  %v8159_v39 = vld [vmem:[%s24376_s3 + $0xe60] sm:$0xff] }
 0x4da   :  { %v17408_v12 = vadd.f32 %v7596_v2, %v1122_v16  ;;  %v17407_v5 = vadd.f32 %v7434_v57, %v1118_v58  ;;  %v7598_v6 = vpop.f32.mrb[13].mxu1  ;;  %v7436_v8 = vpop.f32.mrb[14].mxu0  ;;  %14019 = vmatpush1.bf16.msra.mxu0 %v16793_v24  ;;  %v16826_v2 = vcombine.high %v8155_v55, %v8159_v39 }
 0x4db   :  { %vm7615_vm12 = vcmp.gt.f32.partialorder %v17406_v1, 0.0  ;;  %v17409_v22 = vadd.f32 %v7598_v6, %v1126_v37  ;;  %v7600_v13 = vpop.f32.mrb[14].mxu1  ;;  %14347 = vmatpush1.bf16.msra.mxu1 %v16795_v61  ;;  %v7437_v14 = vpop.f32.mrb[15].mxu0  ;;  %14020 = vmatprep.subr.bf16.mxu0 %v16802_v30  ;;  %v16818_v37 = vcombine.high %v8147_v18, %v8151_v31  ;;  %v8168_v6 = vld [vmem:[%s24376_s3 + $0xea8] sm:$0xff]  ;;  %v16825_v8 = vcombine.low %v8155_v55, %v8159_v39  ;;  %v8179_v31 = vld [vmem:[%s24376_s3 + $0xf00] sm:$0xff] }
 0x4dc   :  { %v7631_v45 = vsel %vm7615_vm12, 1.0, %v17690_v7  ;;  %v7647_v20 = vsel %vm7615_vm12, 1, %v17691_v9  ;;  %vm7617_vm13 = vcmp.gt.f32.partialorder %v17408_v12, 0.0  ;;  %vm7616_vm14 = vcmp.gt.f32.partialorder %v17407_v5, 0.0  ;;  %v7601_v33 = vpop.f32.mrb[15].mxu1  ;;  %14348 = vmatprep.subr.bf16.mxu1 %v16804_v48  ;;  %v8156_v48 = vld [vmem:[%s24376_s3 + $0xe48] sm:$0xff] }
 0x4dd   :  { %v21756_v34 = vmul.f32 %v17406_v1, %v7631_v45  ;;  %v7633_v35 = vsel %vm7617_vm13, 1.0, %v17690_v7  ;;  %v7649_v38 = vsel %vm7617_vm13, 1, %v17691_v9  ;;  %v7632_v40 = vsel %vm7616_vm14, 1.0, %v17690_v7  ;;  %v8171_v13 = vld [vmem:[%s24376_s3 + $0xec0] sm:$0xff] }
 0x4de   :  { %v21767_v46 = vmul.f32 %v17408_v12, %v7633_v35  ;;  %v7648_v50 = vsel %vm7616_vm14, 1, %v17691_v9  ;;  %v21770_v54 = vmul.f32 %v17407_v5, %v7632_v40  ;;  %vm7618_vm15 = vcmp.gt.f32.partialorder %v17409_v22, 0.0  ;;  %14021 = vmatpush1.bf16.msra.mxu0 %v16801_v3  ;;  %v8167_v12 = vld [vmem:[%s24376_s3 + $0xea0] sm:$0xff]  ;;  %v8164_v5 = vld [vmem:[%s24376_s3 + $0xe88] sm:$0xff] }
 0x4df   :  { %v7660_v16 = vpack.c.b16 %v7648_v50, %v7647_v20  ;;  %v7634_v58 = vsel %vm7618_vm15, 1.0, %v17690_v7  ;;  %v7650_v24 = vsel %vm7618_vm15, 1, %v17691_v9  ;;  %14349 = vmatpush1.bf16.msra.mxu1 %v16803_v4  ;;  %14022 = vmatprep.subr.bf16.mxu0 %v16810_v10  ;;  %v16819_v1 = vcombine.low %v8148_v42, %v8152_v43  ;;  %v8163_v4 = vld [vmem:[%s24376_s3 + $0xe80] sm:$0xff]  ;;  %v8184_v40 = vld [vmem:[%s24376_s3 + $0xf28] sm:$0xff] }
 0x4e0   :  { %v7661_v61 = vpack.c.b16 %v7650_v24, %v7649_v38  ;;  %v21774_v30 = vmul.f32 %v17409_v22, %v7634_v58  ;;  %14350 = vmatprep.subr.bf16.mxu1 %v16812_v21  ;;  %v16828_v3 = vcombine.high %v8156_v48, %v8160_v63  ;;  %v16834_v10 = vcombine.high %v8163_v4, %v8167_v12  ;;  %v8175_v14 = vld [vmem:[%s24376_s3 + $0xee0] sm:$0xff]  ;;  %v8176_v21 = vld [vmem:[%s24376_s3 + $0xee8] sm:$0xff] }
 0x4e1   :  { %v16836_v22 = vcombine.high %v8164_v5, %v8168_v6  ;;  %v16833_v18 = vcombine.low %v8163_v4, %v8167_v12  ;;  %v16835_v45 = vcombine.low %v8164_v5, %v8168_v6  ;;  %v16842_v20 = vcombine.high %v8171_v13, %v8175_v14  ;;  %v8183_v35 = vld [vmem:[%s24376_s3 + $0xf20] sm:$0xff]  ;;  %v8180_v38 = vld [vmem:[%s24376_s3 + $0xf08] sm:$0xff] }
 0x4e2   :  { %14023 = vmatpush1.bf16.msra.mxu0 %v16809_v36  ;;  %v7662_v57 = vpack.c.b8 %v7661_v61, %v7660_v16  ;;  %v16827_v36 = vcombine.low %v8156_v48, %v8160_v63  ;;  %v16841_v42 = vcombine.low %v8171_v13, %v8175_v14  ;;  %v16850_v50 = vcombine.high %v8179_v31, %v8183_v35  ;;  %v8187_v58 = vld [vmem:[%s24376_s3 + $0xf40] sm:$0xff]  ;;  %v8192_v61 = vld [vmem:[%s24376_s3 + $0xf68] sm:$0xff] }
 0x4e3   :  { %14351 = vmatpush1.bf16.msra.mxu1 %v16811_v17  ;;  %14024 = vmatprep.subr.bf16.mxu0 %v16818_v37  ;;  %v8172_v17 = vld [vmem:[%s24376_s3 + $0xec8] sm:$0xff]  ;;  %v16852_v16 = vcombine.high %v8180_v38, %v8184_v40  ;;  %v8191_v24 = vld [vmem:[%s24376_s3 + $0xf60] sm:$0xff]  ;;  %v16851_v55 = vcombine.low %v8180_v38, %v8184_v40 }
 0x4e4   :  { %14352 = vmatprep.subr.bf16.mxu1 %v16820_v25  ;;  %7666 = vst [vmem:[#allocation2 + $0x18] sm:$0xff] %v7662_v57  ;;  %v16844_v33 = vcombine.high %v8172_v17, %v8176_v21  ;;  %v16843_v43 = vcombine.low %v8172_v17, %v8176_v21  ;;  %v8188_v37 = vld [vmem:[%s24376_s3 + $0xf48] sm:$0xff]  ;;  %v16849_v25 = vcombine.low %v8179_v31, %v8183_v35  ;;  %v8195_v63 = vld [vmem:[%s24376_s3 + $0xf80] sm:$0xff] }
 0x4e5   :  { %v16858_v39 = vcombine.high %v8187_v58, %v8191_v24  ;;  %v16860_v48 = vcombine.high %v8188_v37, %v8192_v61  ;;  %v16857_v57 = vcombine.low %v8187_v58, %v8191_v24  ;;  %v8203_v5 = vld [vmem:[%s24376_s3 + $0xfc0] sm:$0xff] }
 0x4e6   :  { %14025 = vmatpush1.bf16.msra.mxu0 %v16817_v0  ;;  %v8199_v0 = vld [vmem:[%s24376_s3 + $0xfa0] sm:$0xff] }
 0x4e7   :  { %14353 = vmatpush1.bf16.msra.mxu1 %v16819_v1  ;;  %14026 = vmatprep.subr.bf16.mxu0 %v16826_v2  ;;  %v8196_v1 = vld [vmem:[%s24376_s3 + $0xf88] sm:$0xff]  ;;  %v16866_v4 = vcombine.high %v8195_v63, %v8199_v0  ;;  %v8207_v6 = vld [vmem:[%s24376_s3 + $0xfe0] sm:$0xff] }
 0x4e8   :  { %14354 = vmatprep.subr.bf16.mxu1 %v16828_v3  ;;  %v8200_v2 = vld [vmem:[%s24376_s3 + $0xfa8] sm:$0xff]  ;;  %v16859_v3 = vcombine.low %v8188_v37, %v8192_v61  ;;  %v16874_v13 = vcombine.high %v8203_v5, %v8207_v6  ;;  %v8211_v17 = vld [vmem:[%s24376_s3 + $0x1000] sm:$0xff] }
 0x4e9   :  { %v16868_v12 = vcombine.high %v8196_v1, %v8200_v2  ;;  %v8215_v21 = vld [vmem:[%s24376_s3 + $0x1020] sm:$0xff] }
 0x4ea   :  { %14027 = vmatpush1.bf16.msra.mxu0 %v16825_v8  ;;  %v8204_v8 = vld [vmem:[%s24376_s3 + $0xfc8] sm:$0xff]  ;;  %v16882_v31 = vcombine.high %v8211_v17, %v8215_v21  ;;  %v8219_v38 = vld [vmem:[%s24376_s3 + $0x1040] sm:$0xff] }
 0x4eb   :  { %14355 = vmatpush1.bf16.msra.mxu1 %v16827_v36  ;;  %14028 = vmatprep.subr.bf16.mxu0 %v16834_v10  ;;  %v8208_v36 = vld [vmem:[%s24376_s3 + $0xfe8] sm:$0xff]  ;;  %v16865_v10 = vcombine.low %v8195_v63, %v8199_v0  ;;  %v8223_v40 = vld [vmem:[%s24376_s3 + $0x1060] sm:$0xff] }
 0x4ec   :  { %14356 = vmatprep.subr.bf16.mxu1 %v16836_v22  ;;  %v16867_v22 = vcombine.low %v8196_v1, %v8200_v2  ;;  %v16876_v14 = vcombine.high %v8204_v8, %v8208_v36  ;;  %v16890_v24 = vcombine.high %v8219_v38, %v8223_v40  ;;  %v8227_v37 = vld [vmem:[%s24376_s3 + $0x1080] sm:$0xff] }
 0x4ed   :  { %v8231_v61 = vld [vmem:[%s24376_s3 + $0x10a0] sm:$0xff] }
 0x4ee   :  { %14029 = vmatpush1.bf16.msra.mxu0 %v16833_v18  ;;  %v8212_v18 = vld [vmem:[%s24376_s3 + $0x1008] sm:$0xff]  ;;  %v16898_v63 = vcombine.high %v8227_v37, %v8231_v61  ;;  %v8235_v1 = vld [vmem:[%s24376_s3 + $0x10c0] sm:$0xff] }
 0x4ef   :  { %14357 = vmatpush1.bf16.msra.mxu1 %v16835_v45  ;;  %14030 = vmatprep.subr.bf16.mxu0 %v16842_v20  ;;  %v8216_v45 = vld [vmem:[%s24376_s3 + $0x1028] sm:$0xff]  ;;  %v16873_v20 = vcombine.low %v8203_v5, %v8207_v6  ;;  %v8239_v2 = vld [vmem:[%s24376_s3 + $0x10e0] sm:$0xff] }
 0x4f0   :  { %14358 = vmatprep.subr.bf16.mxu1 %v16844_v33  ;;  %v16875_v33 = vcombine.low %v8204_v8, %v8208_v36  ;;  %v16884_v35 = vcombine.high %v8212_v18, %v8216_v45  ;;  %v16883_v58 = vcombine.low %v8212_v18, %v8216_v45  ;;  %v16906_v5 = vcombine.high %v8235_v1, %v8239_v2  ;;  %v8243_v8 = vld [vmem:[%s24376_s3 + $0x1100] sm:$0xff] }
 0x4f1   :  { %v8247_v36 = vld [vmem:[%s24376_s3 + $0x1120] sm:$0xff] }
 0x4f2   :  { %14031 = vmatpush1.bf16.msra.mxu0 %v16841_v42  ;;  %v16881_v42 = vcombine.low %v8211_v17, %v8215_v21  ;;  %v16914_v17 = vcombine.high %v8243_v8, %v8247_v36  ;;  %v8251_v18 = vld [vmem:[%s24376_s3 + $0x1140] sm:$0xff] }
 0x4f3   :  { %14359 = vmatpush1.bf16.msra.mxu1 %v16843_v43  ;;  %14032 = vmatprep.subr.bf16.mxu0 %v16850_v50  ;;  %v8220_v43 = vld [vmem:[%s24376_s3 + $0x1048] sm:$0xff]  ;;  %v8255_v45 = vld [vmem:[%s24376_s3 + $0x1160] sm:$0xff] }
 0x4f4   :  { %14360 = vmatprep.subr.bf16.mxu1 %v16852_v16  ;;  %v8224_v50 = vld [vmem:[%s24376_s3 + $0x1068] sm:$0xff]  ;;  %v21886_v16 = vpack.c.bf16 %v20125_v41, %v20125_v41 }
 0x4f5   :  { %v16892_v41 = vcombine.high %v8220_v43, %v8224_v50 }
 0x4f6   :  { %14033 = vmatpush1.bf16.msra.mxu0 %v16849_v25  ;;  %v21896_v25 = vpack.c.bf16 %v20935_v51, %v20935_v51  ;;  %v16891_v51 = vcombine.low %v8220_v43, %v8224_v50  ;;  %v8263_v43 = vld [vmem:[%s24376_s3 + $0x11a0] sm:$0xff]  ;;  %v8260_v50 = vld [vmem:[%s24376_s3 + $0x1188] sm:$0xff] }
 0x4f7   :  { %14361 = vmatpush1.bf16.msra.mxu1 %v16851_v55  ;;  %14034 = vmatprep.subr.bf16.mxu0 %v16858_v39  ;;  %v8228_v55 = vld [vmem:[%s24376_s3 + $0x1088] sm:$0xff] }
 0x4f8   :  { %14362 = vmatprep.subr.bf16.mxu1 %v16860_v48  ;;  %v8232_v39 = vld [vmem:[%s24376_s3 + $0x10a8] sm:$0xff]  ;;  %v16889_v48 = vcombine.low %v8219_v38, %v8223_v40  ;;  %v16922_v38 = vcombine.high %v8251_v18, %v8255_v45 }
 0x4f9   :  { %v16900_v0 = vcombine.high %v8228_v55, %v8232_v39 }
 0x4fa   :  { %14035 = vmatpush1.bf16.msra.mxu0 %v16857_v57  ;;  %v8236_v57 = vld [vmem:[%s24376_s3 + $0x10c8] sm:$0xff] }
 0x4fb   :  { %14363 = vmatpush1.bf16.msra.mxu1 %v16859_v3  ;;  %14036 = vmatprep.subr.bf16.mxu0 %v16866_v4  ;;  %v8240_v3 = vld [vmem:[%s24376_s3 + $0x10e8] sm:$0xff]  ;;  %v16897_v4 = vcombine.low %v8227_v37, %v8231_v61 }
 0x4fc   :  { %14364 = vmatprep.subr.bf16.mxu1 %v16868_v12  ;;  %v16899_v12 = vcombine.low %v8228_v55, %v8232_v39  ;;  %v16908_v6 = vcombine.high %v8236_v57, %v8240_v3  ;;  %v8267_v55 = vld [vmem:[%s24376_s3 + $0x11c0] sm:$0xff] }
 0x4fd   :  { %v8271_v39 = vld [vmem:[%s24376_s3 + $0x11e0] sm:$0xff] }
 0x4fe   :  { %14037 = vmatpush1.bf16.msra.mxu0 %v16865_v10  ;;  %v8244_v10 = vld [vmem:[%s24376_s3 + $0x1108] sm:$0xff] }
 0x4ff   :  { %14365 = vmatpush1.bf16.msra.mxu1 %v16867_v22  ;;  %14038 = vmatprep.subr.bf16.mxu0 %v16874_v13  ;;  %v8248_v22 = vld [vmem:[%s24376_s3 + $0x1128] sm:$0xff]  ;;  %v16905_v13 = vcombine.low %v8235_v1, %v8239_v2  ;;  %v16938_v1 = vcombine.high %v8267_v55, %v8271_v39 }
 0x500   :  { %14366 = vmatprep.subr.bf16.mxu1 %v16876_v14  ;;  %v16907_v14 = vcombine.low %v8236_v57, %v8240_v3  ;;  %v16916_v21 = vcombine.high %v8244_v10, %v8248_v22  ;;  %v8275_v57 = vld [vmem:[%s24376_s3 + $0x1200] sm:$0xff] }
 0x501   :  { %v8279_v3 = vld [vmem:[%s24376_s3 + $0x1220] sm:$0xff] }
 0x502   :  { %14039 = vmatpush1.bf16.msra.mxu0 %v16873_v20  ;;  %v8252_v20 = vld [vmem:[%s24376_s3 + $0x1148] sm:$0xff] }
 0x503   :  { %14367 = vmatpush1.bf16.msra.mxu1 %v16875_v33  ;;  %14049 = vmatprep.subr.bf16.mxu0 %v16882_v31  ;;  %v8256_v33 = vld [vmem:[%s24376_s3 + $0x1168] sm:$0xff]  ;;  %v16913_v31 = vcombine.low %v8243_v8, %v8247_v36  ;;  %v16946_v8 = vcombine.high %v8275_v57, %v8279_v3 }
 0x504   :  { %14377 = vmatprep.subr.bf16.mxu1 %v16884_v35  ;;  %v16915_v35 = vcombine.low %v8244_v10, %v8248_v22  ;;  %v16924_v40 = vcombine.high %v8252_v20, %v8256_v33  ;;  %v16923_v37 = vcombine.low %v8252_v20, %v8256_v33  ;;  %v8283_v10 = vld [vmem:[%s24376_s3 + $0x1240] sm:$0xff] }
 0x505   :  { %14041 = vmatmul.mubr.bf16.vlgmr.msra.gmra.mrb[16].mxu0 %v21886_v16  ;;  %v8287_v22 = vld [vmem:[%s24376_s3 + $0x1260] sm:$0xff] }
 0x506   :  { %14369 = vmatmul.mubr.bf16.vlgmr.msra.gmra.mrb[16].mxu1 %v21886_v16  ;;  %14050 = vmatpush1.bf16.msra.mxu0 %v16881_v42  ;;  %v8259_v42 = vld [vmem:[%s24376_s3 + $0x1180] sm:$0xff] }
 0x507   :  { %14081 = vmatprep.mubr.bf16.mxu0 %v21896_v25  ;;  %14378 = vmatpush1.bf16.msra.mxu1 %v16883_v58  ;;  %v8264_v58 = vld [vmem:[%s24376_s3 + $0x11a8] sm:$0xff]  ;;  %v16930_v61 = vcombine.high %v8259_v42, %v8263_v43  ;;  %v8291_v20 = vld [vmem:[%s24376_s3 + $0x1280] sm:$0xff] }
 0x508   :  { %14409 = vmatprep.mubr.bf16.mxu1 %v21896_v25  ;;  %14051 = vmatprep.subr.bf16.mxu0 %v16890_v24  ;;  %v16921_v24 = vcombine.low %v8251_v18, %v8255_v45  ;;  %v16954_v18 = vcombine.high %v8283_v10, %v8287_v22  ;;  %v8295_v33 = vld [vmem:[%s24376_s3 + $0x12a0] sm:$0xff] }
 0x509   :  { %14379 = vmatprep.subr.bf16.mxu1 %v16892_v41  ;;  %v16932_v41 = vcombine.high %v8260_v50, %v8264_v58 }
 0x50a   :  { %14052 = vmatpush1.bf16.msra.mxu0 %v16889_v48  ;;  %v8268_v48 = vld [vmem:[%s24376_s3 + $0x11c8] sm:$0xff] }
 0x50b   :  { %14380 = vmatpush1.bf16.msra.mxu1 %v16891_v51  ;;  %14053 = vmatprep.subr.bf16.mxu0 %v16898_v63  ;;  %v8272_v51 = vld [vmem:[%s24376_s3 + $0x11e8] sm:$0xff]  ;;  %v16929_v63 = vcombine.low %v8259_v42, %v8263_v43  ;;  %v16962_v42 = vcombine.high %v8291_v20, %v8295_v33 }
 0x50c   :  { %14381 = vmatprep.subr.bf16.mxu1 %v16900_v0  ;;  %v16931_v0 = vcombine.low %v8260_v50, %v8264_v58  ;;  %v16940_v2 = vcombine.high %v8268_v48, %v8272_v51  ;;  %v8299_v50 = vld [vmem:[%s24376_s3 + $0x12c0] sm:$0xff] }
 0x50d   :  { %v8303_v58 = vld [vmem:[%s24376_s3 + $0x12e0] sm:$0xff] }
 0x50e   :  { %14054 = vmatpush1.bf16.msra.mxu0 %v16897_v4  ;;  %v8276_v4 = vld [vmem:[%s24376_s3 + $0x1208] sm:$0xff] }
 0x50f   :  { %14382 = vmatpush1.bf16.msra.mxu1 %v16899_v12  ;;  %14055 = vmatprep.subr.bf16.mxu0 %v16906_v5  ;;  %v8280_v12 = vld [vmem:[%s24376_s3 + $0x1228] sm:$0xff]  ;;  %v16937_v5 = vcombine.low %v8267_v55, %v8271_v39  ;;  %v16970_v55 = vcombine.high %v8299_v50, %v8303_v58 }
 0x510   :  { %14383 = vmatprep.subr.bf16.mxu1 %v16908_v6  ;;  %v16939_v6 = vcombine.low %v8268_v48, %v8272_v51  ;;  %v16948_v36 = vcombine.high %v8276_v4, %v8280_v12  ;;  %v8307_v48 = vld [vmem:[%s24376_s3 + $0x1300] sm:$0xff] }
 0x511   :  { %v8311_v51 = vld [vmem:[%s24376_s3 + $0x1320] sm:$0xff] }
 0x512   :  { %14056 = vmatpush1.bf16.msra.mxu0 %v16905_v13  ;;  %v8284_v13 = vld [vmem:[%s24376_s3 + $0x1248] sm:$0xff] }
 0x513   :  { %14384 = vmatpush1.bf16.msra.mxu1 %v16907_v14  ;;  %14057 = vmatprep.subr.bf16.mxu0 %v16914_v17  ;;  %v8288_v14 = vld [vmem:[%s24376_s3 + $0x1268] sm:$0xff]  ;;  %v16945_v17 = vcombine.low %v8275_v57, %v8279_v3  ;;  %v16978_v57 = vcombine.high %v8307_v48, %v8311_v51 }
 0x514   :  { %14385 = vmatprep.subr.bf16.mxu1 %v16916_v21  ;;  %v16947_v21 = vcombine.low %v8276_v4, %v8280_v12  ;;  %v16956_v45 = vcombine.high %v8284_v13, %v8288_v14  ;;  %v8315_v4 = vld [vmem:[%s24376_s3 + $0x1340] sm:$0xff] }
 0x515   :  { %v8319_v12 = vld [vmem:[%s24376_s3 + $0x1360] sm:$0xff] }
 0x516   :  { %14058 = vmatpush1.bf16.msra.mxu0 %v16913_v31  ;;  %v8292_v31 = vld [vmem:[%s24376_s3 + $0x1288] sm:$0xff] }
 0x517   :  { %14386 = vmatpush1.bf16.msra.mxu1 %v16915_v35  ;;  %14059 = vmatprep.subr.bf16.mxu0 %v16922_v38  ;;  %v8296_v35 = vld [vmem:[%s24376_s3 + $0x12a8] sm:$0xff]  ;;  %v16953_v38 = vcombine.low %v8283_v10, %v8287_v22  ;;  %v16986_v10 = vcombine.high %v8315_v4, %v8319_v12 }
 0x518   :  { %14387 = vmatprep.subr.bf16.mxu1 %v16924_v40  ;;  %v16955_v40 = vcombine.low %v8284_v13, %v8288_v14  ;;  %v16964_v43 = vcombine.high %v8292_v31, %v8296_v35  ;;  %v8323_v13 = vld [vmem:[%s24376_s3 + $0x1380] sm:$0xff] }
 0x519   :  { %v8327_v14 = vld [vmem:[%s24376_s3 + $0x13a0] sm:$0xff] }
 0x51a   :  { %14060 = vmatpush1.bf16.msra.mxu0 %v16921_v24  ;;  %v8300_v24 = vld [vmem:[%s24376_s3 + $0x12c8] sm:$0xff] }
 0x51b   :  { %14388 = vmatpush1.bf16.msra.mxu1 %v16923_v37  ;;  %14061 = vmatprep.subr.bf16.mxu0 %v16930_v61  ;;  %v8304_v37 = vld [vmem:[%s24376_s3 + $0x12e8] sm:$0xff]  ;;  %v16961_v61 = vcombine.low %v8291_v20, %v8295_v33  ;;  %v16994_v20 = vcombine.high %v8323_v13, %v8327_v14 }
 0x51c   :  { %14389 = vmatprep.subr.bf16.mxu1 %v16932_v41  ;;  %v16963_v41 = vcombine.low %v8292_v31, %v8296_v35  ;;  %v16972_v39 = vcombine.high %v8300_v24, %v8304_v37  ;;  %v8331_v31 = vld [vmem:[%s24376_s3 + $0x13c0] sm:$0xff] }
 0x51d   :  { %v8335_v35 = vld [vmem:[%s24376_s3 + $0x13e0] sm:$0xff] }
 0x51e   :  { %14062 = vmatpush1.bf16.msra.mxu0 %v16929_v63  ;;  %v8308_v63 = vld [vmem:[%s24376_s3 + $0x1308] sm:$0xff] }
 0x51f   :  { %14390 = vmatpush1.bf16.msra.mxu1 %v16931_v0  ;;  %14063 = vmatprep.subr.bf16.mxu0 %v16938_v1  ;;  %v8312_v0 = vld [vmem:[%s24376_s3 + $0x1328] sm:$0xff]  ;;  %v16969_v1 = vcombine.low %v8299_v50, %v8303_v58  ;;  %v17002_v50 = vcombine.high %v8331_v31, %v8335_v35 }
 0x520   :  { %14391 = vmatprep.subr.bf16.mxu1 %v16940_v2  ;;  %v16971_v2 = vcombine.low %v8300_v24, %v8304_v37  ;;  %v16980_v3 = vcombine.high %v8308_v63, %v8312_v0  ;;  %v8339_v24 = vld [vmem:[%s24376_s3 + $0x1400] sm:$0xff] }
 0x521   :  { %v8343_v37 = vld [vmem:[%s24376_s3 + $0x1420] sm:$0xff] }
 0x522   :  { %14064 = vmatpush1.bf16.msra.mxu0 %v16937_v5  ;;  %v8316_v5 = vld [vmem:[%s24376_s3 + $0x1348] sm:$0xff] }
 0x523   :  { %14392 = vmatpush1.bf16.msra.mxu1 %v16939_v6  ;;  %14065 = vmatprep.subr.bf16.mxu0 %v16946_v8  ;;  %v8320_v6 = vld [vmem:[%s24376_s3 + $0x1368] sm:$0xff]  ;;  %v16977_v8 = vcombine.low %v8307_v48, %v8311_v51  ;;  %v17010_v48 = vcombine.high %v8339_v24, %v8343_v37 }
 0x524   :  { %14393 = vmatprep.subr.bf16.mxu1 %v16948_v36  ;;  %v16979_v36 = vcombine.low %v8308_v63, %v8312_v0  ;;  %v16988_v22 = vcombine.high %v8316_v5, %v8320_v6  ;;  %v8347_v63 = vld [vmem:[%s24376_s3 + $0x1440] sm:$0xff] }
 0x525   :  { %v8351_v0 = vld [vmem:[%s24376_s3 + $0x1460] sm:$0xff] }
 0x526   :  { %14066 = vmatpush1.bf16.msra.mxu0 %v16945_v17  ;;  %v8324_v17 = vld [vmem:[%s24376_s3 + $0x1388] sm:$0xff] }
 0x527   :  { %14394 = vmatpush1.bf16.msra.mxu1 %v16947_v21  ;;  %14067 = vmatprep.subr.bf16.mxu0 %v16954_v18  ;;  %v8328_v21 = vld [vmem:[%s24376_s3 + $0x13a8] sm:$0xff]  ;;  %v16985_v18 = vcombine.low %v8315_v4, %v8319_v12  ;;  %v17018_v12 = vcombine.high %v8347_v63, %v8351_v0 }
 0x528   :  { %14395 = vmatprep.subr.bf16.mxu1 %v16956_v45  ;;  %v16987_v45 = vcombine.low %v8316_v5, %v8320_v6  ;;  %v16996_v33 = vcombine.high %v8324_v17, %v8328_v21  ;;  %v8355_v5 = vld [vmem:[%s24376_s3 + $0x1480] sm:$0xff] }
 0x529   :  { %v8359_v6 = vld [vmem:[%s24376_s3 + $0x14a0] sm:$0xff] }
 0x52a   :  { %14068 = vmatpush1.bf16.msra.mxu0 %v16953_v38  ;;  %v8332_v38 = vld [vmem:[%s24376_s3 + $0x13c8] sm:$0xff] }
 0x52b   :  { %14396 = vmatpush1.bf16.msra.mxu1 %v16955_v40  ;;  %14069 = vmatprep.subr.bf16.mxu0 %v16962_v42  ;;  %v8336_v40 = vld [vmem:[%s24376_s3 + $0x13e8] sm:$0xff]  ;;  %v16993_v42 = vcombine.low %v8323_v13, %v8327_v14  ;;  %v17026_v13 = vcombine.high %v8355_v5, %v8359_v6 }
 0x52c   :  { %14397 = vmatprep.subr.bf16.mxu1 %v16964_v43  ;;  %v16995_v43 = vcombine.low %v8324_v17, %v8328_v21  ;;  %v17004_v58 = vcombine.high %v8332_v38, %v8336_v40  ;;  %v8363_v17 = vld [vmem:[%s24376_s3 + $0x14c0] sm:$0xff] }
 0x52d   :  { %v8367_v21 = vld [vmem:[%s24376_s3 + $0x14e0] sm:$0xff] }
 0x52e   :  { %14070 = vmatpush1.bf16.msra.mxu0 %v16961_v61  ;;  %v8340_v61 = vld [vmem:[%s24376_s3 + $0x1408] sm:$0xff] }
 0x52f   :  { %14398 = vmatpush1.bf16.msra.mxu1 %v16963_v41  ;;  %14071 = vmatprep.subr.bf16.mxu0 %v16970_v55  ;;  %v8344_v41 = vld [vmem:[%s24376_s3 + $0x1428] sm:$0xff]  ;;  %v17001_v55 = vcombine.low %v8331_v31, %v8335_v35  ;;  %v17034_v31 = vcombine.high %v8363_v17, %v8367_v21 }
 0x530   :  { %14399 = vmatprep.subr.bf16.mxu1 %v16972_v39  ;;  %v17003_v39 = vcombine.low %v8332_v38, %v8336_v40  ;;  %v17012_v51 = vcombine.high %v8340_v61, %v8344_v41  ;;  %v17011_v4 = vcombine.low %v8340_v61, %v8344_v41  ;;  %v8371_v38 = vld [vmem:[%s24376_s3 + $0x1500] sm:$0xff] }
 0x531   :  { %v8375_v40 = vld [vmem:[%s24376_s3 + $0x1520] sm:$0xff] }
 0x532   :  { %14072 = vmatpush1.bf16.msra.mxu0 %v16969_v1  ;;  %v17009_v1 = vcombine.low %v8339_v24, %v8343_v37  ;;  %v17042_v24 = vcombine.high %v8371_v38, %v8375_v40  ;;  %v8379_v61 = vld [vmem:[%s24376_s3 + $0x1540] sm:$0xff] }
 0x533   :  { %14400 = vmatpush1.bf16.msra.mxu1 %v16971_v2  ;;  %14073 = vmatprep.subr.bf16.mxu0 %v16978_v57  ;;  %v8348_v2 = vld [vmem:[%s24376_s3 + $0x1448] sm:$0xff]  ;;  %v8383_v41 = vld [vmem:[%s24376_s3 + $0x1560] sm:$0xff] }
 0x534   :  { %14401 = vmatprep.subr.bf16.mxu1 %v16980_v3  ;;  %v8352_v57 = vld [vmem:[%s24376_s3 + $0x1468] sm:$0xff]  ;;  %v22090_v3 = vpack.c.bf16 %v20921_v11, %v20921_v11 }
 0x535   :  { %v17020_v11 = vcombine.high %v8348_v2, %v8352_v57 }
 0x536   :  { %14074 = vmatpush1.bf16.msra.mxu0 %v16977_v8  ;;  %v22100_v8 = vpack.c.bf16 %v20939_v60, %v20939_v60  ;;  %v17019_v60 = vcombine.low %v8348_v2, %v8352_v57  ;;  %v8391_v2 = vld [vmem:[%s24376_s3 + $0x15a0] sm:$0xff]  ;;  %v8388_v57 = vld [vmem:[%s24376_s3 + $0x1588] sm:$0xff] }
 0x537   :  { %14402 = vmatpush1.bf16.msra.mxu1 %v16979_v36  ;;  %14075 = vmatprep.subr.bf16.mxu0 %v16986_v10  ;;  %v8356_v36 = vld [vmem:[%s24376_s3 + $0x1488] sm:$0xff] }
 0x538   :  { %14403 = vmatprep.subr.bf16.mxu1 %v16988_v22  ;;  %v8360_v10 = vld [vmem:[%s24376_s3 + $0x14a8] sm:$0xff]  ;;  %v17017_v22 = vcombine.low %v8347_v63, %v8351_v0  ;;  %v17050_v63 = vcombine.high %v8379_v61, %v8383_v41 }
 0x539   :  { %v17028_v14 = vcombine.high %v8356_v36, %v8360_v10 }
 0x53a   :  { %14076 = vmatpush1.bf16.msra.mxu0 %v16985_v18  ;;  %v8364_v18 = vld [vmem:[%s24376_s3 + $0x14c8] sm:$0xff] }
 0x53b   :  { %14404 = vmatpush1.bf16.msra.mxu1 %v16987_v45  ;;  %14077 = vmatprep.subr.bf16.mxu0 %v16994_v20  ;;  %v8368_v45 = vld [vmem:[%s24376_s3 + $0x14e8] sm:$0xff]  ;;  %v17025_v20 = vcombine.low %v8355_v5, %v8359_v6 }
 0x53c   :  { %14405 = vmatprep.subr.bf16.mxu1 %v16996_v33  ;;  %v17027_v33 = vcombine.low %v8356_v36, %v8360_v10  ;;  %v17036_v35 = vcombine.high %v8364_v18, %v8368_v45  ;;  %v8395_v36 = vld [vmem:[%s24376_s3 + $0x15c0] sm:$0xff] }
 0x53d   :  { %v8399_v10 = vld [vmem:[%s24376_s3 + $0x15e0] sm:$0xff] }
 0x53e   :  { %14078 = vmatpush1.bf16.msra.mxu0 %v16993_v42  ;;  %v8372_v42 = vld [vmem:[%s24376_s3 + $0x1508] sm:$0xff] }
 0x53f   :  { %14406 = vmatpush1.bf16.msra.mxu1 %v16995_v43  ;;  %14079 = vmatprep.subr.bf16.mxu0 %v17002_v50  ;;  %v8376_v43 = vld [vmem:[%s24376_s3 + $0x1528] sm:$0xff]  ;;  %v17033_v50 = vcombine.low %v8363_v17, %v8367_v21  ;;  %v17066_v17 = vcombine.high %v8395_v36, %v8399_v10 }
 0x540   :  { %14407 = vmatprep.subr.bf16.mxu1 %v17004_v58  ;;  %v17035_v58 = vcombine.low %v8364_v18, %v8368_v45  ;;  %v17044_v37 = vcombine.high %v8372_v42, %v8376_v43  ;;  %v8403_v18 = vld [vmem:[%s24376_s3 + $0x1600] sm:$0xff] }
 0x541   :  { %v8407_v45 = vld [vmem:[%s24376_s3 + $0x1620] sm:$0xff] }
 0x542   :  { %14080 = vmatpush1.bf16.msra.mxu0 %v17001_v55  ;;  %v8380_v55 = vld [vmem:[%s24376_s3 + $0x1548] sm:$0xff] }
 0x543   :  { %14408 = vmatpush1.bf16.msra.mxu1 %v17003_v39  ;;  %14090 = vmatprep.subr.bf16.mxu0 %v17010_v48  ;;  %v8384_v39 = vld [vmem:[%s24376_s3 + $0x1568] sm:$0xff]  ;;  %v17041_v48 = vcombine.low %v8371_v38, %v8375_v40  ;;  %v17074_v38 = vcombine.high %v8403_v18, %v8407_v45 }
 0x544   :  { %14418 = vmatprep.subr.bf16.mxu1 %v17012_v51  ;;  %v17043_v51 = vcombine.low %v8372_v42, %v8376_v43  ;;  %v17052_v0 = vcombine.high %v8380_v55, %v8384_v39  ;;  %v17051_v5 = vcombine.low %v8380_v55, %v8384_v39  ;;  %v8411_v42 = vld [vmem:[%s24376_s3 + $0x1640] sm:$0xff] }
 0x545   :  { %14082 = vmatmul.mubr.bf16.vlgmr.msra.gmra.mrb[16].mxu0 %v22090_v3  ;;  %v8415_v43 = vld [vmem:[%s24376_s3 + $0x1660] sm:$0xff] }
 0x546   :  { %14410 = vmatmul.mubr.bf16.vlgmr.msra.gmra.mrb[16].mxu1 %v22090_v3  ;;  %14091 = vmatpush1.bf16.msra.mxu0 %v17009_v1  ;;  %v8387_v1 = vld [vmem:[%s24376_s3 + $0x1580] sm:$0xff] }
 0x547   :  { %14122 = vmatprep.mubr.bf16.mxu0 %v22100_v8  ;;  %14419 = vmatpush1.bf16.msra.mxu1 %v17011_v4  ;;  %v8392_v4 = vld [vmem:[%s24376_s3 + $0x15a8] sm:$0xff]  ;;  %v17058_v6 = vcombine.high %v8387_v1, %v8391_v2  ;;  %v8419_v55 = vld [vmem:[%s24376_s3 + $0x1680] sm:$0xff] }
 0x548   :  { %14450 = vmatprep.mubr.bf16.mxu1 %v22100_v8  ;;  %14092 = vmatprep.subr.bf16.mxu0 %v17018_v12  ;;  %v17049_v12 = vcombine.low %v8379_v61, %v8383_v41  ;;  %v17082_v61 = vcombine.high %v8411_v42, %v8415_v43  ;;  %v8423_v39 = vld [vmem:[%s24376_s3 + $0x16a0] sm:$0xff] }
 0x549   :  { %14420 = vmatprep.subr.bf16.mxu1 %v17020_v11  ;;  %v17060_v11 = vcombine.high %v8388_v57, %v8392_v4 }
 0x54a   :  { %14093 = vmatpush1.bf16.msra.mxu0 %v17017_v22  ;;  %v8396_v22 = vld [vmem:[%s24376_s3 + $0x15c8] sm:$0xff] }
 0x54b   :  { %14421 = vmatpush1.bf16.msra.mxu1 %v17019_v60  ;;  %14094 = vmatprep.subr.bf16.mxu0 %v17026_v13  ;;  %v8400_v60 = vld [vmem:[%s24376_s3 + $0x15e8] sm:$0xff]  ;;  %v17057_v13 = vcombine.low %v8387_v1, %v8391_v2  ;;  %v17090_v1 = vcombine.high %v8419_v55, %v8423_v39 }
 0x54c   :  { %14422 = vmatprep.subr.bf16.mxu1 %v17028_v14  ;;  %v17059_v14 = vcombine.low %v8388_v57, %v8392_v4  ;;  %v17068_v21 = vcombine.high %v8396_v22, %v8400_v60  ;;  %v8427_v57 = vld [vmem:[%s24376_s3 + $0x16c0] sm:$0xff] }
 0x54d   :  { %v8431_v4 = vld [vmem:[%s24376_s3 + $0x16e0] sm:$0xff] }
 0x54e   :  { %14095 = vmatpush1.bf16.msra.mxu0 %v17025_v20  ;;  %v8404_v20 = vld [vmem:[%s24376_s3 + $0x1608] sm:$0xff] }
 0x54f   :  { %14423 = vmatpush1.bf16.msra.mxu1 %v17027_v33  ;;  %14096 = vmatprep.subr.bf16.mxu0 %v17034_v31  ;;  %v8408_v33 = vld [vmem:[%s24376_s3 + $0x1628] sm:$0xff]  ;;  %v17065_v31 = vcombine.low %v8395_v36, %v8399_v10  ;;  %v17098_v36 = vcombine.high %v8427_v57, %v8431_v4 }
 0x550   :  { %14424 = vmatprep.subr.bf16.mxu1 %v17036_v35  ;;  %v17067_v35 = vcombine.low %v8396_v22, %v8400_v60  ;;  %v17076_v40 = vcombine.high %v8404_v20, %v8408_v33  ;;  %v8435_v22 = vld [vmem:[%s24376_s3 + $0x1700] sm:$0xff] }
 0x551   :  { %v8439_v60 = vld [vmem:[%s24376_s3 + $0x1720] sm:$0xff] }
 0x552   :  { %14097 = vmatpush1.bf16.msra.mxu0 %v17033_v50  ;;  %v8412_v50 = vld [vmem:[%s24376_s3 + $0x1648] sm:$0xff] }
 0x553   :  { %14425 = vmatpush1.bf16.msra.mxu1 %v17035_v58  ;;  %14098 = vmatprep.subr.bf16.mxu0 %v17042_v24  ;;  %v8416_v58 = vld [vmem:[%s24376_s3 + $0x1668] sm:$0xff]  ;;  %v17073_v24 = vcombine.low %v8403_v18, %v8407_v45  ;;  %v17106_v18 = vcombine.high %v8435_v22, %v8439_v60 }
 0x554   :  { %14426 = vmatprep.subr.bf16.mxu1 %v17044_v37  ;;  %v17075_v37 = vcombine.low %v8404_v20, %v8408_v33  ;;  %v17084_v41 = vcombine.high %v8412_v50, %v8416_v58  ;;  %v8443_v20 = vld [vmem:[%s24376_s3 + $0x1740] sm:$0xff] }
 0x555   :  { %v8447_v33 = vld [vmem:[%s24376_s3 + $0x1760] sm:$0xff] }
 0x556   :  { %14099 = vmatpush1.bf16.msra.mxu0 %v17041_v48  ;;  %v8420_v48 = vld [vmem:[%s24376_s3 + $0x1688] sm:$0xff] }
 0x557   :  { %14427 = vmatpush1.bf16.msra.mxu1 %v17043_v51  ;;  %14100 = vmatprep.subr.bf16.mxu0 %v17050_v63  ;;  %v8424_v51 = vld [vmem:[%s24376_s3 + $0x16a8] sm:$0xff]  ;;  %v17081_v63 = vcombine.low %v8411_v42, %v8415_v43  ;;  %v17114_v42 = vcombine.high %v8443_v20, %v8447_v33 }
 0x558   :  { %14428 = vmatprep.subr.bf16.mxu1 %v17052_v0  ;;  %v17083_v0 = vcombine.low %v8412_v50, %v8416_v58  ;;  %v17092_v2 = vcombine.high %v8420_v48, %v8424_v51  ;;  %v8451_v50 = vld [vmem:[%s24376_s3 + $0x1780] sm:$0xff] }
 0x559   :  { %v8455_v58 = vld [vmem:[%s24376_s3 + $0x17a0] sm:$0xff] }
 0x55a   :  { %14101 = vmatpush1.bf16.msra.mxu0 %v17049_v12  ;;  %v8428_v12 = vld [vmem:[%s24376_s3 + $0x16c8] sm:$0xff] }
 0x55b   :  { %14429 = vmatpush1.bf16.msra.mxu1 %v17051_v5  ;;  %14102 = vmatprep.subr.bf16.mxu0 %v17058_v6  ;;  %v8432_v5 = vld [vmem:[%s24376_s3 + $0x16e8] sm:$0xff]  ;;  %v17089_v6 = vcombine.low %v8419_v55, %v8423_v39  ;;  %v17122_v55 = vcombine.high %v8451_v50, %v8455_v58 }
 0x55c   :  { %14430 = vmatprep.subr.bf16.mxu1 %v17060_v11  ;;  %v17091_v11 = vcombine.low %v8420_v48, %v8424_v51  ;;  %v17100_v10 = vcombine.high %v8428_v12, %v8432_v5  ;;  %v8459_v48 = vld [vmem:[%s24376_s3 + $0x17c0] sm:$0xff] }
 0x55d   :  { %v8463_v51 = vld [vmem:[%s24376_s3 + $0x17e0] sm:$0xff] }
 0x55e   :  { %14103 = vmatpush1.bf16.msra.mxu0 %v17057_v13  ;;  %v8436_v13 = vld [vmem:[%s24376_s3 + $0x1708] sm:$0xff] }
 0x55f   :  { %14431 = vmatpush1.bf16.msra.mxu1 %v17059_v14  ;;  %14104 = vmatprep.subr.bf16.mxu0 %v17066_v17  ;;  %v8440_v14 = vld [vmem:[%s24376_s3 + $0x1728] sm:$0xff]  ;;  %v17097_v17 = vcombine.low %v8427_v57, %v8431_v4  ;;  %v17130_v57 = vcombine.high %v8459_v48, %v8463_v51 }
 0x560   :  { %14432 = vmatprep.subr.bf16.mxu1 %v17068_v21  ;;  %v17099_v21 = vcombine.low %v8428_v12, %v8432_v5  ;;  %v17108_v45 = vcombine.high %v8436_v13, %v8440_v14  ;;  %v8467_v12 = vld [vmem:[%s24376_s3 + $0x1800] sm:$0xff] }
 0x561   :  { %v8471_v5 = vld [vmem:[%s24376_s3 + $0x1820] sm:$0xff] }
 0x562   :  { %14105 = vmatpush1.bf16.msra.mxu0 %v17065_v31  ;;  %v8444_v31 = vld [vmem:[%s24376_s3 + $0x1748] sm:$0xff] }
 0x563   :  { %14433 = vmatpush1.bf16.msra.mxu1 %v17067_v35  ;;  %14106 = vmatprep.subr.bf16.mxu0 %v17074_v38  ;;  %v8448_v35 = vld [vmem:[%s24376_s3 + $0x1768] sm:$0xff]  ;;  %v17105_v38 = vcombine.low %v8435_v22, %v8439_v60  ;;  %v17138_v22 = vcombine.high %v8467_v12, %v8471_v5 }
 0x564   :  { %14434 = vmatprep.subr.bf16.mxu1 %v17076_v40  ;;  %v17107_v40 = vcombine.low %v8436_v13, %v8440_v14  ;;  %v17116_v43 = vcombine.high %v8444_v31, %v8448_v35  ;;  %v8475_v13 = vld [vmem:[%s24376_s3 + $0x1840] sm:$0xff] }
 0x565   :  { %v8479_v14 = vld [vmem:[%s24376_s3 + $0x1860] sm:$0xff] }
 0x566   :  { %14107 = vmatpush1.bf16.msra.mxu0 %v17073_v24  ;;  %v8452_v24 = vld [vmem:[%s24376_s3 + $0x1788] sm:$0xff] }
 0x567   :  { %14435 = vmatpush1.bf16.msra.mxu1 %v17075_v37  ;;  %14108 = vmatprep.subr.bf16.mxu0 %v17082_v61  ;;  %v8456_v37 = vld [vmem:[%s24376_s3 + $0x17a8] sm:$0xff]  ;;  %v17113_v61 = vcombine.low %v8443_v20, %v8447_v33  ;;  %v17146_v33 = vcombine.high %v8475_v13, %v8479_v14 }
 0x568   :  { %14436 = vmatprep.subr.bf16.mxu1 %v17084_v41  ;;  %v17115_v41 = vcombine.low %v8444_v31, %v8448_v35  ;;  %v17124_v39 = vcombine.high %v8452_v24, %v8456_v37  ;;  %v8483_v31 = vld [vmem:[%s24376_s3 + $0x1880] sm:$0xff] }
 0x569   :  { %v8487_v35 = vld [vmem:[%s24376_s3 + $0x18a0] sm:$0xff] }
 0x56a   :  { %14109 = vmatpush1.bf16.msra.mxu0 %v17081_v63  ;;  %v8460_v63 = vld [vmem:[%s24376_s3 + $0x17c8] sm:$0xff] }
 0x56b   :  { %14437 = vmatpush1.bf16.msra.mxu1 %v17083_v0  ;;  %14110 = vmatprep.subr.bf16.mxu0 %v17090_v1  ;;  %v8464_v0 = vld [vmem:[%s24376_s3 + $0x17e8] sm:$0xff]  ;;  %v17121_v1 = vcombine.low %v8451_v50, %v8455_v58  ;;  %v17154_v50 = vcombine.high %v8483_v31, %v8487_v35 }
 0x56c   :  { %14438 = vmatprep.subr.bf16.mxu1 %v17092_v2  ;;  %v17123_v2 = vcombine.low %v8452_v24, %v8456_v37  ;;  %v17132_v4 = vcombine.high %v8460_v63, %v8464_v0  ;;  %v8491_v24 = vld [vmem:[%s24376_s3 + $0x18c0] sm:$0xff] }
 0x56d   :  { %v8495_v37 = vld [vmem:[%s24376_s3 + $0x18e0] sm:$0xff] }
 0x56e   :  { %14111 = vmatpush1.bf16.msra.mxu0 %v17089_v6  ;;  %v8468_v6 = vld [vmem:[%s24376_s3 + $0x1808] sm:$0xff] }
 0x56f   :  { %14439 = vmatpush1.bf16.msra.mxu1 %v17091_v11  ;;  %14112 = vmatprep.subr.bf16.mxu0 %v17098_v36  ;;  %v8472_v11 = vld [vmem:[%s24376_s3 + $0x1828] sm:$0xff]  ;;  %v17129_v36 = vcombine.low %v8459_v48, %v8463_v51  ;;  %v17162_v48 = vcombine.high %v8491_v24, %v8495_v37 }
 0x570   :  { %14440 = vmatprep.subr.bf16.mxu1 %v17100_v10  ;;  %v17131_v10 = vcombine.low %v8460_v63, %v8464_v0  ;;  %v17140_v60 = vcombine.high %v8468_v6, %v8472_v11  ;;  %v17139_v20 = vcombine.low %v8468_v6, %v8472_v11  ;;  %v8499_v63 = vld [vmem:[%s24376_s3 + $0x1900] sm:$0xff] }
 0x571   :  { %v8503_v0 = vld [vmem:[%s24376_s3 + $0x1920] sm:$0xff] }
 0x572   :  { %14113 = vmatpush1.bf16.msra.mxu0 %v17097_v17  ;;  %v17137_v17 = vcombine.low %v8467_v12, %v8471_v5  ;;  %v17170_v12 = vcombine.high %v8499_v63, %v8503_v0  ;;  %v8507_v6 = vld [vmem:[%s24376_s3 + $0x1940] sm:$0xff] }
 0x573   :  { %14441 = vmatpush1.bf16.msra.mxu1 %v17099_v21  ;;  %14114 = vmatprep.subr.bf16.mxu0 %v17106_v18  ;;  %v8476_v21 = vld [vmem:[%s24376_s3 + $0x1848] sm:$0xff]  ;;  %v8511_v11 = vld [vmem:[%s24376_s3 + $0x1960] sm:$0xff] }
 0x574   :  { %14442 = vmatprep.subr.bf16.mxu1 %v17108_v45  ;;  %v8480_v18 = vld [vmem:[%s24376_s3 + $0x1868] sm:$0xff]  ;;  %v22294_v45 = vpack.c.bf16 %v20932_v49, %v20932_v49 }
 0x575   :  { %v17148_v49 = vcombine.high %v8476_v21, %v8480_v18 }
 0x576   :  { %14115 = vmatpush1.bf16.msra.mxu0 %v17105_v38  ;;  %v22304_v38 = vpack.c.bf16 %v21770_v54, %v21770_v54  ;;  %v17147_v54 = vcombine.low %v8476_v21, %v8480_v18  ;;  %v8519_v21 = vld [vmem:[%s24376_s3 + $0x19a0] sm:$0xff]  ;;  %v8516_v18 = vld [vmem:[%s24376_s3 + $0x1988] sm:$0xff] }
 0x577   :  { %14443 = vmatpush1.bf16.msra.mxu1 %v17107_v40  ;;  %14116 = vmatprep.subr.bf16.mxu0 %v17114_v42  ;;  %v8484_v40 = vld [vmem:[%s24376_s3 + $0x1888] sm:$0xff] }
 0x578   :  { %14444 = vmatprep.subr.bf16.mxu1 %v17116_v43  ;;  %v8488_v42 = vld [vmem:[%s24376_s3 + $0x18a8] sm:$0xff]  ;;  %v17145_v43 = vcombine.low %v8475_v13, %v8479_v14  ;;  %v17178_v13 = vcombine.high %v8507_v6, %v8511_v11 }
 0x579   :  { %v17156_v58 = vcombine.high %v8484_v40, %v8488_v42 }
 0x57a   :  { %14117 = vmatpush1.bf16.msra.mxu0 %v17113_v61  ;;  %v8492_v61 = vld [vmem:[%s24376_s3 + $0x18c8] sm:$0xff] }
 0x57b   :  { %14445 = vmatpush1.bf16.msra.mxu1 %v17115_v41  ;;  %14118 = vmatprep.subr.bf16.mxu0 %v17122_v55  ;;  %v8496_v41 = vld [vmem:[%s24376_s3 + $0x18e8] sm:$0xff]  ;;  %v17153_v55 = vcombine.low %v8483_v31, %v8487_v35 }
 0x57c   :  { %14446 = vmatprep.subr.bf16.mxu1 %v17124_v39  ;;  %v17155_v39 = vcombine.low %v8484_v40, %v8488_v42  ;;  %v17164_v51 = vcombine.high %v8492_v61, %v8496_v41  ;;  %v8523_v40 = vld [vmem:[%s24376_s3 + $0x19c0] sm:$0xff] }
 0x57d   :  { %v8527_v42 = vld [vmem:[%s24376_s3 + $0x19e0] sm:$0xff] }
 0x57e   :  { %14119 = vmatpush1.bf16.msra.mxu0 %v17121_v1  ;;  %v8500_v1 = vld [vmem:[%s24376_s3 + $0x1908] sm:$0xff] }
 0x57f   :  { %14447 = vmatpush1.bf16.msra.mxu1 %v17123_v2  ;;  %14120 = vmatprep.subr.bf16.mxu0 %v17130_v57  ;;  %v8504_v2 = vld [vmem:[%s24376_s3 + $0x1928] sm:$0xff]  ;;  %v17161_v57 = vcombine.low %v8491_v24, %v8495_v37  ;;  %v17194_v24 = vcombine.high %v8523_v40, %v8527_v42 }
 0x580   :  { %14448 = vmatprep.subr.bf16.mxu1 %v17132_v4  ;;  %v17163_v4 = vcombine.low %v8492_v61, %v8496_v41  ;;  %v17172_v5 = vcombine.high %v8500_v1, %v8504_v2  ;;  %v8531_v61 = vld [vmem:[%s24376_s3 + $0x1a00] sm:$0xff] }
 0x581   :  { %v8535_v41 = vld [vmem:[%s24376_s3 + $0x1a20] sm:$0xff] }
 0x582   :  { %14121 = vmatpush1.bf16.msra.mxu0 %v17129_v36  ;;  %v8508_v36 = vld [vmem:[%s24376_s3 + $0x1948] sm:$0xff] }
 0x583   :  { %14449 = vmatpush1.bf16.msra.mxu1 %v17131_v10  ;;  %14131 = vmatprep.subr.bf16.mxu0 %v17138_v22  ;;  %v8512_v10 = vld [vmem:[%s24376_s3 + $0x1968] sm:$0xff]  ;;  %v17169_v22 = vcombine.low %v8499_v63, %v8503_v0  ;;  %v17202_v63 = vcombine.high %v8531_v61, %v8535_v41 }
 0x584   :  { %14459 = vmatprep.subr.bf16.mxu1 %v17140_v60  ;;  %v17171_v60 = vcombine.low %v8500_v1, %v8504_v2  ;;  %v17180_v14 = vcombine.high %v8508_v36, %v8512_v10  ;;  %v17179_v31 = vcombine.low %v8508_v36, %v8512_v10  ;;  %v8539_v1 = vld [vmem:[%s24376_s3 + $0x1a40] sm:$0xff] }
 0x585   :  { %14123 = vmatmul.mubr.bf16.vlgmr.msra.gmra.mrb[16].mxu0 %v22294_v45  ;;  %v8543_v2 = vld [vmem:[%s24376_s3 + $0x1a60] sm:$0xff] }
 0x586   :  { %14451 = vmatmul.mubr.bf16.vlgmr.msra.gmra.mrb[16].mxu1 %v22294_v45  ;;  %14132 = vmatpush1.bf16.msra.mxu0 %v17137_v17  ;;  %v8515_v17 = vld [vmem:[%s24376_s3 + $0x1980] sm:$0xff] }
 0x587   :  { %14163 = vmatprep.mubr.bf16.mxu0 %v22304_v38  ;;  %14460 = vmatpush1.bf16.msra.mxu1 %v17139_v20  ;;  %v8520_v20 = vld [vmem:[%s24376_s3 + $0x19a8] sm:$0xff]  ;;  %v17186_v35 = vcombine.high %v8515_v17, %v8519_v21  ;;  %v8547_v36 = vld [vmem:[%s24376_s3 + $0x1a80] sm:$0xff] }
 0x588   :  { %14491 = vmatprep.mubr.bf16.mxu1 %v22304_v38  ;;  %14133 = vmatprep.subr.bf16.mxu0 %v17146_v33  ;;  %v17177_v33 = vcombine.low %v8507_v6, %v8511_v11  ;;  %v17210_v6 = vcombine.high %v8539_v1, %v8543_v2  ;;  %v8551_v10 = vld [vmem:[%s24376_s3 + $0x1aa0] sm:$0xff] }
 0x589   :  { %14461 = vmatprep.subr.bf16.mxu1 %v17148_v49  ;;  %v17188_v49 = vcombine.high %v8516_v18, %v8520_v20 }
 0x58a   :  { %14134 = vmatpush1.bf16.msra.mxu0 %v17145_v43  ;;  %v8524_v43 = vld [vmem:[%s24376_s3 + $0x19c8] sm:$0xff] }
 0x58b   :  { %14462 = vmatpush1.bf16.msra.mxu1 %v17147_v54  ;;  %14135 = vmatprep.subr.bf16.mxu0 %v17154_v50  ;;  %v8528_v54 = vld [vmem:[%s24376_s3 + $0x19e8] sm:$0xff]  ;;  %v17185_v50 = vcombine.low %v8515_v17, %v8519_v21  ;;  %v17218_v17 = vcombine.high %v8547_v36, %v8551_v10 }
 0x58c   :  { %14463 = vmatprep.subr.bf16.mxu1 %v17156_v58  ;;  %v17187_v58 = vcombine.low %v8516_v18, %v8520_v20  ;;  %v17196_v37 = vcombine.high %v8524_v43, %v8528_v54  ;;  %v8555_v18 = vld [vmem:[%s24376_s3 + $0x1ac0] sm:$0xff] }
 0x58d   :  { %v8559_v20 = vld [vmem:[%s24376_s3 + $0x1ae0] sm:$0xff] }
 0x58e   :  { %14136 = vmatpush1.bf16.msra.mxu0 %v17153_v55  ;;  %v8532_v55 = vld [vmem:[%s24376_s3 + $0x1a08] sm:$0xff] }
 0x58f   :  { %14464 = vmatpush1.bf16.msra.mxu1 %v17155_v39  ;;  %14137 = vmatprep.subr.bf16.mxu0 %v17162_v48  ;;  %v8536_v39 = vld [vmem:[%s24376_s3 + $0x1a28] sm:$0xff]  ;;  %v17193_v48 = vcombine.low %v8523_v40, %v8527_v42  ;;  %v17226_v40 = vcombine.high %v8555_v18, %v8559_v20 }
 0x590   :  { %14465 = vmatprep.subr.bf16.mxu1 %v17164_v51  ;;  %v17195_v51 = vcombine.low %v8524_v43, %v8528_v54  ;;  %v17204_v0 = vcombine.high %v8532_v55, %v8536_v39  ;;  %v8563_v43 = vld [vmem:[%s24376_s3 + $0x1b00] sm:$0xff] }
 0x591   :  { %v8567_v54 = vld [vmem:[%s24376_s3 + $0x1b20] sm:$0xff] }
 0x592   :  { %14138 = vmatpush1.bf16.msra.mxu0 %v17161_v57  ;;  %v8540_v57 = vld [vmem:[%s24376_s3 + $0x1a48] sm:$0xff] }
 0x593   :  { %14466 = vmatpush1.bf16.msra.mxu1 %v17163_v4  ;;  %14139 = vmatprep.subr.bf16.mxu0 %v17170_v12  ;;  %v8544_v4 = vld [vmem:[%s24376_s3 + $0x1a68] sm:$0xff]  ;;  %v17201_v12 = vcombine.low %v8531_v61, %v8535_v41  ;;  %v17234_v61 = vcombine.high %v8563_v43, %v8567_v54 }
 0x594   :  { %14467 = vmatprep.subr.bf16.mxu1 %v17172_v5  ;;  %v17203_v5 = vcombine.low %v8532_v55, %v8536_v39  ;;  %v17212_v11 = vcombine.high %v8540_v57, %v8544_v4  ;;  %v8571_v55 = vld [vmem:[%s24376_s3 + $0x1b40] sm:$0xff] }
 0x595   :  { %v8575_v39 = vld [vmem:[%s24376_s3 + $0x1b60] sm:$0xff] }
 0x596   :  { %14140 = vmatpush1.bf16.msra.mxu0 %v17169_v22  ;;  %v8548_v22 = vld [vmem:[%s24376_s3 + $0x1a88] sm:$0xff] }
 0x597   :  { %14468 = vmatpush1.bf16.msra.mxu1 %v17171_v60  ;;  %14141 = vmatprep.subr.bf16.mxu0 %v17178_v13  ;;  %v8552_v60 = vld [vmem:[%s24376_s3 + $0x1aa8] sm:$0xff]  ;;  %v17209_v13 = vcombine.low %v8539_v1, %v8543_v2  ;;  %v17242_v1 = vcombine.high %v8571_v55, %v8575_v39 }
 0x598   :  { %14469 = vmatprep.subr.bf16.mxu1 %v17180_v14  ;;  %v17211_v14 = vcombine.low %v8540_v57, %v8544_v4  ;;  %v17220_v21 = vcombine.high %v8548_v22, %v8552_v60  ;;  %v8579_v57 = vld [vmem:[%s24376_s3 + $0x1b80] sm:$0xff] }
 0x599   :  { %v8583_v4 = vld [vmem:[%s24376_s3 + $0x1ba0] sm:$0xff] }
 0x59a   :  { %14142 = vmatpush1.bf16.msra.mxu0 %v17177_v33  ;;  %v8556_v33 = vld [vmem:[%s24376_s3 + $0x1ac8] sm:$0xff] }
 0x59b   :  { %14470 = vmatpush1.bf16.msra.mxu1 %v17179_v31  ;;  %14143 = vmatprep.subr.bf16.mxu0 %v17186_v35  ;;  %v8560_v31 = vld [vmem:[%s24376_s3 + $0x1ae8] sm:$0xff]  ;;  %v17217_v35 = vcombine.low %v8547_v36, %v8551_v10  ;;  %v17250_v36 = vcombine.high %v8579_v57, %v8583_v4 }
 0x59c   :  { %14471 = vmatprep.subr.bf16.mxu1 %v17188_v49  ;;  %v17219_v49 = vcombine.low %v8548_v22, %v8552_v60  ;;  %v17228_v42 = vcombine.high %v8556_v33, %v8560_v31  ;;  %v8587_v22 = vld [vmem:[%s24376_s3 + $0x1bc0] sm:$0xff] }
 0x59d   :  { %v8591_v60 = vld [vmem:[%s24376_s3 + $0x1be0] sm:$0xff] }
 0x59e   :  { %14144 = vmatpush1.bf16.msra.mxu0 %v17185_v50  ;;  %v8564_v50 = vld [vmem:[%s24376_s3 + $0x1b08] sm:$0xff] }
 0x59f   :  { %14472 = vmatpush1.bf16.msra.mxu1 %v17187_v58  ;;  %14145 = vmatprep.subr.bf16.mxu0 %v17194_v24  ;;  %v8568_v58 = vld [vmem:[%s24376_s3 + $0x1b28] sm:$0xff]  ;;  %v17225_v24 = vcombine.low %v8555_v18, %v8559_v20  ;;  %v17258_v18 = vcombine.high %v8587_v22, %v8591_v60 }
 0x5a0   :  { %14473 = vmatprep.subr.bf16.mxu1 %v17196_v37  ;;  %v17227_v37 = vcombine.low %v8556_v33, %v8560_v31  ;;  %v17236_v41 = vcombine.high %v8564_v50, %v8568_v58  ;;  %v8595_v33 = vld [vmem:[%s24376_s3 + $0x1c00] sm:$0xff] }
 0x5a1   :  { %v8599_v31 = vld [vmem:[%s24376_s3 + $0x1c20] sm:$0xff] }
 0x5a2   :  { %14146 = vmatpush1.bf16.msra.mxu0 %v17193_v48  ;;  %v8572_v48 = vld [vmem:[%s24376_s3 + $0x1b48] sm:$0xff] }
 0x5a3   :  { %14474 = vmatpush1.bf16.msra.mxu1 %v17195_v51  ;;  %14147 = vmatprep.subr.bf16.mxu0 %v17202_v63  ;;  %v8576_v51 = vld [vmem:[%s24376_s3 + $0x1b68] sm:$0xff]  ;;  %v17233_v63 = vcombine.low %v8563_v43, %v8567_v54  ;;  %v17266_v43 = vcombine.high %v8595_v33, %v8599_v31 }
 0x5a4   :  { %14475 = vmatprep.subr.bf16.mxu1 %v17204_v0  ;;  %v17235_v0 = vcombine.low %v8564_v50, %v8568_v58  ;;  %v17244_v2 = vcombine.high %v8572_v48, %v8576_v51  ;;  %v8603_v50 = vld [vmem:[%s24376_s3 + $0x1c40] sm:$0xff] }
 0x5a5   :  { %v8607_v58 = vld [vmem:[%s24376_s3 + $0x1c60] sm:$0xff] }
 0x5a6   :  { %14148 = vmatpush1.bf16.msra.mxu0 %v17201_v12  ;;  %v8580_v12 = vld [vmem:[%s24376_s3 + $0x1b88] sm:$0xff] }
 0x5a7   :  { %14476 = vmatpush1.bf16.msra.mxu1 %v17203_v5  ;;  %14149 = vmatprep.subr.bf16.mxu0 %v17210_v6  ;;  %v8584_v5 = vld [vmem:[%s24376_s3 + $0x1ba8] sm:$0xff]  ;;  %v17241_v6 = vcombine.low %v8571_v55, %v8575_v39  ;;  %v17274_v39 = vcombine.high %v8603_v50, %v8607_v58 }
 0x5a8   :  { %14477 = vmatprep.subr.bf16.mxu1 %v17212_v11  ;;  %v17243_v11 = vcombine.low %v8572_v48, %v8576_v51  ;;  %v17252_v10 = vcombine.high %v8580_v12, %v8584_v5  ;;  %v8611_v48 = vld [vmem:[%s24376_s3 + $0x1c80] sm:$0xff] }
 0x5a9   :  { %v8615_v51 = vld [vmem:[%s24376_s3 + $0x1ca0] sm:$0xff] }
 0x5aa   :  { %14150 = vmatpush1.bf16.msra.mxu0 %v17209_v13  ;;  %v8588_v13 = vld [vmem:[%s24376_s3 + $0x1bc8] sm:$0xff] }
 0x5ab   :  { %14478 = vmatpush1.bf16.msra.mxu1 %v17211_v14  ;;  %14151 = vmatprep.subr.bf16.mxu0 %v17218_v17  ;;  %v8592_v14 = vld [vmem:[%s24376_s3 + $0x1be8] sm:$0xff]  ;;  %v17249_v17 = vcombine.low %v8579_v57, %v8583_v4  ;;  %v17282_v57 = vcombine.high %v8611_v48, %v8615_v51 }
 0x5ac   :  { %14479 = vmatprep.subr.bf16.mxu1 %v17220_v21  ;;  %v17251_v21 = vcombine.low %v8580_v12, %v8584_v5  ;;  %v17260_v20 = vcombine.high %v8588_v13, %v8592_v14  ;;  %v8619_v12 = vld [vmem:[%s24376_s3 + $0x1cc0] sm:$0xff] }
 0x5ad   :  { %v8623_v5 = vld [vmem:[%s24376_s3 + $0x1ce0] sm:$0xff] }
 0x5ae   :  { %14152 = vmatpush1.bf16.msra.mxu0 %v17217_v35  ;;  %v8596_v35 = vld [vmem:[%s24376_s3 + $0x1c08] sm:$0xff] }
 0x5af   :  { %14480 = vmatpush1.bf16.msra.mxu1 %v17219_v49  ;;  %14153 = vmatprep.subr.bf16.mxu0 %v17226_v40  ;;  %v8600_v49 = vld [vmem:[%s24376_s3 + $0x1c28] sm:$0xff]  ;;  %v17257_v40 = vcombine.low %v8587_v22, %v8591_v60  ;;  %v17290_v22 = vcombine.high %v8619_v12, %v8623_v5 }
 0x5b0   :  { %14481 = vmatprep.subr.bf16.mxu1 %v17228_v42  ;;  %v17259_v42 = vcombine.low %v8588_v13, %v8592_v14  ;;  %v17268_v54 = vcombine.high %v8596_v35, %v8600_v49  ;;  %v17267_v55 = vcombine.low %v8596_v35, %v8600_v49  ;;  %v8627_v13 = vld [vmem:[%s24376_s3 + $0x1d00] sm:$0xff] }
 0x5b1   :  { %v8631_v14 = vld [vmem:[%s24376_s3 + $0x1d20] sm:$0xff] }
 0x5b2   :  { %14154 = vmatpush1.bf16.msra.mxu0 %v17225_v24  ;;  %v17265_v24 = vcombine.low %v8595_v33, %v8599_v31  ;;  %v17298_v33 = vcombine.high %v8627_v13, %v8631_v14  ;;  %v8635_v35 = vld [vmem:[%s24376_s3 + $0x1d40] sm:$0xff] }
 0x5b3   :  { %14482 = vmatpush1.bf16.msra.mxu1 %v17227_v37  ;;  %14155 = vmatprep.subr.bf16.mxu0 %v17234_v61  ;;  %v8604_v37 = vld [vmem:[%s24376_s3 + $0x1c48] sm:$0xff]  ;;  %v8639_v49 = vld [vmem:[%s24376_s3 + $0x1d60] sm:$0xff] }
 0x5b4   :  { %14483 = vmatprep.subr.bf16.mxu1 %v17236_v41  ;;  %v8608_v61 = vld [vmem:[%s24376_s3 + $0x1c68] sm:$0xff]  ;;  %v22498_v41 = vpack.c.bf16 %v21756_v34, %v21756_v34 }
 0x5b5   :  { %v17276_v34 = vcombine.high %v8604_v37, %v8608_v61 }
 0x5b6   :  { %14156 = vmatpush1.bf16.msra.mxu0 %v17233_v63  ;;  %v22508_v63 = vpack.c.bf16 %v21774_v30, %v21774_v30  ;;  %v17275_v30 = vcombine.low %v8604_v37, %v8608_v61  ;;  %v8647_v37 = vld [vmem:[%s24376_s3 + $0x1da0] sm:$0xff]  ;;  %v8644_v61 = vld [vmem:[%s24376_s3 + $0x1d88] sm:$0xff] }
 0x5b7   :  { %14484 = vmatpush1.bf16.msra.mxu1 %v17235_v0  ;;  %14157 = vmatprep.subr.bf16.mxu0 %v17242_v1  ;;  %v8612_v0 = vld [vmem:[%s24376_s3 + $0x1c88] sm:$0xff] }
 0x5b8   :  { %14485 = vmatprep.subr.bf16.mxu1 %v17244_v2  ;;  %v8616_v1 = vld [vmem:[%s24376_s3 + $0x1ca8] sm:$0xff]  ;;  %v17273_v2 = vcombine.low %v8603_v50, %v8607_v58  ;;  %v17306_v50 = vcombine.high %v8635_v35, %v8639_v49 }
 0x5b9   :  { %v17284_v4 = vcombine.high %v8612_v0, %v8616_v1 }
 0x5ba   :  { %14158 = vmatpush1.bf16.msra.mxu0 %v17241_v6  ;;  %v8620_v6 = vld [vmem:[%s24376_s3 + $0x1cc8] sm:$0xff] }
 0x5bb   :  { %14486 = vmatpush1.bf16.msra.mxu1 %v17243_v11  ;;  %14159 = vmatprep.subr.bf16.mxu0 %v17250_v36  ;;  %v8624_v11 = vld [vmem:[%s24376_s3 + $0x1ce8] sm:$0xff]  ;;  %v17281_v36 = vcombine.low %v8611_v48, %v8615_v51 }
 0x5bc   :  { %14487 = vmatprep.subr.bf16.mxu1 %v17252_v10  ;;  %v17283_v10 = vcombine.low %v8612_v0, %v8616_v1  ;;  %v17292_v60 = vcombine.high %v8620_v6, %v8624_v11  ;;  %v8651_v0 = vld [vmem:[%s24376_s3 + $0x1dc0] sm:$0xff] }
 0x5bd   :  { %v8655_v1 = vld [vmem:[%s24376_s3 + $0x1de0] sm:$0xff] }
 0x5be   :  { %14160 = vmatpush1.bf16.msra.mxu0 %v17249_v17  ;;  %v8628_v17 = vld [vmem:[%s24376_s3 + $0x1d08] sm:$0xff] }
 0x5bf   :  { %14488 = vmatpush1.bf16.msra.mxu1 %v17251_v21  ;;  %14161 = vmatprep.subr.bf16.mxu0 %v17258_v18  ;;  %v8632_v21 = vld [vmem:[%s24376_s3 + $0x1d28] sm:$0xff]  ;;  %v17289_v18 = vcombine.low %v8619_v12, %v8623_v5  ;;  %v17322_v12 = vcombine.high %v8651_v0, %v8655_v1 }
 0x5c0   :  { %14489 = vmatprep.subr.bf16.mxu1 %v17260_v20  ;;  %v17291_v20 = vcombine.low %v8620_v6, %v8624_v11  ;;  %v17300_v31 = vcombine.high %v8628_v17, %v8632_v21  ;;  %v8659_v6 = vld [vmem:[%s24376_s3 + $0x1e00] sm:$0xff] }
 0x5c1   :  { %v8663_v11 = vld [vmem:[%s24376_s3 + $0x1e20] sm:$0xff] }
 0x5c2   :  { %14162 = vmatpush1.bf16.msra.mxu0 %v17257_v40  ;;  %v8636_v40 = vld [vmem:[%s24376_s3 + $0x1d48] sm:$0xff] }
 0x5c3   :  { %14490 = vmatpush1.bf16.msra.mxu1 %v17259_v42  ;;  %14172 = vmatprep.subr.bf16.mxu0 %v17266_v43  ;;  %v8640_v42 = vld [vmem:[%s24376_s3 + $0x1d68] sm:$0xff]  ;;  %v17297_v43 = vcombine.low %v8627_v13, %v8631_v14  ;;  %v17330_v13 = vcombine.high %v8659_v6, %v8663_v11 }
 0x5c4   :  { %14500 = vmatprep.subr.bf16.mxu1 %v17268_v54  ;;  %v17299_v54 = vcombine.low %v8628_v17, %v8632_v21  ;;  %v17308_v58 = vcombine.high %v8636_v40, %v8640_v42  ;;  %v17307_v48 = vcombine.low %v8636_v40, %v8640_v42  ;;  %v8667_v17 = vld [vmem:[%s24376_s3 + $0x1e40] sm:$0xff] }
 0x5c5   :  { %14164 = vmatmul.mubr.bf16.vlgmr.msra.gmra.mrb[16].mxu0 %v22498_v41  ;;  %v8671_v21 = vld [vmem:[%s24376_s3 + $0x1e60] sm:$0xff] }
 0x5c6   :  { %14492 = vmatmul.mubr.bf16.vlgmr.msra.gmra.mrb[16].mxu1 %v22498_v41  ;;  %14173 = vmatpush1.bf16.msra.mxu0 %v17265_v24  ;;  %v8643_v24 = vld [vmem:[%s24376_s3 + $0x1d80] sm:$0xff] }
 0x5c7   :  { %14204 = vmatprep.mubr.bf16.mxu0 %v22508_v63  ;;  %14501 = vmatpush1.bf16.msra.mxu1 %v17267_v55  ;;  %v8648_v55 = vld [vmem:[%s24376_s3 + $0x1da8] sm:$0xff]  ;;  %v17314_v51 = vcombine.high %v8643_v24, %v8647_v37  ;;  %v8675_v40 = vld [vmem:[%s24376_s3 + $0x1e80] sm:$0xff] }
 0x5c8   :  { %14532 = vmatprep.mubr.bf16.mxu1 %v22508_v63  ;;  %14174 = vmatprep.subr.bf16.mxu0 %v17274_v39  ;;  %v17305_v39 = vcombine.low %v8635_v35, %v8639_v49  ;;  %v17338_v35 = vcombine.high %v8667_v17, %v8671_v21  ;;  %v8679_v42 = vld [vmem:[%s24376_s3 + $0x1ea0] sm:$0xff] }
 0x5c9   :  { %14502 = vmatprep.subr.bf16.mxu1 %v17276_v34  ;;  %v17316_v34 = vcombine.high %v8644_v61, %v8648_v55 }
 0x5ca   :  { %14175 = vmatpush1.bf16.msra.mxu0 %v17273_v2  ;;  %v8652_v2 = vld [vmem:[%s24376_s3 + $0x1dc8] sm:$0xff] }
 0x5cb   :  { %14503 = vmatpush1.bf16.msra.mxu1 %v17275_v30  ;;  %14176 = vmatprep.subr.bf16.mxu0 %v17282_v57  ;;  %v8656_v30 = vld [vmem:[%s24376_s3 + $0x1de8] sm:$0xff]  ;;  %v17313_v57 = vcombine.low %v8643_v24, %v8647_v37  ;;  %v17346_v24 = vcombine.high %v8675_v40, %v8679_v42 }
 0x5cc   :  { %14504 = vmatprep.subr.bf16.mxu1 %v17284_v4  ;;  %v17315_v4 = vcombine.low %v8644_v61, %v8648_v55  ;;  %v17324_v5 = vcombine.high %v8652_v2, %v8656_v30  ;;  %v8683_v61 = vld [vmem:[%s24376_s3 + $0x1ec0] sm:$0xff] }
 0x5cd   :  { %v8687_v55 = vld [vmem:[%s24376_s3 + $0x1ee0] sm:$0xff] }
 0x5ce   :  { %14177 = vmatpush1.bf16.msra.mxu0 %v17281_v36  ;;  %v8660_v36 = vld [vmem:[%s24376_s3 + $0x1e08] sm:$0xff] }
 0x5cf   :  { %14505 = vmatpush1.bf16.msra.mxu1 %v17283_v10  ;;  %14178 = vmatprep.subr.bf16.mxu0 %v17290_v22  ;;  %v8664_v10 = vld [vmem:[%s24376_s3 + $0x1e28] sm:$0xff]  ;;  %v17321_v22 = vcombine.low %v8651_v0, %v8655_v1  ;;  %v17354_v0 = vcombine.high %v8683_v61, %v8687_v55 }
 0x5d0   :  { %14506 = vmatprep.subr.bf16.mxu1 %v17292_v60  ;;  %v17323_v60 = vcombine.low %v8652_v2, %v8656_v30  ;;  %v17332_v14 = vcombine.high %v8660_v36, %v8664_v10  ;;  %v8691_v2 = vld [vmem:[%s24376_s3 + $0x1f00] sm:$0xff] }
 0x5d1   :  { %v8695_v30 = vld [vmem:[%s24376_s3 + $0x1f20] sm:$0xff] }
 0x5d2   :  { %14179 = vmatpush1.bf16.msra.mxu0 %v17289_v18  ;;  %v8668_v18 = vld [vmem:[%s24376_s3 + $0x1e48] sm:$0xff] }
 0x5d3   :  { %14507 = vmatpush1.bf16.msra.mxu1 %v17291_v20  ;;  %14180 = vmatprep.subr.bf16.mxu0 %v17298_v33  ;;  %v8672_v20 = vld [vmem:[%s24376_s3 + $0x1e68] sm:$0xff]  ;;  %v17329_v33 = vcombine.low %v8659_v6, %v8663_v11  ;;  %v17362_v6 = vcombine.high %v8691_v2, %v8695_v30 }
 0x5d4   :  { %14508 = vmatprep.subr.bf16.mxu1 %v17300_v31  ;;  %v17331_v31 = vcombine.low %v8660_v36, %v8664_v10  ;;  %v17340_v49 = vcombine.high %v8668_v18, %v8672_v20  ;;  %v8699_v36 = vld [vmem:[%s24376_s3 + $0x1f40] sm:$0xff] }
 0x5d5   :  { %v8703_v10 = vld [vmem:[%s24376_s3 + $0x1f60] sm:$0xff] }
 0x5d6   :  { %14181 = vmatpush1.bf16.msra.mxu0 %v17297_v43  ;;  %v8676_v43 = vld [vmem:[%s24376_s3 + $0x1e88] sm:$0xff] }
 0x5d7   :  { %14509 = vmatpush1.bf16.msra.mxu1 %v17299_v54  ;;  %14182 = vmatprep.subr.bf16.mxu0 %v17306_v50  ;;  %v8680_v54 = vld [vmem:[%s24376_s3 + $0x1ea8] sm:$0xff]  ;;  %v17337_v50 = vcombine.low %v8667_v17, %v8671_v21  ;;  %v17370_v17 = vcombine.high %v8699_v36, %v8703_v10 }
 0x5d8   :  { %14510 = vmatprep.subr.bf16.mxu1 %v17308_v58  ;;  %v17339_v58 = vcombine.low %v8668_v18, %v8672_v20  ;;  %v17348_v37 = vcombine.high %v8676_v43, %v8680_v54  ;;  %v8707_v18 = vld [vmem:[%s24376_s3 + $0x1f80] sm:$0xff] }
 0x5d9   :  { %v8711_v20 = vld [vmem:[%s24376_s3 + $0x1fa0] sm:$0xff] }
 0x5da   :  { %14183 = vmatpush1.bf16.msra.mxu0 %v17305_v39  ;;  %v8684_v39 = vld [vmem:[%s24376_s3 + $0x1ec8] sm:$0xff] }
 0x5db   :  { %14511 = vmatpush1.bf16.msra.mxu1 %v17307_v48  ;;  %14184 = vmatprep.subr.bf16.mxu0 %v17314_v51  ;;  %v8688_v48 = vld [vmem:[%s24376_s3 + $0x1ee8] sm:$0xff]  ;;  %v17345_v51 = vcombine.low %v8675_v40, %v8679_v42  ;;  %v17378_v40 = vcombine.high %v8707_v18, %v8711_v20 }
 0x5dc   :  { %14512 = vmatprep.subr.bf16.mxu1 %v17316_v34  ;;  %v17347_v34 = vcombine.low %v8676_v43, %v8680_v54  ;;  %v17356_v1 = vcombine.high %v8684_v39, %v8688_v48  ;;  %v8715_v43 = vld [vmem:[%s24376_s3 + $0x1fc0] sm:$0xff] }
 0x5dd   :  { %v8719_v54 = vld [vmem:[%s24376_s3 + $0x1fe0] sm:$0xff] }
 0x5de   :  { %14185 = vmatpush1.bf16.msra.mxu0 %v17313_v57  ;;  %v8692_v57 = vld [vmem:[%s24376_s3 + $0x1f08] sm:$0xff] }
 0x5df   :  { %14513 = vmatpush1.bf16.msra.mxu1 %v17315_v4  ;;  %14186 = vmatprep.subr.bf16.mxu0 %v17322_v12  ;;  %v8696_v4 = vld [vmem:[%s24376_s3 + $0x1f28] sm:$0xff]  ;;  %v17353_v12 = vcombine.low %v8683_v61, %v8687_v55  ;;  %v17386_v61 = vcombine.high %v8715_v43, %v8719_v54 }
 0x5e0   :  { %14514 = vmatprep.subr.bf16.mxu1 %v17324_v5  ;;  %v17355_v5 = vcombine.low %v8684_v39, %v8688_v48  ;;  %v17364_v11 = vcombine.high %v8692_v57, %v8696_v4  ;;  %v7701_v39 = vld [vmem:[%s24376_s3 + $0x10] sm:$0xff] }
 0x5e1   :  { %v7705_v48 = vld [vmem:[%s24376_s3 + $0x30] sm:$0xff] }
 0x5e2   :  { %14187 = vmatpush1.bf16.msra.mxu0 %v17321_v22  ;;  %v8700_v22 = vld [vmem:[%s24376_s3 + $0x1f48] sm:$0xff] }
 0x5e3   :  { %14515 = vmatpush1.bf16.msra.mxu1 %v17323_v60  ;;  %14188 = vmatprep.subr.bf16.mxu0 %v17330_v13  ;;  %v8704_v60 = vld [vmem:[%s24376_s3 + $0x1f68] sm:$0xff]  ;;  %v17361_v13 = vcombine.low %v8691_v2, %v8695_v30  ;;  %v16374_v2 = vcombine.high %v7701_v39, %v7705_v48 }
 0x5e4   :  { %14516 = vmatprep.subr.bf16.mxu1 %v17332_v14  ;;  %v17363_v14 = vcombine.low %v8692_v57, %v8696_v4  ;;  %v17372_v21 = vcombine.high %v8700_v22, %v8704_v60  ;;  %v7709_v57 = vld [vmem:[%s24376_s3 + $0x50] sm:$0xff] }
 0x5e5   :  { %v7713_v4 = vld [vmem:[%s24376_s3 + $0x70] sm:$0xff] }
 0x5e6   :  { %14189 = vmatpush1.bf16.msra.mxu0 %v17329_v33  ;;  %v8708_v33 = vld [vmem:[%s24376_s3 + $0x1f88] sm:$0xff] }
 0x5e7   :  { %14517 = vmatpush1.bf16.msra.mxu1 %v17331_v31  ;;  %14190 = vmatprep.subr.bf16.mxu0 %v17338_v35  ;;  %v8712_v31 = vld [vmem:[%s24376_s3 + $0x1fa8] sm:$0xff]  ;;  %v17369_v35 = vcombine.low %v8699_v36, %v8703_v10  ;;  %v16382_v10 = vcombine.high %v7709_v57, %v7713_v4 }
 0x5e8   :  { %14518 = vmatprep.subr.bf16.mxu1 %v17340_v49  ;;  %v17371_v49 = vcombine.low %v8700_v22, %v8704_v60  ;;  %v17380_v42 = vcombine.high %v8708_v33, %v8712_v31  ;;  %v7717_v22 = vld [vmem:[%s24376_s3 + $0x90] sm:$0xff] }
 0x5e9   :  { %v7721_v60 = vld [vmem:[%s24376_s3 + $0xb0] sm:$0xff] }
 0x5ea   :  { %14191 = vmatpush1.bf16.msra.mxu0 %v17337_v50  ;;  %v8716_v50 = vld [vmem:[%s24376_s3 + $0x1fc8] sm:$0xff] }
 0x5eb   :  { %14519 = vmatpush1.bf16.msra.mxu1 %v17339_v58  ;;  %14192 = vmatprep.subr.bf16.mxu0 %v17346_v24  ;;  %v8720_v58 = vld [vmem:[%s24376_s3 + $0x1fe8] sm:$0xff]  ;;  %v17377_v24 = vcombine.low %v8707_v18, %v8711_v20  ;;  %v16390_v18 = vcombine.high %v7717_v22, %v7721_v60 }
 0x5ec   :  { %14520 = vmatprep.subr.bf16.mxu1 %v17348_v37  ;;  %v17379_v37 = vcombine.low %v8708_v33, %v8712_v31  ;;  %v17388_v55 = vcombine.high %v8716_v50, %v8720_v58  ;;  %v7725_v33 = vld [vmem:[%s24376_s3 + $0xd0] sm:$0xff] }
 0x5ed   :  { %v7729_v31 = vld [vmem:[%s24376_s3 + $0xf0] sm:$0xff] }
 0x5ee   :  { %14193 = vmatpush1.bf16.msra.mxu0 %v17345_v51  ;;  %v7702_v51 = vld [vmem:[%s24376_s3 + $0x18] sm:$0xff] }
 0x5ef   :  { %14521 = vmatpush1.bf16.msra.mxu1 %v17347_v34  ;;  %14194 = vmatprep.subr.bf16.mxu0 %v17354_v0  ;;  %v7706_v34 = vld [vmem:[%s24376_s3 + $0x38] sm:$0xff]  ;;  %v17385_v0 = vcombine.low %v8715_v43, %v8719_v54  ;;  %v7733_v54 = vld [vmem:[%s24376_s3 + $0x110] sm:$0xff] }
 0x5f0   :  { %14522 = vmatprep.subr.bf16.mxu1 %v17356_v1  ;;  %v17387_v1 = vcombine.low %v8716_v50, %v8720_v58  ;;  %v16376_v30 = vcombine.high %v7702_v51, %v7706_v34  ;;  %v16375_v36 = vcombine.low %v7702_v51, %v7706_v34  ;;  %v7737_v50 = vld [vmem:[%s24376_s3 + $0x130] sm:$0xff]  ;;  %v7734_v58 = vld [vmem:[%s24376_s3 + $0x118] sm:$0xff] }
 0x5f1   :  { %v7745_v51 = vld [vmem:[%s24376_s3 + $0x170] sm:$0xff]  ;;  %v7742_v34 = vld [vmem:[%s24376_s3 + $0x158] sm:$0xff] }
 0x5f2   :  { %14195 = vmatpush1.bf16.msra.mxu0 %v17353_v12  ;;  %v16373_v12 = vcombine.low %v7701_v39, %v7705_v48  ;;  %v7741_v48 = vld [vmem:[%s24376_s3 + $0x150] sm:$0xff] }
 0x5f3   :  { %14523 = vmatpush1.bf16.msra.mxu1 %v17355_v5  ;;  %14196 = vmatprep.subr.bf16.mxu0 %v17362_v6  ;;  %v7710_v5 = vld [vmem:[%s24376_s3 + $0x58] sm:$0xff] }
 0x5f4   :  { %14524 = vmatprep.subr.bf16.mxu1 %v17364_v11  ;;  %v7714_v6 = vld [vmem:[%s24376_s3 + $0x78] sm:$0xff]  ;;  %v22702_v11 = vpack.c.bf16 %v21767_v46, %v21767_v46 }
 0x5f5   :  { %v7718_v46 = vld [vmem:[%s24376_s3 + $0x98] sm:$0xff] }
 0x5f6   :  { %14197 = vmatpush1.bf16.msra.mxu0 %v17361_v13  ;;  %v16384_v13 = vcombine.high %v7710_v5, %v7714_v6 }
 0x5f7   :  { %14525 = vmatpush1.bf16.msra.mxu1 %v17363_v14  ;;  %14198 = vmatprep.subr.bf16.mxu0 %v17370_v17  ;;  %v7722_v14 = vld [vmem:[%s24376_s3 + $0xb8] sm:$0xff]  ;;  %v16381_v17 = vcombine.low %v7709_v57, %v7713_v4  ;;  %v7749_v4 = vld [vmem:[%s24376_s3 + $0x190] sm:$0xff] }
 0x5f8   :  { %14526 = vmatprep.subr.bf16.mxu1 %v17372_v21  ;;  %v16383_v21 = vcombine.low %v7710_v5, %v7714_v6  ;;  %v16392_v20 = vcombine.high %v7718_v46, %v7722_v14  ;;  %v7750_v5 = vld [vmem:[%s24376_s3 + $0x198] sm:$0xff] }
 0x5f9   :  { %v7754_v6 = vld [vmem:[%s24376_s3 + $0x1b8] sm:$0xff] }
 0x5fa   :  { %14199 = vmatpush1.bf16.msra.mxu0 %v17369_v35  ;;  %v7726_v35 = vld [vmem:[%s24376_s3 + $0xd8] sm:$0xff] }
 0x5fb   :  { %14527 = vmatpush1.bf16.msra.mxu1 %v17371_v49  ;;  %14200 = vmatprep.subr.bf16.mxu0 %v17378_v40  ;;  %v7730_v49 = vld [vmem:[%s24376_s3 + $0xf8] sm:$0xff]  ;;  %v16391_v40 = vcombine.low %v7718_v46, %v7722_v14  ;;  %v7761_v46 = vld [vmem:[%s24376_s3 + $0x1f0] sm:$0xff] }
 0x5fc   :  { %14528 = vmatprep.subr.bf16.mxu1 %v17380_v42  ;;  %v16398_v42 = vcombine.high %v7725_v33, %v7729_v31  ;;  %v16400_v43 = vcombine.high %v7726_v35, %v7730_v49  ;;  %v7758_v14 = vld [vmem:[%s24376_s3 + $0x1d8] sm:$0xff] }
 0x5fe   :  { %14201 = vmatpush1.bf16.msra.mxu0 %v17377_v24  ;;  %v7738_v24 = vld [vmem:[%s24376_s3 + $0x138] sm:$0xff] }
 0x5ff   :  { %14529 = vmatpush1.bf16.msra.mxu1 %v17379_v37  ;;  %14202 = vmatprep.subr.bf16.mxu0 %v17386_v61  ;;  %v16397_v37 = vcombine.low %v7725_v33, %v7729_v31  ;;  %v16399_v61 = vcombine.low %v7726_v35, %v7730_v49  ;;  %v16408_v39 = vcombine.high %v7734_v58, %v7738_v24  ;;  %v7765_v31 = vld [vmem:[%s24376_s3 + $0x210] sm:$0xff]  ;;  %v7766_v49 = vld [vmem:[%s24376_s3 + $0x218] sm:$0xff] }
 0x600   :  { %14530 = vmatprep.subr.bf16.mxu1 %v17388_v55  ;;  %v16406_v55 = vcombine.high %v7733_v54, %v7737_v50  ;;  %v7769_v35 = vld [vmem:[%s24376_s3 + $0x230] sm:$0xff] }
 0x602   :  { %14203 = vmatpush1.bf16.msra.mxu0 %v17385_v0  ;;  %v7746_v0 = vld [vmem:[%s24376_s3 + $0x178] sm:$0xff] }
 0x603   :  { %14531 = vmatpush1.bf16.msra.mxu1 %v17387_v1  ;;  %14541 = vmatprep.subr.bf16.mxu0 %v16374_v2  ;;  %v16405_v1 = vcombine.low %v7733_v54, %v7737_v50  ;;  %v16407_v2 = vcombine.low %v7734_v58, %v7738_v24  ;;  %v16416_v57 = vcombine.high %v7742_v34, %v7746_v0  ;;  %v7773_v50 = vld [vmem:[%s24376_s3 + $0x250] sm:$0xff]  ;;  %v7774_v24 = vld [vmem:[%s24376_s3 + $0x258] sm:$0xff] }
 0x604   :  { %14869 = vmatprep.subr.bf16.mxu1 %v16376_v30  ;;  %v16414_v30 = vcombine.high %v7741_v48, %v7745_v51  ;;  %v7777_v58 = vld [vmem:[%s24376_s3 + $0x270] sm:$0xff] }
 0x605   :  { %14205 = vmatmul.mubr.bf16.vlgmr.msra.gmra.mrb[16].mxu0 %v22702_v11 }
 0x606   :  { %14533 = vmatmul.mubr.bf16.vlgmr.msra.gmra.mrb[16].mxu1 %v22702_v11  ;;  %14542 = vmatpush1.bf16.msra.mxu0 %v16373_v12  ;;  %v7753_v12 = vld [vmem:[%s24376_s3 + $0x1b0] sm:$0xff] }
 0x607   :  { %14573 = vmatprep.mubr.bf16.mxu0 %v21057_v47  ;;  %14870 = vmatpush1.bf16.msra.mxu1 %v16375_v36  ;;  %v16413_v36 = vcombine.low %v7741_v48, %v7745_v51  ;;  %v7781_v51 = vld [vmem:[%s24376_s3 + $0x290] sm:$0xff] }
 0x608   :  { %14901 = vmatprep.mubr.bf16.mxu1 %v21057_v47  ;;  %14543 = vmatprep.subr.bf16.mxu0 %v16382_v10  ;;  %v16389_v47 = vcombine.low %v7717_v22, %v7721_v60  ;;  %v16415_v10 = vcombine.low %v7742_v34, %v7746_v0  ;;  %v16422_v22 = vcombine.high %v7749_v4, %v7753_v12  ;;  %v7785_v34 = vld [vmem:[%s24376_s3 + $0x2b0] sm:$0xff]  ;;  %v7782_v0 = vld [vmem:[%s24376_s3 + $0x298] sm:$0xff] }
 0x609   :  { %14871 = vmatprep.subr.bf16.mxu1 %v16384_v13  ;;  %v16424_v60 = vcombine.high %v7750_v5, %v7754_v6  ;;  %v7757_v13 = vld [vmem:[%s24376_s3 + $0x1d0] sm:$0xff] }
 0x60a   :  { %14544 = vmatpush1.bf16.msra.mxu0 %v16381_v17  ;;  %v7762_v17 = vld [vmem:[%s24376_s3 + $0x1f8] sm:$0xff] }
 0x60b   :  { %14872 = vmatpush1.bf16.msra.mxu1 %v16383_v21  ;;  %14545 = vmatprep.subr.bf16.mxu0 %v16390_v18  ;;  %v16421_v21 = vcombine.low %v7749_v4, %v7753_v12  ;;  %v16423_v18 = vcombine.low %v7750_v5, %v7754_v6  ;;  %v16432_v33 = vcombine.high %v7758_v14, %v7762_v17  ;;  %v7789_v12 = vld [vmem:[%s24376_s3 + $0x2d0] sm:$0xff]  ;;  %v7790_v6 = vld [vmem:[%s24376_s3 + $0x2d8] sm:$0xff] }
 0x60c   :  { %14873 = vmatprep.subr.bf16.mxu1 %v16392_v20  ;;  %v16430_v20 = vcombine.high %v7757_v13, %v7761_v46  ;;  %v7793_v5 = vld [vmem:[%s24376_s3 + $0x2f0] sm:$0xff] }
 0x60e   :  { %14546 = vmatpush1.bf16.msra.mxu0 %v16389_v47  ;;  %v7770_v47 = vld [vmem:[%s24376_s3 + $0x238] sm:$0xff] }
 0x60f   :  { %14874 = vmatpush1.bf16.msra.mxu1 %v16391_v40  ;;  %14547 = vmatprep.subr.bf16.mxu0 %v16398_v42  ;;  %v16429_v40 = vcombine.low %v7757_v13, %v7761_v46  ;;  %v16431_v42 = vcombine.low %v7758_v14, %v7762_v17  ;;  %v16440_v54 = vcombine.high %v7766_v49, %v7770_v47  ;;  %v7797_v46 = vld [vmem:[%s24376_s3 + $0x310] sm:$0xff]  ;;  %v7798_v17 = vld [vmem:[%s24376_s3 + $0x318] sm:$0xff] }
 0x610   :  { %14875 = vmatprep.subr.bf16.mxu1 %v16400_v43  ;;  %v16438_v43 = vcombine.high %v7765_v31, %v7769_v35  ;;  %v7801_v14 = vld [vmem:[%s24376_s3 + $0x330] sm:$0xff] }
 0x612   :  { %14548 = vmatpush1.bf16.msra.mxu0 %v16397_v37  ;;  %v7778_v37 = vld [vmem:[%s24376_s3 + $0x278] sm:$0xff] }
 0x613   :  { %14876 = vmatpush1.bf16.msra.mxu1 %v16399_v61  ;;  %14549 = vmatprep.subr.bf16.mxu0 %v16406_v55  ;;  %v16437_v61 = vcombine.low %v7765_v31, %v7769_v35  ;;  %v16439_v55 = vcombine.low %v7766_v49, %v7770_v47  ;;  %v16448_v48 = vcombine.high %v7774_v24, %v7778_v37  ;;  %v7805_v35 = vld [vmem:[%s24376_s3 + $0x350] sm:$0xff]  ;;  %v7806_v47 = vld [vmem:[%s24376_s3 + $0x358] sm:$0xff] }
 0x614   :  { %14877 = vmatprep.subr.bf16.mxu1 %v16408_v39  ;;  %v16446_v39 = vcombine.high %v7773_v50, %v7777_v58  ;;  %v7809_v49 = vld [vmem:[%s24376_s3 + $0x370] sm:$0xff] }
 0x616   :  { %14550 = vmatpush1.bf16.msra.mxu0 %v16405_v1  ;;  %v7786_v1 = vld [vmem:[%s24376_s3 + $0x2b8] sm:$0xff] }
 0x617   :  { %14878 = vmatpush1.bf16.msra.mxu1 %v16407_v2  ;;  %14551 = vmatprep.subr.bf16.mxu0 %v16414_v30  ;;  %v16445_v2 = vcombine.low %v7773_v50, %v7777_v58  ;;  %v16447_v30 = vcombine.low %v7774_v24, %v7778_v37  ;;  %v16456_v4 = vcombine.high %v7782_v0, %v7786_v1  ;;  %v7813_v58 = vld [vmem:[%s24376_s3 + $0x390] sm:$0xff]  ;;  %v7814_v37 = vld [vmem:[%s24376_s3 + $0x398] sm:$0xff] }
 0x618   :  { %14879 = vmatprep.subr.bf16.mxu1 %v16416_v57  ;;  %v16454_v57 = vcombine.high %v7781_v51, %v7785_v34  ;;  %v7817_v24 = vld [vmem:[%s24376_s3 + $0x3b0] sm:$0xff] }
 0x61a   :  { %14552 = vmatpush1.bf16.msra.mxu0 %v16413_v36  ;;  %v7794_v36 = vld [vmem:[%s24376_s3 + $0x2f8] sm:$0xff] }
 0x61b   :  { %14880 = vmatpush1.bf16.msra.mxu1 %v16415_v10  ;;  %14553 = vmatprep.subr.bf16.mxu0 %v16422_v22  ;;  %v16453_v10 = vcombine.low %v7781_v51, %v7785_v34  ;;  %v16455_v22 = vcombine.low %v7782_v0, %v7786_v1  ;;  %v16464_v13 = vcombine.high %v7790_v6, %v7794_v36  ;;  %v7821_v34 = vld [vmem:[%s24376_s3 + $0x3d0] sm:$0xff]  ;;  %v7822_v1 = vld [vmem:[%s24376_s3 + $0x3d8] sm:$0xff] }
 0x61c   :  { %14881 = vmatprep.subr.bf16.mxu1 %v16424_v60  ;;  %v16462_v60 = vcombine.high %v7789_v12, %v7793_v5  ;;  %v7825_v0 = vld [vmem:[%s24376_s3 + $0x3f0] sm:$0xff] }
 0x61e   :  { %14554 = vmatpush1.bf16.msra.mxu0 %v16421_v21  ;;  %v7802_v21 = vld [vmem:[%s24376_s3 + $0x338] sm:$0xff] }
 0x61f   :  { %14882 = vmatpush1.bf16.msra.mxu1 %v16423_v18  ;;  %14555 = vmatprep.subr.bf16.mxu0 %v16430_v20  ;;  %v16461_v18 = vcombine.low %v7789_v12, %v7793_v5  ;;  %v16463_v20 = vcombine.low %v7790_v6, %v7794_v36  ;;  %v16472_v31 = vcombine.high %v7798_v17, %v7802_v21  ;;  %v7829_v5 = vld [vmem:[%s24376_s3 + $0x410] sm:$0xff]  ;;  %v7830_v36 = vld [vmem:[%s24376_s3 + $0x418] sm:$0xff] }
 0x620   :  { %14883 = vmatprep.subr.bf16.mxu1 %v16432_v33  ;;  %v16470_v33 = vcombine.high %v7797_v46, %v7801_v14  ;;  %v7833_v6 = vld [vmem:[%s24376_s3 + $0x430] sm:$0xff] }
 0x622   :  { %14556 = vmatpush1.bf16.msra.mxu0 %v16429_v40  ;;  %v7810_v40 = vld [vmem:[%s24376_s3 + $0x378] sm:$0xff] }
 0x623   :  { %14884 = vmatpush1.bf16.msra.mxu1 %v16431_v42  ;;  %14557 = vmatprep.subr.bf16.mxu0 %v16438_v43  ;;  %v16469_v42 = vcombine.low %v7797_v46, %v7801_v14  ;;  %v16471_v43 = vcombine.low %v7798_v17, %v7802_v21  ;;  %v16480_v50 = vcombine.high %v7806_v47, %v7810_v40  ;;  %v7837_v14 = vld [vmem:[%s24376_s3 + $0x450] sm:$0xff] }
 0x624   :  { %14885 = vmatprep.subr.bf16.mxu1 %v16440_v54  ;;  %v16478_v54 = vcombine.high %v7805_v35, %v7809_v49  ;;  %v7841_v17 = vld [vmem:[%s24376_s3 + $0x470] sm:$0xff]  ;;  %v16501_v21 = vcombine.low %v7829_v5, %v7833_v6 }
 0x626   :  { %14558 = vmatpush1.bf16.msra.mxu0 %v16437_v61  ;;  %v7818_v61 = vld [vmem:[%s24376_s3 + $0x3b8] sm:$0xff] }
 0x627   :  { %14886 = vmatpush1.bf16.msra.mxu1 %v16439_v55  ;;  %14559 = vmatprep.subr.bf16.mxu0 %v16446_v39  ;;  %v16477_v55 = vcombine.low %v7805_v35, %v7809_v49  ;;  %v16479_v39 = vcombine.low %v7806_v47, %v7810_v40  ;;  %v16488_v51 = vcombine.high %v7814_v37, %v7818_v61  ;;  %v7845_v35 = vld [vmem:[%s24376_s3 + $0x490] sm:$0xff]  ;;  %v7846_v40 = vld [vmem:[%s24376_s3 + $0x498] sm:$0xff] }
 0x628   :  { %14887 = vmatprep.subr.bf16.mxu1 %v16448_v48  ;;  %v16486_v48 = vcombine.high %v7813_v58, %v7817_v24  ;;  %v7849_v49 = vld [vmem:[%s24376_s3 + $0x4b0] sm:$0xff] }
 0x62a   :  { %14560 = vmatpush1.bf16.msra.mxu0 %v16445_v2  ;;  %v7826_v2 = vld [vmem:[%s24376_s3 + $0x3f8] sm:$0xff] }
 0x62b   :  { %14888 = vmatpush1.bf16.msra.mxu1 %v16447_v30  ;;  %14561 = vmatprep.subr.bf16.mxu0 %v16454_v57  ;;  %v16485_v30 = vcombine.low %v7813_v58, %v7817_v24  ;;  %v16487_v57 = vcombine.low %v7814_v37, %v7818_v61  ;;  %v16496_v12 = vcombine.high %v7822_v1, %v7826_v2  ;;  %v7853_v24 = vld [vmem:[%s24376_s3 + $0x4d0] sm:$0xff]  ;;  %v7858_v61 = vld [vmem:[%s24376_s3 + $0x4f8] sm:$0xff] }
 0x62c   :  { %14889 = vmatprep.subr.bf16.mxu1 %v16456_v4  ;;  %v16494_v4 = vcombine.high %v7821_v34, %v7825_v0  ;;  %v7857_v37 = vld [vmem:[%s24376_s3 + $0x4f0] sm:$0xff] }
 0x62e   :  { %14562 = vmatpush1.bf16.msra.mxu0 %v16453_v10  ;;  %v7834_v10 = vld [vmem:[%s24376_s3 + $0x438] sm:$0xff] }
 0x62f   :  { %14890 = vmatpush1.bf16.msra.mxu1 %v16455_v22  ;;  %14563 = vmatprep.subr.bf16.mxu0 %v16462_v60  ;;  %v16493_v22 = vcombine.low %v7821_v34, %v7825_v0  ;;  %v16495_v60 = vcombine.low %v7822_v1, %v7826_v2  ;;  %v16504_v46 = vcombine.high %v7830_v36, %v7834_v10  ;;  %v7865_v34 = vld [vmem:[%s24376_s3 + $0x530] sm:$0xff]  ;;  %v7862_v0 = vld [vmem:[%s24376_s3 + $0x518] sm:$0xff] }
 0x630   :  { %14891 = vmatprep.subr.bf16.mxu1 %v16464_v13  ;;  %v16502_v13 = vcombine.high %v7829_v5, %v7833_v6  ;;  %v7866_v1 = vld [vmem:[%s24376_s3 + $0x538] sm:$0xff]  ;;  %v16525_v2 = vcombine.low %v7853_v24, %v7857_v37  ;;  %v7873_v5 = vld [vmem:[%s24376_s3 + $0x570] sm:$0xff] }
 0x631   :  { %v7870_v6 = vld [vmem:[%s24376_s3 + $0x558] sm:$0xff] }
 0x632   :  { %14564 = vmatpush1.bf16.msra.mxu0 %v16461_v18  ;;  %v7838_v18 = vld [vmem:[%s24376_s3 + $0x458] sm:$0xff] }
 0x633   :  { %14892 = vmatpush1.bf16.msra.mxu1 %v16463_v20  ;;  %14565 = vmatprep.subr.bf16.mxu0 %v16470_v33  ;;  %v7842_v20 = vld [vmem:[%s24376_s3 + $0x478] sm:$0xff]  ;;  %v16503_v33 = vcombine.low %v7830_v36, %v7834_v10 }
 0x634   :  { %14893 = vmatprep.subr.bf16.mxu1 %v16472_v31  ;;  %v16510_v31 = vcombine.high %v7837_v14, %v7841_v17  ;;  %v16512_v47 = vcombine.high %v7838_v18, %v7842_v20  ;;  %v7874_v36 = vld [vmem:[%s24376_s3 + $0x578] sm:$0xff] }
 0x636   :  { %14566 = vmatpush1.bf16.msra.mxu0 %v16469_v42  ;;  %v7850_v42 = vld [vmem:[%s24376_s3 + $0x4b8] sm:$0xff] }
 0x637   :  { %14894 = vmatpush1.bf16.msra.mxu1 %v16471_v43  ;;  %14567 = vmatprep.subr.bf16.mxu0 %v16478_v54  ;;  %v16509_v43 = vcombine.low %v7837_v14, %v7841_v17  ;;  %v16511_v54 = vcombine.low %v7838_v18, %v7842_v20  ;;  %v16520_v58 = vcombine.high %v7846_v40, %v7850_v42  ;;  %v7881_v14 = vld [vmem:[%s24376_s3 + $0x5b0] sm:$0xff]  ;;  %v7878_v17 = vld [vmem:[%s24376_s3 + $0x598] sm:$0xff] }
 0x638   :  { %14895 = vmatprep.subr.bf16.mxu1 %v16480_v50  ;;  %v16518_v50 = vcombine.high %v7845_v35, %v7849_v49  ;;  %v16543_v20 = vcombine.low %v7870_v6, %v7874_v36 }
 0x63a   :  { %14568 = vmatpush1.bf16.msra.mxu0 %v16477_v55  ;;  %v16519_v55 = vcombine.low %v7846_v40, %v7850_v42  ;;  %v7890_v40 = vld [vmem:[%s24376_s3 + $0x5f8] sm:$0xff] }
 0x63b   :  { %14896 = vmatpush1.bf16.msra.mxu1 %v16479_v39  ;;  %14569 = vmatprep.subr.bf16.mxu0 %v16486_v48  ;;  %v16526_v39 = vcombine.high %v7853_v24, %v7857_v37  ;;  %v7897_v24 = vld [vmem:[%s24376_s3 + $0x630] sm:$0xff]  ;;  %v7894_v37 = vld [vmem:[%s24376_s3 + $0x618] sm:$0xff] }
 0x63c   :  { %14897 = vmatprep.subr.bf16.mxu1 %v16488_v51  ;;  %v7861_v51 = vld [vmem:[%s24376_s3 + $0x510] sm:$0xff] }
 0x63d   :  { %v16533_v10 = vcombine.low %v7861_v51, %v7865_v34 }
 0x63e   :  { %14570 = vmatpush1.bf16.msra.mxu0 %v16485_v30 }
 0x63f   :  { %14898 = vmatpush1.bf16.msra.mxu1 %v16487_v57  ;;  %14571 = vmatprep.subr.bf16.mxu0 %v16494_v4  ;;  %v16534_v57 = vcombine.high %v7861_v51, %v7865_v34  ;;  %v16536_v4 = vcombine.high %v7862_v0, %v7866_v1  ;;  %v7905_v51 = vld [vmem:[%s24376_s3 + $0x670] sm:$0xff]  ;;  %v7902_v34 = vld [vmem:[%s24376_s3 + $0x658] sm:$0xff] }
 0x640   :  { %14899 = vmatprep.subr.bf16.mxu1 %v16496_v12  ;;  %v7869_v12 = vld [vmem:[%s24376_s3 + $0x550] sm:$0xff] }
 0x641   :  { %v16541_v18 = vcombine.low %v7869_v12, %v7873_v5 }
 0x642   :  { %14572 = vmatpush1.bf16.msra.mxu0 %v16493_v22  ;;  %v16535_v22 = vcombine.low %v7862_v0, %v7866_v1  ;;  %v7906_v0 = vld [vmem:[%s24376_s3 + $0x678] sm:$0xff] }
 0x643   :  { %14900 = vmatpush1.bf16.msra.mxu1 %v16495_v60  ;;  %14582 = vmatprep.subr.bf16.mxu0 %v16502_v13  ;;  %v16542_v60 = vcombine.high %v7869_v12, %v7873_v5  ;;  %v16544_v13 = vcombine.high %v7870_v6, %v7874_v36  ;;  %v7913_v12 = vld [vmem:[%s24376_s3 + $0x6b0] sm:$0xff]  ;;  %v7910_v5 = vld [vmem:[%s24376_s3 + $0x698] sm:$0xff] }
 0x644   :  { %14910 = vmatprep.subr.bf16.mxu1 %v16504_v46  ;;  %v7877_v46 = vld [vmem:[%s24376_s3 + $0x590] sm:$0xff]  ;;  %v7914_v6 = vld [vmem:[%s24376_s3 + $0x6b8] sm:$0xff] }
 0x645   :  { %14574 = vmatmul.mubr.bf16.vlgmr.msra.gmra.mrb[20].mxu0 %v21251_v44  ;;  %v16549_v42 = vcombine.low %v7877_v46, %v7881_v14 }
 0x646   :  { %14902 = vmatmul.mubr.bf16.vlgmr.msra.gmra.mrb[20].mxu1 %v21251_v44  ;;  %14583 = vmatpush1.bf16.msra.mxu0 %v16501_v21  ;;  %v7854_v44 = vld [vmem:[%s24376_s3 + $0x4d8] sm:$0xff] }
 0x647   :  { %14614 = vmatprep.mubr.bf16.mxu0 %v21261_v56  ;;  %14911 = vmatpush1.bf16.msra.mxu1 %v16503_v33  ;;  %v16528_v48 = vcombine.high %v7854_v44, %v7858_v61  ;;  %v16527_v30 = vcombine.low %v7854_v44, %v7858_v61  ;;  %v7882_v21 = vld [vmem:[%s24376_s3 + $0x5b8] sm:$0xff]  ;;  %v16550_v33 = vcombine.high %v7877_v46, %v7881_v14  ;;  %v7921_v46 = vld [vmem:[%s24376_s3 + $0x6f0] sm:$0xff] }
 0x648   :  { %14942 = vmatprep.mubr.bf16.mxu1 %v21261_v56  ;;  %14584 = vmatprep.subr.bf16.mxu0 %v16510_v31  ;;  %v16517_v56 = vcombine.low %v7845_v35, %v7849_v49  ;;  %v16552_v31 = vcombine.high %v7878_v17, %v7882_v21  ;;  %v7885_v35 = vld [vmem:[%s24376_s3 + $0x5d0] sm:$0xff]  ;;  %v7898_v44 = vld [vmem:[%s24376_s3 + $0x638] sm:$0xff] }
 0x649   :  { %14912 = vmatprep.subr.bf16.mxu1 %v16512_v47  ;;  %v7889_v49 = vld [vmem:[%s24376_s3 + $0x5f0] sm:$0xff]  ;;  %v7886_v47 = vld [vmem:[%s24376_s3 + $0x5d8] sm:$0xff] }
 0x64a   :  { %14585 = vmatpush1.bf16.msra.mxu0 %v16509_v43  ;;  %v16551_v43 = vcombine.low %v7878_v17, %v7882_v21  ;;  %v16557_v61 = vcombine.low %v7885_v35, %v7889_v49  ;;  %v7918_v14 = vld [vmem:[%s24376_s3 + $0x6d8] sm:$0xff] }
 0x64b   :  { %14913 = vmatpush1.bf16.msra.mxu1 %v16511_v54  ;;  %14586 = vmatprep.subr.bf16.mxu0 %v16518_v50  ;;  %v16558_v54 = vcombine.high %v7885_v35, %v7889_v49  ;;  %v16560_v50 = vcombine.high %v7886_v47, %v7890_v40  ;;  %v7922_v17 = vld [vmem:[%s24376_s3 + $0x6f8] sm:$0xff]  ;;  %v7929_v35 = vld [vmem:[%s24376_s3 + $0x730] sm:$0xff] }
 0x64c   :  { %14914 = vmatprep.subr.bf16.mxu1 %v16520_v58  ;;  %v7893_v58 = vld [vmem:[%s24376_s3 + $0x610] sm:$0xff]  ;;  %v7926_v49 = vld [vmem:[%s24376_s3 + $0x718] sm:$0xff] }
 0x64d   :  { %v16565_v1 = vcombine.low %v7893_v58, %v7897_v24 }
 0x64e   :  { %14587 = vmatpush1.bf16.msra.mxu0 %v16517_v56  ;;  %v16559_v56 = vcombine.low %v7886_v47, %v7890_v40  ;;  %v7930_v47 = vld [vmem:[%s24376_s3 + $0x738] sm:$0xff] }
 0x64f   :  { %14915 = vmatpush1.bf16.msra.mxu1 %v16519_v55  ;;  %14588 = vmatprep.subr.bf16.mxu0 %v16526_v39  ;;  %v16566_v55 = vcombine.high %v7893_v58, %v7897_v24  ;;  %v16568_v39 = vcombine.high %v7894_v37, %v7898_v44  ;;  %v7937_v58 = vld [vmem:[%s24376_s3 + $0x770] sm:$0xff]  ;;  %v7934_v24 = vld [vmem:[%s24376_s3 + $0x758] sm:$0xff] }
 0x650   :  { %14916 = vmatprep.subr.bf16.mxu1 %v16528_v48  ;;  %v7901_v48 = vld [vmem:[%s24376_s3 + $0x650] sm:$0xff] }
 0x651   :  { %v16573_v36 = vcombine.low %v7901_v48, %v7905_v51 }
 0x652   :  { %14589 = vmatpush1.bf16.msra.mxu0 %v16525_v2  ;;  %v16567_v2 = vcombine.low %v7894_v37, %v7898_v44  ;;  %v7938_v37 = vld [vmem:[%s24376_s3 + $0x778] sm:$0xff] }
 0x653   :  { %14917 = vmatpush1.bf16.msra.mxu1 %v16527_v30  ;;  %14590 = vmatprep.subr.bf16.mxu0 %v16534_v57  ;;  %v16574_v30 = vcombine.high %v7901_v48, %v7905_v51  ;;  %v16576_v57 = vcombine.high %v7902_v34, %v7906_v0  ;;  %v7945_v48 = vld [vmem:[%s24376_s3 + $0x7b0] sm:$0xff]  ;;  %v7942_v51 = vld [vmem:[%s24376_s3 + $0x798] sm:$0xff] }
 0x654   :  { %14918 = vmatprep.subr.bf16.mxu1 %v16536_v4  ;;  %v7909_v4 = vld [vmem:[%s24376_s3 + $0x690] sm:$0xff] }
 0x655   :  { %v16581_v21 = vcombine.low %v7909_v4, %v7913_v12 }
 0x656   :  { %14591 = vmatpush1.bf16.msra.mxu0 %v16533_v10  ;;  %v16575_v10 = vcombine.low %v7902_v34, %v7906_v0  ;;  %v7946_v34 = vld [vmem:[%s24376_s3 + $0x7b8] sm:$0xff] }
 0x657   :  { %14919 = vmatpush1.bf16.msra.mxu1 %v16535_v22  ;;  %14592 = vmatprep.subr.bf16.mxu0 %v16542_v60  ;;  %v16582_v22 = vcombine.high %v7909_v4, %v7913_v12  ;;  %v16584_v60 = vcombine.high %v7910_v5, %v7914_v6  ;;  %v7953_v4 = vld [vmem:[%s24376_s3 + $0x7f0] sm:$0xff]  ;;  %v7950_v12 = vld [vmem:[%s24376_s3 + $0x7d8] sm:$0xff] }
 0x658   :  { %14920 = vmatprep.subr.bf16.mxu1 %v16544_v13  ;;  %v7917_v13 = vld [vmem:[%s24376_s3 + $0x6d0] sm:$0xff] }
 0x659   :  { %v16589_v40 = vcombine.low %v7917_v13, %v7921_v46 }
 0x65a   :  { %14593 = vmatpush1.bf16.msra.mxu0 %v16541_v18  ;;  %v16583_v18 = vcombine.low %v7910_v5, %v7914_v6  ;;  %v7954_v5 = vld [vmem:[%s24376_s3 + $0x7f8] sm:$0xff] }
 0x65b   :  { %14921 = vmatpush1.bf16.msra.mxu1 %v16543_v20  ;;  %14594 = vmatprep.subr.bf16.mxu0 %v16550_v33  ;;  %v16590_v20 = vcombine.high %v7917_v13, %v7921_v46  ;;  %v16592_v33 = vcombine.high %v7918_v14, %v7922_v17  ;;  %v7961_v13 = vld [vmem:[%s24376_s3 + $0x830] sm:$0xff]  ;;  %v7958_v46 = vld [vmem:[%s24376_s3 + $0x818] sm:$0xff] }
 0x65c   :  { %14922 = vmatprep.subr.bf16.mxu1 %v16552_v31  ;;  %v7925_v31 = vld [vmem:[%s24376_s3 + $0x710] sm:$0xff] }
 0x65d   :  { %v16597_v44 = vcombine.low %v7925_v31, %v7929_v35 }
 0x65e   :  { %14595 = vmatpush1.bf16.msra.mxu0 %v16549_v42  ;;  %v16591_v42 = vcombine.low %v7918_v14, %v7922_v17  ;;  %v7962_v14 = vld [vmem:[%s24376_s3 + $0x838] sm:$0xff] }
 0x65f   :  { %14923 = vmatpush1.bf16.msra.mxu1 %v16551_v43  ;;  %14596 = vmatprep.subr.bf16.mxu0 %v16558_v54  ;;  %v16598_v43 = vcombine.high %v7925_v31, %v7929_v35  ;;  %v16600_v54 = vcombine.high %v7926_v49, %v7930_v47  ;;  %v7969_v31 = vld [vmem:[%s24376_s3 + $0x870] sm:$0xff] }
 0x660   :  { %14924 = vmatprep.subr.bf16.mxu1 %v16560_v50  ;;  %v7933_v50 = vld [vmem:[%s24376_s3 + $0x750] sm:$0xff] }
 0x661   :  { %v16605_v0 = vcombine.low %v7933_v50, %v7937_v58 }
 0x662   :  { %14597 = vmatpush1.bf16.msra.mxu0 %v16557_v61  ;;  %v16599_v61 = vcombine.low %v7926_v49, %v7930_v47  ;;  %v7966_v49 = vld [vmem:[%s24376_s3 + $0x858] sm:$0xff] }
 0x663   :  { %14925 = vmatpush1.bf16.msra.mxu1 %v16559_v56  ;;  %14598 = vmatprep.subr.bf16.mxu0 %v16566_v55  ;;  %v16606_v56 = vcombine.high %v7933_v50, %v7937_v58  ;;  %v16608_v55 = vcombine.high %v7934_v24, %v7938_v37  ;;  %v7970_v47 = vld [vmem:[%s24376_s3 + $0x878] sm:$0xff] }
 0x664   :  { %14926 = vmatprep.subr.bf16.mxu1 %v16568_v39  ;;  %v7941_v39 = vld [vmem:[%s24376_s3 + $0x790] sm:$0xff]  ;;  %v16640_v50 = vcombine.high %v7966_v49, %v7970_v47  ;;  %v7974_v58 = vld [vmem:[%s24376_s3 + $0x898] sm:$0xff] }
 0x665   :  { %v16613_v6 = vcombine.low %v7941_v39, %v7945_v48 }
 0x666   :  { %14599 = vmatpush1.bf16.msra.mxu0 %v16565_v1  ;;  %v16607_v1 = vcombine.low %v7934_v24, %v7938_v37  ;;  %v7978_v24 = vld [vmem:[%s24376_s3 + $0x8b8] sm:$0xff] }
 0x667   :  { %14927 = vmatpush1.bf16.msra.mxu1 %v16567_v2  ;;  %14600 = vmatprep.subr.bf16.mxu0 %v16574_v30  ;;  %v16614_v2 = vcombine.high %v7941_v39, %v7945_v48  ;;  %v16616_v30 = vcombine.high %v7942_v51, %v7946_v34  ;;  %v7985_v39 = vld [vmem:[%s24376_s3 + $0x8f0] sm:$0xff]  ;;  %v7986_v48 = vld [vmem:[%s24376_s3 + $0x8f8] sm:$0xff] }
 0x668   :  { %14928 = vmatprep.subr.bf16.mxu1 %v16576_v57  ;;  %v7949_v57 = vld [vmem:[%s24376_s3 + $0x7d0] sm:$0xff] }
 0x669   :  { %v16621_v17 = vcombine.low %v7949_v57, %v7953_v4 }
 0x66a   :  { %14601 = vmatpush1.bf16.msra.mxu0 %v16573_v36  ;;  %v16615_v36 = vcombine.low %v7942_v51, %v7946_v34  ;;  %v16647_v51 = vcombine.low %v7974_v58, %v7978_v24 }
 0x66b   :  { %14929 = vmatpush1.bf16.msra.mxu1 %v16575_v10  ;;  %14602 = vmatprep.subr.bf16.mxu0 %v16582_v22  ;;  %v16622_v10 = vcombine.high %v7949_v57, %v7953_v4  ;;  %v16624_v22 = vcombine.high %v7950_v12, %v7954_v5  ;;  %v7994_v57 = vld [vmem:[%s24376_s3 + $0x938] sm:$0xff] }
 0x66c   :  { %14930 = vmatprep.subr.bf16.mxu1 %v16584_v60  ;;  %v7957_v60 = vld [vmem:[%s24376_s3 + $0x810] sm:$0xff] }
 0x66d   :  { %v16629_v35 = vcombine.low %v7957_v60, %v7961_v13 }
 0x66e   :  { %14603 = vmatpush1.bf16.msra.mxu0 %v16581_v21  ;;  %v16623_v21 = vcombine.low %v7950_v12, %v7954_v5 }
 0x66f   :  { %14931 = vmatpush1.bf16.msra.mxu1 %v16583_v18  ;;  %14604 = vmatprep.subr.bf16.mxu0 %v16590_v20  ;;  %v16630_v18 = vcombine.high %v7957_v60, %v7961_v13  ;;  %v16632_v20 = vcombine.high %v7958_v46, %v7962_v14  ;;  %v8002_v60 = vld [vmem:[%s24376_s3 + $0x978] sm:$0xff] }
 0x670   :  { %14932 = vmatprep.subr.bf16.mxu1 %v16592_v33  ;;  %v7965_v33 = vld [vmem:[%s24376_s3 + $0x850] sm:$0xff] }
 0x671   :  { %v16637_v37 = vcombine.low %v7965_v33, %v7969_v31 }
 0x672   :  { %14605 = vmatpush1.bf16.msra.mxu0 %v16589_v40  ;;  %v16631_v40 = vcombine.low %v7958_v46, %v7962_v14 }
 0x673   :  { %14933 = vmatpush1.bf16.msra.mxu1 %v16591_v42  ;;  %14606 = vmatprep.subr.bf16.mxu0 %v16598_v43  ;;  %v16638_v42 = vcombine.high %v7965_v33, %v7969_v31  ;;  %v7973_v43 = vld [vmem:[%s24376_s3 + $0x890] sm:$0xff]  ;;  %v8010_v33 = vld [vmem:[%s24376_s3 + $0x9b8] sm:$0xff] }
 0x674   :  { %14934 = vmatprep.subr.bf16.mxu1 %v16600_v54  ;;  %v7977_v54 = vld [vmem:[%s24376_s3 + $0x8b0] sm:$0xff] }
 0x676   :  { %14607 = vmatpush1.bf16.msra.mxu0 %v16597_v44  ;;  %v16639_v44 = vcombine.low %v7966_v49, %v7970_v47 }
 0x677   :  { %14935 = vmatpush1.bf16.msra.mxu1 %v16599_v61  ;;  %14608 = vmatprep.subr.bf16.mxu0 %v16606_v56  ;;  %v16646_v61 = vcombine.high %v7973_v43, %v7977_v54  ;;  %v16648_v56 = vcombine.high %v7974_v58, %v7978_v24 }
 0x678   :  { %14936 = vmatprep.subr.bf16.mxu1 %v16608_v55  ;;  %v7981_v55 = vld [vmem:[%s24376_s3 + $0x8d0] sm:$0xff] }
 0x679   :  { %v16654_v34 = vcombine.high %v7981_v55, %v7985_v39  ;;  %v16653_v4 = vcombine.low %v7981_v55, %v7985_v39  ;;  %v8026_v55 = vld [vmem:[%s24376_s3 + $0xa38] sm:$0xff] }
 0x67a   :  { %14609 = vmatpush1.bf16.msra.mxu0 %v16605_v0 }
 0x67b   :  { %14937 = vmatpush1.bf16.msra.mxu1 %v16607_v1  ;;  %14610 = vmatprep.subr.bf16.mxu0 %v16614_v2  ;;  %v7989_v1 = vld [vmem:[%s24376_s3 + $0x910] sm:$0xff] }
 0x67c   :  { %14938 = vmatprep.subr.bf16.mxu1 %v16616_v30  ;;  %v7993_v2 = vld [vmem:[%s24376_s3 + $0x930] sm:$0xff]  ;;  %v7990_v30 = vld [vmem:[%s24376_s3 + $0x918] sm:$0xff] }
 0x67d   :  { %v16662_v5 = vcombine.high %v7989_v1, %v7993_v2  ;;  %v16661_v13 = vcombine.low %v7989_v1, %v7993_v2  ;;  %v16663_v46 = vcombine.low %v7990_v30, %v7994_v57  ;;  %v8034_v1 = vld [vmem:[%s24376_s3 + $0xa78] sm:$0xff] }
 0x67e   :  { %14611 = vmatpush1.bf16.msra.mxu0 %v16613_v6  ;;  %v16664_v6 = vcombine.high %v7990_v30, %v7994_v57 }
 0x67f   :  { %14939 = vmatpush1.bf16.msra.mxu1 %v16615_v36  ;;  %14612 = vmatprep.subr.bf16.mxu0 %v16622_v10  ;;  %v7997_v36 = vld [vmem:[%s24376_s3 + $0x950] sm:$0xff] }
 0x680   :  { %14940 = vmatprep.subr.bf16.mxu1 %v16624_v22  ;;  %v8001_v10 = vld [vmem:[%s24376_s3 + $0x970] sm:$0xff]  ;;  %v7998_v22 = vld [vmem:[%s24376_s3 + $0x958] sm:$0xff] }
 0x681   :  { %v16670_v14 = vcombine.high %v7997_v36, %v8001_v10  ;;  %v16669_v31 = vcombine.low %v7997_v36, %v8001_v10  ;;  %v8042_v36 = vld [vmem:[%s24376_s3 + $0xab8] sm:$0xff] }
 0x682   :  { %14613 = vmatpush1.bf16.msra.mxu0 %v16621_v17  ;;  %v16672_v17 = vcombine.high %v7998_v22, %v8002_v60 }
 0x683   :  { %14941 = vmatpush1.bf16.msra.mxu1 %v16623_v21  ;;  %14623 = vmatprep.subr.bf16.mxu0 %v16630_v18  ;;  %v8005_v21 = vld [vmem:[%s24376_s3 + $0x990] sm:$0xff] }
 0x684   :  { %14951 = vmatprep.subr.bf16.mxu1 %v16632_v20  ;;  %v8009_v18 = vld [vmem:[%s24376_s3 + $0x9b0] sm:$0xff]  ;;  %v8006_v20 = vld [vmem:[%s24376_s3 + $0x998] sm:$0xff] }
 0x685   :  { %14615 = vmatmul.mubr.bf16.vlgmr.msra.gmra.mrb[20].mxu0 %v21455_v52  ;;  %v16678_v49 = vcombine.high %v8005_v21, %v8009_v18  ;;  %v16680_v47 = vcombine.high %v8006_v20, %v8010_v33  ;;  %v16679_v58 = vcombine.low %v8006_v20, %v8010_v33 }
 0x686   :  { %14943 = vmatmul.mubr.bf16.vlgmr.msra.gmra.mrb[20].mxu1 %v21455_v52  ;;  %14624 = vmatpush1.bf16.msra.mxu0 %v16629_v35  ;;  %v7982_v52 = vld [vmem:[%s24376_s3 + $0x8d8] sm:$0xff]  ;;  %v16671_v35 = vcombine.low %v7998_v22, %v8002_v60 }
 0x687   :  { %14655 = vmatprep.mubr.bf16.mxu0 %v21465_v59  ;;  %14952 = vmatpush1.bf16.msra.mxu1 %v16631_v40  ;;  %v16656_v0 = vcombine.high %v7982_v52, %v7986_v48  ;;  %v16655_v12 = vcombine.low %v7982_v52, %v7986_v48  ;;  %v8013_v40 = vld [vmem:[%s24376_s3 + $0x9d0] sm:$0xff] }
 0x688   :  { %14983 = vmatprep.mubr.bf16.mxu1 %v21465_v59  ;;  %14625 = vmatprep.subr.bf16.mxu0 %v16638_v42  ;;  %v16645_v59 = vcombine.low %v7973_v43, %v7977_v54  ;;  %v8017_v42 = vld [vmem:[%s24376_s3 + $0x9f0] sm:$0xff]  ;;  %v8014_v43 = vld [vmem:[%s24376_s3 + $0x9d8] sm:$0xff] }
 0x689   :  { %14953 = vmatprep.subr.bf16.mxu1 %v16640_v50  ;;  %v8018_v54 = vld [vmem:[%s24376_s3 + $0x9f8] sm:$0xff]  ;;  %v16677_v50 = vcombine.low %v8005_v21, %v8009_v18  ;;  %v16686_v24 = vcombine.high %v8013_v40, %v8017_v42  ;;  %v16685_v39 = vcombine.low %v8013_v40, %v8017_v42 }
 0x68a   :  { %14626 = vmatpush1.bf16.msra.mxu0 %v16637_v37  ;;  %v16688_v37 = vcombine.high %v8014_v43, %v8018_v54  ;;  %v16687_v52 = vcombine.low %v8014_v43, %v8018_v54  ;;  %v8050_v21 = vld [vmem:[%s24376_s3 + $0xaf8] sm:$0xff] }
 0x68b   :  { %14954 = vmatpush1.bf16.msra.mxu1 %v16639_v44  ;;  %14627 = vmatprep.subr.bf16.mxu0 %v16646_v61  ;;  %v8021_v44 = vld [vmem:[%s24376_s3 + $0xa10] sm:$0xff]  ;;  %v8058_v40 = vld [vmem:[%s24376_s3 + $0xb38] sm:$0xff] }
 0x68c   :  { %14955 = vmatprep.subr.bf16.mxu1 %v16648_v56  ;;  %v8025_v61 = vld [vmem:[%s24376_s3 + $0xa30] sm:$0xff]  ;;  %v8022_v56 = vld [vmem:[%s24376_s3 + $0xa18] sm:$0xff] }
 0x68d   :  { %v16694_v48 = vcombine.high %v8021_v44, %v8025_v61  ;;  %v16693_v2 = vcombine.low %v8021_v44, %v8025_v61  ;;  %v16695_v30 = vcombine.low %v8022_v56, %v8026_v55  ;;  %v8066_v44 = vld [vmem:[%s24376_s3 + $0xb78] sm:$0xff] }
 0x68e   :  { %14628 = vmatpush1.bf16.msra.mxu0 %v16645_v59  ;;  %v16696_v59 = vcombine.high %v8022_v56, %v8026_v55 }
 0x68f   :  { %14956 = vmatpush1.bf16.msra.mxu1 %v16647_v51  ;;  %14629 = vmatprep.subr.bf16.mxu0 %v16654_v34  ;;  %v8029_v51 = vld [vmem:[%s24376_s3 + $0xa50] sm:$0xff] }
 0x690   :  { %14957 = vmatprep.subr.bf16.mxu1 %v16656_v0  ;;  %v8033_v34 = vld [vmem:[%s24376_s3 + $0xa70] sm:$0xff]  ;;  %v8030_v0 = vld [vmem:[%s24376_s3 + $0xa58] sm:$0xff] }
 0x691   :  { %v16702_v57 = vcombine.high %v8029_v51, %v8033_v34  ;;  %v16701_v10 = vcombine.low %v8029_v51, %v8033_v34  ;;  %v16703_v22 = vcombine.low %v8030_v0, %v8034_v1  ;;  %v8074_v51 = vld [vmem:[%s24376_s3 + $0xbb8] sm:$0xff] }
 0x692   :  { %14630 = vmatpush1.bf16.msra.mxu0 %v16653_v4  ;;  %v16704_v4 = vcombine.high %v8030_v0, %v8034_v1 }
 0x693   :  { %14958 = vmatpush1.bf16.msra.mxu1 %v16655_v12  ;;  %14631 = vmatprep.subr.bf16.mxu0 %v16662_v5  ;;  %v8037_v12 = vld [vmem:[%s24376_s3 + $0xa90] sm:$0xff] }
 0x694   :  { %14959 = vmatprep.subr.bf16.mxu1 %v16664_v6  ;;  %v8041_v5 = vld [vmem:[%s24376_s3 + $0xab0] sm:$0xff]  ;;  %v8038_v6 = vld [vmem:[%s24376_s3 + $0xa98] sm:$0xff] }
 0x695   :  { %v16710_v60 = vcombine.high %v8037_v12, %v8041_v5  ;;  %v16709_v18 = vcombine.low %v8037_v12, %v8041_v5  ;;  %v16711_v20 = vcombine.low %v8038_v6, %v8042_v36  ;;  %v8082_v12 = vld [vmem:[%s24376_s3 + $0xbf8] sm:$0xff] }
 0x696   :  { %14632 = vmatpush1.bf16.msra.mxu0 %v16661_v13  ;;  %v16712_v13 = vcombine.high %v8038_v6, %v8042_v36 }
 0x697   :  { %14960 = vmatpush1.bf16.msra.mxu1 %v16663_v46  ;;  %14633 = vmatprep.subr.bf16.mxu0 %v16670_v14  ;;  %v8045_v46 = vld [vmem:[%s24376_s3 + $0xad0] sm:$0xff] }
 0x698   :  { %14961 = vmatprep.subr.bf16.mxu1 %v16672_v17  ;;  %v8049_v14 = vld [vmem:[%s24376_s3 + $0xaf0] sm:$0xff]  ;;  %v8046_v17 = vld [vmem:[%s24376_s3 + $0xad8] sm:$0xff] }
 0x699   :  { %v16718_v33 = vcombine.high %v8045_v46, %v8049_v14  ;;  %v16717_v42 = vcombine.low %v8045_v46, %v8049_v14  ;;  %v16719_v43 = vcombine.low %v8046_v17, %v8050_v21  ;;  %v8090_v46 = vld [vmem:[%s24376_s3 + $0xc38] sm:$0xff] }
 0x69a   :  { %14634 = vmatpush1.bf16.msra.mxu0 %v16669_v31  ;;  %v16720_v31 = vcombine.high %v8046_v17, %v8050_v21 }
 0x69b   :  { %14962 = vmatpush1.bf16.msra.mxu1 %v16671_v35  ;;  %14635 = vmatprep.subr.bf16.mxu0 %v16678_v49  ;;  %v8053_v35 = vld [vmem:[%s24376_s3 + $0xb10] sm:$0xff] }
 0x69c   :  { %14963 = vmatprep.subr.bf16.mxu1 %v16680_v47  ;;  %v8057_v49 = vld [vmem:[%s24376_s3 + $0xb30] sm:$0xff]  ;;  %v8054_v47 = vld [vmem:[%s24376_s3 + $0xb18] sm:$0xff] }
 0x69d   :  { %v16726_v54 = vcombine.high %v8053_v35, %v8057_v49  ;;  %v16725_v61 = vcombine.low %v8053_v35, %v8057_v49  ;;  %v16727_v56 = vcombine.low %v8054_v47, %v8058_v40  ;;  %v8094_v35 = vld [vmem:[%s24376_s3 + $0xc58] sm:$0xff] }
 0x69e   :  { %14636 = vmatpush1.bf16.msra.mxu0 %v16677_v50  ;;  %v16728_v50 = vcombine.high %v8054_v47, %v8058_v40  ;;  %v8098_v49 = vld [vmem:[%s24376_s3 + $0xc78] sm:$0xff] }
 0x69f   :  { %14964 = vmatpush1.bf16.msra.mxu1 %v16679_v58  ;;  %14637 = vmatprep.subr.bf16.mxu0 %v16686_v24  ;;  %v8061_v58 = vld [vmem:[%s24376_s3 + $0xb50] sm:$0xff] }
 0x6a0   :  { %14965 = vmatprep.subr.bf16.mxu1 %v16688_v37  ;;  %v8065_v24 = vld [vmem:[%s24376_s3 + $0xb70] sm:$0xff]  ;;  %v8062_v37 = vld [vmem:[%s24376_s3 + $0xb58] sm:$0xff] }
 0x6a1   :  { %v16734_v55 = vcombine.high %v8061_v58, %v8065_v24  ;;  %v16733_v34 = vcombine.low %v8061_v58, %v8065_v24  ;;  %v16735_v0 = vcombine.low %v8062_v37, %v8066_v44  ;;  %v8106_v58 = vld [vmem:[%s24376_s3 + $0xcb8] sm:$0xff] }
 0x6a2   :  { %14638 = vmatpush1.bf16.msra.mxu0 %v16685_v39  ;;  %v16736_v39 = vcombine.high %v8062_v37, %v8066_v44  ;;  %v16767_v37 = vcombine.low %v8094_v35, %v8098_v49 }
 0x6a3   :  { %14966 = vmatpush1.bf16.msra.mxu1 %v16687_v52  ;;  %14639 = vmatprep.subr.bf16.mxu0 %v16694_v48  ;;  %v8069_v52 = vld [vmem:[%s24376_s3 + $0xb90] sm:$0xff] }
 0x6a4   :  { %14967 = vmatprep.subr.bf16.mxu1 %v16696_v59  ;;  %v8073_v48 = vld [vmem:[%s24376_s3 + $0xbb0] sm:$0xff]  ;;  %v8070_v59 = vld [vmem:[%s24376_s3 + $0xb98] sm:$0xff] }
 0x6a5   :  { %v16742_v1 = vcombine.high %v8069_v52, %v8073_v48  ;;  %v16741_v5 = vcombine.low %v8069_v52, %v8073_v48  ;;  %v16743_v6 = vcombine.low %v8070_v59, %v8074_v51 }
 0x6a6   :  { %14640 = vmatpush1.bf16.msra.mxu0 %v16693_v2  ;;  %v16744_v2 = vcombine.high %v8070_v59, %v8074_v51  ;;  %v8117_v51 = vld [vmem:[%s24376_s3 + $0xd10] sm:$0xff] }
 0x6a7   :  { %14968 = vmatpush1.bf16.msra.mxu1 %v16695_v30  ;;  %14641 = vmatprep.subr.bf16.mxu0 %v16702_v57  ;;  %v8077_v30 = vld [vmem:[%s24376_s3 + $0xbd0] sm:$0xff] }
 0x6a8   :  { %14969 = vmatprep.subr.bf16.mxu1 %v16704_v4  ;;  %v8081_v57 = vld [vmem:[%s24376_s3 + $0xbf0] sm:$0xff]  ;;  %v8078_v4 = vld [vmem:[%s24376_s3 + $0xbd8] sm:$0xff] }
 0x6a9   :  { %v16750_v36 = vcombine.high %v8077_v30, %v8081_v57  ;;  %v16749_v14 = vcombine.low %v8077_v30, %v8081_v57  ;;  %v16751_v17 = vcombine.low %v8078_v4, %v8082_v12 }
 0x6aa   :  { %14642 = vmatpush1.bf16.msra.mxu0 %v16701_v10  ;;  %v16752_v10 = vcombine.high %v8078_v4, %v8082_v12  ;;  %v8125_v12 = vld [vmem:[%s24376_s3 + $0xd50] sm:$0xff] }
 0x6ab   :  { %14970 = vmatpush1.bf16.msra.mxu1 %v16703_v22  ;;  %14643 = vmatprep.subr.bf16.mxu0 %v16710_v60  ;;  %v8085_v22 = vld [vmem:[%s24376_s3 + $0xc10] sm:$0xff] }
 0x6ac   :  { %14971 = vmatprep.subr.bf16.mxu1 %v16712_v13  ;;  %v8089_v60 = vld [vmem:[%s24376_s3 + $0xc30] sm:$0xff]  ;;  %v8086_v13 = vld [vmem:[%s24376_s3 + $0xc18] sm:$0xff] }
 0x6ad   :  { %v16758_v21 = vcombine.high %v8085_v22, %v8089_v60  ;;  %v16759_v47 = vcombine.low %v8086_v13, %v8090_v46 }
 0x6ae   :  { %14644 = vmatpush1.bf16.msra.mxu0 %v16709_v18  ;;  %v16760_v18 = vcombine.high %v8086_v13, %v8090_v46  ;;  %v23350_v46 = vld [vmem:[%s24378_s5] sm:$0xff] }
 0x6af   :  { %14972 = vmatpush1.bf16.msra.mxu1 %v16711_v20  ;;  %14645 = vmatprep.subr.bf16.mxu0 %v16718_v33  ;;  %v8093_v20 = vld [vmem:[%s24376_s3 + $0xc50] sm:$0xff] }
 0x6b0   :  { %14973 = vmatprep.subr.bf16.mxu1 %v16720_v31  ;;  %v8097_v33 = vld [vmem:[%s24376_s3 + $0xc70] sm:$0xff]  ;;  %v16757_v31 = vcombine.low %v8085_v22, %v8089_v60  ;;  %v8723_v22 = vld [vmem:[%s24377_s4] sm:$0xff] }
 0x6b1   :  { %v16766_v40 = vcombine.high %v8093_v20, %v8097_v33  ;;  %v16765_v24 = vcombine.low %v8093_v20, %v8097_v33  ;;  %v23366_v20 = vld [vmem:[%s24376_s3 + $0xd98] sm:$0xff] }
 0x6b2   :  { %14646 = vmatpush1.bf16.msra.mxu0 %v16717_v42  ;;  %v8101_v42 = vld [vmem:[%s24376_s3 + $0xc90] sm:$0xff]  ;;  %v23371_v33 = vld [vmem:[%s24376_s3 + $0xdb8] sm:$0xff] }
 0x6b3   :  { %14974 = vmatpush1.bf16.msra.mxu1 %v16719_v43  ;;  %14647 = vmatprep.subr.bf16.mxu0 %v16726_v54  ;;  %v8105_v43 = vld [vmem:[%s24376_s3 + $0xcb0] sm:$0xff]  ;;  %v16768_v54 = vcombine.high %v8094_v35, %v8098_v49  ;;  %v8732_v35 = vrot.slane %v8723_v22, %v19254_v15  ;;  %v8740_v49 = vrot.slane %v8723_v22, %v19257_v29 }
 0x6b4   :  { %14975 = vmatprep.subr.bf16.mxu1 %v16728_v50  ;;  %v8102_v50 = vld [vmem:[%s24376_s3 + $0xc98] sm:$0xff]  ;;  %v16774_v44 = vcombine.high %v8101_v42, %v8105_v43 }
 0x6b5   :  { %v16775_v52 = vcombine.low %v8102_v50, %v8106_v58 }
 0x6b6   :  { %14648 = vmatpush1.bf16.msra.mxu0 %v16725_v61  ;;  %v16776_v61 = vcombine.high %v8102_v50, %v8106_v58  ;;  %v23393_v58 = vld [vmem:[%s24376_s3 + $0xdd8] sm:$0xff] }
 0x6b7   :  { %14976 = vmatpush1.bf16.msra.mxu1 %v16727_v56  ;;  %14649 = vmatprep.subr.bf16.mxu0 %v16734_v55  ;;  %v8109_v56 = vld [vmem:[%s24376_s3 + $0xcd0] sm:$0xff] }
 0x6b8   :  { %14977 = vmatprep.subr.bf16.mxu1 %v16736_v39  ;;  %v8113_v55 = vld [vmem:[%s24376_s3 + $0xcf0] sm:$0xff]  ;;  %v8114_v39 = vld [vmem:[%s24376_s3 + $0xcf8] sm:$0xff] }
 0x6b9   :  { %v16782_v48 = vcombine.high %v8109_v56, %v8113_v55 }
 0x6ba   :  { %14650 = vmatpush1.bf16.msra.mxu0 %v16733_v34  ;;  %v8121_v34 = vld [vmem:[%s24376_s3 + $0xd30] sm:$0xff] }
 0x6bb   :  { %14978 = vmatpush1.bf16.msra.mxu1 %v16735_v0  ;;  %14651 = vmatprep.subr.bf16.mxu0 %v16742_v1  ;;  %v8118_v0 = vld [vmem:[%s24376_s3 + $0xd18] sm:$0xff]  ;;  %v16790_v57 = vcombine.high %v8117_v51, %v8121_v34 }
 0x6bc   :  { %14979 = vmatprep.subr.bf16.mxu1 %v16744_v2  ;;  %v8122_v1 = vld [vmem:[%s24376_s3 + $0xd38] sm:$0xff]  ;;  %v16781_v2 = vcombine.low %v8109_v56, %v8113_v55  ;;  %v16808_v56 = vcombine.high %v23366_v20, %v23371_v33  ;;  %v23411_v55 = vld [vmem:[%s24376_s3 + $0xe10] sm:$0xff] }
 0x6bd   :  { %v16792_v4 = vcombine.high %v8118_v0, %v8122_v1  ;;  %v16791_v60 = vcombine.low %v8118_v0, %v8122_v1 }
 0x6be   :  { %14652 = vmatpush1.bf16.msra.mxu0 %v16741_v5  ;;  %v8129_v5 = vld [vmem:[%s24376_s3 + $0xd70] sm:$0xff] }
 0x6bf   :  { %14980 = vmatpush1.bf16.msra.mxu1 %v16743_v6  ;;  %14653 = vmatprep.subr.bf16.mxu0 %v16750_v36  ;;  %v8126_v6 = vld [vmem:[%s24376_s3 + $0xd58] sm:$0xff]  ;;  %v16798_v13 = vcombine.high %v8125_v12, %v8129_v5 }
 0x6c0   :  { %14981 = vmatprep.subr.bf16.mxu1 %v16752_v10  ;;  %v8130_v36 = vld [vmem:[%s24376_s3 + $0xd78] sm:$0xff]  ;;  %v16789_v10 = vcombine.low %v8117_v51, %v8121_v34 }
 0x6c2   :  { %14654 = vmatpush1.bf16.msra.mxu0 %v16749_v14  ;;  %v16800_v14 = vcombine.high %v8126_v6, %v8130_v36 }
 0x6c3   :  { %14982 = vmatpush1.bf16.msra.mxu1 %v16751_v17  ;;  %14664 = vmatprep.subr.bf16.mxu0 %v16758_v21  ;;  %v23355_v17 = vld [vmem:[%s24376_s3 + $0xd90] sm:$0xff] }
 0x6c4   :  { %14992 = vmatprep.subr.bf16.mxu1 %v16760_v18  ;;  %v23360_v21 = vld [vmem:[%s24376_s3 + $0xdb0] sm:$0xff]  ;;  %v8728_v18 = vrot.slane %v8723_v22, %v19239_v19 }
 0x6c5   :  { %14656 = vmatmul.mubr.bf16.vlgmr.msra.gmra.mrb[20].mxu0 %v21659_v28  ;;  %v16806_v50 = vcombine.high %v23355_v17, %v23360_v21 }
 0x6c6   :  { %14984 = vmatmul.mubr.bf16.vlgmr.msra.gmra.mrb[20].mxu1 %v21659_v28  ;;  %14665 = vmatpush1.bf16.msra.mxu0 %v16757_v31  ;;  %v8110_v28 = vld [vmem:[%s24376_s3 + $0xcd8] sm:$0xff]  ;;  %v8736_v31 = vrot.slane %v8723_v22, %v19251_v27 }
 0x6c7   :  { %14696 = vmatprep.mubr.bf16.mxu0 %v21669_v62  ;;  %14993 = vmatpush1.bf16.msra.mxu1 %v16759_v47  ;;  %v16784_v59 = vcombine.high %v8110_v28, %v8114_v39  ;;  %v16783_v30 = vcombine.low %v8110_v28, %v8114_v39  ;;  %v16797_v47 = vcombine.low %v8125_v12, %v8129_v5  ;;  %v23416_v28 = vld [vmem:[%s24376_s3 + $0xe30] sm:$0xff] }
 0x6c8   :  { %15024 = vmatprep.mubr.bf16.mxu1 %v21669_v62  ;;  %14666 = vmatprep.subr.bf16.mxu0 %v16766_v40  ;;  %v16773_v62 = vcombine.low %v8101_v42, %v8105_v43  ;;  %v23379_v40 = vld [vmem:[%s24376_s3 + $0xdd0] sm:$0xff]  ;;  %v15242_v43 = vrot.slane %v23350_v46, %v19239_v19  ;;  %v16805_v19 = vcombine.low %v23355_v17, %v23360_v21 }
 0x6c9   :  { %14994 = vmatprep.subr.bf16.mxu1 %v16768_v54  ;;  %v23384_v42 = vld [vmem:[%s24376_s3 + $0xdf0] sm:$0xff]  ;;  %v16799_v54 = vcombine.low %v8126_v6, %v8130_v36  ;;  %v16822_v12 = vcombine.high %v23411_v55, %v23416_v28 }
 0x6ca   :  { %14667 = vmatpush1.bf16.msra.mxu0 %v16765_v24  ;;  %v23398_v24 = vld [vmem:[%s24376_s3 + $0xdf8] sm:$0xff] }
 0x6cb   :  { %14995 = vmatpush1.bf16.msra.mxu1 %v16767_v37  ;;  %14668 = vmatprep.subr.bf16.mxu0 %v16774_v44  ;;  %v15250_v44 = vrot.slane %v23350_v46, %v19251_v27 }
 0x6cc   :  { %14996 = vmatprep.subr.bf16.mxu1 %v16776_v61  ;;  %v16807_v61 = vcombine.low %v23366_v20, %v23371_v33 }
 0x6ce   :  { %14669 = vmatpush1.bf16.msra.mxu0 %v16773_v62 }
 0x6cf   :  { %14997 = vmatpush1.bf16.msra.mxu1 %v16775_v52  ;;  %14670 = vmatprep.subr.bf16.mxu0 %v16782_v48  ;;  %v15246_v52 = vrot.slane %v23350_v46, %v19254_v15  ;;  %v15254_v48 = vrot.slane %v23350_v46, %v19257_v29  ;;  %v16816_v29 = vcombine.high %v23393_v58, %v23398_v24  ;;  %v8150_v46 = vld [vmem:[%s24376_s3 + $0xe18] sm:$0xff] }
 0x6d0   :  { %14998 = vmatprep.subr.bf16.mxu1 %v16784_v59  ;;  %v16814_v59 = vcombine.high %v23379_v40, %v23384_v42 }
 0x6d2   :  { %14671 = vmatpush1.bf16.msra.mxu0 %v16781_v2  ;;  %v16813_v2 = vcombine.low %v23379_v40, %v23384_v42 }
 0x6d3   :  { %14999 = vmatpush1.bf16.msra.mxu1 %v16783_v30  ;;  %14672 = vmatprep.subr.bf16.mxu0 %v16790_v57  ;;  %v16815_v30 = vcombine.low %v23393_v58, %v23398_v24  ;;  %v8162_v58 = vld [vmem:[%s24376_s3 + $0xe78] sm:$0xff] }
 0x6d4   :  { %15000 = vmatprep.subr.bf16.mxu1 %v16792_v4 }
 0x6d6   :  { %14673 = vmatpush1.bf16.msra.mxu0 %v16789_v10 }
 0x6d7   :  { %15001 = vmatpush1.bf16.msra.mxu1 %v16791_v60  ;;  %14674 = vmatprep.subr.bf16.mxu0 %v16798_v13 }
 0x6d8   :  { %v14206_v37 = vpop.f32.mrb[16].mxu0  ;;  %15002 = vmatprep.subr.bf16.mxu1 %v16800_v14  ;;  %v8154_v14 = vld [vmem:[%s24376_s3 + $0xe38] sm:$0xff] }
 0x6d9   :  { %v17410_v27 = vadd.f32 %v14206_v37, %v8728_v18  ;;  %v14534_v39 = vpop.f32.mrb[16].mxu1  ;;  %v14208_v62 = vpop.f32.mrb[17].mxu0  ;;  %v16824_v42 = vcombine.high %v8150_v46, %v8154_v14 }
 0x6da   :  { %v17412_v51 = vadd.f32 %v14534_v39, %v8736_v31  ;;  %v17411_v34 = vadd.f32 %v14208_v62, %v8732_v35  ;;  %v14536_v0 = vpop.f32.mrb[17].mxu1  ;;  %v14210_v1 = vpop.f32.mrb[18].mxu0  ;;  %14675 = vmatpush1.bf16.msra.mxu0 %v16797_v47 }
 0x6db   :  { %vm15197_vm0 = vcmp.gt.f32.partialorder %v17410_v27, 0.0  ;;  %v17413_v57 = vadd.f32 %v14536_v0, %v8740_v49  ;;  %v14538_v15 = vpop.f32.mrb[18].mxu1  ;;  %15003 = vmatpush1.bf16.msra.mxu1 %v16799_v54  ;;  %v14211_v4 = vpop.f32.mrb[19].mxu0  ;;  %14676 = vmatprep.subr.bf16.mxu0 %v16806_v50  ;;  %v8157_v54 = vld [vmem:[%s24376_s3 + $0xe50] sm:$0xff]  ;;  %v8158_v50 = vld [vmem:[%s24376_s3 + $0xe58] sm:$0xff] }
 0x6dc   :  { %v15205_v5 = vsel %vm15197_vm0, 1.0, %v17690_v7  ;;  %v15213_v6 = vsel %vm15197_vm0, 1, %v17691_v9  ;;  %vm15199_vm1 = vcmp.gt.f32.partialorder %v17412_v51, 0.0  ;;  %vm15198_vm2 = vcmp.gt.f32.partialorder %v17411_v34, 0.0  ;;  %v14539_v36 = vpop.f32.mrb[19].mxu1  ;;  %15004 = vmatprep.subr.bf16.mxu1 %v16808_v56  ;;  %v8178_v15 = vld [vmem:[%s24376_s3 + $0xef8] sm:$0xff] }
 0x6dd   :  { %v15229_v10 = vmul.f32 %v17410_v27, %v15205_v5  ;;  %v15207_v22 = vsel %vm15199_vm1, 1.0, %v17690_v7  ;;  %v15215_v60 = vsel %vm15199_vm1, 1, %v17691_v9  ;;  %v15206_v13 = vsel %vm15198_vm2, 1.0, %v17690_v7  ;;  %v8185_v36 = vld [vmem:[%s24376_s3 + $0xf30] sm:$0xff] }
 0x6de   :  { %v15231_v17 = vmul.f32 %v17412_v51, %v15207_v22  ;;  %v15214_v21 = vsel %vm15198_vm2, 1, %v17691_v9  ;;  %v15230_v18 = vmul.f32 %v17411_v34, %v15206_v13  ;;  %vm15200_vm3 = vcmp.gt.f32.partialorder %v17413_v57, 0.0  ;;  %14677 = vmatpush1.bf16.msra.mxu0 %v16805_v19  ;;  %v8186_v22 = vld [vmem:[%s24376_s3 + $0xf38] sm:$0xff] }
 0x6df   :  { %v15279_v20 = vmul.f32 %v15242_v43, %v15229_v10  ;;  %v15221_v33 = vpack.c.b16 %v15214_v21, %v15213_v6  ;;  %v15208_v31 = vsel %vm15200_vm3, 1.0, %v17690_v7  ;;  %v15216_v35 = vsel %vm15200_vm3, 1, %v17691_v9  ;;  %15005 = vmatpush1.bf16.msra.mxu1 %v16807_v61  ;;  %14678 = vmatprep.subr.bf16.mxu0 %v16814_v59  ;;  %v8161_v43 = vld [vmem:[%s24376_s3 + $0xe70] sm:$0xff]  ;;  %v8182_v10 = vld [vmem:[%s24376_s3 + $0xf18] sm:$0xff] }
 0x6e0   :  { %v15280_v49 = vmul.f32 %v15246_v52, %v15230_v18  ;;  %v15222_v47 = vpack.c.b16 %v15216_v35, %v15215_v60  ;;  %v15232_v40 = vmul.f32 %v17413_v57, %v15208_v31  ;;  %15006 = vmatprep.subr.bf16.mxu1 %v16816_v29  ;;  %v15281_v24 = vmul.f32 %v15250_v44, %v15231_v17  ;;  %v8165_v59 = vld [vmem:[%s24376_s3 + $0xe90] sm:$0xff]  ;;  %v8174_v57 = vld [vmem:[%s24376_s3 + $0xed8] sm:$0xff] }
 0x6e1   :  { %v16821_v19 = vcombine.low %v23411_v55, %v23416_v28  ;;  %v16823_v61 = vcombine.low %v8150_v46, %v8154_v14  ;;  %v16830_v56 = vcombine.high %v8157_v54, %v8161_v43  ;;  %v16832_v52 = vcombine.high %v8158_v50, %v8162_v58  ;;  %v8169_v44 = vld [vmem:[%s24376_s3 + $0xeb0] sm:$0xff]  ;;  %v8166_v55 = vld [vmem:[%s24376_s3 + $0xe98] sm:$0xff] }
 0x6e2   :  { %v15287_v37 = vadd.f32 %v15280_v49, %v15279_v20  ;;  %14679 = vmatpush1.bf16.msra.mxu0 %v16813_v2  ;;  %v15223_v27 = vpack.c.b8 %v15222_v47, %v15221_v33  ;;  %v15282_v39 = vmul.f32 %v15254_v48, %v15232_v40  ;;  %v8170_v28 = vld [vmem:[%s24376_s3 + $0xeb8] sm:$0xff]  ;;  %v16829_v51 = vcombine.low %v8157_v54, %v8161_v43  ;;  %v8173_v2 = vld [vmem:[%s24376_s3 + $0xed0] sm:$0xff] }
 0x6e3   :  { %15007 = vmatpush1.bf16.msra.mxu1 %v16815_v30  ;;  %14680 = vmatprep.subr.bf16.mxu0 %v16822_v12  ;;  %v16831_v34 = vcombine.low %v8158_v50, %v8162_v58  ;;  %v16838_v0 = vcombine.high %v8165_v59, %v8169_v44  ;;  %v16840_v1 = vcombine.high %v8166_v55, %v8170_v28  ;;  %v8177_v30 = vld [vmem:[%s24376_s3 + $0xef0] sm:$0xff]  ;;  %v8190_v18 = vld [vmem:[%s24376_s3 + $0xf58] sm:$0xff] }
 0x6e4   :  { %v15288_v62 = vadd.f32 %v15287_v37, %v15281_v24  ;;  %15008 = vmatprep.subr.bf16.mxu1 %v16824_v42  ;;  %15227 = vst [vmem:[#allocation4] sm:$0xff] %v15223_v27  ;;  %v16837_v4 = vcombine.low %v8165_v59, %v8169_v44  ;;  %v16839_v29 = vcombine.low %v8166_v55, %v8170_v28  ;;  %v8181_v6 = vld [vmem:[%s24376_s3 + $0xf10] sm:$0xff]  ;;  %v8194_v20 = vld [vmem:[%s24376_s3 + $0xf78] sm:$0xff] }
 0x6e5   :  { %v16846_v12 = vcombine.high %v8173_v2, %v8177_v30  ;;  %v16848_v5 = vcombine.high %v8174_v57, %v8178_v15  ;;  %v16845_v60 = vcombine.low %v8173_v2, %v8177_v30  ;;  %v16847_v13 = vcombine.low %v8174_v57, %v8178_v15  ;;  %v8189_v17 = vld [vmem:[%s24376_s3 + $0xf50] sm:$0xff]  ;;  %v8198_v42 = vld [vmem:[%s24376_s3 + $0xf98] sm:$0xff] }
 0x6e6   :  { %v23472_v48 = vadd.f32 %v15288_v62, %v15282_v39  ;;  %14681 = vmatpush1.bf16.msra.mxu0 %v16821_v19  ;;  %v16854_v46 = vcombine.high %v8181_v6, %v8185_v36  ;;  %v16856_v14 = vcombine.high %v8182_v10, %v8186_v22  ;;  %v8193_v21 = vld [vmem:[%s24376_s3 + $0xf70] sm:$0xff]  ;;  %v16853_v33 = vcombine.low %v8181_v6, %v8185_v36  ;;  %v8202_v54 = vld [vmem:[%s24376_s3 + $0xfb8] sm:$0xff] }
 0x6e7   :  { %15009 = vmatpush1.bf16.msra.mxu1 %v16823_v61  ;;  %14682 = vmatprep.subr.bf16.mxu0 %v16830_v56  ;;  %v16855_v31 = vcombine.low %v8182_v10, %v8186_v22  ;;  %v16862_v35 = vcombine.high %v8189_v17, %v8193_v21  ;;  %v16864_v49 = vcombine.high %v8190_v18, %v8194_v20  ;;  %v8197_v47 = vld [vmem:[%s24376_s3 + $0xf90] sm:$0xff]  ;;  %v8206_v61 = vld [vmem:[%s24376_s3 + $0xfd8] sm:$0xff] }
 0x6e8   :  { %15010 = vmatprep.subr.bf16.mxu1 %v16832_v52  ;;  %v8201_v40 = vld [vmem:[%s24376_s3 + $0xfb0] sm:$0xff]  ;;  %v16861_v43 = vcombine.low %v8189_v17, %v8193_v21  ;;  %v16863_v50 = vcombine.low %v8190_v18, %v8194_v20  ;;  %v16872_v24 = vcombine.high %v8198_v42, %v8202_v54  ;;  %v8210_v56 = vld [vmem:[%s24376_s3 + $0xff8] sm:$0xff]  ;;  %v16871_v39 = vcombine.low %v8198_v42, %v8202_v54 }
 0x6e9   :  { %v16870_v58 = vcombine.high %v8197_v47, %v8201_v40  ;;  %v8205_v37 = vld [vmem:[%s24376_s3 + $0xfd0] sm:$0xff]  ;;  %v16869_v27 = vcombine.low %v8197_v47, %v8201_v40  ;;  %v16880_v52 = vcombine.high %v8206_v61, %v8210_v56  ;;  %v8214_v55 = vld [vmem:[%s24376_s3 + $0x1018] sm:$0xff] }
 0x6ea   :  { %14683 = vmatpush1.bf16.msra.mxu0 %v16829_v51  ;;  %v8209_v19 = vld [vmem:[%s24376_s3 + $0xff0] sm:$0xff]  ;;  %v8218_v28 = vld [vmem:[%s24376_s3 + $0x1038] sm:$0xff] }
 0x6eb   :  { %15011 = vmatpush1.bf16.msra.mxu1 %v16831_v34  ;;  %14684 = vmatprep.subr.bf16.mxu0 %v16838_v0  ;;  %v16878_v62 = vcombine.high %v8205_v37, %v8209_v19  ;;  %v8213_v59 = vld [vmem:[%s24376_s3 + $0x1010] sm:$0xff]  ;;  %v16877_v51 = vcombine.low %v8205_v37, %v8209_v19  ;;  %v16879_v34 = vcombine.low %v8206_v61, %v8210_v56  ;;  %v8222_v15 = vld [vmem:[%s24376_s3 + $0x1058] sm:$0xff] }
 0x6ec   :  { %15012 = vmatprep.subr.bf16.mxu1 %v16840_v1  ;;  %v8217_v44 = vld [vmem:[%s24376_s3 + $0x1030] sm:$0xff]  ;;  %v16888_v1 = vcombine.high %v8214_v55, %v8218_v28  ;;  %v8230_v10 = vld [vmem:[%s24376_s3 + $0x1098] sm:$0xff] }
 0x6ed   :  { %v16886_v0 = vcombine.high %v8213_v59, %v8217_v44  ;;  %v8221_v2 = vld [vmem:[%s24376_s3 + $0x1050] sm:$0xff]  ;;  %v16885_v57 = vcombine.low %v8213_v59, %v8217_v44  ;;  %v8234_v22 = vld [vmem:[%s24376_s3 + $0x10b8] sm:$0xff] }
 0x6ee   :  { %14685 = vmatpush1.bf16.msra.mxu0 %v16837_v4  ;;  %v8225_v30 = vld [vmem:[%s24376_s3 + $0x1070] sm:$0xff]  ;;  %v8226_v4 = vld [vmem:[%s24376_s3 + $0x1078] sm:$0xff]  ;;  %v16903_v20 = vcombine.low %v8230_v10, %v8234_v22 }
 0x6ef   :  { %15013 = vmatpush1.bf16.msra.mxu1 %v16839_v29  ;;  %14686 = vmatprep.subr.bf16.mxu0 %v16846_v12  ;;  %v16887_v29 = vcombine.low %v8214_v55, %v8218_v28  ;;  %v16894_v12 = vcombine.high %v8221_v2, %v8225_v30  ;;  %v8233_v6 = vld [vmem:[%s24376_s3 + $0x10b0] sm:$0xff]  ;;  %v16896_v36 = vcombine.high %v8222_v15, %v8226_v4  ;;  %v8242_v18 = vld [vmem:[%s24376_s3 + $0x10f8] sm:$0xff] }
 0x6f0   :  { %15014 = vmatprep.subr.bf16.mxu1 %v16848_v5  ;;  %v8229_v5 = vld [vmem:[%s24376_s3 + $0x1090] sm:$0xff]  ;;  %v8246_v47 = vld [vmem:[%s24376_s3 + $0x1118] sm:$0xff] }
 0x6f1   :  { %v8237_v17 = vld [vmem:[%s24376_s3 + $0x10d0] sm:$0xff]  ;;  %v8250_v40 = vld [vmem:[%s24376_s3 + $0x1138] sm:$0xff] }
 0x6f2   :  { %14687 = vmatpush1.bf16.msra.mxu0 %v16845_v60  ;;  %v16893_v60 = vcombine.low %v8221_v2, %v8225_v30  ;;  %v8241_v21 = vld [vmem:[%s24376_s3 + $0x10f0] sm:$0xff]  ;;  %v8254_v37 = vld [vmem:[%s24376_s3 + $0x1158] sm:$0xff]  ;;  %v16919_v56 = vcombine.low %v8246_v47, %v8250_v40 }
 0x6f3   :  { %15015 = vmatpush1.bf16.msra.mxu1 %v16847_v13  ;;  %14688 = vmatprep.subr.bf16.mxu0 %v16854_v46  ;;  %v16895_v13 = vcombine.low %v8222_v15, %v8226_v4  ;;  %v16902_v46 = vcombine.high %v8229_v5, %v8233_v6  ;;  %v16909_v42 = vcombine.low %v8237_v17, %v8241_v21  ;;  %v8258_v19 = vld [vmem:[%s24376_s3 + $0x1178] sm:$0xff] }
 0x6f4   :  { %15016 = vmatprep.subr.bf16.mxu1 %v16856_v14  ;;  %v16904_v14 = vcombine.high %v8230_v10, %v8234_v22  ;;  %v8262_v59 = vld [vmem:[%s24376_s3 + $0x1198] sm:$0xff]  ;;  %v16927_v28 = vcombine.low %v8254_v37, %v8258_v19 }
 0x6f5   :  { %v8266_v44 = vld [vmem:[%s24376_s3 + $0x11b8] sm:$0xff] }
 0x6f6   :  { %14689 = vmatpush1.bf16.msra.mxu0 %v16853_v33  ;;  %v16910_v33 = vcombine.high %v8237_v17, %v8241_v21  ;;  %v8270_v2 = vld [vmem:[%s24376_s3 + $0x11d8] sm:$0xff]  ;;  %v16935_v15 = vcombine.low %v8262_v59, %v8266_v44 }
 0x6f7   :  { %15017 = vmatpush1.bf16.msra.mxu1 %v16855_v31  ;;  %14690 = vmatprep.subr.bf16.mxu0 %v16862_v35  ;;  %v8245_v35 = vld [vmem:[%s24376_s3 + $0x1110] sm:$0xff]  ;;  %v8274_v30 = vld [vmem:[%s24376_s3 + $0x11f8] sm:$0xff] }
 0x6f8   :  { %15018 = vmatprep.subr.bf16.mxu1 %v16864_v49  ;;  %v8249_v49 = vld [vmem:[%s24376_s3 + $0x1130] sm:$0xff]  ;;  %v16943_v22 = vcombine.low %v8270_v2, %v8274_v30  ;;  %v8286_v17 = vld [vmem:[%s24376_s3 + $0x1258] sm:$0xff] }
 0x6f9   :  { %v16917_v61 = vcombine.low %v8245_v35, %v8249_v49  ;;  %v8290_v21 = vld [vmem:[%s24376_s3 + $0x1278] sm:$0xff] }
 0x6fa   :  { %14691 = vmatpush1.bf16.msra.mxu0 %v16861_v43  ;;  %v16918_v43 = vcombine.high %v8245_v35, %v8249_v49  ;;  %v8294_v35 = vld [vmem:[%s24376_s3 + $0x1298] sm:$0xff] }
 0x6fb   :  { %15019 = vmatpush1.bf16.msra.mxu1 %v16863_v50  ;;  %14692 = vmatprep.subr.bf16.mxu0 %v16870_v58  ;;  %v16920_v50 = vcombine.high %v8246_v47, %v8250_v40  ;;  %v8253_v58 = vld [vmem:[%s24376_s3 + $0x1150] sm:$0xff]  ;;  %v8298_v49 = vld [vmem:[%s24376_s3 + $0x12b8] sm:$0xff]  ;;  %v16959_v40 = vcombine.low %v8286_v17, %v8290_v21 }
 0x6fc   :  { %15020 = vmatprep.subr.bf16.mxu1 %v16872_v24  ;;  %v8257_v24 = vld [vmem:[%s24376_s3 + $0x1170] sm:$0xff] }
 0x6fd   :  { %v16925_v55 = vcombine.low %v8253_v58, %v8257_v24 }
 0x6fe   :  { %14693 = vmatpush1.bf16.msra.mxu0 %v16869_v27  ;;  %v16926_v27 = vcombine.high %v8253_v58, %v8257_v24  ;;  %v8302_v58 = vld [vmem:[%s24376_s3 + $0x12d8] sm:$0xff] }
 0x6ff   :  { %15021 = vmatpush1.bf16.msra.mxu1 %v16871_v39  ;;  %14694 = vmatprep.subr.bf16.mxu0 %v16878_v62  ;;  %v16928_v39 = vcombine.high %v8254_v37, %v8258_v19  ;;  %v8261_v62 = vld [vmem:[%s24376_s3 + $0x1190] sm:$0xff]  ;;  %v8306_v24 = vld [vmem:[%s24376_s3 + $0x12f8] sm:$0xff]  ;;  %v16967_v19 = vcombine.low %v8294_v35, %v8298_v49 }
 0x700   :  { %15022 = vmatprep.subr.bf16.mxu1 %v16880_v52  ;;  %v8265_v52 = vld [vmem:[%s24376_s3 + $0x11b0] sm:$0xff] }
 0x702   :  { %14695 = vmatpush1.bf16.msra.mxu0 %v16877_v51  ;;  %v16934_v51 = vcombine.high %v8261_v62, %v8265_v52 }
 0x703   :  { %15023 = vmatpush1.bf16.msra.mxu1 %v16879_v34  ;;  %14705 = vmatprep.subr.bf16.mxu0 %v16886_v0  ;;  %v16936_v34 = vcombine.high %v8262_v59, %v8266_v44  ;;  %v8269_v0 = vld [vmem:[%s24376_s3 + $0x11d0] sm:$0xff]  ;;  %v16975_v44 = vcombine.low %v8302_v58, %v8306_v24 }
 0x704   :  { %15033 = vmatprep.subr.bf16.mxu1 %v16888_v1  ;;  %v8273_v1 = vld [vmem:[%s24376_s3 + $0x11f0] sm:$0xff] }
 0x705   :  { %14697 = vmatmul.mubr.bf16.vlgmr.msra.gmra.mrb[20].mxu0 %v21886_v16  ;;  %v16942_v4 = vcombine.high %v8269_v0, %v8273_v1  ;;  %v16941_v10 = vcombine.low %v8269_v0, %v8273_v1  ;;  %v8318_v0 = vld [vmem:[%s24376_s3 + $0x1358] sm:$0xff] }
 0x706   :  { %15025 = vmatmul.mubr.bf16.vlgmr.msra.gmra.mrb[20].mxu1 %v21886_v16  ;;  %14706 = vmatpush1.bf16.msra.mxu0 %v16885_v57  ;;  %v8238_v16 = vld [vmem:[%s24376_s3 + $0x10d8] sm:$0xff]  ;;  %v16933_v57 = vcombine.low %v8261_v62, %v8265_v52 }
 0x707   :  { %14737 = vmatprep.mubr.bf16.mxu0 %v21896_v25  ;;  %15034 = vmatpush1.bf16.msra.mxu1 %v16887_v29  ;;  %v16912_v31 = vcombine.high %v8238_v16, %v8242_v18  ;;  %v16911_v54 = vcombine.low %v8238_v16, %v8242_v18  ;;  %v16944_v29 = vcombine.high %v8270_v2, %v8274_v30  ;;  %v8310_v62 = vld [vmem:[%s24376_s3 + $0x1318] sm:$0xff] }
 0x708   :  { %15065 = vmatprep.mubr.bf16.mxu1 %v21896_v25  ;;  %14707 = vmatprep.subr.bf16.mxu0 %v16894_v12  ;;  %v16901_v25 = vcombine.low %v8229_v5, %v8233_v6  ;;  %v8277_v12 = vld [vmem:[%s24376_s3 + $0x1210] sm:$0xff]  ;;  %v8278_v6 = vld [vmem:[%s24376_s3 + $0x1218] sm:$0xff] }
 0x709   :  { %15035 = vmatprep.subr.bf16.mxu1 %v16896_v36  ;;  %v8281_v5 = vld [vmem:[%s24376_s3 + $0x1230] sm:$0xff]  ;;  %v8282_v36 = vld [vmem:[%s24376_s3 + $0x1238] sm:$0xff] }
 0x70a   :  { %14708 = vmatpush1.bf16.msra.mxu0 %v16893_v60  ;;  %v16950_v60 = vcombine.high %v8277_v12, %v8281_v5  ;;  %v16949_v16 = vcombine.low %v8277_v12, %v8281_v5  ;;  %v16951_v18 = vcombine.low %v8278_v6, %v8282_v36  ;;  %v8314_v52 = vld [vmem:[%s24376_s3 + $0x1338] sm:$0xff] }
 0x70b   :  { %15036 = vmatpush1.bf16.msra.mxu1 %v16895_v13  ;;  %14709 = vmatprep.subr.bf16.mxu0 %v16902_v46  ;;  %v16952_v13 = vcombine.high %v8278_v6, %v8282_v36  ;;  %v8285_v46 = vld [vmem:[%s24376_s3 + $0x1250] sm:$0xff]  ;;  %v8322_v1 = vld [vmem:[%s24376_s3 + $0x1378] sm:$0xff]  ;;  %v16983_v30 = vcombine.low %v8310_v62, %v8314_v52 }
 0x70c   :  { %15037 = vmatprep.subr.bf16.mxu1 %v16904_v14  ;;  %v8289_v14 = vld [vmem:[%s24376_s3 + $0x1270] sm:$0xff]  ;;  %v8326_v12 = vld [vmem:[%s24376_s3 + $0x1398] sm:$0xff]  ;;  %v16991_v36 = vcombine.low %v8318_v0, %v8322_v1 }
 0x70d   :  { %v16957_v47 = vcombine.low %v8285_v46, %v8289_v14  ;;  %v8330_v5 = vld [vmem:[%s24376_s3 + $0x13b8] sm:$0xff] }
 0x70e   :  { %14710 = vmatpush1.bf16.msra.mxu0 %v16901_v25  ;;  %v16958_v25 = vcombine.high %v8285_v46, %v8289_v14  ;;  %v8334_v46 = vld [vmem:[%s24376_s3 + $0x13d8] sm:$0xff] }
 0x70f   :  { %15038 = vmatpush1.bf16.msra.mxu1 %v16903_v20  ;;  %14711 = vmatprep.subr.bf16.mxu0 %v16910_v33  ;;  %v16960_v20 = vcombine.high %v8286_v17, %v8290_v21  ;;  %v8293_v33 = vld [vmem:[%s24376_s3 + $0x1290] sm:$0xff]  ;;  %v8338_v14 = vld [vmem:[%s24376_s3 + $0x13f8] sm:$0xff]  ;;  %v16999_v21 = vcombine.low %v8326_v12, %v8330_v5 }
 0x710   :  { %15039 = vmatprep.subr.bf16.mxu1 %v16912_v31  ;;  %v8297_v31 = vld [vmem:[%s24376_s3 + $0x12b0] sm:$0xff] }
 0x711   :  { %v16965_v37 = vcombine.low %v8293_v33, %v8297_v31 }
 0x712   :  { %14712 = vmatpush1.bf16.msra.mxu0 %v16909_v42  ;;  %v16966_v42 = vcombine.high %v8293_v33, %v8297_v31  ;;  %v8342_v33 = vld [vmem:[%s24376_s3 + $0x1418] sm:$0xff] }
 0x713   :  { %15040 = vmatpush1.bf16.msra.mxu1 %v16911_v54  ;;  %14713 = vmatprep.subr.bf16.mxu0 %v16918_v43  ;;  %v16968_v54 = vcombine.high %v8294_v35, %v8298_v49  ;;  %v8301_v43 = vld [vmem:[%s24376_s3 + $0x12d0] sm:$0xff]  ;;  %v8346_v31 = vld [vmem:[%s24376_s3 + $0x1438] sm:$0xff]  ;;  %v17007_v49 = vcombine.low %v8334_v46, %v8338_v14 }
 0x714   :  { %15041 = vmatprep.subr.bf16.mxu1 %v16920_v50  ;;  %v8305_v50 = vld [vmem:[%s24376_s3 + $0x12f0] sm:$0xff] }
 0x715   :  { %v16973_v59 = vcombine.low %v8301_v43, %v8305_v50 }
 0x716   :  { %14714 = vmatpush1.bf16.msra.mxu0 %v16917_v61  ;;  %v16974_v61 = vcombine.high %v8301_v43, %v8305_v50  ;;  %v8350_v50 = vld [vmem:[%s24376_s3 + $0x1458] sm:$0xff] }
 0x717   :  { %15042 = vmatpush1.bf16.msra.mxu1 %v16919_v56  ;;  %14715 = vmatprep.subr.bf16.mxu0 %v16926_v27  ;;  %v16976_v56 = vcombine.high %v8302_v58, %v8306_v24  ;;  %v8309_v27 = vld [vmem:[%s24376_s3 + $0x1310] sm:$0xff]  ;;  %v8354_v58 = vld [vmem:[%s24376_s3 + $0x1478] sm:$0xff]  ;;  %v17015_v24 = vcombine.low %v8342_v33, %v8346_v31 }
 0x718   :  { %15043 = vmatprep.subr.bf16.mxu1 %v16928_v39  ;;  %v8313_v39 = vld [vmem:[%s24376_s3 + $0x1330] sm:$0xff] }
 0x719   :  { %v16981_v2 = vcombine.low %v8309_v27, %v8313_v39 }
 0x71a   :  { %14716 = vmatpush1.bf16.msra.mxu0 %v16925_v55  ;;  %v16982_v55 = vcombine.high %v8309_v27, %v8313_v39  ;;  %v8358_v27 = vld [vmem:[%s24376_s3 + $0x1498] sm:$0xff] }
 0x71b   :  { %15044 = vmatpush1.bf16.msra.mxu1 %v16927_v28  ;;  %14717 = vmatprep.subr.bf16.mxu0 %v16934_v51  ;;  %v16984_v28 = vcombine.high %v8310_v62, %v8314_v52  ;;  %v8317_v51 = vld [vmem:[%s24376_s3 + $0x1350] sm:$0xff]  ;;  %v8362_v39 = vld [vmem:[%s24376_s3 + $0x14b8] sm:$0xff]  ;;  %v17023_v52 = vcombine.low %v8350_v50, %v8354_v58 }
 0x71c   :  { %15045 = vmatprep.subr.bf16.mxu1 %v16936_v34  ;;  %v8321_v34 = vld [vmem:[%s24376_s3 + $0x1370] sm:$0xff] }
 0x71d   :  { %v16989_v6 = vcombine.low %v8317_v51, %v8321_v34 }
 0x71e   :  { %14718 = vmatpush1.bf16.msra.mxu0 %v16933_v57  ;;  %v16990_v57 = vcombine.high %v8317_v51, %v8321_v34  ;;  %v8370_v51 = vld [vmem:[%s24376_s3 + $0x14f8] sm:$0xff]  ;;  %v17031_v34 = vcombine.low %v8358_v27, %v8362_v39 }
 0x71f   :  { %15046 = vmatpush1.bf16.msra.mxu1 %v16935_v15  ;;  %14719 = vmatprep.subr.bf16.mxu0 %v16942_v4  ;;  %v16992_v15 = vcombine.high %v8318_v0, %v8322_v1  ;;  %v8325_v4 = vld [vmem:[%s24376_s3 + $0x1390] sm:$0xff] }
 0x720   :  { %15047 = vmatprep.subr.bf16.mxu1 %v16944_v29  ;;  %v8329_v29 = vld [vmem:[%s24376_s3 + $0x13b0] sm:$0xff] }
 0x721   :  { %v16997_v17 = vcombine.low %v8325_v4, %v8329_v29 }
 0x722   :  { %14720 = vmatpush1.bf16.msra.mxu0 %v16941_v10  ;;  %v16998_v10 = vcombine.high %v8325_v4, %v8329_v29 }
 0x723   :  { %15048 = vmatpush1.bf16.msra.mxu1 %v16943_v22  ;;  %14721 = vmatprep.subr.bf16.mxu0 %v16950_v60  ;;  %v17000_v22 = vcombine.high %v8326_v12, %v8330_v5  ;;  %v8333_v60 = vld [vmem:[%s24376_s3 + $0x13d0] sm:$0xff] }
 0x724   :  { %15049 = vmatprep.subr.bf16.mxu1 %v16952_v13  ;;  %v8337_v13 = vld [vmem:[%s24376_s3 + $0x13f0] sm:$0xff] }
 0x725   :  { %v17005_v35 = vcombine.low %v8333_v60, %v8337_v13 }
 0x726   :  { %14722 = vmatpush1.bf16.msra.mxu0 %v16949_v16  ;;  %v17006_v16 = vcombine.high %v8333_v60, %v8337_v13 }
 0x727   :  { %15050 = vmatpush1.bf16.msra.mxu1 %v16951_v18  ;;  %14723 = vmatprep.subr.bf16.mxu0 %v16958_v25  ;;  %v17008_v18 = vcombine.high %v8334_v46, %v8338_v14  ;;  %v8341_v25 = vld [vmem:[%s24376_s3 + $0x1410] sm:$0xff] }
 0x728   :  { %15051 = vmatprep.subr.bf16.mxu1 %v16960_v20  ;;  %v8345_v20 = vld [vmem:[%s24376_s3 + $0x1430] sm:$0xff] }
 0x729   :  { %v17013_v43 = vcombine.low %v8341_v25, %v8345_v20 }
 0x72a   :  { %14724 = vmatpush1.bf16.msra.mxu0 %v16957_v47  ;;  %v17014_v47 = vcombine.high %v8341_v25, %v8345_v20 }
 0x72b   :  { %15052 = vmatpush1.bf16.msra.mxu1 %v16959_v40  ;;  %14725 = vmatprep.subr.bf16.mxu0 %v16966_v42  ;;  %v17016_v40 = vcombine.high %v8342_v33, %v8346_v31  ;;  %v8349_v42 = vld [vmem:[%s24376_s3 + $0x1450] sm:$0xff] }
 0x72c   :  { %15053 = vmatprep.subr.bf16.mxu1 %v16968_v54  ;;  %v8353_v54 = vld [vmem:[%s24376_s3 + $0x1470] sm:$0xff] }
 0x72d   :  { %v17021_v62 = vcombine.low %v8349_v42, %v8353_v54 }
 0x72e   :  { %14726 = vmatpush1.bf16.msra.mxu0 %v16965_v37  ;;  %v17022_v37 = vcombine.high %v8349_v42, %v8353_v54 }
 0x72f   :  { %15054 = vmatpush1.bf16.msra.mxu1 %v16967_v19  ;;  %14727 = vmatprep.subr.bf16.mxu0 %v16974_v61  ;;  %v8357_v19 = vld [vmem:[%s24376_s3 + $0x1490] sm:$0xff] }
 0x730   :  { %15055 = vmatprep.subr.bf16.mxu1 %v16976_v56  ;;  %v8361_v61 = vld [vmem:[%s24376_s3 + $0x14b0] sm:$0xff]  ;;  %v17024_v56 = vcombine.high %v8350_v50, %v8354_v58 }
 0x731   :  { %v8405_v58 = vld [vmem:[%s24376_s3 + $0x1610] sm:$0xff] }
 0x732   :  { %14728 = vmatpush1.bf16.msra.mxu0 %v16973_v59  ;;  %v17030_v59 = vcombine.high %v8357_v19, %v8361_v61 }
 0x733   :  { %15056 = vmatpush1.bf16.msra.mxu1 %v16975_v44  ;;  %14729 = vmatprep.subr.bf16.mxu0 %v16982_v55  ;;  %v17032_v44 = vcombine.high %v8358_v27, %v8362_v39  ;;  %v8365_v55 = vld [vmem:[%s24376_s3 + $0x14d0] sm:$0xff] }
 0x734   :  { %15057 = vmatprep.subr.bf16.mxu1 %v16984_v28  ;;  %v8369_v28 = vld [vmem:[%s24376_s3 + $0x14f0] sm:$0xff] }
 0x735   :  { %v17038_v0 = vcombine.high %v8365_v55, %v8369_v28  ;;  %v17037_v4 = vcombine.low %v8365_v55, %v8369_v28 }
 0x736   :  { %14730 = vmatpush1.bf16.msra.mxu0 %v16981_v2  ;;  %v8373_v2 = vld [vmem:[%s24376_s3 + $0x1510] sm:$0xff] }
 0x737   :  { %15058 = vmatpush1.bf16.msra.mxu1 %v16983_v30  ;;  %14731 = vmatprep.subr.bf16.mxu0 %v16990_v57  ;;  %v8377_v30 = vld [vmem:[%s24376_s3 + $0x1530] sm:$0xff]  ;;  %v8374_v57 = vld [vmem:[%s24376_s3 + $0x1518] sm:$0xff] }
 0x738   :  { %15059 = vmatprep.subr.bf16.mxu1 %v16992_v15  ;;  %v8378_v15 = vld [vmem:[%s24376_s3 + $0x1538] sm:$0xff]  ;;  %v17046_v12 = vcombine.high %v8373_v2, %v8377_v30  ;;  %v17045_v60 = vcombine.low %v8373_v2, %v8377_v30 }
 0x739   :  { %v17048_v5 = vcombine.high %v8374_v57, %v8378_v15  ;;  %v17047_v13 = vcombine.low %v8374_v57, %v8378_v15 }
 0x73a   :  { %14732 = vmatpush1.bf16.msra.mxu0 %v16989_v6  ;;  %v8381_v6 = vld [vmem:[%s24376_s3 + $0x1550] sm:$0xff] }
 0x73b   :  { %15060 = vmatpush1.bf16.msra.mxu1 %v16991_v36  ;;  %14733 = vmatprep.subr.bf16.mxu0 %v16998_v10  ;;  %v8385_v36 = vld [vmem:[%s24376_s3 + $0x1570] sm:$0xff]  ;;  %v8382_v10 = vld [vmem:[%s24376_s3 + $0x1558] sm:$0xff] }
 0x73c   :  { %15061 = vmatprep.subr.bf16.mxu1 %v17000_v22  ;;  %v8386_v22 = vld [vmem:[%s24376_s3 + $0x1578] sm:$0xff]  ;;  %v17054_v46 = vcombine.high %v8381_v6, %v8385_v36  ;;  %v17053_v25 = vcombine.low %v8381_v6, %v8385_v36 }
 0x73d   :  { %v17056_v14 = vcombine.high %v8382_v10, %v8386_v22  ;;  %v17055_v20 = vcombine.low %v8382_v10, %v8386_v22 }
 0x73e   :  { %14734 = vmatpush1.bf16.msra.mxu0 %v16997_v17  ;;  %v8389_v17 = vld [vmem:[%s24376_s3 + $0x1590] sm:$0xff] }
 0x73f   :  { %15062 = vmatpush1.bf16.msra.mxu1 %v16999_v21  ;;  %14735 = vmatprep.subr.bf16.mxu0 %v17006_v16  ;;  %v8393_v21 = vld [vmem:[%s24376_s3 + $0x15b0] sm:$0xff]  ;;  %v8390_v16 = vld [vmem:[%s24376_s3 + $0x1598] sm:$0xff] }
 0x740   :  { %15063 = vmatprep.subr.bf16.mxu1 %v17008_v18  ;;  %v8394_v18 = vld [vmem:[%s24376_s3 + $0x15b8] sm:$0xff]  ;;  %v17062_v33 = vcombine.high %v8389_v17, %v8393_v21  ;;  %v17061_v42 = vcombine.low %v8389_v17, %v8393_v21 }
 0x741   :  { %v17064_v31 = vcombine.high %v8390_v16, %v8394_v18  ;;  %v17063_v54 = vcombine.low %v8390_v16, %v8394_v18 }
 0x742   :  { %14736 = vmatpush1.bf16.msra.mxu0 %v17005_v35  ;;  %v8397_v35 = vld [vmem:[%s24376_s3 + $0x15d0] sm:$0xff] }
 0x743   :  { %15064 = vmatpush1.bf16.msra.mxu1 %v17007_v49  ;;  %14746 = vmatprep.subr.bf16.mxu0 %v17014_v47  ;;  %v8401_v49 = vld [vmem:[%s24376_s3 + $0x15f0] sm:$0xff]  ;;  %v8398_v47 = vld [vmem:[%s24376_s3 + $0x15d8] sm:$0xff] }
 0x744   :  { %15074 = vmatprep.subr.bf16.mxu1 %v17016_v40  ;;  %v8402_v40 = vld [vmem:[%s24376_s3 + $0x15f8] sm:$0xff] }
 0x745   :  { %14738 = vmatmul.mubr.bf16.vlgmr.msra.gmra.mrb[20].mxu0 %v22090_v3  ;;  %v17072_v50 = vcombine.high %v8398_v47, %v8402_v40 }
 0x746   :  { %15066 = vmatmul.mubr.bf16.vlgmr.msra.gmra.mrb[20].mxu1 %v22090_v3  ;;  %14747 = vmatpush1.bf16.msra.mxu0 %v17013_v43  ;;  %v8366_v3 = vld [vmem:[%s24376_s3 + $0x14d8] sm:$0xff]  ;;  %v17070_v43 = vcombine.high %v8397_v35, %v8401_v49 }
 0x747   :  { %14778 = vmatprep.mubr.bf16.mxu0 %v22100_v8  ;;  %15075 = vmatpush1.bf16.msra.mxu1 %v17015_v24  ;;  %v17040_v1 = vcombine.high %v8366_v3, %v8370_v51  ;;  %v17039_v29 = vcombine.low %v8366_v3, %v8370_v51  ;;  %v8409_v24 = vld [vmem:[%s24376_s3 + $0x1630] sm:$0xff] }
 0x748   :  { %15106 = vmatprep.mubr.bf16.mxu1 %v22100_v8  ;;  %14748 = vmatprep.subr.bf16.mxu0 %v17022_v37  ;;  %v17029_v8 = vcombine.low %v8357_v19, %v8361_v61  ;;  %v8406_v37 = vld [vmem:[%s24376_s3 + $0x1618] sm:$0xff]  ;;  %v17069_v61 = vcombine.low %v8397_v35, %v8401_v49  ;;  %v17078_v27 = vcombine.high %v8405_v58, %v8409_v24 }
 0x749   :  { %15076 = vmatprep.subr.bf16.mxu1 %v17024_v56  ;;  %v8410_v19 = vld [vmem:[%s24376_s3 + $0x1638] sm:$0xff]  ;;  %v17071_v56 = vcombine.low %v8398_v47, %v8402_v40  ;;  %v17077_v55 = vcombine.low %v8405_v58, %v8409_v24 }
 0x74a   :  { %14749 = vmatpush1.bf16.msra.mxu0 %v17021_v62  ;;  %v17080_v39 = vcombine.high %v8406_v37, %v8410_v19  ;;  %v8413_v62 = vld [vmem:[%s24376_s3 + $0x1650] sm:$0xff]  ;;  %v17079_v28 = vcombine.low %v8406_v37, %v8410_v19 }
 0x74b   :  { %15077 = vmatpush1.bf16.msra.mxu1 %v17023_v52  ;;  %14750 = vmatprep.subr.bf16.mxu0 %v17030_v59  ;;  %v8417_v52 = vld [vmem:[%s24376_s3 + $0x1670] sm:$0xff]  ;;  %v8414_v59 = vld [vmem:[%s24376_s3 + $0x1658] sm:$0xff] }
 0x74c   :  { %15078 = vmatprep.subr.bf16.mxu1 %v17032_v44  ;;  %v8418_v44 = vld [vmem:[%s24376_s3 + $0x1678] sm:$0xff]  ;;  %v17086_v3 = vcombine.high %v8413_v62, %v8417_v52  ;;  %v17085_v2 = vcombine.low %v8413_v62, %v8417_v52 }
 0x74d   :  { %v17088_v51 = vcombine.high %v8414_v59, %v8418_v44  ;;  %v17087_v30 = vcombine.low %v8414_v59, %v8418_v44 }
 0x74e   :  { %14751 = vmatpush1.bf16.msra.mxu0 %v17029_v8  ;;  %v8421_v8 = vld [vmem:[%s24376_s3 + $0x1690] sm:$0xff] }
 0x74f   :  { %15079 = vmatpush1.bf16.msra.mxu1 %v17031_v34  ;;  %14752 = vmatprep.subr.bf16.mxu0 %v17038_v0  ;;  %v8425_v34 = vld [vmem:[%s24376_s3 + $0x16b0] sm:$0xff]  ;;  %v8422_v0 = vld [vmem:[%s24376_s3 + $0x1698] sm:$0xff] }
 0x750   :  { %15080 = vmatprep.subr.bf16.mxu1 %v17040_v1  ;;  %v8426_v1 = vld [vmem:[%s24376_s3 + $0x16b8] sm:$0xff]  ;;  %v17094_v57 = vcombine.high %v8421_v8, %v8425_v34  ;;  %v17093_v6 = vcombine.low %v8421_v8, %v8425_v34 }
 0x751   :  { %v17096_v15 = vcombine.high %v8422_v0, %v8426_v1  ;;  %v17095_v36 = vcombine.low %v8422_v0, %v8426_v1 }
 0x752   :  { %14753 = vmatpush1.bf16.msra.mxu0 %v17037_v4  ;;  %v8429_v4 = vld [vmem:[%s24376_s3 + $0x16d0] sm:$0xff] }
 0x753   :  { %15081 = vmatpush1.bf16.msra.mxu1 %v17039_v29  ;;  %14754 = vmatprep.subr.bf16.mxu0 %v17046_v12  ;;  %v8433_v29 = vld [vmem:[%s24376_s3 + $0x16f0] sm:$0xff]  ;;  %v8430_v12 = vld [vmem:[%s24376_s3 + $0x16d8] sm:$0xff] }
 0x754   :  { %15082 = vmatprep.subr.bf16.mxu1 %v17048_v5  ;;  %v8434_v5 = vld [vmem:[%s24376_s3 + $0x16f8] sm:$0xff]  ;;  %v17102_v10 = vcombine.high %v8429_v4, %v8433_v29  ;;  %v17101_v17 = vcombine.low %v8429_v4, %v8433_v29 }
 0x755   :  { %v17104_v22 = vcombine.high %v8430_v12, %v8434_v5  ;;  %v17103_v21 = vcombine.low %v8430_v12, %v8434_v5  ;;  %v8482_v4 = vld [vmem:[%s24376_s3 + $0x1878] sm:$0xff]  ;;  %v8485_v5 = vld [vmem:[%s24376_s3 + $0x1890] sm:$0xff] }
 0x756   :  { %14755 = vmatpush1.bf16.msra.mxu0 %v17045_v60  ;;  %v8437_v60 = vld [vmem:[%s24376_s3 + $0x1710] sm:$0xff] }
 0x757   :  { %15083 = vmatpush1.bf16.msra.mxu1 %v17047_v13  ;;  %14756 = vmatprep.subr.bf16.mxu0 %v17054_v46  ;;  %v8441_v13 = vld [vmem:[%s24376_s3 + $0x1730] sm:$0xff]  ;;  %v8438_v46 = vld [vmem:[%s24376_s3 + $0x1718] sm:$0xff] }
 0x758   :  { %15084 = vmatprep.subr.bf16.mxu1 %v17056_v14  ;;  %v8442_v14 = vld [vmem:[%s24376_s3 + $0x1738] sm:$0xff]  ;;  %v17110_v16 = vcombine.high %v8437_v60, %v8441_v13  ;;  %v17109_v35 = vcombine.low %v8437_v60, %v8441_v13 }
 0x759   :  { %v17112_v18 = vcombine.high %v8438_v46, %v8442_v14  ;;  %v17111_v49 = vcombine.low %v8438_v46, %v8442_v14 }
 0x75a   :  { %14757 = vmatpush1.bf16.msra.mxu0 %v17053_v25  ;;  %v8445_v25 = vld [vmem:[%s24376_s3 + $0x1750] sm:$0xff] }
 0x75b   :  { %15085 = vmatpush1.bf16.msra.mxu1 %v17055_v20  ;;  %14758 = vmatprep.subr.bf16.mxu0 %v17062_v33  ;;  %v8449_v20 = vld [vmem:[%s24376_s3 + $0x1770] sm:$0xff]  ;;  %v8446_v33 = vld [vmem:[%s24376_s3 + $0x1758] sm:$0xff] }
 0x75c   :  { %15086 = vmatprep.subr.bf16.mxu1 %v17064_v31  ;;  %v8450_v31 = vld [vmem:[%s24376_s3 + $0x1778] sm:$0xff]  ;;  %v17118_v47 = vcombine.high %v8445_v25, %v8449_v20  ;;  %v17117_v58 = vcombine.low %v8445_v25, %v8449_v20 }
 0x75d   :  { %v17120_v40 = vcombine.high %v8446_v33, %v8450_v31  ;;  %v17119_v24 = vcombine.low %v8446_v33, %v8450_v31  ;;  %v8501_v33 = vld [vmem:[%s24376_s3 + $0x1910] sm:$0xff] }
 0x75e   :  { %14759 = vmatpush1.bf16.msra.mxu0 %v17061_v42  ;;  %v8453_v42 = vld [vmem:[%s24376_s3 + $0x1790] sm:$0xff] }
 0x75f   :  { %15087 = vmatpush1.bf16.msra.mxu1 %v17063_v54  ;;  %14760 = vmatprep.subr.bf16.mxu0 %v17070_v43  ;;  %v8457_v54 = vld [vmem:[%s24376_s3 + $0x17b0] sm:$0xff]  ;;  %v8454_v43 = vld [vmem:[%s24376_s3 + $0x1798] sm:$0xff] }
 0x760   :  { %15088 = vmatprep.subr.bf16.mxu1 %v17072_v50  ;;  %v8458_v50 = vld [vmem:[%s24376_s3 + $0x17b8] sm:$0xff]  ;;  %v17126_v37 = vcombine.high %v8453_v42, %v8457_v54  ;;  %v17125_v62 = vcombine.low %v8453_v42, %v8457_v54  ;;  %v8505_v31 = vld [vmem:[%s24376_s3 + $0x1930] sm:$0xff] }
 0x761   :  { %v17128_v19 = vcombine.high %v8454_v43, %v8458_v50  ;;  %v17127_v52 = vcombine.low %v8454_v43, %v8458_v50  ;;  %v17174_v42 = vcombine.high %v8501_v33, %v8505_v31  ;;  %v8509_v43 = vld [vmem:[%s24376_s3 + $0x1950] sm:$0xff] }
 0x762   :  { %14761 = vmatpush1.bf16.msra.mxu0 %v17069_v61  ;;  %v8461_v61 = vld [vmem:[%s24376_s3 + $0x17d0] sm:$0xff] }
 0x763   :  { %15089 = vmatpush1.bf16.msra.mxu1 %v17071_v56  ;;  %14762 = vmatprep.subr.bf16.mxu0 %v17078_v27  ;;  %v8465_v56 = vld [vmem:[%s24376_s3 + $0x17f0] sm:$0xff]  ;;  %v8462_v27 = vld [vmem:[%s24376_s3 + $0x17d8] sm:$0xff] }
 0x764   :  { %15090 = vmatprep.subr.bf16.mxu1 %v17080_v39  ;;  %v8466_v39 = vld [vmem:[%s24376_s3 + $0x17f8] sm:$0xff]  ;;  %v17134_v59 = vcombine.high %v8461_v61, %v8465_v56  ;;  %v17133_v8 = vcombine.low %v8461_v61, %v8465_v56  ;;  %v8513_v50 = vld [vmem:[%s24376_s3 + $0x1970] sm:$0xff] }
 0x765   :  { %v17136_v44 = vcombine.high %v8462_v27, %v8466_v39  ;;  %v17135_v34 = vcombine.low %v8462_v27, %v8466_v39  ;;  %v17182_v61 = vcombine.high %v8509_v43, %v8513_v50  ;;  %v8517_v27 = vld [vmem:[%s24376_s3 + $0x1990] sm:$0xff] }
 0x766   :  { %14763 = vmatpush1.bf16.msra.mxu0 %v17077_v55  ;;  %v8469_v55 = vld [vmem:[%s24376_s3 + $0x1810] sm:$0xff] }
 0x767   :  { %15091 = vmatpush1.bf16.msra.mxu1 %v17079_v28  ;;  %14764 = vmatprep.subr.bf16.mxu0 %v17086_v3  ;;  %v8473_v28 = vld [vmem:[%s24376_s3 + $0x1830] sm:$0xff]  ;;  %v8470_v3 = vld [vmem:[%s24376_s3 + $0x1818] sm:$0xff] }
 0x768   :  { %15092 = vmatprep.subr.bf16.mxu1 %v17088_v51  ;;  %v8474_v51 = vld [vmem:[%s24376_s3 + $0x1838] sm:$0xff]  ;;  %v17142_v0 = vcombine.high %v8469_v55, %v8473_v28  ;;  %v8521_v39 = vld [vmem:[%s24376_s3 + $0x19b0] sm:$0xff] }
 0x769   :  { %v17144_v1 = vcombine.high %v8470_v3, %v8474_v51  ;;  %v17143_v29 = vcombine.low %v8470_v3, %v8474_v51  ;;  %v8525_v3 = vld [vmem:[%s24376_s3 + $0x19d0] sm:$0xff] }
 0x76a   :  { %14765 = vmatpush1.bf16.msra.mxu0 %v17085_v2  ;;  %v8477_v2 = vld [vmem:[%s24376_s3 + $0x1850] sm:$0xff] }
 0x76b   :  { %15093 = vmatpush1.bf16.msra.mxu1 %v17087_v30  ;;  %14766 = vmatprep.subr.bf16.mxu0 %v17094_v57  ;;  %v8481_v30 = vld [vmem:[%s24376_s3 + $0x1870] sm:$0xff]  ;;  %v17141_v57 = vcombine.low %v8469_v55, %v8473_v28  ;;  %v17190_v55 = vcombine.high %v8517_v27, %v8521_v39 }
 0x76c   :  { %15094 = vmatprep.subr.bf16.mxu1 %v17096_v15  ;;  %v8478_v15 = vld [vmem:[%s24376_s3 + $0x1858] sm:$0xff]  ;;  %v17150_v12 = vcombine.high %v8477_v2, %v8481_v30  ;;  %v17149_v60 = vcombine.low %v8477_v2, %v8481_v30  ;;  %v8529_v51 = vld [vmem:[%s24376_s3 + $0x19f0] sm:$0xff] }
 0x76d   :  { %v17151_v13 = vcombine.low %v8478_v15, %v8482_v4  ;;  %v17198_v2 = vcombine.high %v8525_v3, %v8529_v51 }
 0x76e   :  { %14767 = vmatpush1.bf16.msra.mxu0 %v17093_v6  ;;  %v8489_v6 = vld [vmem:[%s24376_s3 + $0x18b0] sm:$0xff] }
 0x76f   :  { %15095 = vmatpush1.bf16.msra.mxu1 %v17095_v36  ;;  %14768 = vmatprep.subr.bf16.mxu0 %v17102_v10  ;;  %v17152_v36 = vcombine.high %v8478_v15, %v8482_v4  ;;  %v8486_v10 = vld [vmem:[%s24376_s3 + $0x1898] sm:$0xff]  ;;  %v17158_v46 = vcombine.high %v8485_v5, %v8489_v6  ;;  %v8537_v15 = vld [vmem:[%s24376_s3 + $0x1a30] sm:$0xff] }
 0x770   :  { %15096 = vmatprep.subr.bf16.mxu1 %v17104_v22  ;;  %v8490_v22 = vld [vmem:[%s24376_s3 + $0x18b8] sm:$0xff] }
 0x771   :  { %v17160_v14 = vcombine.high %v8486_v10, %v8490_v22  ;;  %v8534_v4 = vld [vmem:[%s24376_s3 + $0x1a18] sm:$0xff] }
 0x772   :  { %14769 = vmatpush1.bf16.msra.mxu0 %v17101_v17  ;;  %v8493_v17 = vld [vmem:[%s24376_s3 + $0x18d0] sm:$0xff] }
 0x773   :  { %15097 = vmatpush1.bf16.msra.mxu1 %v17103_v21  ;;  %14770 = vmatprep.subr.bf16.mxu0 %v17110_v16  ;;  %v8497_v21 = vld [vmem:[%s24376_s3 + $0x18f0] sm:$0xff]  ;;  %v8498_v16 = vld [vmem:[%s24376_s3 + $0x18f8] sm:$0xff] }
 0x774   :  { %15098 = vmatprep.subr.bf16.mxu1 %v17112_v18  ;;  %v17159_v18 = vcombine.low %v8486_v10, %v8490_v22  ;;  %v17166_v25 = vcombine.high %v8493_v17, %v8497_v21  ;;  %v8541_v10 = vld [vmem:[%s24376_s3 + $0x1a50] sm:$0xff] }
 0x775   :  { %v8545_v22 = vld [vmem:[%s24376_s3 + $0x1a70] sm:$0xff] }
 0x776   :  { %14771 = vmatpush1.bf16.msra.mxu0 %v17109_v35  ;;  %v8502_v35 = vld [vmem:[%s24376_s3 + $0x1918] sm:$0xff] }
 0x777   :  { %15099 = vmatpush1.bf16.msra.mxu1 %v17111_v49  ;;  %14772 = vmatprep.subr.bf16.mxu0 %v17118_v47  ;;  %v8506_v49 = vld [vmem:[%s24376_s3 + $0x1938] sm:$0xff]  ;;  %v17165_v47 = vcombine.low %v8493_v17, %v8497_v21  ;;  %v17214_v17 = vcombine.high %v8541_v10, %v8545_v22 }
 0x778   :  { %15100 = vmatprep.subr.bf16.mxu1 %v17120_v40  ;;  %v17176_v54 = vcombine.high %v8502_v35, %v8506_v49 }
 0x77a   :  { %14773 = vmatpush1.bf16.msra.mxu0 %v17117_v58  ;;  %v8510_v58 = vld [vmem:[%s24376_s3 + $0x1958] sm:$0xff] }
 0x77b   :  { %15101 = vmatpush1.bf16.msra.mxu1 %v17119_v24  ;;  %14774 = vmatprep.subr.bf16.mxu0 %v17126_v37  ;;  %v8514_v24 = vld [vmem:[%s24376_s3 + $0x1978] sm:$0xff]  ;;  %v17173_v37 = vcombine.low %v8501_v33, %v8505_v31 }
 0x77c   :  { %15102 = vmatprep.subr.bf16.mxu1 %v17128_v19  ;;  %v17175_v19 = vcombine.low %v8502_v35, %v8506_v49  ;;  %v17184_v56 = vcombine.high %v8510_v58, %v8514_v24  ;;  %v8557_v35 = vld [vmem:[%s24376_s3 + $0x1ad0] sm:$0xff] }
 0x77d   :  { %v8561_v49 = vld [vmem:[%s24376_s3 + $0x1af0] sm:$0xff] }
 0x77e   :  { %14775 = vmatpush1.bf16.msra.mxu0 %v17125_v62  ;;  %v8518_v62 = vld [vmem:[%s24376_s3 + $0x1998] sm:$0xff] }
 0x77f   :  { %15103 = vmatpush1.bf16.msra.mxu1 %v17127_v52  ;;  %14776 = vmatprep.subr.bf16.mxu0 %v17134_v59  ;;  %v8522_v52 = vld [vmem:[%s24376_s3 + $0x19b8] sm:$0xff]  ;;  %v17181_v59 = vcombine.low %v8509_v43, %v8513_v50  ;;  %v17230_v43 = vcombine.high %v8557_v35, %v8561_v49 }
 0x780   :  { %15104 = vmatprep.subr.bf16.mxu1 %v17136_v44  ;;  %v17183_v44 = vcombine.low %v8510_v58, %v8514_v24  ;;  %v17192_v28 = vcombine.high %v8518_v62, %v8522_v52  ;;  %v8565_v58 = vld [vmem:[%s24376_s3 + $0x1b10] sm:$0xff] }
 0x781   :  { %v8569_v24 = vld [vmem:[%s24376_s3 + $0x1b30] sm:$0xff] }
 0x782   :  { %14777 = vmatpush1.bf16.msra.mxu0 %v17133_v8  ;;  %v8526_v8 = vld [vmem:[%s24376_s3 + $0x19d8] sm:$0xff] }
 0x783   :  { %15105 = vmatpush1.bf16.msra.mxu1 %v17135_v34  ;;  %14787 = vmatprep.subr.bf16.mxu0 %v17142_v0  ;;  %v8530_v34 = vld [vmem:[%s24376_s3 + $0x19f8] sm:$0xff]  ;;  %v17189_v0 = vcombine.low %v8517_v27, %v8521_v39  ;;  %v17238_v27 = vcombine.high %v8565_v58, %v8569_v24 }
 0x784   :  { %15115 = vmatprep.subr.bf16.mxu1 %v17144_v1  ;;  %v17191_v1 = vcombine.low %v8518_v62, %v8522_v52  ;;  %v17200_v30 = vcombine.high %v8526_v8, %v8530_v34  ;;  %v8573_v62 = vld [vmem:[%s24376_s3 + $0x1b50] sm:$0xff] }
 0x785   :  { %14779 = vmatmul.mubr.bf16.vlgmr.msra.gmra.mrb[20].mxu0 %v22294_v45  ;;  %v8577_v52 = vld [vmem:[%s24376_s3 + $0x1b70] sm:$0xff] }
 0x786   :  { %15107 = vmatmul.mubr.bf16.vlgmr.msra.gmra.mrb[20].mxu1 %v22294_v45  ;;  %14788 = vmatpush1.bf16.msra.mxu0 %v17141_v57  ;;  %v8494_v45 = vld [vmem:[%s24376_s3 + $0x18d8] sm:$0xff]  ;;  %v8533_v57 = vld [vmem:[%s24376_s3 + $0x1a10] sm:$0xff] }
 0x787   :  { %14819 = vmatprep.mubr.bf16.mxu0 %v22304_v38  ;;  %15116 = vmatpush1.bf16.msra.mxu1 %v17143_v29  ;;  %v17168_v20 = vcombine.high %v8494_v45, %v8498_v16  ;;  %v17167_v40 = vcombine.low %v8494_v45, %v8498_v16  ;;  %v8538_v29 = vld [vmem:[%s24376_s3 + $0x1a38] sm:$0xff]  ;;  %v8549_v45 = vld [vmem:[%s24376_s3 + $0x1a90] sm:$0xff] }
 0x788   :  { %15147 = vmatprep.mubr.bf16.mxu1 %v22304_v38  ;;  %14789 = vmatprep.subr.bf16.mxu0 %v17150_v12  ;;  %v17157_v38 = vcombine.low %v8485_v5, %v8489_v6  ;;  %v17197_v12 = vcombine.low %v8525_v3, %v8529_v51  ;;  %v17199_v5 = vcombine.low %v8526_v8, %v8530_v34  ;;  %v8553_v16 = vld [vmem:[%s24376_s3 + $0x1ab0] sm:$0xff] }
 0x789   :  { %15117 = vmatprep.subr.bf16.mxu1 %v17152_v36  ;;  %v17206_v6 = vcombine.high %v8533_v57, %v8537_v15  ;;  %v17208_v36 = vcombine.high %v8534_v4, %v8538_v29  ;;  %v17222_v33 = vcombine.high %v8549_v45, %v8553_v16  ;;  %v17246_v3 = vcombine.high %v8573_v62, %v8577_v52  ;;  %v8581_v8 = vld [vmem:[%s24376_s3 + $0x1b90] sm:$0xff] }
 0x78a   :  { %14790 = vmatpush1.bf16.msra.mxu0 %v17149_v60  ;;  %v8542_v60 = vld [vmem:[%s24376_s3 + $0x1a58] sm:$0xff]  ;;  %v8585_v34 = vld [vmem:[%s24376_s3 + $0x1bb0] sm:$0xff] }
 0x78b   :  { %15118 = vmatpush1.bf16.msra.mxu1 %v17151_v13  ;;  %14791 = vmatprep.subr.bf16.mxu0 %v17158_v46  ;;  %v8546_v13 = vld [vmem:[%s24376_s3 + $0x1a78] sm:$0xff]  ;;  %v17205_v46 = vcombine.low %v8533_v57, %v8537_v15  ;;  %v17254_v57 = vcombine.high %v8581_v8, %v8585_v34 }
 0x78c   :  { %15119 = vmatprep.subr.bf16.mxu1 %v17160_v14  ;;  %v17207_v14 = vcombine.low %v8534_v4, %v8538_v29  ;;  %v17216_v21 = vcombine.high %v8542_v60, %v8546_v13  ;;  %v8589_v4 = vld [vmem:[%s24376_s3 + $0x1bd0] sm:$0xff] }
 0x78d   :  { %v8593_v29 = vld [vmem:[%s24376_s3 + $0x1bf0] sm:$0xff] }
 0x78e   :  { %14792 = vmatpush1.bf16.msra.mxu0 %v17157_v38  ;;  %v8550_v38 = vld [vmem:[%s24376_s3 + $0x1a98] sm:$0xff] }
 0x78f   :  { %15120 = vmatpush1.bf16.msra.mxu1 %v17159_v18  ;;  %14793 = vmatprep.subr.bf16.mxu0 %v17166_v25  ;;  %v8554_v18 = vld [vmem:[%s24376_s3 + $0x1ab8] sm:$0xff]  ;;  %v17213_v25 = vcombine.low %v8541_v10, %v8545_v22  ;;  %v17262_v10 = vcombine.high %v8589_v4, %v8593_v29 }
 0x790   :  { %15121 = vmatprep.subr.bf16.mxu1 %v17168_v20  ;;  %v17215_v20 = vcombine.low %v8542_v60, %v8546_v13  ;;  %v17224_v31 = vcombine.high %v8550_v38, %v8554_v18  ;;  %v8597_v60 = vld [vmem:[%s24376_s3 + $0x1c10] sm:$0xff] }
 0x791   :  { %v8601_v13 = vld [vmem:[%s24376_s3 + $0x1c30] sm:$0xff] }
 0x792   :  { %14794 = vmatpush1.bf16.msra.mxu0 %v17165_v47  ;;  %v8558_v47 = vld [vmem:[%s24376_s3 + $0x1ad8] sm:$0xff] }
 0x793   :  { %15122 = vmatpush1.bf16.msra.mxu1 %v17167_v40  ;;  %14795 = vmatprep.subr.bf16.mxu0 %v17174_v42  ;;  %v8562_v40 = vld [vmem:[%s24376_s3 + $0x1af8] sm:$0xff]  ;;  %v17221_v42 = vcombine.low %v8549_v45, %v8553_v16  ;;  %v17270_v45 = vcombine.high %v8597_v60, %v8601_v13 }
 0x794   :  { %15123 = vmatprep.subr.bf16.mxu1 %v17176_v54  ;;  %v17223_v54 = vcombine.low %v8550_v38, %v8554_v18  ;;  %v17232_v50 = vcombine.high %v8558_v47, %v8562_v40  ;;  %v8605_v38 = vld [vmem:[%s24376_s3 + $0x1c50] sm:$0xff] }
 0x795   :  { %v8609_v18 = vld [vmem:[%s24376_s3 + $0x1c70] sm:$0xff] }
 0x796   :  { %14796 = vmatpush1.bf16.msra.mxu0 %v17173_v37  ;;  %v8566_v37 = vld [vmem:[%s24376_s3 + $0x1b18] sm:$0xff] }
 0x797   :  { %15124 = vmatpush1.bf16.msra.mxu1 %v17175_v19  ;;  %14797 = vmatprep.subr.bf16.mxu0 %v17182_v61  ;;  %v8570_v19 = vld [vmem:[%s24376_s3 + $0x1b38] sm:$0xff]  ;;  %v17229_v61 = vcombine.low %v8557_v35, %v8561_v49  ;;  %v17278_v35 = vcombine.high %v8605_v38, %v8609_v18  ;;  %v8613_v49 = vld [vmem:[%s24376_s3 + $0x1c90] sm:$0xff] }
 0x798   :  { %15125 = vmatprep.subr.bf16.mxu1 %v17184_v56  ;;  %v17231_v56 = vcombine.low %v8558_v47, %v8562_v40  ;;  %v17240_v39 = vcombine.high %v8566_v37, %v8570_v19  ;;  %v8617_v47 = vld [vmem:[%s24376_s3 + $0x1cb0] sm:$0xff] }
 0x79a   :  { %14798 = vmatpush1.bf16.msra.mxu0 %v17181_v59  ;;  %v8574_v59 = vld [vmem:[%s24376_s3 + $0x1b58] sm:$0xff] }
 0x79b   :  { %15126 = vmatpush1.bf16.msra.mxu1 %v17183_v44  ;;  %14799 = vmatprep.subr.bf16.mxu0 %v17190_v55  ;;  %v8578_v44 = vld [vmem:[%s24376_s3 + $0x1b78] sm:$0xff]  ;;  %v17237_v55 = vcombine.low %v8565_v58, %v8569_v24  ;;  %v17286_v58 = vcombine.high %v8613_v49, %v8617_v47 }
 0x79c   :  { %15127 = vmatprep.subr.bf16.mxu1 %v17192_v28  ;;  %v17239_v28 = vcombine.low %v8566_v37, %v8570_v19  ;;  %v17248_v51 = vcombine.high %v8574_v59, %v8578_v44  ;;  %v8621_v37 = vld [vmem:[%s24376_s3 + $0x1cd0] sm:$0xff] }
 0x79d   :  { %v8625_v19 = vld [vmem:[%s24376_s3 + $0x1cf0] sm:$0xff] }
 0x79e   :  { %14800 = vmatpush1.bf16.msra.mxu0 %v17189_v0  ;;  %v8582_v0 = vld [vmem:[%s24376_s3 + $0x1b98] sm:$0xff] }
 0x79f   :  { %15128 = vmatpush1.bf16.msra.mxu1 %v17191_v1  ;;  %14801 = vmatprep.subr.bf16.mxu0 %v17198_v2  ;;  %v8586_v1 = vld [vmem:[%s24376_s3 + $0x1bb8] sm:$0xff]  ;;  %v17245_v2 = vcombine.low %v8573_v62, %v8577_v52  ;;  %v8629_v62 = vld [vmem:[%s24376_s3 + $0x1d10] sm:$0xff] }
 0x7a0   :  { %15129 = vmatprep.subr.bf16.mxu1 %v17200_v30  ;;  %v17247_v30 = vcombine.low %v8574_v59, %v8578_v44  ;;  %v17256_v15 = vcombine.high %v8582_v0, %v8586_v1  ;;  %v8633_v52 = vld [vmem:[%s24376_s3 + $0x1d30] sm:$0xff]  ;;  %v8630_v59 = vld [vmem:[%s24376_s3 + $0x1d18] sm:$0xff] }
 0x7a1   :  { %v8634_v44 = vld [vmem:[%s24376_s3 + $0x1d38] sm:$0xff] }
 0x7a2   :  { %14802 = vmatpush1.bf16.msra.mxu0 %v17197_v12  ;;  %v8590_v12 = vld [vmem:[%s24376_s3 + $0x1bd8] sm:$0xff] }
 0x7a3   :  { %15130 = vmatpush1.bf16.msra.mxu1 %v17199_v5  ;;  %14803 = vmatprep.subr.bf16.mxu0 %v17206_v6  ;;  %v8594_v5 = vld [vmem:[%s24376_s3 + $0x1bf8] sm:$0xff]  ;;  %v17253_v6 = vcombine.low %v8581_v8, %v8585_v34  ;;  %v8637_v8 = vld [vmem:[%s24376_s3 + $0x1d50] sm:$0xff] }
 0x7a4   :  { %15131 = vmatprep.subr.bf16.mxu1 %v17208_v36  ;;  %v17255_v36 = vcombine.low %v8582_v0, %v8586_v1  ;;  %v17264_v22 = vcombine.high %v8590_v12, %v8594_v5  ;;  %v8641_v34 = vld [vmem:[%s24376_s3 + $0x1d70] sm:$0xff]  ;;  %v8638_v0 = vld [vmem:[%s24376_s3 + $0x1d58] sm:$0xff] }
 0x7a5   :  { %v8642_v1 = vld [vmem:[%s24376_s3 + $0x1d78] sm:$0xff] }
 0x7a6   :  { %14804 = vmatpush1.bf16.msra.mxu0 %v17205_v46  ;;  %v8598_v46 = vld [vmem:[%s24376_s3 + $0x1c18] sm:$0xff] }
 0x7a7   :  { %15132 = vmatpush1.bf16.msra.mxu1 %v17207_v14  ;;  %14805 = vmatprep.subr.bf16.mxu0 %v17214_v17  ;;  %v8602_v14 = vld [vmem:[%s24376_s3 + $0x1c38] sm:$0xff]  ;;  %v17261_v17 = vcombine.low %v8589_v4, %v8593_v29  ;;  %v8645_v4 = vld [vmem:[%s24376_s3 + $0x1d90] sm:$0xff] }
 0x7a8   :  { %15133 = vmatprep.subr.bf16.mxu1 %v17216_v21  ;;  %v17263_v21 = vcombine.low %v8590_v12, %v8594_v5  ;;  %v17272_v16 = vcombine.high %v8598_v46, %v8602_v14  ;;  %v8649_v29 = vld [vmem:[%s24376_s3 + $0x1db0] sm:$0xff]  ;;  %v8646_v12 = vld [vmem:[%s24376_s3 + $0x1d98] sm:$0xff] }
 0x7a9   :  { %v8650_v5 = vld [vmem:[%s24376_s3 + $0x1db8] sm:$0xff] }
 0x7aa   :  { %14806 = vmatpush1.bf16.msra.mxu0 %v17213_v25  ;;  %v17269_v25 = vcombine.low %v8597_v60, %v8601_v13  ;;  %v8653_v60 = vld [vmem:[%s24376_s3 + $0x1dd0] sm:$0xff] }
 0x7ab   :  { %15134 = vmatpush1.bf16.msra.mxu1 %v17215_v20  ;;  %14807 = vmatprep.subr.bf16.mxu0 %v17222_v33  ;;  %v8606_v20 = vld [vmem:[%s24376_s3 + $0x1c58] sm:$0xff]  ;;  %v8657_v13 = vld [vmem:[%s24376_s3 + $0x1df0] sm:$0xff] }
 0x7ac   :  { %15135 = vmatprep.subr.bf16.mxu1 %v17224_v31  ;;  %v8610_v33 = vld [vmem:[%s24376_s3 + $0x1c78] sm:$0xff]  ;;  %v17271_v31 = vcombine.low %v8598_v46, %v8602_v14 }
 0x7ad   :  { %v17280_v40 = vcombine.high %v8606_v20, %v8610_v33  ;;  %v8654_v46 = vld [vmem:[%s24376_s3 + $0x1dd8] sm:$0xff] }
 0x7ae   :  { %14808 = vmatpush1.bf16.msra.mxu0 %v17221_v42  ;;  %v8614_v42 = vld [vmem:[%s24376_s3 + $0x1c98] sm:$0xff] }
 0x7af   :  { %15136 = vmatpush1.bf16.msra.mxu1 %v17223_v54  ;;  %14809 = vmatprep.subr.bf16.mxu0 %v17230_v43  ;;  %v8618_v54 = vld [vmem:[%s24376_s3 + $0x1cb8] sm:$0xff]  ;;  %v17277_v43 = vcombine.low %v8605_v38, %v8609_v18  ;;  %v8661_v38 = vld [vmem:[%s24376_s3 + $0x1e10] sm:$0xff] }
 0x7b0   :  { %15137 = vmatprep.subr.bf16.mxu1 %v17232_v50  ;;  %v17279_v50 = vcombine.low %v8606_v20, %v8610_v33  ;;  %v17288_v24 = vcombine.high %v8614_v42, %v8618_v54  ;;  %v8658_v14 = vld [vmem:[%s24376_s3 + $0x1df8] sm:$0xff]  ;;  %v8665_v18 = vld [vmem:[%s24376_s3 + $0x1e30] sm:$0xff]  ;;  %v17325_v33 = vcombine.low %v8653_v60, %v8657_v13 }
 0x7b1   :  { %v8666_v20 = vld [vmem:[%s24376_s3 + $0x1e38] sm:$0xff] }
 0x7b2   :  { %14810 = vmatpush1.bf16.msra.mxu0 %v17229_v61  ;;  %v8626_v61 = vld [vmem:[%s24376_s3 + $0x1cf8] sm:$0xff] }
 0x7b3   :  { %15138 = vmatpush1.bf16.msra.mxu1 %v17231_v56  ;;  %14811 = vmatprep.subr.bf16.mxu0 %v17238_v27  ;;  %v17287_v56 = vcombine.low %v8614_v42, %v8618_v54  ;;  %v17294_v27 = vcombine.high %v8621_v37, %v8625_v19  ;;  %v8670_v42 = vld [vmem:[%s24376_s3 + $0x1e58] sm:$0xff] }
 0x7b4   :  { %15139 = vmatprep.subr.bf16.mxu1 %v17240_v39  ;;  %v8674_v54 = vld [vmem:[%s24376_s3 + $0x1e78] sm:$0xff] }
 0x7b6   :  { %14812 = vmatpush1.bf16.msra.mxu0 %v17237_v55  ;;  %v17293_v55 = vcombine.low %v8621_v37, %v8625_v19  ;;  %v8677_v37 = vld [vmem:[%s24376_s3 + $0x1e90] sm:$0xff] }
 0x7b7   :  { %15140 = vmatpush1.bf16.msra.mxu1 %v17239_v28  ;;  %14813 = vmatprep.subr.bf16.mxu0 %v17246_v3  ;;  %v17302_v3 = vcombine.high %v8629_v62, %v8633_v52  ;;  %v8681_v19 = vld [vmem:[%s24376_s3 + $0x1eb0] sm:$0xff] }
 0x7b8   :  { %15141 = vmatprep.subr.bf16.mxu1 %v17248_v51  ;;  %v17304_v51 = vcombine.high %v8630_v59, %v8634_v44 }
 0x7ba   :  { %14814 = vmatpush1.bf16.msra.mxu0 %v17245_v2  ;;  %v17301_v2 = vcombine.low %v8629_v62, %v8633_v52  ;;  %v8685_v62 = vld [vmem:[%s24376_s3 + $0x1ed0] sm:$0xff] }
 0x7bb   :  { %15142 = vmatpush1.bf16.msra.mxu1 %v17247_v30  ;;  %14815 = vmatprep.subr.bf16.mxu0 %v17254_v57  ;;  %v17303_v30 = vcombine.low %v8630_v59, %v8634_v44  ;;  %v17310_v57 = vcombine.high %v8637_v8, %v8641_v34  ;;  %v8689_v52 = vld [vmem:[%s24376_s3 + $0x1ef0] sm:$0xff]  ;;  %v8686_v59 = vld [vmem:[%s24376_s3 + $0x1ed8] sm:$0xff] }
 0x7bc   :  { %15143 = vmatprep.subr.bf16.mxu1 %v17256_v15  ;;  %v17312_v15 = vcombine.high %v8638_v0, %v8642_v1  ;;  %v8690_v44 = vld [vmem:[%s24376_s3 + $0x1ef8] sm:$0xff] }
 0x7be   :  { %14816 = vmatpush1.bf16.msra.mxu0 %v17253_v6  ;;  %v17309_v6 = vcombine.low %v8637_v8, %v8641_v34  ;;  %v8693_v8 = vld [vmem:[%s24376_s3 + $0x1f10] sm:$0xff] }
 0x7bf   :  { %15144 = vmatpush1.bf16.msra.mxu1 %v17255_v36  ;;  %14817 = vmatprep.subr.bf16.mxu0 %v17262_v10  ;;  %v17311_v36 = vcombine.low %v8638_v0, %v8642_v1  ;;  %v17318_v10 = vcombine.high %v8645_v4, %v8649_v29  ;;  %v8697_v34 = vld [vmem:[%s24376_s3 + $0x1f30] sm:$0xff]  ;;  %v8694_v0 = vld [vmem:[%s24376_s3 + $0x1f18] sm:$0xff] }
 0x7c0   :  { %15145 = vmatprep.subr.bf16.mxu1 %v17264_v22  ;;  %v17320_v22 = vcombine.high %v8646_v12, %v8650_v5  ;;  %v8698_v1 = vld [vmem:[%s24376_s3 + $0x1f38] sm:$0xff] }
 0x7c2   :  { %14818 = vmatpush1.bf16.msra.mxu0 %v17261_v17  ;;  %v17317_v17 = vcombine.low %v8645_v4, %v8649_v29  ;;  %v8701_v4 = vld [vmem:[%s24376_s3 + $0x1f50] sm:$0xff] }
 0x7c3   :  { %15146 = vmatpush1.bf16.msra.mxu1 %v17263_v21  ;;  %14828 = vmatprep.subr.bf16.mxu0 %v17270_v45  ;;  %v17319_v21 = vcombine.low %v8646_v12, %v8650_v5  ;;  %v17326_v45 = vcombine.high %v8653_v60, %v8657_v13  ;;  %v8705_v29 = vld [vmem:[%s24376_s3 + $0x1f70] sm:$0xff]  ;;  %v8702_v12 = vld [vmem:[%s24376_s3 + $0x1f58] sm:$0xff] }
 0x7c4   :  { %15156 = vmatprep.subr.bf16.mxu1 %v17272_v16  ;;  %v17328_v16 = vcombine.high %v8654_v46, %v8658_v14  ;;  %v8706_v5 = vld [vmem:[%s24376_s3 + $0x1f78] sm:$0xff]  ;;  %v8709_v60 = vld [vmem:[%s24376_s3 + $0x1f90] sm:$0xff] }
 0x7c5   :  { %14820 = vmatmul.mubr.bf16.vlgmr.msra.gmra.mrb[20].mxu0 %v22498_v41  ;;  %v8713_v13 = vld [vmem:[%s24376_s3 + $0x1fb0] sm:$0xff] }
 0x7c6   :  { %15148 = vmatmul.mubr.bf16.vlgmr.msra.gmra.mrb[20].mxu1 %v22498_v41  ;;  %14829 = vmatpush1.bf16.msra.mxu0 %v17269_v25  ;;  %v8622_v41 = vld [vmem:[%s24376_s3 + $0x1cd8] sm:$0xff] }
 0x7c7   :  { %14860 = vmatprep.mubr.bf16.mxu0 %v22508_v63  ;;  %15157 = vmatpush1.bf16.msra.mxu1 %v17271_v31  ;;  %v17296_v39 = vcombine.high %v8622_v41, %v8626_v61  ;;  %v17295_v28 = vcombine.low %v8622_v41, %v8626_v61  ;;  %v8662_v25 = vld [vmem:[%s24376_s3 + $0x1e18] sm:$0xff]  ;;  %v17327_v31 = vcombine.low %v8654_v46, %v8658_v14 }
 0x7c8   :  { %15188 = vmatprep.mubr.bf16.mxu1 %v22508_v63  ;;  %14830 = vmatprep.subr.bf16.mxu0 %v17278_v35  ;;  %v17285_v63 = vcombine.low %v8613_v49, %v8617_v47  ;;  %v17334_v35 = vcombine.high %v8661_v38, %v8665_v18  ;;  %v17336_v49 = vcombine.high %v8662_v25, %v8666_v20  ;;  %v8669_v47 = vld [vmem:[%s24376_s3 + $0x1e50] sm:$0xff]  ;;  %v8678_v41 = vld [vmem:[%s24376_s3 + $0x1e98] sm:$0xff] }
 0x7c9   :  { %15158 = vmatprep.subr.bf16.mxu1 %v17280_v40  ;;  %v8673_v40 = vld [vmem:[%s24376_s3 + $0x1e70] sm:$0xff]  ;;  %v8682_v61 = vld [vmem:[%s24376_s3 + $0x1eb8] sm:$0xff] }
 0x7ca   :  { %14831 = vmatpush1.bf16.msra.mxu0 %v17277_v43  ;;  %v17333_v43 = vcombine.low %v8661_v38, %v8665_v18  ;;  %v8710_v46 = vld [vmem:[%s24376_s3 + $0x1f98] sm:$0xff]  ;;  %v8717_v38 = vld [vmem:[%s24376_s3 + $0x1fd0] sm:$0xff] }
 0x7cb   :  { %15159 = vmatpush1.bf16.msra.mxu1 %v17279_v50  ;;  %14832 = vmatprep.subr.bf16.mxu0 %v17286_v58  ;;  %v17335_v50 = vcombine.low %v8662_v25, %v8666_v20  ;;  %v17342_v58 = vcombine.high %v8669_v47, %v8673_v40  ;;  %v8714_v14 = vld [vmem:[%s24376_s3 + $0x1fb8] sm:$0xff]  ;;  %v8721_v18 = vld [vmem:[%s24376_s3 + $0x1ff0] sm:$0xff] }
 0x7cc   :  { %15160 = vmatprep.subr.bf16.mxu1 %v17288_v24  ;;  %v17344_v24 = vcombine.high %v8670_v42, %v8674_v54  ;;  %v8718_v25 = vld [vmem:[%s24376_s3 + $0x1fd8] sm:$0xff] }
 0x7cd   :  { %v8722_v20 = vld [vmem:[%s24376_s3 + $0x1ff8] sm:$0xff] }
 0x7ce   :  { %14833 = vmatpush1.bf16.msra.mxu0 %v17285_v63  ;;  %v17341_v63 = vcombine.low %v8669_v47, %v8673_v40  ;;  %v17389_v47 = vcombine.low %v8717_v38, %v8721_v18  ;;  %v17391_v40 = vcombine.low %v8718_v25, %v8722_v20 }
 0x7cf   :  { %15161 = vmatpush1.bf16.msra.mxu1 %v17287_v56  ;;  %14834 = vmatprep.subr.bf16.mxu0 %v17294_v27  ;;  %v17343_v56 = vcombine.low %v8670_v42, %v8674_v54  ;;  %v17350_v27 = vcombine.high %v8677_v37, %v8681_v19  ;;  %v17640_v42 = vld [vmem:[%s24377_s4] sm:$0xff]  ;;  %s17692_s4 = smov [#allocation2]  }
 0x7d0   :  { %15162 = vmatprep.subr.bf16.mxu1 %v17296_v39  ;;  %v17352_v39 = vcombine.high %v8678_v41, %v8682_v61  ;;  %v8744_v54 = vrot.slane %v17640_v42, %v20058_v53 }
 0x7d2   :  { %14835 = vmatpush1.bf16.msra.mxu0 %v17293_v55  ;;  %v17349_v55 = vcombine.low %v8677_v37, %v8681_v19 }
 0x7d3   :  { %15163 = vmatpush1.bf16.msra.mxu1 %v17295_v28  ;;  %14836 = vmatprep.subr.bf16.mxu0 %v17302_v3  ;;  %v17351_v28 = vcombine.low %v8678_v41, %v8682_v61  ;;  %v17358_v3 = vcombine.high %v8685_v62, %v8689_v52 }
 0x7d4   :  { %15164 = vmatprep.subr.bf16.mxu1 %v17304_v51  ;;  %v17360_v51 = vcombine.high %v8686_v59, %v8690_v44 }
 0x7d6   :  { %14837 = vmatpush1.bf16.msra.mxu0 %v17301_v2  ;;  %v17357_v2 = vcombine.low %v8685_v62, %v8689_v52 }
 0x7d7   :  { %15165 = vmatpush1.bf16.msra.mxu1 %v17303_v30  ;;  %14838 = vmatprep.subr.bf16.mxu0 %v17310_v57  ;;  %v17359_v30 = vcombine.low %v8686_v59, %v8690_v44  ;;  %v17366_v57 = vcombine.high %v8693_v8, %v8697_v34 }
 0x7d8   :  { %15166 = vmatprep.subr.bf16.mxu1 %v17312_v15  ;;  %v17368_v15 = vcombine.high %v8694_v0, %v8698_v1 }
 0x7da   :  { %14839 = vmatpush1.bf16.msra.mxu0 %v17309_v6  ;;  %v17365_v6 = vcombine.low %v8693_v8, %v8697_v34 }
 0x7db   :  { %15167 = vmatpush1.bf16.msra.mxu1 %v17311_v36  ;;  %14840 = vmatprep.subr.bf16.mxu0 %v17318_v10  ;;  %v17367_v36 = vcombine.low %v8694_v0, %v8698_v1  ;;  %v17374_v10 = vcombine.high %v8701_v4, %v8705_v29 }
 0x7dc   :  { %15168 = vmatprep.subr.bf16.mxu1 %v17320_v22  ;;  %v17376_v22 = vcombine.high %v8702_v12, %v8706_v5 }
 0x7de   :  { %14841 = vmatpush1.bf16.msra.mxu0 %v17317_v17  ;;  %v17373_v17 = vcombine.low %v8701_v4, %v8705_v29 }
 0x7df   :  { %15169 = vmatpush1.bf16.msra.mxu1 %v17319_v21  ;;  %14842 = vmatprep.subr.bf16.mxu0 %v17326_v45  ;;  %v17375_v21 = vcombine.low %v8702_v12, %v8706_v5  ;;  %v17382_v45 = vcombine.high %v8709_v60, %v8713_v13 }
 0x7e0   :  { %15170 = vmatprep.subr.bf16.mxu1 %v17328_v16  ;;  %v17384_v16 = vcombine.high %v8710_v46, %v8714_v14 }
 0x7e2   :  { %14843 = vmatpush1.bf16.msra.mxu0 %v17325_v33  ;;  %v17381_v33 = vcombine.low %v8709_v60, %v8713_v13 }
 0x7e3   :  { %15171 = vmatpush1.bf16.msra.mxu1 %v17327_v31  ;;  %14844 = vmatprep.subr.bf16.mxu0 %v17334_v35  ;;  %v17383_v31 = vcombine.low %v8710_v46, %v8714_v14  ;;  %v17390_v35 = vcombine.high %v8717_v38, %v8721_v18 }
 0x7e4   :  { %15172 = vmatprep.subr.bf16.mxu1 %v17336_v49  ;;  %v17392_v49 = vcombine.high %v8718_v25, %v8722_v20 }
 0x7e6   :  { %14845 = vmatpush1.bf16.msra.mxu0 %v17333_v43  ;;  %v8752_v43 = vrot.slane %v17640_v42, %v20067_v23 }
 0x7e7   :  { %15173 = vmatpush1.bf16.msra.mxu1 %v17335_v50  ;;  %14846 = vmatprep.subr.bf16.mxu0 %v17342_v58  ;;  %v8748_v50 = vrot.slane %v17640_v42, %v20070_v26  ;;  %v8756_v58 = vrot.slane %v17640_v42, %v20073_v32 }
 0x7e8   :  { %15174 = vmatprep.subr.bf16.mxu1 %v17344_v24 }
 0x7ea   :  { %14847 = vmatpush1.bf16.msra.mxu0 %v17341_v63 }
 0x7eb   :  { %15175 = vmatpush1.bf16.msra.mxu1 %v17343_v56  ;;  %14848 = vmatprep.subr.bf16.mxu0 %v17350_v27 }
 0x7ec   :  { %15176 = vmatprep.subr.bf16.mxu1 %v17352_v39 }
 0x7ee   :  { %14849 = vmatpush1.bf16.msra.mxu0 %v17349_v55 }
 0x7ef   :  { %15177 = vmatpush1.bf16.msra.mxu1 %v17351_v28  ;;  %14850 = vmatprep.subr.bf16.mxu0 %v17358_v3 }
 0x7f0   :  { %15178 = vmatprep.subr.bf16.mxu1 %v17360_v51 }
 0x7f2   :  { %14851 = vmatpush1.bf16.msra.mxu0 %v17357_v2 }
 0x7f3   :  { %15179 = vmatpush1.bf16.msra.mxu1 %v17359_v30  ;;  %14852 = vmatprep.subr.bf16.mxu0 %v17366_v57 }
 0x7f4   :  { %15180 = vmatprep.subr.bf16.mxu1 %v17368_v15 }
 0x7f6   :  { %14853 = vmatpush1.bf16.msra.mxu0 %v17365_v6 }
 0x7f7   :  { %15181 = vmatpush1.bf16.msra.mxu1 %v17367_v36  ;;  %14854 = vmatprep.subr.bf16.mxu0 %v17374_v10 }
 0x7f8   :  { %15182 = vmatprep.subr.bf16.mxu1 %v17376_v22 }
 0x7fa   :  { %14855 = vmatpush1.bf16.msra.mxu0 %v17373_v17 }
 0x7fb   :  { %15183 = vmatpush1.bf16.msra.mxu1 %v17375_v21  ;;  %14856 = vmatprep.subr.bf16.mxu0 %v17382_v45 }
 0x7fc   :  { %15184 = vmatprep.subr.bf16.mxu1 %v17384_v16 }
 0x7fe   :  { %14857 = vmatpush1.bf16.msra.mxu0 %v17381_v33 }
 0x7ff   :  { %15185 = vmatpush1.bf16.msra.mxu1 %v17383_v31  ;;  %14858 = vmatprep.subr.bf16.mxu0 %v17390_v35 }
 0x800   :  { %15186 = vmatprep.subr.bf16.mxu1 %v17392_v49 }
 0x802   :  { %14859 = vmatpush1.bf16.msra.mxu0 %v17389_v47 }
 0x803   :  { %15187 = vmatpush1.bf16.msra.mxu1 %v17391_v40 }
 0x805   :  { %14861 = vmatmul.mubr.bf16.vlgmr.msra.gmra.mrb[20].mxu0 %v22702_v11 }
 0x806   :  { %15189 = vmatmul.mubr.bf16.vlgmr.msra.gmra.mrb[20].mxu1 %v22702_v11  ;;  %v17641_v11 = vld [vmem:[%s24378_s5] sm:$0xff]  ;;  %s15313_s5 = sshll.u32 %s17692_s4, 4  ;;  %s15314_s5 = int_to_ptr.vmem [resolvable:$true] %s15313_s5 }
 0x807   :  { %v15258_v61 = vrot.slane %v17641_v11, %v20058_v53  ;;  %v15262_v62 = vrot.slane %v17641_v11, %v20070_v26  ;;  %v15266_v55 = vrot.slane %v17641_v11, %v20067_v23  ;;  %v15270_v5 = vrot.slane %v17641_v11, %v20073_v32  ;;  %s17642_s12 = scalar_lea.vmem %s15314_s5, 512  ;;  %p17647_p1 = scmp.lt.s32.totalorder %s15314_s5, %s15314_s5 }
 0x808   :  { %p17643_p0 = scmp.ne.s32.totalorder %s15314_s5, %s17642_s12  ;;  %p17648_p2 = scmp.lt.s32.totalorder %s17642_s12, %s17642_s12 }
 0x80a   :  { %p17649_p3 = por %p17648_p2, %p17647_p1 }
 0x80c   :  { %p17650_p4 = pnand %p17649_p3, %p17643_p0 }
 0x8d8   :  { %v14862_v24 = vpop.f32.mrb[20].mxu0 }
 0x8d9   :  { %v17414_v37 = vadd.f32 %v14862_v24, %v8744_v54  ;;  %v15190_v19 = vpop.f32.mrb[20].mxu1  ;;  %v14864_v41 = vpop.f32.mrb[21].mxu0 }
 0x8da   :  { %v17416_v63 = vadd.f32 %v15190_v19, %v8752_v43  ;;  %v17415_v56 = vadd.f32 %v14864_v41, %v8748_v50  ;;  %v15192_v27 = vpop.f32.mrb[21].mxu1  ;;  %v14866_v39 = vpop.f32.mrb[22].mxu0 }
 0x8db   :  { %vm15201_vm4 = vcmp.gt.f32.partialorder %v17414_v37, 0.0  ;;  %v17417_v52 = vadd.f32 %v15192_v27, %v8756_v58  ;;  %v15194_v59 = vpop.f32.mrb[22].mxu1  ;;  %v14867_v44 = vpop.f32.mrb[23].mxu0 }
 0x8dc   :  { %v15209_v28 = vsel %vm15201_vm4, 1.0, %v17690_v7  ;;  %v15217_v3 = vsel %vm15201_vm4, 1, %v17691_v9  ;;  %vm15203_vm5 = vcmp.gt.f32.partialorder %v17416_v63, 0.0  ;;  %vm15202_vm6 = vcmp.gt.f32.partialorder %v17415_v56, 0.0  ;;  %v15195_v51 = vpop.f32.mrb[23].mxu1 }
 0x8dd   :  { %v15233_v53 = vmul.f32 %v17414_v37, %v15209_v28  ;;  %v15211_v8 = vsel %vm15203_vm5, 1.0, %v17690_v7  ;;  %v15219_v34 = vsel %vm15203_vm5, 1, %v17691_v9  ;;  %v15210_v0 = vsel %vm15202_vm6, 1.0, %v17690_v7 }
 0x8de   :  { %v15235_v26 = vmul.f32 %v17416_v63, %v15211_v8  ;;  %v15218_v1 = vsel %vm15202_vm6, 1, %v17691_v9  ;;  %v15234_v2 = vmul.f32 %v17415_v56, %v15210_v0  ;;  %vm15204_vm7 = vcmp.gt.f32.partialorder %v17417_v52, 0.0 }
 0x8df   :  { %v15283_v23 = vmul.f32 %v15258_v61, %v15233_v53  ;;  %v15224_v30 = vpack.c.b16 %v15218_v1, %v15217_v3  ;;  %v15212_v57 = vsel %vm15204_vm7, 1.0, %v17690_v7  ;;  %v15220_v15 = vsel %vm15204_vm7, 1, %v17691_v9 }
 0x8e0   :  { %v15284_v4 = vmul.f32 %v15262_v62, %v15234_v2  ;;  %v15225_v29 = vpack.c.b16 %v15220_v15, %v15219_v34  ;;  %v15236_v12 = vmul.f32 %v17417_v52, %v15212_v57  ;;  %v15285_v10 = vmul.f32 %v15266_v55, %v15235_v26 }
 0x8e1   :  { %v15290_v6 = vadd.f32 %v23472_v48, %v15283_v23 }
 0x8e2   :  { %v15226_v36 = vpack.c.b8 %v15225_v29, %v15224_v30  ;;  %v15286_v60 = vmul.f32 %v15270_v5, %v15236_v12 }
 0x8e3   :  { %v15291_v22 = vadd.f32 %v15290_v6, %v15284_v4 }
 0x8e4   :  { %15228 = vst [vmem:[#allocation4 + $0x8] sm:$0xff] %v15226_v36 }
 0x8e5   :  { %v15292_v13 = vadd.f32 %v15291_v22, %v15285_v10 }
 0x8e7   :  { %v15293_v46 = vadd.f32 %v15292_v13, %v15286_v60 }
 0x8e9   :  { %15294 = vadd.xlane.f32.xlu0 %v15293_v46 }
 0x8ea   :  { %17653 = shalt.err (!%p17650_p4)
}
 0x8eb   :  { %s17654_s15 = scalar_lea.hbm %s24381_s8, 512 }
 0x8ec   :  { %p17655_p5 = scmp.ne.s32.totalorder %s24381_s8, %s17654_s15  ;;  %p17658_p6 = scmp.lt.u32.totalorder %s17654_s15, %s24381_s8 }
 0x8ee   :  { %p17660_p7 = pnand %p17658_p6, %p17655_p5 }
 0x8f0   :  { %17663 = shalt.err (!%p17660_p7)
}
 0x8f1   :  { %15316 = dma.vmem_to_hbm [thread:$0]  %s15314_s5, 512, %s24381_s8, [#allocation3]  }
 0x8f2   :  { %s17664_s0 = scalar_lea.vmem %s15324_s11, 256  ;;  %p17669_p9 = scmp.lt.s32.totalorder %s15324_s11, %s15324_s11 }
 0x8f3   :  { %p17665_p8 = scmp.ne.s32.totalorder %s15324_s11, %s17664_s0  ;;  %p17670_p10 = scmp.lt.s32.totalorder %s17664_s0, %s17664_s0 }
 0x8f5   :  { %p17671_p11 = por %p17670_p10, %p17669_p9 }
 0x8f7   :  { %p17672_p12 = pnand %p17671_p11, %p17665_p8 }
 0x8f9   :  { %17675 = shalt.err (!%p17672_p12)
}
 0x8fa   :  { %s17676_s24 = scalar_lea.hbm %s24382_s9, 256 }
 0x8fb   :  { %p17677_p13 = scmp.ne.s32.totalorder %s24382_s9, %s17676_s24  ;;  %p17680_p0 = scmp.lt.u32.totalorder %s17676_s24, %s24382_s9 }
 0x8fd   :  { %p17682_p1 = pnand %p17680_p0, %p17677_p13 }
 0x8ff   :  { %17685 = shalt.err (!%p17682_p1)
}
 0x900   :  { %15326 = dma.vmem_to_hbm [thread:$0]  %s15324_s11, 256, %s24382_s9, [#allocation5]   ;;  %v17393_v7 = vld [vmem:[%s24379_s6] ss:$0 sm:$0xff] }
 0x976   :  { %v15295_v9 = vpop.xlane.xlu0 %15294 }
 0x977   :  { %v15303_v32 = vadd.f32 %v17393_v7, %v15295_v9 }
 0x979   :  { %15304 = vst [vmem:[%s24380_s7] sm:$0xff] %v15303_v32 }
 0x97a   :  { %17686 = dma.done.wait [#allocation3], 512  }
 0x97b   :  { %17687 = vsyncadd [#allocation3], 4294966784 }
 0x97c   :  { %17688 = dma.done.wait [#allocation5], 256  }
 0x97d   :  { %17689 = vsyncadd [#allocation5], 4294967040 }
 0x97e   :  { %15335 = vsyncpa [#allocation3], 1 }
 0x97f   :  { %15336 = vsyncpa [#allocation5], 1 }

</bundles_post_ra>
